<compile_context>
chip_gen: v6e
topology: v6e:2x2x1
jax: 0.10.0
libtpu: 0.0.40
codegen_flags: <defaults>
</compile_context>

<pallas_src>
import functools
import math

import jax
import jax.numpy as jnp
from jax import lax
from jax.experimental import pallas as pl
from jax.experimental.pallas import tpu as pltpu

RADIX, CARD = 2, 2


def _round_up(x, m):
    return ((x + m - 1) // m) * m


def _pad_k(k):
    # K <= 128 stays a single 128 tile; otherwise pad to a 256 multiple so the
    # MXU sees 256-wide K tiles (fewer grid steps on v6e/v7x).
    return 128 if k <= 128 else _round_up(k, 256)


# ----------------------------------------------------------------------------
# Pallas kernel 1: grouped tiled MXU matmul, lane-dense (M, G*N) output
# ----------------------------------------------------------------------------
def _mm_kernel_k1(a_ref, b_ref, o_ref):
    # Single K step: write straight to the output block.
    o_ref[...] = jnp.dot(a_ref[0], b_ref[0],
                         preferred_element_type=jnp.float32).astype(o_ref.dtype)


def _mm_kernel(a_ref, b_ref, o_ref, acc_ref):
    @pl.when(pl.program_id(3) == 0)
    def _():
        acc_ref[...] = jnp.zeros_like(acc_ref)

    acc_ref[...] += jnp.dot(a_ref[0], b_ref[0],
                            preferred_element_type=jnp.float32)

    @pl.when(pl.program_id(3) == pl.num_programs(3) - 1)
    def _():
        o_ref[...] = acc_ref[...].astype(o_ref.dtype)


def grouped_matmul(a, b_packed, n_out):
    """a: (G, M, K) float; b_packed: (G, Kp, Np) bf16 pre-padded/packed.

    Returns (M, n_out) bf16, written lane-dense as (M, G*Np) by the kernel
    (group-major output channels, matching PyTorch grouped convs).
    """
    G, M, K = a.shape
    _, Kp, Np = b_packed.shape
    if G > 1:
        assert G * Np == n_out, "grouped lane-dense output needs cog % 128 == 0"

    tm = min(256, _round_up(M, 16))          # bf16 packs 16 rows per vreg
    Mp = _round_up(M, tm)
    tk = 256 if (Kp % 256 == 0 and Kp >= 256) else 128
    tn = 256 if (Np % 256 == 0 and Np >= 256) else 128
    if G * (Mp // tm) * (Np // tn) == 1 and Np >= 256:
        tn = 128                              # expose >=2 parallel steps (v7x)
    npg = Np // tn
    nk = Kp // tk

    if a.dtype != jnp.bfloat16:
        a = a.astype(jnp.bfloat16)
    if (Mp, Kp) != (M, K):
        a = jnp.pad(a, ((0, 0), (0, Mp - M), (0, Kp - K)))

    out_shape = jax.ShapeDtypeStruct((Mp, G * Np), jnp.bfloat16)
    if nk == 1:
        out = pl.pallas_call(
            _mm_kernel_k1,
            out_shape=out_shape,
            grid_spec=pltpu.PrefetchScalarGridSpec(
                num_scalar_prefetch=0,
                grid=(G, Mp // tm, Np // tn),
                in_specs=[pl.BlockSpec((1, tm, tk), lambda g, i, j: (g, i, 0)),
                          pl.BlockSpec((1, tk, tn), lambda g, i, j: (g, 0, j))],
                out_specs=pl.BlockSpec((tm, tn),
                                       lambda g, i, j: (i, g * npg + j))),
            compiler_params=pltpu.CompilerParams(
                dimension_semantics=("parallel", "parallel", "parallel")),
        )(a, b_packed)
    else:
        out = pl.pallas_call(
            _mm_kernel,
            out_shape=out_shape,
            grid_spec=pltpu.PrefetchScalarGridSpec(
                num_scalar_prefetch=0,
                grid=(G, Mp // tm, Np // tn, nk),
                in_specs=[pl.BlockSpec((1, tm, tk),
                                       lambda g, i, j, k: (g, i, k)),
                          pl.BlockSpec((1, tk, tn),
                                       lambda g, i, j, k: (g, k, j))],
                out_specs=pl.BlockSpec((tm, tn),
                                       lambda g, i, j, k: (i, g * npg + j)),
                scratch_shapes=[pltpu.VMEM((tm, tn), jnp.float32)]),
            compiler_params=pltpu.CompilerParams(
                dimension_semantics=("parallel", "parallel", "parallel",
                                     "arbitrary")),
        )(a, b_packed)
    return out[:M, :n_out]


# ----------------------------------------------------------------------------
# Pallas kernel 2: fused bottleneck epilogue  relu(x*sx+bx + r*sr+br) -> bf16
# ----------------------------------------------------------------------------
def _bn_add_relu_kernel(x_ref, r_ref, sx_ref, bx_ref, sr_ref, br_ref, o_ref):
    y = (x_ref[...].astype(jnp.float32) * sx_ref[...] + bx_ref[...]
         + r_ref[...].astype(jnp.float32) * sr_ref[...] + br_ref[...])
    o_ref[...] = jnp.maximum(y, 0.0).astype(o_ref.dtype)


def _pad2d(x, Mp, Cp):
    M, C = x.shape
    return x if (Mp, Cp) == (M, C) else jnp.pad(x, ((0, Mp - M), (0, Cp - C)))


def _pad_row(v, Cp):
    C = v.shape[0]
    return (v if Cp == C else jnp.pad(v, (0, Cp - C))).reshape(1, Cp)


def bn_add_relu_2d(x2d, r2d, sx, bx, sr, br):
    M, C = x2d.shape
    Cp = _round_up(C, 128)
    tm = min(512, _round_up(M, 16))
    Mp = _round_up(M, tm)
    x2d = x2d.astype(jnp.bfloat16)
    r2d = r2d.astype(jnp.bfloat16)
    out = pl.pallas_call(
        _bn_add_relu_kernel,
        out_shape=jax.ShapeDtypeStruct((Mp, Cp), jnp.bfloat16),
        grid=(Mp // tm,),
        in_specs=[pl.BlockSpec((tm, Cp), lambda i: (i, 0)),
                  pl.BlockSpec((tm, Cp), lambda i: (i, 0)),
                  pl.BlockSpec((1, Cp), lambda i: (0, 0)),
                  pl.BlockSpec((1, Cp), lambda i: (0, 0)),
                  pl.BlockSpec((1, Cp), lambda i: (0, 0)),
                  pl.BlockSpec((1, Cp), lambda i: (0, 0))],
        out_specs=pl.BlockSpec((tm, Cp), lambda i: (i, 0)),
        compiler_params=pltpu.CompilerParams(
            dimension_semantics=("parallel",)),
    )(_pad2d(x2d, Mp, Cp), _pad2d(r2d, Mp, Cp),
      _pad_row(sx, Cp), _pad_row(bx, Cp), _pad_row(sr, Cp), _pad_row(br, Cp))
    return out if (Mp, Cp) == (M, C) else out[:M, :C]


# ----------------------------------------------------------------------------
# BatchNorm (training-mode batch stats, f32) helpers — XLA glue, fuses into the
# operand preparation of the consuming Pallas matmul.
# ----------------------------------------------------------------------------
def bn_scale_bias(x2d, gamma, beta, eps=1e-5):
    x32 = x2d.astype(jnp.float32)
    mean = jnp.mean(x32, axis=0)
    var = jnp.mean(jnp.square(x32 - mean), axis=0)   # biased var (PyTorch train)
    scale = gamma * lax.rsqrt(var + eps)
    bias = beta - mean * scale
    return scale, bias


def bn_relu(x, gamma, beta):
    N, H, W, C = x.shape
    x2d = x.reshape(N * H * W, C)
    s, b = bn_scale_bias(x2d, gamma, beta)
    y = jnp.maximum(x2d.astype(jnp.float32) * s + b, 0.0)
    return y.reshape(N, H, W, C)


# ----------------------------------------------------------------------------
# Convolution = im2col built per group (glue) + grouped Pallas matmul
# ----------------------------------------------------------------------------
def _im2col_grouped(x, kh, kw, stride, pad, groups):
    N, H, W, C = x.shape
    cing = C // groups
    Ho = (H + 2 * pad - kh) // stride + 1
    Wo = (W + 2 * pad - kw) // stride + 1
    xp = jnp.pad(x, ((0, 0), (pad, pad), (pad, pad), (0, 0))) if pad else x
    per_group = []
    for g in range(groups):
        xg = xp[..., g * cing:(g + 1) * cing]
        cols = [xg[:, i:i + stride * (Ho - 1) + 1:stride,
                   j:j + stride * (Wo - 1) + 1:stride, :]
                for i in range(kh) for j in range(kw)]
        per_group.append(
            jnp.concatenate(cols, axis=-1).reshape(N * Ho * Wo, kh * kw * cing))
    return jnp.stack(per_group, axis=0), Ho, Wo


def conv2d(x, w_packed, cout, kh=1, kw=1, stride=1, padding=0, groups=1):
    """x: NHWC, w_packed: pre-packed (G, Kp, Np) bf16, no bias."""
    x = x.astype(jnp.bfloat16)
    N, H, W, Cin = x.shape
    if kh == 1 and kw == 1 and stride == 1 and padding == 0:
        Ho, Wo = H, W
        a2d = x.reshape(N * H * W, Cin)
        if groups == 1:
            a = a2d[None]
        else:
            cing = Cin // groups
            a = jnp.stack([a2d[:, g * cing:(g + 1) * cing]
                           for g in range(groups)], axis=0)
    else:
        a, Ho, Wo = _im2col_grouped(x, kh, kw, stride, padding, groups)
    out = grouped_matmul(a, w_packed, cout)           # (M, cout) bf16
    return out.reshape(N, Ho, Wo, cout)


def pack_conv_weight(w, groups=1):
    """PyTorch (Cout, Cin/g, kh, kw) f32 -> padded (G, Kp, Np) bf16, done once."""
    cout, cing, kh, kw = w.shape
    cog = cout // groups
    K = kh * kw * cing
    wm = jnp.transpose(w.reshape(groups, cog, cing, kh, kw),
                       (0, 3, 4, 2, 1)).reshape(groups, K, cog)
    Kp, Np = _pad_k(K), _round_up(cog, 128)
    if (Kp, Np) != (K, cog):
        wm = jnp.pad(wm, ((0, 0), (0, Kp - K), (0, Np - cog)))
    return wm.astype(jnp.bfloat16)


# ----------------------------------------------------------------------------
# Pooling glue (lax.reduce_window)
# ----------------------------------------------------------------------------
def maxpool_3x3_s2_p1(x):
    return lax.reduce_window(x, jnp.array(-jnp.inf, x.dtype), lax.max,
                             (1, 3, 3, 1), (1, 2, 2, 1),
                             ((0, 0), (1, 1), (1, 1), (0, 0)))


def avgpool2d_ceil(x, k, s):
    """AvgPool2d(k, s, ceil_mode=True, count_include_pad=False)."""
    N, H, W, C = x.shape
    Ho = -(-(H - k) // s) + 1
    Wo = -(-(W - k) // s) + 1
    pad_h = max(0, (Ho - 1) * s + k - H)
    pad_w = max(0, (Wo - 1) * s + k - W)
    xs = jnp.pad(x, ((0, 0), (0, pad_h), (0, pad_w), (0, 0)))
    ones = jnp.pad(jnp.ones_like(x), ((0, 0), (0, pad_h), (0, pad_w), (0, 0)))
    zero = jnp.array(0.0, x.dtype)
    ssum = lax.reduce_window(xs, zero, lax.add, (1, k, k, 1), (1, s, s, 1), 'VALID')
    cnt = lax.reduce_window(ones, zero, lax.add, (1, k, k, 1), (1, s, s, 1), 'VALID')
    return ssum / cnt


# ----------------------------------------------------------------------------
# Model blocks
# ----------------------------------------------------------------------------
def _grouped_dense(v, w, b, groups):
    """Grouped 1x1 conv on a (B, Cin) vector (B == batch == 2): plain jnp."""
    B, Cin = v.shape
    Cout, cig = w.shape[0], w.shape[1]
    cog = Cout // groups
    wm = w.reshape(groups, cog, cig)
    vg = v.reshape(B, groups, cig)
    return jnp.einsum('bgc,goc->bgo', vg, wm).reshape(B, Cout) + b


def _bn_vec_relu(v, gamma, beta, eps=1e-5):
    mean = jnp.mean(v, axis=0)
    var = jnp.mean(jnp.square(v - mean), axis=0)
    y = (v - mean) * (gamma * lax.rsqrt(var + eps)) + beta
    return jnp.maximum(y, 0.0)


def splat_conv2d(x, sp, stride):
    rc = sp['bn0'][0].shape[0]                              # gw * RADIX
    out = conv2d(x, sp['conv_w'], rc, kh=3, kw=3, stride=stride,
                 padding=1, groups=CARD * RADIX)
    out = bn_relu(out, *sp['bn0'])                          # fuses into consumers
    B, Ho, Wo, RC = out.shape
    C = RC // RADIX
    splited = [out[..., r * C:(r + 1) * C] for r in range(RADIX)]
    gap = splited[0]
    for s_ in splited[1:]:
        gap = gap + s_
    gap = jnp.mean(gap, axis=(1, 2))                        # (B, C)
    # Tiny attention branch (M == batch): plain jnp per perf review.
    gap = _grouped_dense(gap, sp['fc1_w'], sp['fc1_b'], CARD)
    gap = _bn_vec_relu(gap, *sp['bn1'])
    atten = _grouped_dense(gap, sp['fc2_w'], sp['fc2_b'], CARD)   # (B, RC)
    # rSoftMax (radix > 1 branch)
    a = atten.reshape(B, CARD, RADIX, -1)
    a = jnp.transpose(a, (0, 2, 1, 3))
    a = jax.nn.softmax(a, axis=1)
    atten = a.reshape(B, RC)
    attens = [atten[:, r * C:(r + 1) * C] for r in range(RADIX)]
    return sum(att[:, None, None, :] * sp_
               for att, sp_ in zip(attens, splited))


def bottleneck_forward(x, p, cfg):
    stride, down, is_first = cfg
    gw = p['bn1'][0].shape[0]
    outc = p['bn3'][0].shape[0]
    out = conv2d(x, p['conv1_w'], gw)                       # 1x1
    out = bn_relu(out, *p['bn1'])                           # fuses into im2col
    out = splat_conv2d(out, p['splat'], stride)
    out = conv2d(out, p['conv3_w'], outc)                   # 1x1 -> bf16
    N, H, W, C = out.shape
    out2d = out.reshape(N * H * W, C)
    sx, bx = bn_scale_bias(out2d, *p['bn3'])
    if down:
        k = 2 if is_first else 1
        r = avgpool2d_ceil(x, k, k) if k > 1 else x
        r = conv2d(r, p['down_conv_w'], outc)
        r2d = r.reshape(N * H * W, C)
        sr, br = bn_scale_bias(r2d, *p['down_bn'])
    else:
        r2d = x.reshape(N * H * W, C)
        sr = jnp.ones((C,), jnp.float32)
        br = jnp.zeros((C,), jnp.float32)
    # Fused Pallas epilogue: bn3 affine + (bn'd) residual add + ReLU, bf16 out.
    return bn_add_relu_2d(out2d, r2d, sx, bx, sr, br).reshape(N, H, W, C)


def stem_forward(stem_p, bn1_p, x_nchw):
    x = jnp.transpose(x_nchw, (0, 2, 3, 1)).astype(jnp.float32)  # NCHW -> NHWC
    x = conv2d(x, stem_p['conv_a'], stem_p['bn_a'][0].shape[0],
               kh=3, kw=3, stride=2, padding=1)
    x = bn_relu(x, *stem_p['bn_a'])
    x = conv2d(x, stem_p['conv_b'], stem_p['bn_b'][0].shape[0],
               kh=3, kw=3, stride=1, padding=1)
    x = bn_relu(x, *stem_p['bn_b'])
    x = conv2d(x, stem_p['conv_c'], bn1_p[0].shape[0],
               kh=3, kw=3, stride=1, padding=1)
    x = bn_relu(x, *bn1_p)
    return maxpool_3x3_s2_p1(x).astype(jnp.bfloat16)


def head_forward(fc_w, fc_b, x):
    gap = jnp.mean(x.astype(jnp.float32), axis=(1, 2))      # GlobalAvgPool2d
    # (2,512)x(512,2): >98% padded work in a Pallas kernel -> plain jnp.
    logits = jnp.dot(gap, fc_w) + fc_b
    return jax.nn.sigmoid(logits)


@functools.partial(jax.jit, static_argnums=(1,))
def resnest_forward(params, cfg, x_nchw):
    x = stem_forward(params['stem'], params['bn1'], x_nchw)
    feats = []
    for layer_params, layer_cfg in zip(params['layers'], cfg):
        for bp, bc in zip(layer_params, layer_cfg):
            x = bottleneck_forward(x, bp, bc)
        feats.append(x)
    # x == self.layers(stem_out) == feats[-1] (exact recompute in reference).
    probs = head_forward(params['fc_w'], params['fc_b'], x)
    feats_nchw = [jnp.transpose(f, (0, 3, 1, 2)).astype(jnp.float32)
                  for f in feats]
    return probs, feats_nchw


# ----------------------------------------------------------------------------
# Deterministic parameter construction (matches module __init__ shapes)
# ----------------------------------------------------------------------------
class ParamGen:
    def __init__(self, seed=0):
        self.key = jax.random.PRNGKey(seed)

    def normal(self, shape, std):
        self.key, sub = jax.random.split(self.key)
        return jax.random.normal(sub, shape, jnp.float32) * std

    def conv(self, cout, cin_per_group, kh, kw):
        n = kh * kw * cout
        return self.normal((cout, cin_per_group, kh, kw), math.sqrt(2.0 / n))

    def bn(self, c):
        return (jnp.ones((c,), jnp.float32), jnp.zeros((c,), jnp.float32))


def make_bottleneck_params(pg, in_c, out_c, down):
    gw = out_c * CARD                  # bottleneck_width=64 -> out_c*cardinality
    inter = max(gw * RADIX // 4, 32)
    p = {
        'conv1_w': pg.conv(gw, in_c, 1, 1), 'bn1': pg.bn(gw),
        'conv3_w': pg.conv(out_c, gw, 1, 1), 'bn3': pg.bn(out_c),
        'splat': {
            'conv_w': pg.conv(gw * RADIX, gw // (CARD * RADIX), 3, 3),
            'bn0': pg.bn(gw * RADIX),
            'fc1_w': pg.conv(inter, gw // CARD, 1, 1),
            'fc1_b': pg.normal((inter,), 0.01),
            'bn1': pg.bn(inter),
            'fc2_w': pg.conv(gw * RADIX, inter // CARD, 1, 1),
            'fc2_b': pg.normal((gw * RADIX,), 0.01),
        },
    }
    if down:
        p['down_conv_w'] = pg.conv(out_c, in_c, 1, 1)
        p['down_bn'] = pg.bn(out_c)
    return p


def make_params(seed=0):
    pg = ParamGen(seed)
    stem_width, in_channels, num_classes = 32, 64, 2
    params = {
        'stem': {
            'conv_a': pg.conv(stem_width, 3, 3, 3), 'bn_a': pg.bn(stem_width),
            'conv_b': pg.conv(stem_width, stem_width, 3, 3),
            'bn_b': pg.bn(stem_width),
            'conv_c': pg.conv(in_channels, stem_width, 3, 3),
        },
        'bn1': pg.bn(in_channels),
    }
    layer_cfgs = [(3, 64, 128), (4, 128, 256), (6, 256, 512)]
    layers, static_cfg = [], []
    for (lc, in_c, out_c) in layer_cfgs:
        blocks = [make_bottleneck_params(pg, in_c, out_c, True)]
        bcfgs = [(2, True, True)]               # (stride, down, is_first)
        for _ in range(1, lc):
            blocks.append(make_bottleneck_params(pg, out_c, out_c, False))
            bcfgs.append((1, False, False))
        layers.append(blocks)
        static_cfg.append(tuple(bcfgs))
    params['layers'] = layers
    params['fc_w'] = pg.normal((512, num_classes), 1.0 / math.sqrt(512.0))
    params['fc_b'] = pg.normal((num_classes,), 0.01)
    return params, tuple(static_cfg)


def pack_params(raw):
    """One-time conversion of conv weights to padded bf16 (G, Kp, Np) layout."""
    packed = {
        'stem': {
            'conv_a': pack_conv_weight(raw['stem']['conv_a']),
            'bn_a': raw['stem']['bn_a'],
            'conv_b': pack_conv_weight(raw['stem']['conv_b']),
            'bn_b': raw['stem']['bn_b'],
            'conv_c': pack_conv_weight(raw['stem']['conv_c']),
        },
        'bn1': raw['bn1'],
        'fc_w': raw['fc_w'], 'fc_b': raw['fc_b'],
        'layers': [],
    }
    for layer in raw['layers']:
        blocks = []
        for b in layer:
            nb = {
                'conv1_w': pack_conv_weight(b['conv1_w']), 'bn1': b['bn1'],
                'conv3_w': pack_conv_weight(b['conv3_w']), 'bn3': b['bn3'],
                'splat': {
                    'conv_w': pack_conv_weight(b['splat']['conv_w'],
                                               CARD * RADIX),
                    'bn0': b['splat']['bn0'],
                    'fc1_w': b['splat']['fc1_w'], 'fc1_b': b['splat']['fc1_b'],
                    'bn1': b['splat']['bn1'],
                    'fc2_w': b['splat']['fc2_w'], 'fc2_b': b['splat']['fc2_b'],
                },
            }
            if 'down_conv_w' in b:
                nb['down_conv_w'] = pack_conv_weight(b['down_conv_w'])
                nb['down_bn'] = b['down_bn']
            blocks.append(nb)
        packed['layers'].append(blocks)
    return packed


# ----------------------------------------------------------------------------
if __name__ == "__main__":
    key = jax.random.PRNGKey(0)
    x = jax.random.normal(key, (2, 3, 32, 32), jnp.float32)   # NCHW like PyTorch
    raw_params, cfg = make_params(0)
    params = pack_params(raw_params)

    probs, feats = resnest_forward(params, cfg, x)
    probs = jax.block_until_ready(probs)
    feats = [jax.block_until_ready(f) for f in feats]

    assert probs.shape == (2, 2)
    assert feats[0].shape == (2, 128, 4, 4)
    assert feats[1].shape == (2, 256, 2, 2)
    assert feats[2].shape == (2, 512, 1, 1)
    assert bool(jnp.all(jnp.isfinite(probs)))
    assert all(bool(jnp.all(jnp.isfinite(f))) for f in feats)
    print("KERNEL_OK")
</pallas_src>

<mosaic_0001>
module attributes {stable_mosaic.version = 11 : i64} {
  func.func @_mm_kernel_k1(%arg0: i32, %arg1: i32, %arg2: i32, %arg3: memref<1x256x128xbf16, #tpu.memory_space<vmem>>, %arg4: memref<1x128x128xbf16, #tpu.memory_space<vmem>>, %arg5: memref<256x128xbf16, #tpu.memory_space<vmem>>) attributes {dimension_semantics = [#tpu.dimension_semantics<parallel>, #tpu.dimension_semantics<parallel>, #tpu.dimension_semantics<parallel>], iteration_bounds = array<i64: 1, 2, 1>, scalar_prefetch = 0 : i64, scratch_operands = 0 : i64, tpu.core_type = #tpu.core_type<tc>, window_params = [{transform_indices = @transform_0, window_bounds = array<i64: 1, 256, 128>}, {transform_indices = @transform_1, window_bounds = array<i64: 1, 128, 128>}, {transform_indices = @transform_2, window_bounds = array<i64: 256, 128>}]} {
    %c0 = arith.constant 0 : index
    %c0_0 = arith.constant 0 : index
    %c0_1 = arith.constant 0 : index
    %0 = vector.load %arg3[%c0, %c0_0, %c0_1] : memref<1x256x128xbf16, #tpu.memory_space<vmem>>, vector<1x256x128xbf16>
    %1 = vector.shape_cast %0 : vector<1x256x128xbf16> to vector<256x128xbf16>
    %c0_2 = arith.constant 0 : index
    %c0_3 = arith.constant 0 : index
    %c0_4 = arith.constant 0 : index
    %2 = vector.load %arg4[%c0_2, %c0_3, %c0_4] : memref<1x128x128xbf16, #tpu.memory_space<vmem>>, vector<1x128x128xbf16>
    %3 = vector.shape_cast %2 : vector<1x128x128xbf16> to vector<128x128xbf16>
    %cst = arith.constant dense<0.000000e+00> : vector<256x128xf32>
    %4 = tpu.matmul %1, %3, %cst {dimension_numbers = #tpu.dot_dimension_numbers<[1], [0], [0], [1], [0, 0, 1, 1], [], []>} : vector<256x128xbf16>, vector<128x128xbf16>, vector<256x128xf32> -> vector<256x128xf32>
    %5 = arith.truncf %4 : vector<256x128xf32> to vector<256x128xbf16>
    %c0_5 = arith.constant 0 : index
    %c0_6 = arith.constant 0 : index
    %6 = vector.load %arg5[%c0_5, %c0_6] : memref<256x128xbf16, #tpu.memory_space<vmem>>, vector<256x128xbf16>
    tpu.vector_store %arg5[%c0_5, %c0_6], %5 {strides = array<i32>} : memref<256x128xbf16, #tpu.memory_space<vmem>>, vector<256x128xbf16>,
    return
  }
  func.func @transform_0(%arg0: i32, %arg1: i32, %arg2: i32) -> (i32, i32, i32) {
    %c0_i32 = arith.constant 0 : i32
    %c0_i32_0 = arith.constant 0 : i32
    return %arg0, %arg1, %c0_i32 : i32, i32, i32
  }
  func.func @transform_1(%arg0: i32, %arg1: i32, %arg2: i32) -> (i32, i32, i32) {
    %c0_i32 = arith.constant 0 : i32
    %c0_i32_0 = arith.constant 0 : i32
    return %arg0, %c0_i32, %arg2 : i32, i32, i32
  }
  func.func @transform_2(%arg0: i32, %arg1: i32, %arg2: i32) -> (i32, i32) {
    %c1_i32 = arith.constant 1 : i32
    %0 = arith.muli %arg0, %c1_i32 : i32
    %1 = arith.addi %0, %arg2 : i32
    %c0_i32 = arith.constant 0 : i32
    return %arg1, %1 : i32, i32
  }
}

module attributes {stable_mosaic.version = 11 : i64} {
  func.func @_mm_kernel(%arg0: i32, %arg1: i32, %arg2: i32, %arg3: i32, %arg4: memref<1x256x256xbf16, #tpu.memory_space<vmem>>, %arg5: memref<1x256x128xbf16, #tpu.memory_space<vmem>>, %arg6: memref<256x128xbf16, #tpu.memory_space<vmem>>, %arg7: memref<256x128xf32, #tpu.memory_space<vmem>>) attributes {dimension_semantics = [#tpu.dimension_semantics<parallel>, #tpu.dimension_semantics<parallel>, #tpu.dimension_semantics<parallel>, #tpu.dimension_semantics<arbitrary>], iteration_bounds = array<i64: 1, 2, 1, 2>, scalar_prefetch = 0 : i64, scratch_operands = 1 : i64, tpu.core_type = #tpu.core_type<tc>, window_params = [{transform_indices = @transform_0, window_bounds = array<i64: 1, 256, 256>}, {transform_indices = @transform_1, window_bounds = array<i64: 1, 256, 128>}, {transform_indices = @transform_2, window_bounds = array<i64: 256, 128>}]} {
    %c0_i32 = arith.constant 0 : i32
    %0 = arith.cmpi eq, %arg3, %c0_i32 : i32
    %1 = arith.extui %0 : i1 to i32
    %c0_i32_0 = arith.constant 0 : i32
    %2 = arith.cmpi ne, %1, %c0_i32_0 : i32
    scf.if %2 {
      %cst_11 = arith.constant 0.000000e+00 : f32
      %14 = vector.broadcast %cst_11 : f32 to vector<256x128xf32>
      %c0_12 = arith.constant 0 : index
      %c0_13 = arith.constant 0 : index
      %15 = vector.load %arg7[%c0_12, %c0_13] : memref<256x128xf32, #tpu.memory_space<vmem>>, vector<256x128xf32>
      tpu.vector_store %arg7[%c0_12, %c0_13], %14 {strides = array<i32>} : memref<256x128xf32, #tpu.memory_space<vmem>>, vector<256x128xf32>,
    } else {
    }
    %c0 = arith.constant 0 : index
    %c0_1 = arith.constant 0 : index
    %3 = vector.load %arg7[%c0, %c0_1] : memref<256x128xf32, #tpu.memory_space<vmem>>, vector<256x128xf32>
    %c0_2 = arith.constant 0 : index
    %c0_3 = arith.constant 0 : index
    %c0_4 = arith.constant 0 : index
    %4 = vector.load %arg4[%c0_2, %c0_3, %c0_4] : memref<1x256x256xbf16, #tpu.memory_space<vmem>>, vector<1x256x256xbf16>
    %5 = vector.shape_cast %4 : vector<1x256x256xbf16> to vector<256x256xbf16>
    %c0_5 = arith.constant 0 : index
    %c0_6 = arith.constant 0 : index
    %c0_7 = arith.constant 0 : index
    %6 = vector.load %arg5[%c0_5, %c0_6, %c0_7] : memref<1x256x128xbf16, #tpu.memory_space<vmem>>, vector<1x256x128xbf16>
    %7 = vector.shape_cast %6 : vector<1x256x128xbf16> to vector<256x128xbf16>
    %cst = arith.constant dense<0.000000e+00> : vector<256x128xf32>
    %8 = tpu.matmul %5, %7, %cst {dimension_numbers = #tpu.dot_dimension_numbers<[1], [0], [0], [1], [0, 0, 1, 1], [], []>} : vector<256x256xbf16>, vector<256x128xbf16>, vector<256x128xf32> -> vector<256x128xf32>
    %9 = arith.addf %3, %8 : vector<256x128xf32>
    %c0_8 = arith.constant 0 : index
    %c0_9 = arith.constant 0 : index
    %10 = vector.load %arg7[%c0_8, %c0_9] : memref<256x128xf32, #tpu.memory_space<vmem>>, vector<256x128xf32>
    tpu.vector_store %arg7[%c0_8, %c0_9], %9 {strides = array<i32>} : memref<256x128xf32, #tpu.memory_space<vmem>>, vector<256x128xf32>,
    %c1_i32 = arith.constant 1 : i32
    %11 = arith.cmpi eq, %arg3, %c1_i32 : i32
    %12 = arith.extui %11 : i1 to i32
    %c0_i32_10 = arith.constant 0 : i32
    %13 = arith.cmpi ne, %12, %c0_i32_10 : i32
    scf.if %13 {
      %c0_11 = arith.constant 0 : index
      %c0_12 = arith.constant 0 : index
      %14 = vector.load %arg7[%c0_11, %c0_12] : memref<256x128xf32, #tpu.memory_space<vmem>>, vector<256x128xf32>
      %15 = arith.truncf %14 : vector<256x128xf32> to vector<256x128xbf16>
      %c0_13 = arith.constant 0 : index
      %c0_14 = arith.constant 0 : index
      %16 = vector.load %arg6[%c0_13, %c0_14] : memref<256x128xbf16, #tpu.memory_space<vmem>>, vector<256x128xbf16>
      tpu.vector_store %arg6[%c0_13, %c0_14], %15 {strides = array<i32>} : memref<256x128xbf16, #tpu.memory_space<vmem>>, vector<256x128xbf16>,
    } else {
    }
    return
  }
  func.func @transform_0(%arg0: i32, %arg1: i32, %arg2: i32, %arg3: i32) -> (i32, i32, i32) {
    %c0_i32 = arith.constant 0 : i32
    return %arg0, %arg1, %arg3 : i32, i32, i32
  }
  func.func @transform_1(%arg0: i32, %arg1: i32, %arg2: i32, %arg3: i32) -> (i32, i32, i32) {
    %c0_i32 = arith.constant 0 : i32
    return %arg0, %arg3, %arg2 : i32, i32, i32
  }
  func.func @transform_2(%arg0: i32, %arg1: i32, %arg2: i32, %arg3: i32) -> (i32, i32) {
    %c1_i32 = arith.constant 1 : i32
    %0 = arith.muli %arg0, %c1_i32 : i32
    %1 = arith.addi %0, %arg2 : i32
    %c0_i32 = arith.constant 0 : i32
    return %arg1, %1 : i32, i32
  }
}

module attributes {stable_mosaic.version = 11 : i64} {
  func.func @_mm_kernel_k1(%arg0: i32, %arg1: i32, %arg2: i32, %arg3: memref<1x128x128xbf16, #tpu.memory_space<vmem>>, %arg4: memref<1x128x128xbf16, #tpu.memory_space<vmem>>, %arg5: memref<128x128xbf16, #tpu.memory_space<vmem>>) attributes {dimension_semantics = [#tpu.dimension_semantics<parallel>, #tpu.dimension_semantics<parallel>, #tpu.dimension_semantics<parallel>], iteration_bounds = array<i64: 1, 1, 2>, scalar_prefetch = 0 : i64, scratch_operands = 0 : i64, tpu.core_type = #tpu.core_type<tc>, window_params = [{transform_indices = @transform_0, window_bounds = array<i64: 1, 128, 128>}, {transform_indices = @transform_1, window_bounds = array<i64: 1, 128, 128>}, {transform_indices = @transform_2, window_bounds = array<i64: 128, 128>}]} {
    %c0 = arith.constant 0 : index
    %c0_0 = arith.constant 0 : index
    %c0_1 = arith.constant 0 : index
    %0 = vector.load %arg3[%c0, %c0_0, %c0_1] : memref<1x128x128xbf16, #tpu.memory_space<vmem>>, vector<1x128x128xbf16>
    %1 = vector.shape_cast %0 : vector<1x128x128xbf16> to vector<128x128xbf16>
    %c0_2 = arith.constant 0 : index
    %c0_3 = arith.constant 0 : index
    %c0_4 = arith.constant 0 : index
    %2 = vector.load %arg4[%c0_2, %c0_3, %c0_4] : memref<1x128x128xbf16, #tpu.memory_space<vmem>>, vector<1x128x128xbf16>
    %3 = vector.shape_cast %2 : vector<1x128x128xbf16> to vector<128x128xbf16>
    %cst = arith.constant dense<0.000000e+00> : vector<128x128xf32>
    %4 = tpu.matmul %1, %3, %cst {dimension_numbers = #tpu.dot_dimension_numbers<[1], [0], [0], [1], [0, 0, 1, 1], [], []>} : vector<128x128xbf16>, vector<128x128xbf16>, vector<128x128xf32> -> vector<128x128xf32>
    %5 = arith.truncf %4 : vector<128x128xf32> to vector<128x128xbf16>
    %c0_5 = arith.constant 0 : index
    %c0_6 = arith.constant 0 : index
    %6 = vector.load %arg5[%c0_5, %c0_6] : memref<128x128xbf16, #tpu.memory_space<vmem>>, vector<128x128xbf16>
    tpu.vector_store %arg5[%c0_5, %c0_6], %5 {strides = array<i32>} : memref<128x128xbf16, #tpu.memory_space<vmem>>, vector<128x128xbf16>,
    return
  }
  func.func @transform_0(%arg0: i32, %arg1: i32, %arg2: i32) -> (i32, i32, i32) {
    %c0_i32 = arith.constant 0 : i32
    %c0_i32_0 = arith.constant 0 : i32
    return %arg0, %arg1, %c0_i32 : i32, i32, i32
  }
  func.func @transform_1(%arg0: i32, %arg1: i32, %arg2: i32) -> (i32, i32, i32) {
    %c0_i32 = arith.constant 0 : i32
    %c0_i32_0 = arith.constant 0 : i32
    return %arg0, %c0_i32, %arg2 : i32, i32, i32
  }
  func.func @transform_2(%arg0: i32, %arg1: i32, %arg2: i32) -> (i32, i32) {
    %c2_i32 = arith.constant 2 : i32
    %0 = arith.muli %arg0, %c2_i32 : i32
    %1 = arith.addi %0, %arg2 : i32
    %c0_i32 = arith.constant 0 : i32
    return %arg1, %1 : i32, i32
  }
}

module attributes {stable_mosaic.version = 11 : i64} {
  func.func @_mm_kernel(%arg0: i32, %arg1: i32, %arg2: i32, %arg3: i32, %arg4: memref<1x32x256xbf16, #tpu.memory_space<vmem>>, %arg5: memref<1x256x128xbf16, #tpu.memory_space<vmem>>, %arg6: memref<32x128xbf16, #tpu.memory_space<vmem>>, %arg7: memref<32x128xf32, #tpu.memory_space<vmem>>) attributes {dimension_semantics = [#tpu.dimension_semantics<parallel>, #tpu.dimension_semantics<parallel>, #tpu.dimension_semantics<parallel>, #tpu.dimension_semantics<arbitrary>], iteration_bounds = array<i64: 4, 1, 1, 3>, scalar_prefetch = 0 : i64, scratch_operands = 1 : i64, tpu.core_type = #tpu.core_type<tc>, window_params = [{transform_indices = @transform_0, window_bounds = array<i64: 1, 32, 256>}, {transform_indices = @transform_1, window_bounds = array<i64: 1, 256, 128>}, {transform_indices = @transform_2, window_bounds = array<i64: 32, 128>}]} {
    %c0_i32 = arith.constant 0 : i32
    %0 = arith.cmpi eq, %arg3, %c0_i32 : i32
    %1 = arith.extui %0 : i1 to i32
    %c0_i32_0 = arith.constant 0 : i32
    %2 = arith.cmpi ne, %1, %c0_i32_0 : i32
    scf.if %2 {
      %cst_11 = arith.constant 0.000000e+00 : f32
      %14 = vector.broadcast %cst_11 : f32 to vector<32x128xf32>
      %c0_12 = arith.constant 0 : index
      %c0_13 = arith.constant 0 : index
      %15 = vector.load %arg7[%c0_12, %c0_13] : memref<32x128xf32, #tpu.memory_space<vmem>>, vector<32x128xf32>
      tpu.vector_store %arg7[%c0_12, %c0_13], %14 {strides = array<i32>} : memref<32x128xf32, #tpu.memory_space<vmem>>, vector<32x128xf32>,
    } else {
    }
    %c0 = arith.constant 0 : index
    %c0_1 = arith.constant 0 : index
    %3 = vector.load %arg7[%c0, %c0_1] : memref<32x128xf32, #tpu.memory_space<vmem>>, vector<32x128xf32>
    %c0_2 = arith.constant 0 : index
    %c0_3 = arith.constant 0 : index
    %c0_4 = arith.constant 0 : index
    %4 = vector.load %arg4[%c0_2, %c0_3, %c0_4] : memref<1x32x256xbf16, #tpu.memory_space<vmem>>, vector<1x32x256xbf16>
    %5 = vector.shape_cast %4 : vector<1x32x256xbf16> to vector<32x256xbf16>
    %c0_5 = arith.constant 0 : index
    %c0_6 = arith.constant 0 : index
    %c0_7 = arith.constant 0 : index
    %6 = vector.load %arg5[%c0_5, %c0_6, %c0_7] : memref<1x256x128xbf16, #tpu.memory_space<vmem>>, vector<1x256x128xbf16>
    %7 = vector.shape_cast %6 : vector<1x256x128xbf16> to vector<256x128xbf16>
    %cst = arith.constant dense<0.000000e+00> : vector<32x128xf32>
    %8 = tpu.matmul %5, %7, %cst {dimension_numbers = #tpu.dot_dimension_numbers<[1], [0], [0], [1], [0, 0, 1, 1], [], []>} : vector<32x256xbf16>, vector<256x128xbf16>, vector<32x128xf32> -> vector<32x128xf32>
    %9 = arith.addf %3, %8 : vector<32x128xf32>
    %c0_8 = arith.constant 0 : index
    %c0_9 = arith.constant 0 : index
    %10 = vector.load %arg7[%c0_8, %c0_9] : memref<32x128xf32, #tpu.memory_space<vmem>>, vector<32x128xf32>
    tpu.vector_store %arg7[%c0_8, %c0_9], %9 {strides = array<i32>} : memref<32x128xf32, #tpu.memory_space<vmem>>, vector<32x128xf32>,
    %c2_i32 = arith.constant 2 : i32
    %11 = arith.cmpi eq, %arg3, %c2_i32 : i32
    %12 = arith.extui %11 : i1 to i32
    %c0_i32_10 = arith.constant 0 : i32
    %13 = arith.cmpi ne, %12, %c0_i32_10 : i32
    scf.if %13 {
      %c0_11 = arith.constant 0 : index
      %c0_12 = arith.constant 0 : index
      %14 = vector.load %arg7[%c0_11, %c0_12] : memref<32x128xf32, #tpu.memory_space<vmem>>, vector<32x128xf32>
      %15 = arith.truncf %14 : vector<32x128xf32> to vector<32x128xbf16>
      %c0_13 = arith.constant 0 : index
      %c0_14 = arith.constant 0 : index
      %16 = vector.load %arg6[%c0_13, %c0_14] : memref<32x128xbf16, #tpu.memory_space<vmem>>, vector<32x128xbf16>
      tpu.vector_store %arg6[%c0_13, %c0_14], %15 {strides = array<i32>} : memref<32x128xbf16, #tpu.memory_space<vmem>>, vector<32x128xbf16>,
    } else {
    }
    return
  }
  func.func @transform_0(%arg0: i32, %arg1: i32, %arg2: i32, %arg3: i32) -> (i32, i32, i32) {
    %c0_i32 = arith.constant 0 : i32
    return %arg0, %arg1, %arg3 : i32, i32, i32
  }
  func.func @transform_1(%arg0: i32, %arg1: i32, %arg2: i32, %arg3: i32) -> (i32, i32, i32) {
    %c0_i32 = arith.constant 0 : i32
    return %arg0, %arg3, %arg2 : i32, i32, i32
  }
  func.func @transform_2(%arg0: i32, %arg1: i32, %arg2: i32, %arg3: i32) -> (i32, i32) {
    %c1_i32 = arith.constant 1 : i32
    %0 = arith.muli %arg0, %c1_i32 : i32
    %1 = arith.addi %0, %arg2 : i32
    %c0_i32 = arith.constant 0 : i32
    return %arg1, %1 : i32, i32
  }
}

module attributes {stable_mosaic.version = 11 : i64} {
  func.func @_mm_kernel_k1(%arg0: i32, %arg1: i32, %arg2: i32, %arg3: memref<1x32x256xbf16, #tpu.memory_space<vmem>>, %arg4: memref<1x256x128xbf16, #tpu.memory_space<vmem>>, %arg5: memref<32x128xbf16, #tpu.memory_space<vmem>>) attributes {dimension_semantics = [#tpu.dimension_semantics<parallel>, #tpu.dimension_semantics<parallel>, #tpu.dimension_semantics<parallel>], iteration_bounds = array<i64: 1, 1, 1>, scalar_prefetch = 0 : i64, scratch_operands = 0 : i64, tpu.core_type = #tpu.core_type<tc>, window_params = [{transform_indices = @transform_0, window_bounds = array<i64: 1, 32, 256>}, {transform_indices = @transform_1, window_bounds = array<i64: 1, 256, 128>}, {transform_indices = @transform_2, window_bounds = array<i64: 32, 128>}]} {
    %c0 = arith.constant 0 : index
    %c0_0 = arith.constant 0 : index
    %c0_1 = arith.constant 0 : index
    %0 = vector.load %arg3[%c0, %c0_0, %c0_1] : memref<1x32x256xbf16, #tpu.memory_space<vmem>>, vector<1x32x256xbf16>
    %1 = vector.shape_cast %0 : vector<1x32x256xbf16> to vector<32x256xbf16>
    %c0_2 = arith.constant 0 : index
    %c0_3 = arith.constant 0 : index
    %c0_4 = arith.constant 0 : index
    %2 = vector.load %arg4[%c0_2, %c0_3, %c0_4] : memref<1x256x128xbf16, #tpu.memory_space<vmem>>, vector<1x256x128xbf16>
    %3 = vector.shape_cast %2 : vector<1x256x128xbf16> to vector<256x128xbf16>
    %cst = arith.constant dense<0.000000e+00> : vector<32x128xf32>
    %4 = tpu.matmul %1, %3, %cst {dimension_numbers = #tpu.dot_dimension_numbers<[1], [0], [0], [1], [0, 0, 1, 1], [], []>} : vector<32x256xbf16>, vector<256x128xbf16>, vector<32x128xf32> -> vector<32x128xf32>
    %5 = arith.truncf %4 : vector<32x128xf32> to vector<32x128xbf16>
    %c0_5 = arith.constant 0 : index
    %c0_6 = arith.constant 0 : index
    %6 = vector.load %arg5[%c0_5, %c0_6] : memref<32x128xbf16, #tpu.memory_space<vmem>>, vector<32x128xbf16>
    tpu.vector_store %arg5[%c0_5, %c0_6], %5 {strides = array<i32>} : memref<32x128xbf16, #tpu.memory_space<vmem>>, vector<32x128xbf16>,
    return
  }
  func.func @transform_0(%arg0: i32, %arg1: i32, %arg2: i32) -> (i32, i32, i32) {
    %c0_i32 = arith.constant 0 : i32
    %c0_i32_0 = arith.constant 0 : i32
    return %arg0, %arg1, %c0_i32 : i32, i32, i32
  }
  func.func @transform_1(%arg0: i32, %arg1: i32, %arg2: i32) -> (i32, i32, i32) {
    %c0_i32 = arith.constant 0 : i32
    %c0_i32_0 = arith.constant 0 : i32
    return %arg0, %c0_i32, %arg2 : i32, i32, i32
  }
  func.func @transform_2(%arg0: i32, %arg1: i32, %arg2: i32) -> (i32, i32) {
    %c1_i32 = arith.constant 1 : i32
    %0 = arith.muli %arg0, %c1_i32 : i32
    %1 = arith.addi %0, %arg2 : i32
    %c0_i32 = arith.constant 0 : i32
    return %arg1, %1 : i32, i32
  }
}

module attributes {stable_mosaic.version = 11 : i64} {
  func.func @_mm_kernel_k1(%arg0: i32, %arg1: i32, %arg2: i32, %arg3: memref<1x32x128xbf16, #tpu.memory_space<vmem>>, %arg4: memref<1x128x128xbf16, #tpu.memory_space<vmem>>, %arg5: memref<32x128xbf16, #tpu.memory_space<vmem>>) attributes {dimension_semantics = [#tpu.dimension_semantics<parallel>, #tpu.dimension_semantics<parallel>, #tpu.dimension_semantics<parallel>], iteration_bounds = array<i64: 1, 1, 1>, scalar_prefetch = 0 : i64, scratch_operands = 0 : i64, tpu.core_type = #tpu.core_type<tc>, window_params = [{transform_indices = @transform_0, window_bounds = array<i64: 1, 32, 128>}, {transform_indices = @transform_1, window_bounds = array<i64: 1, 128, 128>}, {transform_indices = @transform_2, window_bounds = array<i64: 32, 128>}]} {
    %c0 = arith.constant 0 : index
    %c0_0 = arith.constant 0 : index
    %c0_1 = arith.constant 0 : index
    %0 = vector.load %arg3[%c0, %c0_0, %c0_1] : memref<1x32x128xbf16, #tpu.memory_space<vmem>>, vector<1x32x128xbf16>
    %1 = vector.shape_cast %0 : vector<1x32x128xbf16> to vector<32x128xbf16>
    %c0_2 = arith.constant 0 : index
    %c0_3 = arith.constant 0 : index
    %c0_4 = arith.constant 0 : index
    %2 = vector.load %arg4[%c0_2, %c0_3, %c0_4] : memref<1x128x128xbf16, #tpu.memory_space<vmem>>, vector<1x128x128xbf16>
    %3 = vector.shape_cast %2 : vector<1x128x128xbf16> to vector<128x128xbf16>
    %cst = arith.constant dense<0.000000e+00> : vector<32x128xf32>
    %4 = tpu.matmul %1, %3, %cst {dimension_numbers = #tpu.dot_dimension_numbers<[1], [0], [0], [1], [0, 0, 1, 1], [], []>} : vector<32x128xbf16>, vector<128x128xbf16>, vector<32x128xf32> -> vector<32x128xf32>
    %5 = arith.truncf %4 : vector<32x128xf32> to vector<32x128xbf16>
    %c0_5 = arith.constant 0 : index
    %c0_6 = arith.constant 0 : index
    %6 = vector.load %arg5[%c0_5, %c0_6] : memref<32x128xbf16, #tpu.memory_space<vmem>>, vector<32x128xbf16>
    tpu.vector_store %arg5[%c0_5, %c0_6], %5 {strides = array<i32>} : memref<32x128xbf16, #tpu.memory_space<vmem>>, vector<32x128xbf16>,
    return
  }
  func.func @transform_0(%arg0: i32, %arg1: i32, %arg2: i32) -> (i32, i32, i32) {
    %c0_i32 = arith.constant 0 : i32
    %c0_i32_0 = arith.constant 0 : i32
    return %arg0, %arg1, %c0_i32 : i32, i32, i32
  }
  func.func @transform_1(%arg0: i32, %arg1: i32, %arg2: i32) -> (i32, i32, i32) {
    %c0_i32 = arith.constant 0 : i32
    %c0_i32_0 = arith.constant 0 : i32
    return %arg0, %c0_i32, %arg2 : i32, i32, i32
  }
  func.func @transform_2(%arg0: i32, %arg1: i32, %arg2: i32) -> (i32, i32) {
    %c1_i32 = arith.constant 1 : i32
    %0 = arith.muli %arg0, %c1_i32 : i32
    %1 = arith.addi %0, %arg2 : i32
    %c0_i32 = arith.constant 0 : i32
    return %arg1, %1 : i32, i32
  }
}

module attributes {stable_mosaic.version = 11 : i64} {
  func.func @_bn_add_relu_kernel(%arg0: i32, %arg1: memref<32x128xbf16, #tpu.memory_space<vmem>>, %arg2: memref<32x128xbf16, #tpu.memory_space<vmem>>, %arg3: memref<1x128xf32, #tpu.memory_space<vmem>>, %arg4: memref<1x128xf32, #tpu.memory_space<vmem>>, %arg5: memref<1x128xf32, #tpu.memory_space<vmem>>, %arg6: memref<1x128xf32, #tpu.memory_space<vmem>>, %arg7: memref<32x128xbf16, #tpu.memory_space<vmem>>) attributes {dimension_semantics = [#tpu.dimension_semantics<parallel>], iteration_bounds = array<i64: 1>, scalar_prefetch = 0 : i64, scratch_operands = 0 : i64, tpu.core_type = #tpu.core_type<tc>, window_params = [{transform_indices = @transform_0, window_bounds = array<i64: 32, 128>}, {transform_indices = @transform_1, window_bounds = array<i64: 32, 128>}, {pipeline_mode = #tpu.pipeline_mode<synchronous>, transform_indices = @transform_2, window_bounds = array<i64: 1, 128>}, {pipeline_mode = #tpu.pipeline_mode<synchronous>, transform_indices = @transform_3, window_bounds = array<i64: 1, 128>}, {pipeline_mode = #tpu.pipeline_mode<synchronous>, transform_indices = @transform_4, window_bounds = array<i64: 1, 128>}, {pipeline_mode = #tpu.pipeline_mode<synchronous>, transform_indices = @transform_5, window_bounds = array<i64: 1, 128>}, {transform_indices = @transform_6, window_bounds = array<i64: 32, 128>}]} {
    %c0 = arith.constant 0 : index
    %c0_0 = arith.constant 0 : index
    %0 = vector.load %arg1[%c0, %c0_0] : memref<32x128xbf16, #tpu.memory_space<vmem>>, vector<32x128xbf16>
    %1 = arith.extf %0 : vector<32x128xbf16> to vector<32x128xf32>
    %c0_1 = arith.constant 0 : index
    %c0_2 = arith.constant 0 : index
    %2 = vector.load %arg3[%c0_1, %c0_2] : memref<1x128xf32, #tpu.memory_space<vmem>>, vector<1x128xf32>
    %3 = vector.broadcast %2 : vector<1x128xf32> to vector<32x128xf32>
    %4 = arith.mulf %1, %3 : vector<32x128xf32>
    %c0_3 = arith.constant 0 : index
    %c0_4 = arith.constant 0 : index
    %5 = vector.load %arg4[%c0_3, %c0_4] : memref<1x128xf32, #tpu.memory_space<vmem>>, vector<1x128xf32>
    %6 = vector.broadcast %5 : vector<1x128xf32> to vector<32x128xf32>
    %7 = arith.addf %4, %6 : vector<32x128xf32>
    %c0_5 = arith.constant 0 : index
    %c0_6 = arith.constant 0 : index
    %8 = vector.load %arg2[%c0_5, %c0_6] : memref<32x128xbf16, #tpu.memory_space<vmem>>, vector<32x128xbf16>
    %9 = arith.extf %8 : vector<32x128xbf16> to vector<32x128xf32>
    %c0_7 = arith.constant 0 : index
    %c0_8 = arith.constant 0 : index
    %10 = vector.load %arg5[%c0_7, %c0_8] : memref<1x128xf32, #tpu.memory_space<vmem>>, vector<1x128xf32>
    %11 = vector.broadcast %10 : vector<1x128xf32> to vector<32x128xf32>
    %12 = arith.mulf %9, %11 : vector<32x128xf32>
    %13 = arith.addf %7, %12 : vector<32x128xf32>
    %c0_9 = arith.constant 0 : index
    %c0_10 = arith.constant 0 : index
    %14 = vector.load %arg6[%c0_9, %c0_10] : memref<1x128xf32, #tpu.memory_space<vmem>>, vector<1x128xf32>
    %15 = vector.broadcast %14 : vector<1x128xf32> to vector<32x128xf32>
    %16 = arith.addf %13, %15 : vector<32x128xf32>
    %cst = arith.constant 0.000000e+00 : f32
    %17 = vector.broadcast %cst : f32 to vector<32x128xf32>
    %18 = arith.maximumf %16, %17 : vector<32x128xf32>
    %19 = arith.truncf %18 : vector<32x128xf32> to vector<32x128xbf16>
    %c0_11 = arith.constant 0 : index
    %c0_12 = arith.constant 0 : index
    %20 = vector.load %arg7[%c0_11, %c0_12] : memref<32x128xbf16, #tpu.memory_space<vmem>>, vector<32x128xbf16>
    tpu.vector_store %arg7[%c0_11, %c0_12], %19 {strides = array<i32>} : memref<32x128xbf16, #tpu.memory_space<vmem>>, vector<32x128xbf16>,
    return
  }
  func.func @transform_0(%arg0: i32) -> (i32, i32) {
    %c0_i32 = arith.constant 0 : i32
    %c0_i32_0 = arith.constant 0 : i32
    return %arg0, %c0_i32 : i32, i32
  }
  func.func @transform_1(%arg0: i32) -> (i32, i32) {
    %c0_i32 = arith.constant 0 : i32
    %c0_i32_0 = arith.constant 0 : i32
    return %arg0, %c0_i32 : i32, i32
  }
  func.func @transform_2(%arg0: i32) -> (i32, i32) {
    %c0_i32 = arith.constant 0 : i32
    %c0_i32_0 = arith.constant 0 : i32
    %c0_i32_1 = arith.constant 0 : i32
    return %c0_i32, %c0_i32_0 : i32, i32
  }
  func.func @transform_3(%arg0: i32) -> (i32, i32) {
    %c0_i32 = arith.constant 0 : i32
    %c0_i32_0 = arith.constant 0 : i32
    %c0_i32_1 = arith.constant 0 : i32
    return %c0_i32, %c0_i32_0 : i32, i32
  }
  func.func @transform_4(%arg0: i32) -> (i32, i32) {
    %c0_i32 = arith.constant 0 : i32
    %c0_i32_0 = arith.constant 0 : i32
    %c0_i32_1 = arith.constant 0 : i32
    return %c0_i32, %c0_i32_0 : i32, i32
  }
  func.func @transform_5(%arg0: i32) -> (i32, i32) {
    %c0_i32 = arith.constant 0 : i32
    %c0_i32_0 = arith.constant 0 : i32
    %c0_i32_1 = arith.constant 0 : i32
    return %c0_i32, %c0_i32_0 : i32, i32
  }
  func.func @transform_6(%arg0: i32) -> (i32, i32) {
    %c0_i32 = arith.constant 0 : i32
    %c0_i32_0 = arith.constant 0 : i32
    return %arg0, %c0_i32 : i32, i32
  }
}

module attributes {stable_mosaic.version = 11 : i64} {
  func.func @_mm_kernel_k1(%arg0: i32, %arg1: i32, %arg2: i32, %arg3: memref<1x32x128xbf16, #tpu.memory_space<vmem>>, %arg4: memref<1x128x128xbf16, #tpu.memory_space<vmem>>, %arg5: memref<32x128xbf16, #tpu.memory_space<vmem>>) attributes {dimension_semantics = [#tpu.dimension_semantics<parallel>, #tpu.dimension_semantics<parallel>, #tpu.dimension_semantics<parallel>], iteration_bounds = array<i64: 1, 1, 2>, scalar_prefetch = 0 : i64, scratch_operands = 0 : i64, tpu.core_type = #tpu.core_type<tc>, window_params = [{transform_indices = @transform_0, window_bounds = array<i64: 1, 32, 128>}, {transform_indices = @transform_1, window_bounds = array<i64: 1, 128, 128>}, {transform_indices = @transform_2, window_bounds = array<i64: 32, 128>}]} {
    %c0 = arith.constant 0 : index
    %c0_0 = arith.constant 0 : index
    %c0_1 = arith.constant 0 : index
    %0 = vector.load %arg3[%c0, %c0_0, %c0_1] : memref<1x32x128xbf16, #tpu.memory_space<vmem>>, vector<1x32x128xbf16>
    %1 = vector.shape_cast %0 : vector<1x32x128xbf16> to vector<32x128xbf16>
    %c0_2 = arith.constant 0 : index
    %c0_3 = arith.constant 0 : index
    %c0_4 = arith.constant 0 : index
    %2 = vector.load %arg4[%c0_2, %c0_3, %c0_4] : memref<1x128x128xbf16, #tpu.memory_space<vmem>>, vector<1x128x128xbf16>
    %3 = vector.shape_cast %2 : vector<1x128x128xbf16> to vector<128x128xbf16>
    %cst = arith.constant dense<0.000000e+00> : vector<32x128xf32>
    %4 = tpu.matmul %1, %3, %cst {dimension_numbers = #tpu.dot_dimension_numbers<[1], [0], [0], [1], [0, 0, 1, 1], [], []>} : vector<32x128xbf16>, vector<128x128xbf16>, vector<32x128xf32> -> vector<32x128xf32>
    %5 = arith.truncf %4 : vector<32x128xf32> to vector<32x128xbf16>
    %c0_5 = arith.constant 0 : index
    %c0_6 = arith.constant 0 : index
    %6 = vector.load %arg5[%c0_5, %c0_6] : memref<32x128xbf16, #tpu.memory_space<vmem>>, vector<32x128xbf16>
    tpu.vector_store %arg5[%c0_5, %c0_6], %5 {strides = array<i32>} : memref<32x128xbf16, #tpu.memory_space<vmem>>, vector<32x128xbf16>,
    return
  }
  func.func @transform_0(%arg0: i32, %arg1: i32, %arg2: i32) -> (i32, i32, i32) {
    %c0_i32 = arith.constant 0 : i32
    %c0_i32_0 = arith.constant 0 : i32
    return %arg0, %arg1, %c0_i32 : i32, i32, i32
  }
  func.func @transform_1(%arg0: i32, %arg1: i32, %arg2: i32) -> (i32, i32, i32) {
    %c0_i32 = arith.constant 0 : i32
    %c0_i32_0 = arith.constant 0 : i32
    return %arg0, %c0_i32, %arg2 : i32, i32, i32
  }
  func.func @transform_2(%arg0: i32, %arg1: i32, %arg2: i32) -> (i32, i32) {
    %c2_i32 = arith.constant 2 : i32
    %0 = arith.muli %arg0, %c2_i32 : i32
    %1 = arith.addi %0, %arg2 : i32
    %c0_i32 = arith.constant 0 : i32
    return %arg1, %1 : i32, i32
  }
}

module attributes {stable_mosaic.version = 11 : i64} {
  func.func @_mm_kernel_k1(%arg0: i32, %arg1: i32, %arg2: i32, %arg3: memref<1x16x128xbf16, #tpu.memory_space<vmem>>, %arg4: memref<1x128x128xbf16, #tpu.memory_space<vmem>>, %arg5: memref<16x128xbf16, #tpu.memory_space<vmem>>) attributes {dimension_semantics = [#tpu.dimension_semantics<parallel>, #tpu.dimension_semantics<parallel>, #tpu.dimension_semantics<parallel>], iteration_bounds = array<i64: 1, 1, 2>, scalar_prefetch = 0 : i64, scratch_operands = 0 : i64, tpu.core_type = #tpu.core_type<tc>, window_params = [{transform_indices = @transform_0, window_bounds = array<i64: 1, 16, 128>}, {transform_indices = @transform_1, window_bounds = array<i64: 1, 128, 128>}, {transform_indices = @transform_2, window_bounds = array<i64: 16, 128>}]} {
    %c0 = arith.constant 0 : index
    %c0_0 = arith.constant 0 : index
    %c0_1 = arith.constant 0 : index
    %0 = vector.load %arg3[%c0, %c0_0, %c0_1] : memref<1x16x128xbf16, #tpu.memory_space<vmem>>, vector<1x16x128xbf16>
    %1 = vector.shape_cast %0 : vector<1x16x128xbf16> to vector<16x128xbf16>
    %c0_2 = arith.constant 0 : index
    %c0_3 = arith.constant 0 : index
    %c0_4 = arith.constant 0 : index
    %2 = vector.load %arg4[%c0_2, %c0_3, %c0_4] : memref<1x128x128xbf16, #tpu.memory_space<vmem>>, vector<1x128x128xbf16>
    %3 = vector.shape_cast %2 : vector<1x128x128xbf16> to vector<128x128xbf16>
    %cst = arith.constant dense<0.000000e+00> : vector<16x128xf32>
    %4 = tpu.matmul %1, %3, %cst {dimension_numbers = #tpu.dot_dimension_numbers<[1], [0], [0], [1], [0, 0, 1, 1], [], []>} : vector<16x128xbf16>, vector<128x128xbf16>, vector<16x128xf32> -> vector<16x128xf32>
    %5 = arith.truncf %4 : vector<16x128xf32> to vector<16x128xbf16>
    %c0_5 = arith.constant 0 : index
    %c0_6 = arith.constant 0 : index
    %6 = vector.load %arg5[%c0_5, %c0_6] : memref<16x128xbf16, #tpu.memory_space<vmem>>, vector<16x128xbf16>
    tpu.vector_store %arg5[%c0_5, %c0_6], %5 {strides = array<i32>} : memref<16x128xbf16, #tpu.memory_space<vmem>>, vector<16x128xbf16>,
    return
  }
  func.func @transform_0(%arg0: i32, %arg1: i32, %arg2: i32) -> (i32, i32, i32) {
    %c0_i32 = arith.constant 0 : i32
    %c0_i32_0 = arith.constant 0 : i32
    return %arg0, %arg1, %c0_i32 : i32, i32, i32
  }
  func.func @transform_1(%arg0: i32, %arg1: i32, %arg2: i32) -> (i32, i32, i32) {
    %c0_i32 = arith.constant 0 : i32
    %c0_i32_0 = arith.constant 0 : i32
    return %arg0, %c0_i32, %arg2 : i32, i32, i32
  }
  func.func @transform_2(%arg0: i32, %arg1: i32, %arg2: i32) -> (i32, i32) {
    %c2_i32 = arith.constant 2 : i32
    %0 = arith.muli %arg0, %c2_i32 : i32
    %1 = arith.addi %0, %arg2 : i32
    %c0_i32 = arith.constant 0 : i32
    return %arg1, %1 : i32, i32
  }
}

module attributes {stable_mosaic.version = 11 : i64} {
  func.func @_mm_kernel_k1(%arg0: i32, %arg1: i32, %arg2: i32, %arg3: memref<1x32x128xbf16, #tpu.memory_space<vmem>>, %arg4: memref<1x128x256xbf16, #tpu.memory_space<vmem>>, %arg5: memref<32x256xbf16, #tpu.memory_space<vmem>>) attributes {dimension_semantics = [#tpu.dimension_semantics<parallel>, #tpu.dimension_semantics<parallel>, #tpu.dimension_semantics<parallel>], iteration_bounds = array<i64: 1, 1, 2>, scalar_prefetch = 0 : i64, scratch_operands = 0 : i64, tpu.core_type = #tpu.core_type<tc>, window_params = [{transform_indices = @transform_0, window_bounds = array<i64: 1, 32, 128>}, {transform_indices = @transform_1, window_bounds = array<i64: 1, 128, 256>}, {transform_indices = @transform_2, window_bounds = array<i64: 32, 256>}]} {
    %c0 = arith.constant 0 : index
    %c0_0 = arith.constant 0 : index
    %c0_1 = arith.constant 0 : index
    %0 = vector.load %arg3[%c0, %c0_0, %c0_1] : memref<1x32x128xbf16, #tpu.memory_space<vmem>>, vector<1x32x128xbf16>
    %1 = vector.shape_cast %0 : vector<1x32x128xbf16> to vector<32x128xbf16>
    %c0_2 = arith.constant 0 : index
    %c0_3 = arith.constant 0 : index
    %c0_4 = arith.constant 0 : index
    %2 = vector.load %arg4[%c0_2, %c0_3, %c0_4] : memref<1x128x256xbf16, #tpu.memory_space<vmem>>, vector<1x128x256xbf16>
    %3 = vector.shape_cast %2 : vector<1x128x256xbf16> to vector<128x256xbf16>
    %cst = arith.constant dense<0.000000e+00> : vector<32x256xf32>
    %4 = tpu.matmul %1, %3, %cst {dimension_numbers = #tpu.dot_dimension_numbers<[1], [0], [0], [1], [0, 0, 1, 1], [], []>} : vector<32x128xbf16>, vector<128x256xbf16>, vector<32x256xf32> -> vector<32x256xf32>
    %5 = arith.truncf %4 : vector<32x256xf32> to vector<32x256xbf16>
    %c0_5 = arith.constant 0 : index
    %c0_6 = arith.constant 0 : index
    %6 = vector.load %arg5[%c0_5, %c0_6] : memref<32x256xbf16, #tpu.memory_space<vmem>>, vector<32x256xbf16>
    tpu.vector_store %arg5[%c0_5, %c0_6], %5 {strides = array<i32>} : memref<32x256xbf16, #tpu.memory_space<vmem>>, vector<32x256xbf16>,
    return
  }
  func.func @transform_0(%arg0: i32, %arg1: i32, %arg2: i32) -> (i32, i32, i32) {
    %c0_i32 = arith.constant 0 : i32
    %c0_i32_0 = arith.constant 0 : i32
    return %arg0, %arg1, %c0_i32 : i32, i32, i32
  }
  func.func @transform_1(%arg0: i32, %arg1: i32, %arg2: i32) -> (i32, i32, i32) {
    %c0_i32 = arith.constant 0 : i32
    %c0_i32_0 = arith.constant 0 : i32
    return %arg0, %c0_i32, %arg2 : i32, i32, i32
  }
  func.func @transform_2(%arg0: i32, %arg1: i32, %arg2: i32) -> (i32, i32) {
    %c2_i32 = arith.constant 2 : i32
    %0 = arith.muli %arg0, %c2_i32 : i32
    %1 = arith.addi %0, %arg2 : i32
    %c0_i32 = arith.constant 0 : i32
    return %arg1, %1 : i32, i32
  }
}

module attributes {stable_mosaic.version = 11 : i64} {
  func.func @_mm_kernel(%arg0: i32, %arg1: i32, %arg2: i32, %arg3: i32, %arg4: memref<1x16x256xbf16, #tpu.memory_space<vmem>>, %arg5: memref<1x256x256xbf16, #tpu.memory_space<vmem>>, %arg6: memref<16x256xbf16, #tpu.memory_space<vmem>>, %arg7: memref<16x256xf32, #tpu.memory_space<vmem>>) attributes {dimension_semantics = [#tpu.dimension_semantics<parallel>, #tpu.dimension_semantics<parallel>, #tpu.dimension_semantics<parallel>, #tpu.dimension_semantics<arbitrary>], iteration_bounds = array<i64: 4, 1, 1, 5>, scalar_prefetch = 0 : i64, scratch_operands = 1 : i64, tpu.core_type = #tpu.core_type<tc>, window_params = [{transform_indices = @transform_0, window_bounds = array<i64: 1, 16, 256>}, {transform_indices = @transform_1, window_bounds = array<i64: 1, 256, 256>}, {transform_indices = @transform_2, window_bounds = array<i64: 16, 256>}]} {
    %c0_i32 = arith.constant 0 : i32
    %0 = arith.cmpi eq, %arg3, %c0_i32 : i32
    %1 = arith.extui %0 : i1 to i32
    %c0_i32_0 = arith.constant 0 : i32
    %2 = arith.cmpi ne, %1, %c0_i32_0 : i32
    scf.if %2 {
      %cst_11 = arith.constant 0.000000e+00 : f32
      %14 = vector.broadcast %cst_11 : f32 to vector<16x256xf32>
      %c0_12 = arith.constant 0 : index
      %c0_13 = arith.constant 0 : index
      %15 = vector.load %arg7[%c0_12, %c0_13] : memref<16x256xf32, #tpu.memory_space<vmem>>, vector<16x256xf32>
      tpu.vector_store %arg7[%c0_12, %c0_13], %14 {strides = array<i32>} : memref<16x256xf32, #tpu.memory_space<vmem>>, vector<16x256xf32>,
    } else {
    }
    %c0 = arith.constant 0 : index
    %c0_1 = arith.constant 0 : index
    %3 = vector.load %arg7[%c0, %c0_1] : memref<16x256xf32, #tpu.memory_space<vmem>>, vector<16x256xf32>
    %c0_2 = arith.constant 0 : index
    %c0_3 = arith.constant 0 : index
    %c0_4 = arith.constant 0 : index
    %4 = vector.load %arg4[%c0_2, %c0_3, %c0_4] : memref<1x16x256xbf16, #tpu.memory_space<vmem>>, vector<1x16x256xbf16>
    %5 = vector.shape_cast %4 : vector<1x16x256xbf16> to vector<16x256xbf16>
    %c0_5 = arith.constant 0 : index
    %c0_6 = arith.constant 0 : index
    %c0_7 = arith.constant 0 : index
    %6 = vector.load %arg5[%c0_5, %c0_6, %c0_7] : memref<1x256x256xbf16, #tpu.memory_space<vmem>>, vector<1x256x256xbf16>
    %7 = vector.shape_cast %6 : vector<1x256x256xbf16> to vector<256x256xbf16>
    %cst = arith.constant dense<0.000000e+00> : vector<16x256xf32>
    %8 = tpu.matmul %5, %7, %cst {dimension_numbers = #tpu.dot_dimension_numbers<[1], [0], [0], [1], [0, 0, 1, 1], [], []>} : vector<16x256xbf16>, vector<256x256xbf16>, vector<16x256xf32> -> vector<16x256xf32>
    %9 = arith.addf %3, %8 : vector<16x256xf32>
    %c0_8 = arith.constant 0 : index
    %c0_9 = arith.constant 0 : index
    %10 = vector.load %arg7[%c0_8, %c0_9] : memref<16x256xf32, #tpu.memory_space<vmem>>, vector<16x256xf32>
    tpu.vector_store %arg7[%c0_8, %c0_9], %9 {strides = array<i32>} : memref<16x256xf32, #tpu.memory_space<vmem>>, vector<16x256xf32>,
    %c4_i32 = arith.constant 4 : i32
    %11 = arith.cmpi eq, %arg3, %c4_i32 : i32
    %12 = arith.extui %11 : i1 to i32
    %c0_i32_10 = arith.constant 0 : i32
    %13 = arith.cmpi ne, %12, %c0_i32_10 : i32
    scf.if %13 {
      %c0_11 = arith.constant 0 : index
      %c0_12 = arith.constant 0 : index
      %14 = vector.load %arg7[%c0_11, %c0_12] : memref<16x256xf32, #tpu.memory_space<vmem>>, vector<16x256xf32>
      %15 = arith.truncf %14 : vector<16x256xf32> to vector<16x256xbf16>
      %c0_13 = arith.constant 0 : index
      %c0_14 = arith.constant 0 : index
      %16 = vector.load %arg6[%c0_13, %c0_14] : memref<16x256xbf16, #tpu.memory_space<vmem>>, vector<16x256xbf16>
      tpu.vector_store %arg6[%c0_13, %c0_14], %15 {strides = array<i32>} : memref<16x256xbf16, #tpu.memory_space<vmem>>, vector<16x256xbf16>,
    } else {
    }
    return
  }
  func.func @transform_0(%arg0: i32, %arg1: i32, %arg2: i32, %arg3: i32) -> (i32, i32, i32) {
    %c0_i32 = arith.constant 0 : i32
    return %arg0, %arg1, %arg3 : i32, i32, i32
  }
  func.func @transform_1(%arg0: i32, %arg1: i32, %arg2: i32, %arg3: i32) -> (i32, i32, i32) {
    %c0_i32 = arith.constant 0 : i32
    return %arg0, %arg3, %arg2 : i32, i32, i32
  }
  func.func @transform_2(%arg0: i32, %arg1: i32, %arg2: i32, %arg3: i32) -> (i32, i32) {
    %c1_i32 = arith.constant 1 : i32
    %0 = arith.muli %arg0, %c1_i32 : i32
    %1 = arith.addi %0, %arg2 : i32
    %c0_i32 = arith.constant 0 : i32
    return %arg1, %1 : i32, i32
  }
}

module attributes {stable_mosaic.version = 11 : i64} {
  func.func @_mm_kernel(%arg0: i32, %arg1: i32, %arg2: i32, %arg3: i32, %arg4: memref<1x16x256xbf16, #tpu.memory_space<vmem>>, %arg5: memref<1x256x128xbf16, #tpu.memory_space<vmem>>, %arg6: memref<16x128xbf16, #tpu.memory_space<vmem>>, %arg7: memref<16x128xf32, #tpu.memory_space<vmem>>) attributes {dimension_semantics = [#tpu.dimension_semantics<parallel>, #tpu.dimension_semantics<parallel>, #tpu.dimension_semantics<parallel>, #tpu.dimension_semantics<arbitrary>], iteration_bounds = array<i64: 1, 1, 2, 2>, scalar_prefetch = 0 : i64, scratch_operands = 1 : i64, tpu.core_type = #tpu.core_type<tc>, window_params = [{transform_indices = @transform_0, window_bounds = array<i64: 1, 16, 256>}, {transform_indices = @transform_1, window_bounds = array<i64: 1, 256, 128>}, {transform_indices = @transform_2, window_bounds = array<i64: 16, 128>}]} {
    %c0_i32 = arith.constant 0 : i32
    %0 = arith.cmpi eq, %arg3, %c0_i32 : i32
    %1 = arith.extui %0 : i1 to i32
    %c0_i32_0 = arith.constant 0 : i32
    %2 = arith.cmpi ne, %1, %c0_i32_0 : i32
    scf.if %2 {
      %cst_11 = arith.constant 0.000000e+00 : f32
      %14 = vector.broadcast %cst_11 : f32 to vector<16x128xf32>
      %c0_12 = arith.constant 0 : index
      %c0_13 = arith.constant 0 : index
      %15 = vector.load %arg7[%c0_12, %c0_13] : memref<16x128xf32, #tpu.memory_space<vmem>>, vector<16x128xf32>
      tpu.vector_store %arg7[%c0_12, %c0_13], %14 {strides = array<i32>} : memref<16x128xf32, #tpu.memory_space<vmem>>, vector<16x128xf32>,
    } else {
    }
    %c0 = arith.constant 0 : index
    %c0_1 = arith.constant 0 : index
    %3 = vector.load %arg7[%c0, %c0_1] : memref<16x128xf32, #tpu.memory_space<vmem>>, vector<16x128xf32>
    %c0_2 = arith.constant 0 : index
    %c0_3 = arith.constant 0 : index
    %c0_4 = arith.constant 0 : index
    %4 = vector.load %arg4[%c0_2, %c0_3, %c0_4] : memref<1x16x256xbf16, #tpu.memory_space<vmem>>, vector<1x16x256xbf16>
    %5 = vector.shape_cast %4 : vector<1x16x256xbf16> to vector<16x256xbf16>
    %c0_5 = arith.constant 0 : index
    %c0_6 = arith.constant 0 : index
    %c0_7 = arith.constant 0 : index
    %6 = vector.load %arg5[%c0_5, %c0_6, %c0_7] : memref<1x256x128xbf16, #tpu.memory_space<vmem>>, vector<1x256x128xbf16>
    %7 = vector.shape_cast %6 : vector<1x256x128xbf16> to vector<256x128xbf16>
    %cst = arith.constant dense<0.000000e+00> : vector<16x128xf32>
    %8 = tpu.matmul %5, %7, %cst {dimension_numbers = #tpu.dot_dimension_numbers<[1], [0], [0], [1], [0, 0, 1, 1], [], []>} : vector<16x256xbf16>, vector<256x128xbf16>, vector<16x128xf32> -> vector<16x128xf32>
    %9 = arith.addf %3, %8 : vector<16x128xf32>
    %c0_8 = arith.constant 0 : index
    %c0_9 = arith.constant 0 : index
    %10 = vector.load %arg7[%c0_8, %c0_9] : memref<16x128xf32, #tpu.memory_space<vmem>>, vector<16x128xf32>
    tpu.vector_store %arg7[%c0_8, %c0_9], %9 {strides = array<i32>} : memref<16x128xf32, #tpu.memory_space<vmem>>, vector<16x128xf32>,
    %c1_i32 = arith.constant 1 : i32
    %11 = arith.cmpi eq, %arg3, %c1_i32 : i32
    %12 = arith.extui %11 : i1 to i32
    %c0_i32_10 = arith.constant 0 : i32
    %13 = arith.cmpi ne, %12, %c0_i32_10 : i32
    scf.if %13 {
      %c0_11 = arith.constant 0 : index
      %c0_12 = arith.constant 0 : index
      %14 = vector.load %arg7[%c0_11, %c0_12] : memref<16x128xf32, #tpu.memory_space<vmem>>, vector<16x128xf32>
      %15 = arith.truncf %14 : vector<16x128xf32> to vector<16x128xbf16>
      %c0_13 = arith.constant 0 : index
      %c0_14 = arith.constant 0 : index
      %16 = vector.load %arg6[%c0_13, %c0_14] : memref<16x128xbf16, #tpu.memory_space<vmem>>, vector<16x128xbf16>
      tpu.vector_store %arg6[%c0_13, %c0_14], %15 {strides = array<i32>} : memref<16x128xbf16, #tpu.memory_space<vmem>>, vector<16x128xbf16>,
    } else {
    }
    return
  }
  func.func @transform_0(%arg0: i32, %arg1: i32, %arg2: i32, %arg3: i32) -> (i32, i32, i32) {
    %c0_i32 = arith.constant 0 : i32
    return %arg0, %arg1, %arg3 : i32, i32, i32
  }
  func.func @transform_1(%arg0: i32, %arg1: i32, %arg2: i32, %arg3: i32) -> (i32, i32, i32) {
    %c0_i32 = arith.constant 0 : i32
    return %arg0, %arg3, %arg2 : i32, i32, i32
  }
  func.func @transform_2(%arg0: i32, %arg1: i32, %arg2: i32, %arg3: i32) -> (i32, i32) {
    %c2_i32 = arith.constant 2 : i32
    %0 = arith.muli %arg0, %c2_i32 : i32
    %1 = arith.addi %0, %arg2 : i32
    %c0_i32 = arith.constant 0 : i32
    return %arg1, %1 : i32, i32
  }
}

module attributes {stable_mosaic.version = 11 : i64} {
  func.func @_bn_add_relu_kernel(%arg0: i32, %arg1: memref<16x256xbf16, #tpu.memory_space<vmem>>, %arg2: memref<16x256xbf16, #tpu.memory_space<vmem>>, %arg3: memref<1x256xf32, #tpu.memory_space<vmem>>, %arg4: memref<1x256xf32, #tpu.memory_space<vmem>>, %arg5: memref<1x256xf32, #tpu.memory_space<vmem>>, %arg6: memref<1x256xf32, #tpu.memory_space<vmem>>, %arg7: memref<16x256xbf16, #tpu.memory_space<vmem>>) attributes {dimension_semantics = [#tpu.dimension_semantics<parallel>], iteration_bounds = array<i64: 1>, scalar_prefetch = 0 : i64, scratch_operands = 0 : i64, tpu.core_type = #tpu.core_type<tc>, window_params = [{transform_indices = @transform_0, window_bounds = array<i64: 16, 256>}, {transform_indices = @transform_1, window_bounds = array<i64: 16, 256>}, {pipeline_mode = #tpu.pipeline_mode<synchronous>, transform_indices = @transform_2, window_bounds = array<i64: 1, 256>}, {pipeline_mode = #tpu.pipeline_mode<synchronous>, transform_indices = @transform_3, window_bounds = array<i64: 1, 256>}, {pipeline_mode = #tpu.pipeline_mode<synchronous>, transform_indices = @transform_4, window_bounds = array<i64: 1, 256>}, {pipeline_mode = #tpu.pipeline_mode<synchronous>, transform_indices = @transform_5, window_bounds = array<i64: 1, 256>}, {transform_indices = @transform_6, window_bounds = array<i64: 16, 256>}]} {
    %c0 = arith.constant 0 : index
    %c0_0 = arith.constant 0 : index
    %0 = vector.load %arg1[%c0, %c0_0] : memref<16x256xbf16, #tpu.memory_space<vmem>>, vector<16x256xbf16>
    %1 = arith.extf %0 : vector<16x256xbf16> to vector<16x256xf32>
    %c0_1 = arith.constant 0 : index
    %c0_2 = arith.constant 0 : index
    %2 = vector.load %arg3[%c0_1, %c0_2] : memref<1x256xf32, #tpu.memory_space<vmem>>, vector<1x256xf32>
    %3 = vector.broadcast %2 : vector<1x256xf32> to vector<16x256xf32>
    %4 = arith.mulf %1, %3 : vector<16x256xf32>
    %c0_3 = arith.constant 0 : index
    %c0_4 = arith.constant 0 : index
    %5 = vector.load %arg4[%c0_3, %c0_4] : memref<1x256xf32, #tpu.memory_space<vmem>>, vector<1x256xf32>
    %6 = vector.broadcast %5 : vector<1x256xf32> to vector<16x256xf32>
    %7 = arith.addf %4, %6 : vector<16x256xf32>
    %c0_5 = arith.constant 0 : index
    %c0_6 = arith.constant 0 : index
    %8 = vector.load %arg2[%c0_5, %c0_6] : memref<16x256xbf16, #tpu.memory_space<vmem>>, vector<16x256xbf16>
    %9 = arith.extf %8 : vector<16x256xbf16> to vector<16x256xf32>
    %c0_7 = arith.constant 0 : index
    %c0_8 = arith.constant 0 : index
    %10 = vector.load %arg5[%c0_7, %c0_8] : memref<1x256xf32, #tpu.memory_space<vmem>>, vector<1x256xf32>
    %11 = vector.broadcast %10 : vector<1x256xf32> to vector<16x256xf32>
    %12 = arith.mulf %9, %11 : vector<16x256xf32>
    %13 = arith.addf %7, %12 : vector<16x256xf32>
    %c0_9 = arith.constant 0 : index
    %c0_10 = arith.constant 0 : index
    %14 = vector.load %arg6[%c0_9, %c0_10] : memref<1x256xf32, #tpu.memory_space<vmem>>, vector<1x256xf32>
    %15 = vector.broadcast %14 : vector<1x256xf32> to vector<16x256xf32>
    %16 = arith.addf %13, %15 : vector<16x256xf32>
    %cst = arith.constant 0.000000e+00 : f32
    %17 = vector.broadcast %cst : f32 to vector<16x256xf32>
    %18 = arith.maximumf %16, %17 : vector<16x256xf32>
    %19 = arith.truncf %18 : vector<16x256xf32> to vector<16x256xbf16>
    %c0_11 = arith.constant 0 : index
    %c0_12 = arith.constant 0 : index
    %20 = vector.load %arg7[%c0_11, %c0_12] : memref<16x256xbf16, #tpu.memory_space<vmem>>, vector<16x256xbf16>
    tpu.vector_store %arg7[%c0_11, %c0_12], %19 {strides = array<i32>} : memref<16x256xbf16, #tpu.memory_space<vmem>>, vector<16x256xbf16>,
    return
  }
  func.func @transform_0(%arg0: i32) -> (i32, i32) {
    %c0_i32 = arith.constant 0 : i32
    %c0_i32_0 = arith.constant 0 : i32
    return %arg0, %c0_i32 : i32, i32
  }
  func.func @transform_1(%arg0: i32) -> (i32, i32) {
    %c0_i32 = arith.constant 0 : i32
    %c0_i32_0 = arith.constant 0 : i32
    return %arg0, %c0_i32 : i32, i32
  }
  func.func @transform_2(%arg0: i32) -> (i32, i32) {
    %c0_i32 = arith.constant 0 : i32
    %c0_i32_0 = arith.constant 0 : i32
    %c0_i32_1 = arith.constant 0 : i32
    return %c0_i32, %c0_i32_0 : i32, i32
  }
  func.func @transform_3(%arg0: i32) -> (i32, i32) {
    %c0_i32 = arith.constant 0 : i32
    %c0_i32_0 = arith.constant 0 : i32
    %c0_i32_1 = arith.constant 0 : i32
    return %c0_i32, %c0_i32_0 : i32, i32
  }
  func.func @transform_4(%arg0: i32) -> (i32, i32) {
    %c0_i32 = arith.constant 0 : i32
    %c0_i32_0 = arith.constant 0 : i32
    %c0_i32_1 = arith.constant 0 : i32
    return %c0_i32, %c0_i32_0 : i32, i32
  }
  func.func @transform_5(%arg0: i32) -> (i32, i32) {
    %c0_i32 = arith.constant 0 : i32
    %c0_i32_0 = arith.constant 0 : i32
    %c0_i32_1 = arith.constant 0 : i32
    return %c0_i32, %c0_i32_0 : i32, i32
  }
  func.func @transform_6(%arg0: i32) -> (i32, i32) {
    %c0_i32 = arith.constant 0 : i32
    %c0_i32_0 = arith.constant 0 : i32
    return %arg0, %c0_i32 : i32, i32
  }
}

module attributes {stable_mosaic.version = 11 : i64} {
  func.func @_mm_kernel_k1(%arg0: i32, %arg1: i32, %arg2: i32, %arg3: memref<1x16x256xbf16, #tpu.memory_space<vmem>>, %arg4: memref<1x256x256xbf16, #tpu.memory_space<vmem>>, %arg5: memref<16x256xbf16, #tpu.memory_space<vmem>>) attributes {dimension_semantics = [#tpu.dimension_semantics<parallel>, #tpu.dimension_semantics<parallel>, #tpu.dimension_semantics<parallel>], iteration_bounds = array<i64: 1, 1, 2>, scalar_prefetch = 0 : i64, scratch_operands = 0 : i64, tpu.core_type = #tpu.core_type<tc>, window_params = [{transform_indices = @transform_0, window_bounds = array<i64: 1, 16, 256>}, {transform_indices = @transform_1, window_bounds = array<i64: 1, 256, 256>}, {transform_indices = @transform_2, window_bounds = array<i64: 16, 256>}]} {
    %c0 = arith.constant 0 : index
    %c0_0 = arith.constant 0 : index
    %c0_1 = arith.constant 0 : index
    %0 = vector.load %arg3[%c0, %c0_0, %c0_1] : memref<1x16x256xbf16, #tpu.memory_space<vmem>>, vector<1x16x256xbf16>
    %1 = vector.shape_cast %0 : vector<1x16x256xbf16> to vector<16x256xbf16>
    %c0_2 = arith.constant 0 : index
    %c0_3 = arith.constant 0 : index
    %c0_4 = arith.constant 0 : index
    %2 = vector.load %arg4[%c0_2, %c0_3, %c0_4] : memref<1x256x256xbf16, #tpu.memory_space<vmem>>, vector<1x256x256xbf16>
    %3 = vector.shape_cast %2 : vector<1x256x256xbf16> to vector<256x256xbf16>
    %cst = arith.constant dense<0.000000e+00> : vector<16x256xf32>
    %4 = tpu.matmul %1, %3, %cst {dimension_numbers = #tpu.dot_dimension_numbers<[1], [0], [0], [1], [0, 0, 1, 1], [], []>} : vector<16x256xbf16>, vector<256x256xbf16>, vector<16x256xf32> -> vector<16x256xf32>
    %5 = arith.truncf %4 : vector<16x256xf32> to vector<16x256xbf16>
    %c0_5 = arith.constant 0 : index
    %c0_6 = arith.constant 0 : index
    %6 = vector.load %arg5[%c0_5, %c0_6] : memref<16x256xbf16, #tpu.memory_space<vmem>>, vector<16x256xbf16>
    tpu.vector_store %arg5[%c0_5, %c0_6], %5 {strides = array<i32>} : memref<16x256xbf16, #tpu.memory_space<vmem>>, vector<16x256xbf16>,
    return
  }
  func.func @transform_0(%arg0: i32, %arg1: i32, %arg2: i32) -> (i32, i32, i32) {
    %c0_i32 = arith.constant 0 : i32
    %c0_i32_0 = arith.constant 0 : i32
    return %arg0, %arg1, %c0_i32 : i32, i32, i32
  }
  func.func @transform_1(%arg0: i32, %arg1: i32, %arg2: i32) -> (i32, i32, i32) {
    %c0_i32 = arith.constant 0 : i32
    %c0_i32_0 = arith.constant 0 : i32
    return %arg0, %c0_i32, %arg2 : i32, i32, i32
  }
  func.func @transform_2(%arg0: i32, %arg1: i32, %arg2: i32) -> (i32, i32) {
    %c2_i32 = arith.constant 2 : i32
    %0 = arith.muli %arg0, %c2_i32 : i32
    %1 = arith.addi %0, %arg2 : i32
    %c0_i32 = arith.constant 0 : i32
    return %arg1, %1 : i32, i32
  }
}

module attributes {stable_mosaic.version = 11 : i64} {
  func.func @_mm_kernel_k1(%arg0: i32, %arg1: i32, %arg2: i32, %arg3: memref<1x16x256xbf16, #tpu.memory_space<vmem>>, %arg4: memref<1x256x256xbf16, #tpu.memory_space<vmem>>, %arg5: memref<16x256xbf16, #tpu.memory_space<vmem>>) attributes {dimension_semantics = [#tpu.dimension_semantics<parallel>, #tpu.dimension_semantics<parallel>, #tpu.dimension_semantics<parallel>], iteration_bounds = array<i64: 1, 1, 4>, scalar_prefetch = 0 : i64, scratch_operands = 0 : i64, tpu.core_type = #tpu.core_type<tc>, window_params = [{transform_indices = @transform_0, window_bounds = array<i64: 1, 16, 256>}, {transform_indices = @transform_1, window_bounds = array<i64: 1, 256, 256>}, {transform_indices = @transform_2, window_bounds = array<i64: 16, 256>}]} {
    %c0 = arith.constant 0 : index
    %c0_0 = arith.constant 0 : index
    %c0_1 = arith.constant 0 : index
    %0 = vector.load %arg3[%c0, %c0_0, %c0_1] : memref<1x16x256xbf16, #tpu.memory_space<vmem>>, vector<1x16x256xbf16>
    %1 = vector.shape_cast %0 : vector<1x16x256xbf16> to vector<16x256xbf16>
    %c0_2 = arith.constant 0 : index
    %c0_3 = arith.constant 0 : index
    %c0_4 = arith.constant 0 : index
    %2 = vector.load %arg4[%c0_2, %c0_3, %c0_4] : memref<1x256x256xbf16, #tpu.memory_space<vmem>>, vector<1x256x256xbf16>
    %3 = vector.shape_cast %2 : vector<1x256x256xbf16> to vector<256x256xbf16>
    %cst = arith.constant dense<0.000000e+00> : vector<16x256xf32>
    %4 = tpu.matmul %1, %3, %cst {dimension_numbers = #tpu.dot_dimension_numbers<[1], [0], [0], [1], [0, 0, 1, 1], [], []>} : vector<16x256xbf16>, vector<256x256xbf16>, vector<16x256xf32> -> vector<16x256xf32>
    %5 = arith.truncf %4 : vector<16x256xf32> to vector<16x256xbf16>
    %c0_5 = arith.constant 0 : index
    %c0_6 = arith.constant 0 : index
    %6 = vector.load %arg5[%c0_5, %c0_6] : memref<16x256xbf16, #tpu.memory_space<vmem>>, vector<16x256xbf16>
    tpu.vector_store %arg5[%c0_5, %c0_6], %5 {strides = array<i32>} : memref<16x256xbf16, #tpu.memory_space<vmem>>, vector<16x256xbf16>,
    return
  }
  func.func @transform_0(%arg0: i32, %arg1: i32, %arg2: i32) -> (i32, i32, i32) {
    %c0_i32 = arith.constant 0 : i32
    %c0_i32_0 = arith.constant 0 : i32
    return %arg0, %arg1, %c0_i32 : i32, i32, i32
  }
  func.func @transform_1(%arg0: i32, %arg1: i32, %arg2: i32) -> (i32, i32, i32) {
    %c0_i32 = arith.constant 0 : i32
    %c0_i32_0 = arith.constant 0 : i32
    return %arg0, %c0_i32, %arg2 : i32, i32, i32
  }
  func.func @transform_2(%arg0: i32, %arg1: i32, %arg2: i32) -> (i32, i32) {
    %c4_i32 = arith.constant 4 : i32
    %0 = arith.muli %arg0, %c4_i32 : i32
    %1 = arith.addi %0, %arg2 : i32
    %c0_i32 = arith.constant 0 : i32
    return %arg1, %1 : i32, i32
  }
}

module attributes {stable_mosaic.version = 11 : i64} {
  func.func @_mm_kernel(%arg0: i32, %arg1: i32, %arg2: i32, %arg3: i32, %arg4: memref<1x16x256xbf16, #tpu.memory_space<vmem>>, %arg5: memref<1x256x256xbf16, #tpu.memory_space<vmem>>, %arg6: memref<16x256xbf16, #tpu.memory_space<vmem>>, %arg7: memref<16x256xf32, #tpu.memory_space<vmem>>) attributes {dimension_semantics = [#tpu.dimension_semantics<parallel>, #tpu.dimension_semantics<parallel>, #tpu.dimension_semantics<parallel>, #tpu.dimension_semantics<arbitrary>], iteration_bounds = array<i64: 4, 1, 2, 9>, scalar_prefetch = 0 : i64, scratch_operands = 1 : i64, tpu.core_type = #tpu.core_type<tc>, window_params = [{transform_indices = @transform_0, window_bounds = array<i64: 1, 16, 256>}, {transform_indices = @transform_1, window_bounds = array<i64: 1, 256, 256>}, {transform_indices = @transform_2, window_bounds = array<i64: 16, 256>}]} {
    %c0_i32 = arith.constant 0 : i32
    %0 = arith.cmpi eq, %arg3, %c0_i32 : i32
    %1 = arith.extui %0 : i1 to i32
    %c0_i32_0 = arith.constant 0 : i32
    %2 = arith.cmpi ne, %1, %c0_i32_0 : i32
    scf.if %2 {
      %cst_11 = arith.constant 0.000000e+00 : f32
      %14 = vector.broadcast %cst_11 : f32 to vector<16x256xf32>
      %c0_12 = arith.constant 0 : index
      %c0_13 = arith.constant 0 : index
      %15 = vector.load %arg7[%c0_12, %c0_13] : memref<16x256xf32, #tpu.memory_space<vmem>>, vector<16x256xf32>
      tpu.vector_store %arg7[%c0_12, %c0_13], %14 {strides = array<i32>} : memref<16x256xf32, #tpu.memory_space<vmem>>, vector<16x256xf32>,
    } else {
    }
    %c0 = arith.constant 0 : index
    %c0_1 = arith.constant 0 : index
    %3 = vector.load %arg7[%c0, %c0_1] : memref<16x256xf32, #tpu.memory_space<vmem>>, vector<16x256xf32>
    %c0_2 = arith.constant 0 : index
    %c0_3 = arith.constant 0 : index
    %c0_4 = arith.constant 0 : index
    %4 = vector.load %arg4[%c0_2, %c0_3, %c0_4] : memref<1x16x256xbf16, #tpu.memory_space<vmem>>, vector<1x16x256xbf16>
    %5 = vector.shape_cast %4 : vector<1x16x256xbf16> to vector<16x256xbf16>
    %c0_5 = arith.constant 0 : index
    %c0_6 = arith.constant 0 : index
    %c0_7 = arith.constant 0 : index
    %6 = vector.load %arg5[%c0_5, %c0_6, %c0_7] : memref<1x256x256xbf16, #tpu.memory_space<vmem>>, vector<1x256x256xbf16>
    %7 = vector.shape_cast %6 : vector<1x256x256xbf16> to vector<256x256xbf16>
    %cst = arith.constant dense<0.000000e+00> : vector<16x256xf32>
    %8 = tpu.matmul %5, %7, %cst {dimension_numbers = #tpu.dot_dimension_numbers<[1], [0], [0], [1], [0, 0, 1, 1], [], []>} : vector<16x256xbf16>, vector<256x256xbf16>, vector<16x256xf32> -> vector<16x256xf32>
    %9 = arith.addf %3, %8 : vector<16x256xf32>
    %c0_8 = arith.constant 0 : index
    %c0_9 = arith.constant 0 : index
    %10 = vector.load %arg7[%c0_8, %c0_9] : memref<16x256xf32, #tpu.memory_space<vmem>>, vector<16x256xf32>
    tpu.vector_store %arg7[%c0_8, %c0_9], %9 {strides = array<i32>} : memref<16x256xf32, #tpu.memory_space<vmem>>, vector<16x256xf32>,
    %c8_i32 = arith.constant 8 : i32
    %11 = arith.cmpi eq, %arg3, %c8_i32 : i32
    %12 = arith.extui %11 : i1 to i32
    %c0_i32_10 = arith.constant 0 : i32
    %13 = arith.cmpi ne, %12, %c0_i32_10 : i32
    scf.if %13 {
      %c0_11 = arith.constant 0 : index
      %c0_12 = arith.constant 0 : index
      %14 = vector.load %arg7[%c0_11, %c0_12] : memref<16x256xf32, #tpu.memory_space<vmem>>, vector<16x256xf32>
      %15 = arith.truncf %14 : vector<16x256xf32> to vector<16x256xbf16>
      %c0_13 = arith.constant 0 : index
      %c0_14 = arith.constant 0 : index
      %16 = vector.load %arg6[%c0_13, %c0_14] : memref<16x256xbf16, #tpu.memory_space<vmem>>, vector<16x256xbf16>
      tpu.vector_store %arg6[%c0_13, %c0_14], %15 {strides = array<i32>} : memref<16x256xbf16, #tpu.memory_space<vmem>>, vector<16x256xbf16>,
    } else {
    }
    return
  }
  func.func @transform_0(%arg0: i32, %arg1: i32, %arg2: i32, %arg3: i32) -> (i32, i32, i32) {
    %c0_i32 = arith.constant 0 : i32
    return %arg0, %arg1, %arg3 : i32, i32, i32
  }
  func.func @transform_1(%arg0: i32, %arg1: i32, %arg2: i32, %arg3: i32) -> (i32, i32, i32) {
    %c0_i32 = arith.constant 0 : i32
    return %arg0, %arg3, %arg2 : i32, i32, i32
  }
  func.func @transform_2(%arg0: i32, %arg1: i32, %arg2: i32, %arg3: i32) -> (i32, i32) {
    %c2_i32 = arith.constant 2 : i32
    %0 = arith.muli %arg0, %c2_i32 : i32
    %1 = arith.addi %0, %arg2 : i32
    %c0_i32 = arith.constant 0 : i32
    return %arg1, %1 : i32, i32
  }
}

module attributes {stable_mosaic.version = 11 : i64} {
  func.func @_mm_kernel(%arg0: i32, %arg1: i32, %arg2: i32, %arg3: i32, %arg4: memref<1x16x256xbf16, #tpu.memory_space<vmem>>, %arg5: memref<1x256x256xbf16, #tpu.memory_space<vmem>>, %arg6: memref<16x256xbf16, #tpu.memory_space<vmem>>, %arg7: memref<16x256xf32, #tpu.memory_space<vmem>>) attributes {dimension_semantics = [#tpu.dimension_semantics<parallel>, #tpu.dimension_semantics<parallel>, #tpu.dimension_semantics<parallel>, #tpu.dimension_semantics<arbitrary>], iteration_bounds = array<i64: 1, 1, 2, 4>, scalar_prefetch = 0 : i64, scratch_operands = 1 : i64, tpu.core_type = #tpu.core_type<tc>, window_params = [{transform_indices = @transform_0, window_bounds = array<i64: 1, 16, 256>}, {transform_indices = @transform_1, window_bounds = array<i64: 1, 256, 256>}, {transform_indices = @transform_2, window_bounds = array<i64: 16, 256>}]} {
    %c0_i32 = arith.constant 0 : i32
    %0 = arith.cmpi eq, %arg3, %c0_i32 : i32
    %1 = arith.extui %0 : i1 to i32
    %c0_i32_0 = arith.constant 0 : i32
    %2 = arith.cmpi ne, %1, %c0_i32_0 : i32
    scf.if %2 {
      %cst_11 = arith.constant 0.000000e+00 : f32
      %14 = vector.broadcast %cst_11 : f32 to vector<16x256xf32>
      %c0_12 = arith.constant 0 : index
      %c0_13 = arith.constant 0 : index
      %15 = vector.load %arg7[%c0_12, %c0_13] : memref<16x256xf32, #tpu.memory_space<vmem>>, vector<16x256xf32>
      tpu.vector_store %arg7[%c0_12, %c0_13], %14 {strides = array<i32>} : memref<16x256xf32, #tpu.memory_space<vmem>>, vector<16x256xf32>,
    } else {
    }
    %c0 = arith.constant 0 : index
    %c0_1 = arith.constant 0 : index
    %3 = vector.load %arg7[%c0, %c0_1] : memref<16x256xf32, #tpu.memory_space<vmem>>, vector<16x256xf32>
    %c0_2 = arith.constant 0 : index
    %c0_3 = arith.constant 0 : index
    %c0_4 = arith.constant 0 : index
    %4 = vector.load %arg4[%c0_2, %c0_3, %c0_4] : memref<1x16x256xbf16, #tpu.memory_space<vmem>>, vector<1x16x256xbf16>
    %5 = vector.shape_cast %4 : vector<1x16x256xbf16> to vector<16x256xbf16>
    %c0_5 = arith.constant 0 : index
    %c0_6 = arith.constant 0 : index
    %c0_7 = arith.constant 0 : index
    %6 = vector.load %arg5[%c0_5, %c0_6, %c0_7] : memref<1x256x256xbf16, #tpu.memory_space<vmem>>, vector<1x256x256xbf16>
    %7 = vector.shape_cast %6 : vector<1x256x256xbf16> to vector<256x256xbf16>
    %cst = arith.constant dense<0.000000e+00> : vector<16x256xf32>
    %8 = tpu.matmul %5, %7, %cst {dimension_numbers = #tpu.dot_dimension_numbers<[1], [0], [0], [1], [0, 0, 1, 1], [], []>} : vector<16x256xbf16>, vector<256x256xbf16>, vector<16x256xf32> -> vector<16x256xf32>
    %9 = arith.addf %3, %8 : vector<16x256xf32>
    %c0_8 = arith.constant 0 : index
    %c0_9 = arith.constant 0 : index
    %10 = vector.load %arg7[%c0_8, %c0_9] : memref<16x256xf32, #tpu.memory_space<vmem>>, vector<16x256xf32>
    tpu.vector_store %arg7[%c0_8, %c0_9], %9 {strides = array<i32>} : memref<16x256xf32, #tpu.memory_space<vmem>>, vector<16x256xf32>,
    %c3_i32 = arith.constant 3 : i32
    %11 = arith.cmpi eq, %arg3, %c3_i32 : i32
    %12 = arith.extui %11 : i1 to i32
    %c0_i32_10 = arith.constant 0 : i32
    %13 = arith.cmpi ne, %12, %c0_i32_10 : i32
    scf.if %13 {
      %c0_11 = arith.constant 0 : index
      %c0_12 = arith.constant 0 : index
      %14 = vector.load %arg7[%c0_11, %c0_12] : memref<16x256xf32, #tpu.memory_space<vmem>>, vector<16x256xf32>
      %15 = arith.truncf %14 : vector<16x256xf32> to vector<16x256xbf16>
      %c0_13 = arith.constant 0 : index
      %c0_14 = arith.constant 0 : index
      %16 = vector.load %arg6[%c0_13, %c0_14] : memref<16x256xbf16, #tpu.memory_space<vmem>>, vector<16x256xbf16>
      tpu.vector_store %arg6[%c0_13, %c0_14], %15 {strides = array<i32>} : memref<16x256xbf16, #tpu.memory_space<vmem>>, vector<16x256xbf16>,
    } else {
    }
    return
  }
  func.func @transform_0(%arg0: i32, %arg1: i32, %arg2: i32, %arg3: i32) -> (i32, i32, i32) {
    %c0_i32 = arith.constant 0 : i32
    return %arg0, %arg1, %arg3 : i32, i32, i32
  }
  func.func @transform_1(%arg0: i32, %arg1: i32, %arg2: i32, %arg3: i32) -> (i32, i32, i32) {
    %c0_i32 = arith.constant 0 : i32
    return %arg0, %arg3, %arg2 : i32, i32, i32
  }
  func.func @transform_2(%arg0: i32, %arg1: i32, %arg2: i32, %arg3: i32) -> (i32, i32) {
    %c2_i32 = arith.constant 2 : i32
    %0 = arith.muli %arg0, %c2_i32 : i32
    %1 = arith.addi %0, %arg2 : i32
    %c0_i32 = arith.constant 0 : i32
    return %arg1, %1 : i32, i32
  }
}

module attributes {stable_mosaic.version = 11 : i64} {
  func.func @_bn_add_relu_kernel(%arg0: i32, %arg1: memref<16x512xbf16, #tpu.memory_space<vmem>>, %arg2: memref<16x512xbf16, #tpu.memory_space<vmem>>, %arg3: memref<1x512xf32, #tpu.memory_space<vmem>>, %arg4: memref<1x512xf32, #tpu.memory_space<vmem>>, %arg5: memref<1x512xf32, #tpu.memory_space<vmem>>, %arg6: memref<1x512xf32, #tpu.memory_space<vmem>>, %arg7: memref<16x512xbf16, #tpu.memory_space<vmem>>) attributes {dimension_semantics = [#tpu.dimension_semantics<parallel>], iteration_bounds = array<i64: 1>, scalar_prefetch = 0 : i64, scratch_operands = 0 : i64, tpu.core_type = #tpu.core_type<tc>, window_params = [{transform_indices = @transform_0, window_bounds = array<i64: 16, 512>}, {transform_indices = @transform_1, window_bounds = array<i64: 16, 512>}, {pipeline_mode = #tpu.pipeline_mode<synchronous>, transform_indices = @transform_2, window_bounds = array<i64: 1, 512>}, {pipeline_mode = #tpu.pipeline_mode<synchronous>, transform_indices = @transform_3, window_bounds = array<i64: 1, 512>}, {pipeline_mode = #tpu.pipeline_mode<synchronous>, transform_indices = @transform_4, window_bounds = array<i64: 1, 512>}, {pipeline_mode = #tpu.pipeline_mode<synchronous>, transform_indices = @transform_5, window_bounds = array<i64: 1, 512>}, {transform_indices = @transform_6, window_bounds = array<i64: 16, 512>}]} {
    %c0 = arith.constant 0 : index
    %c0_0 = arith.constant 0 : index
    %0 = vector.load %arg1[%c0, %c0_0] : memref<16x512xbf16, #tpu.memory_space<vmem>>, vector<16x512xbf16>
    %1 = arith.extf %0 : vector<16x512xbf16> to vector<16x512xf32>
    %c0_1 = arith.constant 0 : index
    %c0_2 = arith.constant 0 : index
    %2 = vector.load %arg3[%c0_1, %c0_2] : memref<1x512xf32, #tpu.memory_space<vmem>>, vector<1x512xf32>
    %3 = vector.broadcast %2 : vector<1x512xf32> to vector<16x512xf32>
    %4 = arith.mulf %1, %3 : vector<16x512xf32>
    %c0_3 = arith.constant 0 : index
    %c0_4 = arith.constant 0 : index
    %5 = vector.load %arg4[%c0_3, %c0_4] : memref<1x512xf32, #tpu.memory_space<vmem>>, vector<1x512xf32>
    %6 = vector.broadcast %5 : vector<1x512xf32> to vector<16x512xf32>
    %7 = arith.addf %4, %6 : vector<16x512xf32>
    %c0_5 = arith.constant 0 : index
    %c0_6 = arith.constant 0 : index
    %8 = vector.load %arg2[%c0_5, %c0_6] : memref<16x512xbf16, #tpu.memory_space<vmem>>, vector<16x512xbf16>
    %9 = arith.extf %8 : vector<16x512xbf16> to vector<16x512xf32>
    %c0_7 = arith.constant 0 : index
    %c0_8 = arith.constant 0 : index
    %10 = vector.load %arg5[%c0_7, %c0_8] : memref<1x512xf32, #tpu.memory_space<vmem>>, vector<1x512xf32>
    %11 = vector.broadcast %10 : vector<1x512xf32> to vector<16x512xf32>
    %12 = arith.mulf %9, %11 : vector<16x512xf32>
    %13 = arith.addf %7, %12 : vector<16x512xf32>
    %c0_9 = arith.constant 0 : index
    %c0_10 = arith.constant 0 : index
    %14 = vector.load %arg6[%c0_9, %c0_10] : memref<1x512xf32, #tpu.memory_space<vmem>>, vector<1x512xf32>
    %15 = vector.broadcast %14 : vector<1x512xf32> to vector<16x512xf32>
    %16 = arith.addf %13, %15 : vector<16x512xf32>
    %cst = arith.constant 0.000000e+00 : f32
    %17 = vector.broadcast %cst : f32 to vector<16x512xf32>
    %18 = arith.maximumf %16, %17 : vector<16x512xf32>
    %19 = arith.truncf %18 : vector<16x512xf32> to vector<16x512xbf16>
    %c0_11 = arith.constant 0 : index
    %c0_12 = arith.constant 0 : index
    %20 = vector.load %arg7[%c0_11, %c0_12] : memref<16x512xbf16, #tpu.memory_space<vmem>>, vector<16x512xbf16>
    tpu.vector_store %arg7[%c0_11, %c0_12], %19 {strides = array<i32>} : memref<16x512xbf16, #tpu.memory_space<vmem>>, vector<16x512xbf16>,
    return
  }
  func.func @transform_0(%arg0: i32) -> (i32, i32) {
    %c0_i32 = arith.constant 0 : i32
    %c0_i32_0 = arith.constant 0 : i32
    return %arg0, %c0_i32 : i32, i32
  }
  func.func @transform_1(%arg0: i32) -> (i32, i32) {
    %c0_i32 = arith.constant 0 : i32
    %c0_i32_0 = arith.constant 0 : i32
    return %arg0, %c0_i32 : i32, i32
  }
  func.func @transform_2(%arg0: i32) -> (i32, i32) {
    %c0_i32 = arith.constant 0 : i32
    %c0_i32_0 = arith.constant 0 : i32
    %c0_i32_1 = arith.constant 0 : i32
    return %c0_i32, %c0_i32_0 : i32, i32
  }
  func.func @transform_3(%arg0: i32) -> (i32, i32) {
    %c0_i32 = arith.constant 0 : i32
    %c0_i32_0 = arith.constant 0 : i32
    %c0_i32_1 = arith.constant 0 : i32
    return %c0_i32, %c0_i32_0 : i32, i32
  }
  func.func @transform_4(%arg0: i32) -> (i32, i32) {
    %c0_i32 = arith.constant 0 : i32
    %c0_i32_0 = arith.constant 0 : i32
    %c0_i32_1 = arith.constant 0 : i32
    return %c0_i32, %c0_i32_0 : i32, i32
  }
  func.func @transform_5(%arg0: i32) -> (i32, i32) {
    %c0_i32 = arith.constant 0 : i32
    %c0_i32_0 = arith.constant 0 : i32
    %c0_i32_1 = arith.constant 0 : i32
    return %c0_i32, %c0_i32_0 : i32, i32
  }
  func.func @transform_6(%arg0: i32) -> (i32, i32) {
    %c0_i32 = arith.constant 0 : i32
    %c0_i32_0 = arith.constant 0 : i32
    return %arg0, %c0_i32 : i32, i32
  }
}

module attributes {stable_mosaic.version = 11 : i64} {
  func.func @_mm_kernel(%arg0: i32, %arg1: i32, %arg2: i32, %arg3: i32, %arg4: memref<1x16x256xbf16, #tpu.memory_space<vmem>>, %arg5: memref<1x256x256xbf16, #tpu.memory_space<vmem>>, %arg6: memref<16x256xbf16, #tpu.memory_space<vmem>>, %arg7: memref<16x256xf32, #tpu.memory_space<vmem>>) attributes {dimension_semantics = [#tpu.dimension_semantics<parallel>, #tpu.dimension_semantics<parallel>, #tpu.dimension_semantics<parallel>, #tpu.dimension_semantics<arbitrary>], iteration_bounds = array<i64: 1, 1, 4, 2>, scalar_prefetch = 0 : i64, scratch_operands = 1 : i64, tpu.core_type = #tpu.core_type<tc>, window_params = [{transform_indices = @transform_0, window_bounds = array<i64: 1, 16, 256>}, {transform_indices = @transform_1, window_bounds = array<i64: 1, 256, 256>}, {transform_indices = @transform_2, window_bounds = array<i64: 16, 256>}]} {
    %c0_i32 = arith.constant 0 : i32
    %0 = arith.cmpi eq, %arg3, %c0_i32 : i32
    %1 = arith.extui %0 : i1 to i32
    %c0_i32_0 = arith.constant 0 : i32
    %2 = arith.cmpi ne, %1, %c0_i32_0 : i32
    scf.if %2 {
      %cst_11 = arith.constant 0.000000e+00 : f32
      %14 = vector.broadcast %cst_11 : f32 to vector<16x256xf32>
      %c0_12 = arith.constant 0 : index
      %c0_13 = arith.constant 0 : index
      %15 = vector.load %arg7[%c0_12, %c0_13] : memref<16x256xf32, #tpu.memory_space<vmem>>, vector<16x256xf32>
      tpu.vector_store %arg7[%c0_12, %c0_13], %14 {strides = array<i32>} : memref<16x256xf32, #tpu.memory_space<vmem>>, vector<16x256xf32>,
    } else {
    }
    %c0 = arith.constant 0 : index
    %c0_1 = arith.constant 0 : index
    %3 = vector.load %arg7[%c0, %c0_1] : memref<16x256xf32, #tpu.memory_space<vmem>>, vector<16x256xf32>
    %c0_2 = arith.constant 0 : index
    %c0_3 = arith.constant 0 : index
    %c0_4 = arith.constant 0 : index
    %4 = vector.load %arg4[%c0_2, %c0_3, %c0_4] : memref<1x16x256xbf16, #tpu.memory_space<vmem>>, vector<1x16x256xbf16>
    %5 = vector.shape_cast %4 : vector<1x16x256xbf16> to vector<16x256xbf16>
    %c0_5 = arith.constant 0 : index
    %c0_6 = arith.constant 0 : index
    %c0_7 = arith.constant 0 : index
    %6 = vector.load %arg5[%c0_5, %c0_6, %c0_7] : memref<1x256x256xbf16, #tpu.memory_space<vmem>>, vector<1x256x256xbf16>
    %7 = vector.shape_cast %6 : vector<1x256x256xbf16> to vector<256x256xbf16>
    %cst = arith.constant dense<0.000000e+00> : vector<16x256xf32>
    %8 = tpu.matmul %5, %7, %cst {dimension_numbers = #tpu.dot_dimension_numbers<[1], [0], [0], [1], [0, 0, 1, 1], [], []>} : vector<16x256xbf16>, vector<256x256xbf16>, vector<16x256xf32> -> vector<16x256xf32>
    %9 = arith.addf %3, %8 : vector<16x256xf32>
    %c0_8 = arith.constant 0 : index
    %c0_9 = arith.constant 0 : index
    %10 = vector.load %arg7[%c0_8, %c0_9] : memref<16x256xf32, #tpu.memory_space<vmem>>, vector<16x256xf32>
    tpu.vector_store %arg7[%c0_8, %c0_9], %9 {strides = array<i32>} : memref<16x256xf32, #tpu.memory_space<vmem>>, vector<16x256xf32>,
    %c1_i32 = arith.constant 1 : i32
    %11 = arith.cmpi eq, %arg3, %c1_i32 : i32
    %12 = arith.extui %11 : i1 to i32
    %c0_i32_10 = arith.constant 0 : i32
    %13 = arith.cmpi ne, %12, %c0_i32_10 : i32
    scf.if %13 {
      %c0_11 = arith.constant 0 : index
      %c0_12 = arith.constant 0 : index
      %14 = vector.load %arg7[%c0_11, %c0_12] : memref<16x256xf32, #tpu.memory_space<vmem>>, vector<16x256xf32>
      %15 = arith.truncf %14 : vector<16x256xf32> to vector<16x256xbf16>
      %c0_13 = arith.constant 0 : index
      %c0_14 = arith.constant 0 : index
      %16 = vector.load %arg6[%c0_13, %c0_14] : memref<16x256xbf16, #tpu.memory_space<vmem>>, vector<16x256xbf16>
      tpu.vector_store %arg6[%c0_13, %c0_14], %15 {strides = array<i32>} : memref<16x256xbf16, #tpu.memory_space<vmem>>, vector<16x256xbf16>,
    } else {
    }
    return
  }
  func.func @transform_0(%arg0: i32, %arg1: i32, %arg2: i32, %arg3: i32) -> (i32, i32, i32) {
    %c0_i32 = arith.constant 0 : i32
    return %arg0, %arg1, %arg3 : i32, i32, i32
  }
  func.func @transform_1(%arg0: i32, %arg1: i32, %arg2: i32, %arg3: i32) -> (i32, i32, i32) {
    %c0_i32 = arith.constant 0 : i32
    return %arg0, %arg3, %arg2 : i32, i32, i32
  }
  func.func @transform_2(%arg0: i32, %arg1: i32, %arg2: i32, %arg3: i32) -> (i32, i32) {
    %c4_i32 = arith.constant 4 : i32
    %0 = arith.muli %arg0, %c4_i32 : i32
    %1 = arith.addi %0, %arg2 : i32
    %c0_i32 = arith.constant 0 : i32
    return %arg1, %1 : i32, i32
  }
}

</mosaic_0001>

<bundles_post_ra>
// kernel: resnest_forward.58
= control target key start
LH: loop header
LB: loop body
LE: loop exit
PB: predicated region body
PF: predicated region fallthrough
CT: control target
= control target key end

     0   :  { %7 = vsyncpa [#allocation3], 0  ;;  %s1253_s9 = smov 0   ;;  %s1255_s10 = smov 0   ;;  %s1354_s0 = inlined_call_operand.vmem [shape: bf16[1,512,128], index: 0, kind: input, shape index: {}]   ;;  %s1355_s1 = inlined_call_operand.hbm [shape: bf16[1,128,128], index: 1, kind: input, shape index: {}]   ;;  %s1356_s2 = inlined_call_operand.vmem [shape: bf16[512,128], index: 2, kind: output, shape index: {}]  }
   0x1   :  { %s1257_s11 = smov 0  }
   0x2 LB: > { %s836_s12 = sadd.s32 4294967295, %s1233_s11   ;;  %s28_s13 = sadd.s32 1, %s1229_s10  ;;  %s1233_s11 = sphi %s1257_s11, %s13_s11   ;;  %s1229_s10 = sphi %s1255_s10, %s1360_s10   ;;  %s1225_s9 = sphi %s1253_s9, %s1359_s9  }
   0x3   : > { %p30_p0 = scmp.ge.s32.totalorder %s28_s13, 2  ;;  %p838_p1 = scmp.ge.s32.totalorder %s1233_s11, 1 }
   0x4   : > { %p123_p2 = scmp.lt.s32.totalorder %s1233_s11, 3  ;;  %p1278_p4 = scmp.eq.s32.totalorder %s836_s12, 0 }
   0x5   : > { %s1362_s13 = smov (%p30_p0, %s28_s13), 0  ;;  %s1235_s16 = smov [#allocation2]  }
   0x6   : > { %p1274_p3 = pnand %p838_p1, %p123_p2  ;;  %s139_s17 = sshll.u32 %s1235_s16, 4  ;;  %s140_s17 = int_to_ptr.vmem [resolvable:$true] %s139_s17 }
   0x7   : > { %s1192_s18 = scalar_lea.vmem %s140_s17, 1024  ;;  %p1200_p11 = scmp.lt.s32.totalorder %s140_s17, %s140_s17 }
   0x8   : > { %p1124_p5 = pneg %p1274_p3  ;;  %p1193_p8 = scmp.ne.s32.totalorder %s140_s17, %s1192_s18 }
   0x9   : > { %p1201_p12 = scmp.lt.s32.totalorder %s1192_s18, %s1192_s18 }
   0xa   : > { %p1125_p6 = pnand %p1278_p4, %p1124_p5 }
   0xb   : > { %p1202_p13 = por %p1201_p12, %p1200_p11 }
   0xc   : > { %p1183_p7 = pneg %p1125_p6 }
   0xe   : > { %p1195_p9 = pnand %p1193_p8, %p1183_p7 }
  0x10   : > { %p1196_p10 = pneg %p1195_p9 }
  0x12   : > { %p1203_p0 = pnand %p1202_p13, %p1196_p10 }
  0x14   : > { %1206 = shalt.err (!%p1203_p0)
}
  0x15   : > { %s1236_s19 = smov 64   ;;  %s1237_s20 = smov 4  }
  0x16   : > { %1127 = dma.hbm_to_vmem [thread:$0]  (!%p1125_p6), %s1355_s1, 1024, %s140_s17, [#allocation3], %s1236_s19, %s1236_s19, %s1237_s20  }
  0x17   : > { %168 = sbr.rel (%p1274_p3) target bundleno = 288 (0x120), region = 28 }
  0x1c   : > { %1220 = dma.done.wait (%p1278_p4), [#allocation3], 1024  }
  0x1d   : > { %1222 = vsyncadd (%p1278_p4), [#allocation3], 4294966272  ;;  %s843_s23 = sshll.u32 %s1225_s9, 5  ;;  %v1157_v0 = vld [vmem:[#allocation2 + $0x38] sm:$0xff]   ;;  %v1158_v1 = vld [vmem:[#allocation2 + $0x30] sm:$0xff]  }
  0x1e   : > { %p201_p1 = scmp.lt.s32.totalorder %s843_s23, 63  ;;  %1056 = vmatprep.subr.bf16.mxu0 %v1157_v0  ;;  %1104 = vmatprep.subr.bf16.mxu1 %v1157_v0  ;;  %v1159_v2 = vld [vmem:[#allocation2 + $0x28] sm:$0xff]   ;;  %v1160_v3 = vld [vmem:[#allocation2 + $0x20] sm:$0xff]   ;;  %v1161_v6 = vld [vmem:[#allocation2 + $0x18] sm:$0xff]  }
  0x1f   : > { %1057 = vmatpush3.bf16.msra.mxu0 %v1157_v0  ;;  %1112 = vmatpush3.bf16.msra.mxu1 %v1157_v0  ;;  %v1162_v7 = vld [vmem:[#allocation2 + $0x10] sm:$0xff]   ;;  %v1163_v8 = vld [vmem:[#allocation2 + $0x8] sm:$0xff]   ;;  %v1164_v9 = vld [vmem:[#allocation2] sm:$0xff]  }
  0x20   : > { %s1364_s23 = smov (!%p201_p1, %s843_s23), 63  ;;  %1058 = vmatprep.subr.bf16.mxu0 %v1158_v1  ;;  %1105 = vmatprep.subr.bf16.mxu1 %v1158_v1 }
  0x21   : > { %s844_s24 = sshll.u32 %s1364_s23, 2 }
  0x22   : > { %s1304_s27 = scalar_lea.vmem %s1354_s0, %s844_s24  ;;  %s1327_s30 = scalar_lea.vmem %s1356_s2, %s844_s24 }
  0x23   : > { %1059 = vmatpush3.bf16.msra.mxu0 %v1158_v1  ;;  %1113 = vmatpush3.bf16.msra.mxu1 %v1158_v1  ;;  %v1165_v4 = vld [vmem:[%s1304_s27] sm:$0xff]   ;;  %v1167_v10 = vld [vmem:[%s1304_s27 + $0x8] sm:$0xff]   ;;  %v1169_v12 = vld [vmem:[%s1304_s27 + $0x10] sm:$0xff]  }
  0x24   : > { %1060 = vmatprep.subr.bf16.mxu0 %v1159_v2  ;;  %1106 = vmatprep.subr.bf16.mxu1 %v1159_v2  ;;  %v1166_v5 = vld [vmem:[%s1304_s27 + $0x40] sm:$0xff]   ;;  %v1168_v11 = vld [vmem:[%s1304_s27 + $0x48] sm:$0xff]   ;;  %v1170_v13 = vld [vmem:[%s1304_s27 + $0x50] sm:$0xff]  }
  0x25   : > { %1072 = vmatprep.mubr.bf16.mxu0 %v1165_v4  ;;  %1088 = vmatprep.mubr.bf16.mxu1 %v1166_v5  ;;  %v1171_v14 = vld [vmem:[%s1304_s27 + $0x18] sm:$0xff]   ;;  %v1173_v16 = vld [vmem:[%s1304_s27 + $0x20] sm:$0xff]   ;;  %v1175_v18 = vld [vmem:[%s1304_s27 + $0x28] sm:$0xff]  }
  0x26   : > { %v1172_v15 = vld [vmem:[%s1304_s27 + $0x58] sm:$0xff]   ;;  %v1174_v17 = vld [vmem:[%s1304_s27 + $0x60] sm:$0xff]   ;;  %v1176_v19 = vld [vmem:[%s1304_s27 + $0x68] sm:$0xff]  }
  0x27   : > { %1061 = vmatpush3.bf16.msra.mxu0 %v1159_v2  ;;  %1114 = vmatpush3.bf16.msra.mxu1 %v1159_v2  ;;  %v1177_v20 = vld [vmem:[%s1304_s27 + $0x30] sm:$0xff]   ;;  %v1179_v22 = vld [vmem:[%s1304_s27 + $0x38] sm:$0xff]  }
  0x28   : > { %1062 = vmatprep.subr.bf16.mxu0 %v1160_v3  ;;  %1107 = vmatprep.subr.bf16.mxu1 %v1160_v3  ;;  %v1178_v21 = vld [vmem:[%s1304_s27 + $0x70] sm:$0xff]   ;;  %v1180_v23 = vld [vmem:[%s1304_s27 + $0x78] sm:$0xff]  }
  0x2b   : > { %1063 = vmatpush3.bf16.msra.mxu0 %v1160_v3  ;;  %1115 = vmatpush3.bf16.msra.mxu1 %v1160_v3 }
  0x2c   : > { %1064 = vmatprep.subr.bf16.mxu0 %v1161_v6  ;;  %1108 = vmatprep.subr.bf16.mxu1 %v1161_v6 }
  0x2f   : > { %1065 = vmatpush3.bf16.msra.mxu0 %v1161_v6  ;;  %1116 = vmatpush3.bf16.msra.mxu1 %v1161_v6 }
  0x30   : > { %1066 = vmatprep.subr.bf16.mxu0 %v1162_v7  ;;  %1109 = vmatprep.subr.bf16.mxu1 %v1162_v7 }
  0x33   : > { %1067 = vmatpush3.bf16.msra.mxu0 %v1162_v7  ;;  %1117 = vmatpush3.bf16.msra.mxu1 %v1162_v7 }
  0x34   : > { %1068 = vmatprep.subr.bf16.mxu0 %v1163_v8  ;;  %1110 = vmatprep.subr.bf16.mxu1 %v1163_v8 }
  0x37   : > { %1069 = vmatpush3.bf16.msra.mxu0 %v1163_v8  ;;  %1118 = vmatpush3.bf16.msra.mxu1 %v1163_v8 }
  0x38   : > { %1070 = vmatprep.subr.bf16.mxu0 %v1164_v9  ;;  %1111 = vmatprep.subr.bf16.mxu1 %v1164_v9 }
  0x3b   : > { %1071 = vmatpush3.bf16.msra.mxu0 %v1164_v9  ;;  %1119 = vmatpush3.bf16.msra.mxu1 %v1164_v9 }
  0x3e   : > { %1073 = vmatmul.mubr.bf16.vlgmr.msra.gmra.mxu0 %v1167_v10  ;;  %1089 = vmatmul.mubr.bf16.vlgmr.msra.gmra.mxu1 %v1168_v11 }
  0x3f   : > { %1076 = vmatprep.mubr.bf16.mxu0 %v1169_v12  ;;  %1092 = vmatprep.mubr.bf16.mxu1 %v1170_v13 }
  0x46   : > { %1077 = vmatmul.mubr.bf16.gmra.mxu0 %v1171_v14  ;;  %1093 = vmatmul.mubr.bf16.gmra.mxu1 %v1172_v15 }
  0x47   : > { %1080 = vmatprep.mubr.bf16.mxu0 %v1173_v16  ;;  %1096 = vmatprep.mubr.bf16.mxu1 %v1174_v17 }
  0x4e   : > { %1081 = vmatmul.mubr.bf16.gmra.mxu0 %v1175_v18  ;;  %1097 = vmatmul.mubr.bf16.gmra.mxu1 %v1176_v19 }
  0x4f   : > { %1084 = vmatprep.mubr.bf16.mxu0 %v1177_v20  ;;  %1100 = vmatprep.mubr.bf16.mxu1 %v1178_v21 }
  0x56   : > { %1085 = vmatmul.mubr.bf16.gmra.mxu0 %v1179_v22  ;;  %1101 = vmatmul.mubr.bf16.gmra.mxu1 %v1180_v23 }
  0xfe   : > { %v1074_v24 = vpop.f32.mrf.mxu0  ;;  %v1090_v25 = vpop.f32.mrf.mxu1 }
 0x100   : > { %v446_v26 = vpop.f32.mrf.mxu0  ;;  %v510_v27 = vpop.f32.mrf.mxu1 }
 0x102   : > { %v1075_v28 = vpop.f32.mrf.mxu0  ;;  %v1091_v29 = vpop.f32.mrf.mxu1 }
 0x103   : > { %v945_v30 = vpack.c.bf16 %v1075_v28, %v1074_v24  ;;  %v985_v31 = vpack.c.bf16 %v1091_v29, %v1090_v25 }
 0x104   : > { %v449_v32 = vpop.f32.mrf.mxu0  ;;  %v513_v33 = vpop.f32.mrf.mxu1 }
 0x105   : > { %1017 = vst [vmem:[%s1327_s30 + $0x8] sm:$0xff] %v945_v30   ;;  %1025 = vst [vmem:[%s1327_s30 + $0x48] sm:$0xff] %v985_v31   ;;  %v940_v34 = vpack.c.bf16 %v449_v32, %v446_v26  ;;  %v980_v35 = vpack.c.bf16 %v513_v33, %v510_v27 }
 0x106   : > { %v1078_v36 = vpop.f32.mrf.mxu0  ;;  %v1094_v37 = vpop.f32.mrf.mxu1 }
 0x107   : > { %941 = vst [vmem:[%s1327_s30] sm:$0xff] %v940_v34   ;;  %1024 = vst [vmem:[%s1327_s30 + $0x40] sm:$0xff] %v980_v35  }
 0x108   : > { %v462_v38 = vpop.f32.mrf.mxu0  ;;  %v526_v39 = vpop.f32.mrf.mxu1 }
 0x10a   : > { %v1079_v40 = vpop.f32.mrf.mxu0  ;;  %v1095_v41 = vpop.f32.mrf.mxu1 }
 0x10b   : > { %v955_v42 = vpack.c.bf16 %v1079_v40, %v1078_v36  ;;  %v995_v43 = vpack.c.bf16 %v1095_v41, %v1094_v37 }
 0x10c   : > { %v465_v44 = vpop.f32.mrf.mxu0  ;;  %v529_v45 = vpop.f32.mrf.mxu1 }
 0x10d   : > { %1019 = vst [vmem:[%s1327_s30 + $0x18] sm:$0xff] %v955_v42   ;;  %1027 = vst [vmem:[%s1327_s30 + $0x58] sm:$0xff] %v995_v43   ;;  %v950_v46 = vpack.c.bf16 %v465_v44, %v462_v38  ;;  %v990_v47 = vpack.c.bf16 %v529_v45, %v526_v39 }
 0x10e   : > { %v1082_v48 = vpop.f32.mrf.mxu0  ;;  %v1098_v49 = vpop.f32.mrf.mxu1 }
 0x10f   : > { %1018 = vst [vmem:[%s1327_s30 + $0x10] sm:$0xff] %v950_v46   ;;  %1026 = vst [vmem:[%s1327_s30 + $0x50] sm:$0xff] %v990_v47  }
 0x110   : > { %v478_v50 = vpop.f32.mrf.mxu0  ;;  %v542_v51 = vpop.f32.mrf.mxu1 }
 0x112   : > { %v1083_v52 = vpop.f32.mrf.mxu0  ;;  %v1099_v53 = vpop.f32.mrf.mxu1 }
 0x113   : > { %v965_v54 = vpack.c.bf16 %v1083_v52, %v1082_v48  ;;  %v1005_v55 = vpack.c.bf16 %v1099_v53, %v1098_v49 }
 0x114   : > { %v481_v56 = vpop.f32.mrf.mxu0  ;;  %v545_v57 = vpop.f32.mrf.mxu1 }
 0x115   : > { %1021 = vst [vmem:[%s1327_s30 + $0x28] sm:$0xff] %v965_v54   ;;  %1029 = vst [vmem:[%s1327_s30 + $0x68] sm:$0xff] %v1005_v55   ;;  %v960_v58 = vpack.c.bf16 %v481_v56, %v478_v50  ;;  %v1000_v59 = vpack.c.bf16 %v545_v57, %v542_v51 }
 0x116   : > { %v1086_v60 = vpop.f32.mrf.mxu0  ;;  %v1102_v61 = vpop.f32.mrf.mxu1 }
 0x117   : > { %1020 = vst [vmem:[%s1327_s30 + $0x20] sm:$0xff] %v960_v58   ;;  %1028 = vst [vmem:[%s1327_s30 + $0x60] sm:$0xff] %v1000_v59  }
 0x118   : > { %v494_v62 = vpop.f32.mrf.mxu0  ;;  %v558_v63 = vpop.f32.mrf.mxu1 }
 0x11a   : > { %v1087_v0 = vpop.f32.mrf.mxu0  ;;  %v1103_v1 = vpop.f32.mrf.mxu1 }
 0x11b   : > { %v975_v2 = vpack.c.bf16 %v1087_v0, %v1086_v60  ;;  %v1015_v3 = vpack.c.bf16 %v1103_v1, %v1102_v61 }
 0x11c   : > { %v497_v4 = vpop.f32.mrf.mxu0  ;;  %v561_v5 = vpop.f32.mrf.mxu1 }
 0x11d   : > { %1023 = vst [vmem:[%s1327_s30 + $0x38] sm:$0xff] %v975_v2   ;;  %1031 = vst [vmem:[%s1327_s30 + $0x78] sm:$0xff] %v1015_v3   ;;  %v970_v6 = vpack.c.bf16 %v497_v4, %v494_v62  ;;  %v1010_v7 = vpack.c.bf16 %v561_v5, %v558_v63 }
 0x11f   : > { %1022 = vst [vmem:[%s1327_s30 + $0x30] sm:$0xff] %v970_v6   ;;  %1030 = vst [vmem:[%s1327_s30 + $0x70] sm:$0xff] %v1010_v7  }
 0x120 PF: > { %s13_s11 = sadd.s32 1, %s1233_s11   ;;  %s1359_s9 = smov %s1229_s10 }
 0x121   : > { %p10_p2 = scmp.ge.s32.totalorder %s13_s11, 4   ;;  %s1360_s10 = smov %s1362_s13 }
 0x123   :  { %12 = sbr.rel (!%p10_p2) target bundleno = 2 (0x2), region = 64 }
 0x128   :  { %764 = vsyncpa [#allocation3], 1 }
 0x129   :  { %766 = vsyncpa [#allocation3 + $0x1], 1 }

// kernel: resnest_forward.59
= control target key start
LH: loop header
LB: loop body
LE: loop exit
PB: predicated region body
PF: predicated region fallthrough
CT: control target
= control target key end

     0   :  { %s1879_s9 = smov 0   ;;  %s1881_s10 = smov 0   ;;  %s2111_s0 = inlined_call_operand.vmem [shape: bf16[1,512,512], index: 0, kind: input, shape index: {}]   ;;  %s2112_s1 = inlined_call_operand.vmem [shape: bf16[1,512,128], index: 1, kind: input, shape index: {}]   ;;  %s2113_s2 = inlined_call_operand.vmem [shape: bf16[512,128], index: 2, kind: output, shape index: {}]  }
   0x1   :  { %s1883_s11 = smov 0   ;;  %s1885_s12 = smov 0  }
   0x2   :  { %s1887_s13 = smov 0   ;;  %s1889_s14 = smov 0  }
   0x3   :  { %s1891_s15 = smov 0  }
   0x4 LB: > { %s27_s16 = sadd.s32 1, %s1853_s13  ;;  %s34_s17 = sadd.s32 1, %s1857_s14  ;;  %s1861_s15 = sphi %s1891_s15, %s12_s15   ;;  %s1857_s14 = sphi %s1889_s14, %s2119_s14   ;;  %s1853_s13 = sphi %s1887_s13, %s2118_s13   ;;  %s1849_s12 = sphi %s1885_s12, %s2117_s12   ;;  %s1845_s11 = sphi %s1883_s11, %s2116_s11   ;;  %s1841_s10 = sphi %s1881_s10, %s2115_s10   ;;  %s1837_s9 = sphi %s1879_s9, %s2114_s9  }
   0x5   : > { %p28_p0 = scmp.ge.s32.totalorder %s27_s16, 2  ;;  %p56_p1 = scmp.ne.s32.totalorder %s1841_s10, %s1837_s9 }
   0x6   : > { %p57_p2 = scmp.eq.s32.totalorder %s1861_s15, 0  ;;  %s49_s21 = sadd.s32 1, %s1841_s10 }
   0x7   : > { %s2121_s16 = smov (%p28_p0, %s27_s16), 0  ;;  %s2123_s17 = smov (!%p28_p0, %s34_s17), %s1857_s14 }
   0x8   : > { %p58_p3 = por %p57_p2, %p56_p1  ;;  %p36_p4 = scmp.ge.s32.totalorder %s2123_s17, 2 }
   0x9   : > { %s45_s18 = ssub.s32 %s1853_s13, %s2121_s16  ;;  %p1334_p6 = scmp.ge.s32.totalorder %s1861_s15, 4 }
   0xa   : > { %s2125_s17 = smov (%p36_p4, %s2123_s17), 0 }
   0xb   : > { %s43_s19 = ssub.s32 %s1857_s14, %s2125_s17  ;;  %142 = sbr.rel (%p1334_p6) target bundleno = 39 (0x27), region = 16 }
   0xc   : > { %s46_s20 = sor.u32 %s45_s18, %s43_s19 }
   0xd   : > { %p47_p5 = scmp.eq.s32.totalorder %s46_s20, 0 }
   0xf   : > { %s1930_s22 = scalar_select %p47_p5, %s1841_s10, %s49_s21  }
  0x10   : > { %145 = sbr.rel (!%p58_p3) target bundleno = 39 (0x27), region = 20  ;;  %s147_s23 = sand.u32 (%p58_p3), 1, %s1841_s10  }
  0x11   : > { %s1337_s24 = sshll.u32 (%p58_p3), %s1853_s13, 1  ;;  %s1335_s25 = sshll.u32 (%p58_p3), %s147_s23, 8 }
  0x12   : > { %s1430_s26 = sshll.u32 (%p58_p3), %s1857_s14, 7  ;;  %s1944_s4 = scalar_lea.vmem (%p58_p3), [#allocation3], %s1335_s25 }
  0x13   : > { %s153_s27 = sadd.s32 (%p58_p3), %s1430_s26, %s1337_s24 }
  0x14   : > { %s1339_s28 = sshll.u32 (%p58_p3), %s153_s27, 2 }
  0x15   : > { %s1939_s3 = scalar_lea.vmem %s2111_s0, %s1339_s28 }
  0x16   : > { %v248_v0 = vld [vmem:[%s1939_s3] sm:$0xff]  ;;  %v250_v1 = vld [vmem:[%s1939_s3 + $0x10] sm:$0xff] }
  0x17   : > { %v252_v2 = vld [vmem:[%s1939_s3 + $0x20] sm:$0xff]  ;;  %249 = vst [vmem:[%s1944_s4] sm:$0xff] %v248_v0  ;;  %251 = vst [vmem:[%s1944_s4 + $0x8] sm:$0xff] %v250_v1  ;;  %v254_v3 = vld [vmem:[%s1939_s3 + $0x30] sm:$0xff] }
  0x18   : > { %253 = vst [vmem:[%s1944_s4 + $0x10] sm:$0xff] %v252_v2  ;;  %v256_v4 = vld [vmem:[%s1939_s3 + $0x40] sm:$0xff]  ;;  %v258_v5 = vld [vmem:[%s1939_s3 + $0x50] sm:$0xff]  ;;  %255 = vst [vmem:[%s1944_s4 + $0x18] sm:$0xff] %v254_v3 }
  0x19   : > { %257 = vst [vmem:[%s1944_s4 + $0x20] sm:$0xff] %v256_v4  ;;  %259 = vst [vmem:[%s1944_s4 + $0x28] sm:$0xff] %v258_v5  ;;  %v260_v6 = vld [vmem:[%s1939_s3 + $0x60] sm:$0xff]  ;;  %v262_v7 = vld [vmem:[%s1939_s3 + $0x70] sm:$0xff] }
  0x1a   : > { %v264_v8 = vld [vmem:[%s1939_s3 + $0x80] sm:$0xff]  ;;  %261 = vst [vmem:[%s1944_s4 + $0x30] sm:$0xff] %v260_v6  ;;  %263 = vst [vmem:[%s1944_s4 + $0x38] sm:$0xff] %v262_v7  ;;  %v266_v9 = vld [vmem:[%s1939_s3 + $0x90] sm:$0xff] }
  0x1b   : > { %265 = vst [vmem:[%s1944_s4 + $0x40] sm:$0xff] %v264_v8  ;;  %v268_v10 = vld [vmem:[%s1939_s3 + $0xa0] sm:$0xff]  ;;  %v270_v11 = vld [vmem:[%s1939_s3 + $0xb0] sm:$0xff]  ;;  %267 = vst [vmem:[%s1944_s4 + $0x48] sm:$0xff] %v266_v9 }
  0x1c   : > { %269 = vst [vmem:[%s1944_s4 + $0x50] sm:$0xff] %v268_v10  ;;  %271 = vst [vmem:[%s1944_s4 + $0x58] sm:$0xff] %v270_v11  ;;  %v272_v12 = vld [vmem:[%s1939_s3 + $0xc0] sm:$0xff]  ;;  %v274_v13 = vld [vmem:[%s1939_s3 + $0xd0] sm:$0xff] }
  0x1d   : > { %v276_v14 = vld [vmem:[%s1939_s3 + $0xe0] sm:$0xff]  ;;  %273 = vst [vmem:[%s1944_s4 + $0x60] sm:$0xff] %v272_v12  ;;  %275 = vst [vmem:[%s1944_s4 + $0x68] sm:$0xff] %v274_v13  ;;  %v278_v15 = vld [vmem:[%s1939_s3 + $0xf0] sm:$0xff] }
  0x1e   : > { %277 = vst [vmem:[%s1944_s4 + $0x70] sm:$0xff] %v276_v14  ;;  %v280_v16 = vld [vmem:[%s1939_s3 + $0x100] sm:$0xff]  ;;  %v282_v17 = vld [vmem:[%s1939_s3 + $0x110] sm:$0xff]  ;;  %279 = vst [vmem:[%s1944_s4 + $0x78] sm:$0xff] %v278_v15 }
  0x1f   : > { %281 = vst [vmem:[%s1944_s4 + $0x80] sm:$0xff] %v280_v16  ;;  %283 = vst [vmem:[%s1944_s4 + $0x88] sm:$0xff] %v282_v17  ;;  %v284_v18 = vld [vmem:[%s1939_s3 + $0x120] sm:$0xff]  ;;  %v286_v19 = vld [vmem:[%s1939_s3 + $0x130] sm:$0xff] }
  0x20   : > { %v288_v20 = vld [vmem:[%s1939_s3 + $0x140] sm:$0xff]  ;;  %285 = vst [vmem:[%s1944_s4 + $0x90] sm:$0xff] %v284_v18  ;;  %287 = vst [vmem:[%s1944_s4 + $0x98] sm:$0xff] %v286_v19  ;;  %v290_v21 = vld [vmem:[%s1939_s3 + $0x150] sm:$0xff] }
  0x21   : > { %289 = vst [vmem:[%s1944_s4 + $0xa0] sm:$0xff] %v288_v20  ;;  %v292_v22 = vld [vmem:[%s1939_s3 + $0x160] sm:$0xff]  ;;  %v294_v23 = vld [vmem:[%s1939_s3 + $0x170] sm:$0xff]  ;;  %291 = vst [vmem:[%s1944_s4 + $0xa8] sm:$0xff] %v290_v21 }
  0x22   : > { %293 = vst [vmem:[%s1944_s4 + $0xb0] sm:$0xff] %v292_v22  ;;  %295 = vst [vmem:[%s1944_s4 + $0xb8] sm:$0xff] %v294_v23  ;;  %v296_v24 = vld [vmem:[%s1939_s3 + $0x180] sm:$0xff]  ;;  %v298_v25 = vld [vmem:[%s1939_s3 + $0x190] sm:$0xff] }
  0x23   : > { %v300_v26 = vld [vmem:[%s1939_s3 + $0x1a0] sm:$0xff]  ;;  %297 = vst [vmem:[%s1944_s4 + $0xc0] sm:$0xff] %v296_v24  ;;  %299 = vst [vmem:[%s1944_s4 + $0xc8] sm:$0xff] %v298_v25  ;;  %v302_v27 = vld [vmem:[%s1939_s3 + $0x1b0] sm:$0xff] }
  0x24   : > { %301 = vst [vmem:[%s1944_s4 + $0xd0] sm:$0xff] %v300_v26  ;;  %v304_v28 = vld [vmem:[%s1939_s3 + $0x1c0] sm:$0xff]  ;;  %v306_v29 = vld [vmem:[%s1939_s3 + $0x1d0] sm:$0xff]  ;;  %303 = vst [vmem:[%s1944_s4 + $0xd8] sm:$0xff] %v302_v27 }
  0x25   : > { %305 = vst [vmem:[%s1944_s4 + $0xe0] sm:$0xff] %v304_v28  ;;  %307 = vst [vmem:[%s1944_s4 + $0xe8] sm:$0xff] %v306_v29  ;;  %v308_v30 = vld [vmem:[%s1939_s3 + $0x1e0] sm:$0xff]  ;;  %v310_v31 = vld [vmem:[%s1939_s3 + $0x1f0] sm:$0xff] }
  0x26   : > { %309 = vst [vmem:[%s1944_s4 + $0xf0] sm:$0xff] %v308_v30  ;;  %311 = vst [vmem:[%s1944_s4 + $0xf8] sm:$0xff] %v310_v31 }
  0x27 PF: > { %p1340_p7 = scmp.ge.s32.totalorder %s1861_s15, 1  ;;  %p332_p8 = scmp.lt.s32.totalorder %s1861_s15, 5 }
  0x29   : > { %p333_p9 = pnand %p1340_p7, %p332_p8 }
  0x2a   : > { %s339_s5 = sand.u32 (!%p333_p9), 1, %s1837_s9   ;;  %s1342_s6 = sshll.u32 (!%p333_p9), %s1845_s11, 5 }
  0x2b   : > { %336 = sbr.rel (%p333_p9) target bundleno = 381 (0x17d), region = 62  ;;  %s1341_s7 = sshll.u32 (!%p333_p9), %s339_s5, 8 }
  0x2c   : > { %p381_p10 = scmp.lt.s32.totalorder (!%p333_p9), %s1342_s6, 63  ;;  %s1344_s8 = sshll.u32 (!%p333_p9), %s1849_s12, 5 }
  0x2d   : > { %p393_p11 = scmp.lt.s32.totalorder (!%p333_p9), %s1344_s8, 63  ;;  %s2022_s9 = scalar_lea.vmem (!%p333_p9), [#allocation3], %s1341_s7 }
  0x2e   : > { %p1346_p12 = scmp.ne.s32.totalorder (!%p333_p9), %s1845_s11, 0 }
  0x30   : > { %s2127_s6 = smov (!%p381_p10, %s1342_s6), 63  ;;  %s2129_s8 = smov (!%p393_p11, %s1344_s8), 63 }
  0x31   : > { %s1343_s18 = sshll.u32 %s2127_s6, 2  ;;  %s1345_s23 = sshll.u32 %s2129_s8, 2 }
  0x32   : > { %s2015_s21 = scalar_lea.vmem %s2112_s1, %s1343_s18  ;;  %s2020_s26 = scalar_lea.vmem %s2113_s2, %s1345_s23 }
  0x33   : > { %406 = sbr.rel (%p1346_p12) target bundleno = 73 (0x49), region = 70 }
  0x38   : > { %v1863_v32 = vmov 0.0  }
  0x39   : > { %407 = vst [vmem:[#allocation2 + $0xb0] sm:$0xff] %v1863_v32  ;;  %408 = vst [vmem:[#allocation2] sm:$0xff] %v1863_v32 }
  0x3a   : > { %409 = vst [vmem:[#allocation2 + $0xd8] sm:$0xff] %v1863_v32  ;;  %410 = vst [vmem:[#allocation2 + $0x18] sm:$0xff] %v1863_v32 }
  0x3b   : > { %411 = vst [vmem:[#allocation2 + $0x50] sm:$0xff] %v1863_v32  ;;  %412 = vst [vmem:[#allocation2 + $0x68] sm:$0xff] %v1863_v32 }
  0x3c   : > { %413 = vst [vmem:[#allocation2 + $0x30] sm:$0xff] %v1863_v32  ;;  %414 = vst [vmem:[#allocation2 + $0x48] sm:$0xff] %v1863_v32 }
  0x3d   : > { %415 = vst [vmem:[#allocation2 + $0x80] sm:$0xff] %v1863_v32  ;;  %416 = vst [vmem:[#allocation2 + $0x88] sm:$0xff] %v1863_v32 }
  0x3e   : > { %417 = vst [vmem:[#allocation2 + $0xe8] sm:$0xff] %v1863_v32  ;;  %418 = vst [vmem:[#allocation2 + $0xb8] sm:$0xff] %v1863_v32 }
  0x3f   : > { %419 = vst [vmem:[#allocation2 + $0x60] sm:$0xff] %v1863_v32  ;;  %420 = vst [vmem:[#allocation2 + $0xf0] sm:$0xff] %v1863_v32 }
  0x40   : > { %421 = vst [vmem:[#allocation2 + $0x8] sm:$0xff] %v1863_v32  ;;  %422 = vst [vmem:[#allocation2 + $0x78] sm:$0xff] %v1863_v32 }
  0x41   : > { %423 = vst [vmem:[#allocation2 + $0x38] sm:$0xff] %v1863_v32  ;;  %424 = vst [vmem:[#allocation2 + $0x58] sm:$0xff] %v1863_v32 }
  0x42   : > { %425 = vst [vmem:[#allocation2 + $0x40] sm:$0xff] %v1863_v32  ;;  %426 = vst [vmem:[#allocation2 + $0xc8] sm:$0xff] %v1863_v32 }
  0x43   : > { %427 = vst [vmem:[#allocation2 + $0xe0] sm:$0xff] %v1863_v32  ;;  %428 = vst [vmem:[#allocation2 + $0x90] sm:$0xff] %v1863_v32 }
  0x44   : > { %429 = vst [vmem:[#allocation2 + $0x70] sm:$0xff] %v1863_v32  ;;  %430 = vst [vmem:[#allocation2 + $0xc0] sm:$0xff] %v1863_v32 }
  0x45   : > { %431 = vst [vmem:[#allocation2 + $0xa8] sm:$0xff] %v1863_v32  ;;  %432 = vst [vmem:[#allocation2 + $0xd0] sm:$0xff] %v1863_v32 }
  0x46   : > { %433 = vst [vmem:[#allocation2 + $0x10] sm:$0xff] %v1863_v32  ;;  %434 = vst [vmem:[#allocation2 + $0x28] sm:$0xff] %v1863_v32 }
  0x47   : > { %435 = vst [vmem:[#allocation2 + $0xa0] sm:$0xff] %v1863_v32  ;;  %436 = vst [vmem:[#allocation2 + $0xf8] sm:$0xff] %v1863_v32 }
  0x48   : > { %437 = vst [vmem:[#allocation2 + $0x20] sm:$0xff] %v1863_v32  ;;  %438 = vst [vmem:[#allocation2 + $0x98] sm:$0xff] %v1863_v32 }
  0x49 PF: > { %v1743_v33 = vld [vmem:[%s2015_s21 + $0x78] sm:$0xff]   ;;  %v1745_v35 = vld [vmem:[%s2015_s21 + $0x70] sm:$0xff]   ;;  %v1747_v37 = vld [vmem:[%s2015_s21 + $0x68] sm:$0xff]   ;;  %p1395_p13 = scmp.ne.s32.totalorder %s1845_s11, 1 }
  0x4a   : > { %v1744_v34 = vld [vmem:[%s2015_s21 + $0x38] sm:$0xff]   ;;  %1558 = vmatprep.subr.bf16.mxu0 %v1743_v33  ;;  %1670 = vmatprep.subr.bf16.mxu1 %v1743_v33  ;;  %v1746_v36 = vld [vmem:[%s2015_s21 + $0x30] sm:$0xff]   ;;  %v1748_v38 = vld [vmem:[%s2015_s21 + $0x28] sm:$0xff]  }
  0x4b   : > { %1559 = vmatpush3.bf16.msra.mxu0 %v1744_v34  ;;  %1678 = vmatpush3.bf16.msra.mxu1 %v1744_v34  ;;  %v1749_v39 = vld [vmem:[%s2015_s21 + $0x60] sm:$0xff]   ;;  %v1751_v41 = vld [vmem:[%s2015_s21 + $0x58] sm:$0xff]   ;;  %v1753_v43 = vld [vmem:[%s2015_s21 + $0x50] sm:$0xff]  }
  0x4c   : > { %1560 = vmatprep.subr.bf16.mxu0 %v1745_v35  ;;  %1671 = vmatprep.subr.bf16.mxu1 %v1745_v35  ;;  %v1750_v40 = vld [vmem:[%s2015_s21 + $0x20] sm:$0xff]   ;;  %v1752_v42 = vld [vmem:[%s2015_s21 + $0x18] sm:$0xff]   ;;  %v1754_v46 = vld [vmem:[%s2015_s21 + $0x10] sm:$0xff]  }
  0x4d   : > { %v1761_v44 = vld [vmem:[%s2022_s9 + $0x4] ss:$8 sps:$4 sm:$0xff]   ;;  %v1759_v51 = vld [vmem:[%s2022_s9] ss:$8 sps:$4 sm:$0xff]   ;;  %v1765_v53 = vld [vmem:[%s2022_s9 + $0x14] ss:$8 sps:$4 sm:$0xff]  }
  0x4e   : > { %v1764_v45 = vld [vmem:[%s2022_s9 + $0x84] ss:$8 sps:$4 sm:$0xff]   ;;  %823 = vmatprep.mubr.bf16.mxu0 %v1761_v44  ;;  %v1762_v52 = vld [vmem:[%s2022_s9 + $0x80] ss:$8 sps:$4 sm:$0xff]   ;;  %v1767_v54 = vld [vmem:[%s2022_s9 + $0x94] ss:$8 sps:$4 sm:$0xff]  }
  0x4f   : > { %1561 = vmatpush3.bf16.msra.mxu0 %v1746_v36  ;;  %1679 = vmatpush3.bf16.msra.mxu1 %v1746_v36  ;;  %v1755_v47 = vld [vmem:[%s2015_s21 + $0x48] sm:$0xff]   ;;  %v1757_v49 = vld [vmem:[%s2015_s21 + $0x40] sm:$0xff]   ;;  %v1769_v55 = vld [vmem:[%s2022_s9 + $0x10] ss:$8 sps:$4 sm:$0xff]  }
  0x50   : > { %1562 = vmatprep.subr.bf16.mxu0 %v1747_v37  ;;  %1672 = vmatprep.subr.bf16.mxu1 %v1747_v37  ;;  %v1756_v48 = vld [vmem:[%s2015_s21 + $0x8] sm:$0xff]   ;;  %v1758_v50 = vld [vmem:[%s2015_s21] sm:$0xff]   ;;  %v1770_v56 = vld [vmem:[%s2022_s9 + $0x90] ss:$8 sps:$4 sm:$0xff]  }
  0x51   : > { %887 = vmatprep.mubr.bf16.mxu1 %v1764_v45  ;;  %v1771_v57 = vld [vmem:[%s2022_s9 + $0x24] ss:$8 sps:$4 sm:$0xff]   ;;  %v1775_v59 = vld [vmem:[%s2022_s9 + $0x20] ss:$8 sps:$4 sm:$0xff]   ;;  %v1777_v61 = vld [vmem:[%s2022_s9 + $0x34] ss:$8 sps:$4 sm:$0xff]  }
  0x52   : > { %v1773_v58 = vld [vmem:[%s2022_s9 + $0xa4] ss:$8 sps:$4 sm:$0xff]   ;;  %v1776_v60 = vld [vmem:[%s2022_s9 + $0xa0] ss:$8 sps:$4 sm:$0xff]   ;;  %v1779_v62 = vld [vmem:[%s2022_s9 + $0xb4] ss:$8 sps:$4 sm:$0xff]  }
  0x53   : > { %1563 = vmatpush3.bf16.msra.mxu0 %v1748_v38  ;;  %1680 = vmatpush3.bf16.msra.mxu1 %v1748_v38  ;;  %v1781_v63 = vld [vmem:[%s2022_s9 + $0x30] ss:$8 sps:$4 sm:$0xff]   ;;  %v1783_v1 = vld [vmem:[%s2022_s9 + $0x44] ss:$8 sps:$4 sm:$0xff]   ;;  %v1787_v3 = vld [vmem:[%s2022_s9 + $0x40] ss:$8 sps:$4 sm:$0xff]  }
  0x54   : > { %1564 = vmatprep.subr.bf16.mxu0 %v1749_v39  ;;  %1673 = vmatprep.subr.bf16.mxu1 %v1749_v39  ;;  %v1782_v0 = vld [vmem:[%s2022_s9 + $0xb0] ss:$8 sps:$4 sm:$0xff]   ;;  %v1785_v2 = vld [vmem:[%s2022_s9 + $0xc4] ss:$8 sps:$4 sm:$0xff]   ;;  %v1788_v4 = vld [vmem:[%s2022_s9 + $0xc0] ss:$8 sps:$4 sm:$0xff]  }
  0x55   : > { %v1789_v5 = vld [vmem:[%s2022_s9 + $0x54] ss:$8 sps:$4 sm:$0xff]   ;;  %v1793_v7 = vld [vmem:[%s2022_s9 + $0x50] ss:$8 sps:$4 sm:$0xff]   ;;  %v1795_v9 = vld [vmem:[%s2022_s9 + $0x64] ss:$8 sps:$4 sm:$0xff]  }
  0x56   : > { %v1791_v6 = vld [vmem:[%s2022_s9 + $0xd4] ss:$8 sps:$4 sm:$0xff]   ;;  %v1794_v8 = vld [vmem:[%s2022_s9 + $0xd0] ss:$8 sps:$4 sm:$0xff]   ;;  %v1797_v10 = vld [vmem:[%s2022_s9 + $0xe4] ss:$8 sps:$4 sm:$0xff]  }
  0x57   : > { %1565 = vmatpush3.bf16.msra.mxu0 %v1750_v40  ;;  %1681 = vmatpush3.bf16.msra.mxu1 %v1750_v40  ;;  %v1799_v11 = vld [vmem:[%s2022_s9 + $0x60] ss:$8 sps:$4 sm:$0xff]   ;;  %v1801_v13 = vld [vmem:[%s2022_s9 + $0x74] ss:$8 sps:$4 sm:$0xff]   ;;  %v1805_v15 = vld [vmem:[%s2022_s9 + $0x70] ss:$8 sps:$4 sm:$0xff]  }
  0x58   : > { %1566 = vmatprep.subr.bf16.mxu0 %v1751_v41  ;;  %1674 = vmatprep.subr.bf16.mxu1 %v1751_v41  ;;  %v1800_v12 = vld [vmem:[%s2022_s9 + $0xe0] ss:$8 sps:$4 sm:$0xff]   ;;  %v1803_v14 = vld [vmem:[%s2022_s9 + $0xf4] ss:$8 sps:$4 sm:$0xff]   ;;  %v1806_v16 = vld [vmem:[%s2022_s9 + $0xf0] ss:$8 sps:$4 sm:$0xff]  }
  0x59   : > { %v439_v19 = vld [vmem:[#allocation2 + $0xb0] sm:$0xff]  ;;  %v455_v21 = vld [vmem:[#allocation2 + $0x38] sm:$0xff]  ;;  %v440_v29 = vld [vmem:[#allocation2] sm:$0xff] }
  0x5a   : > { %v456_v31 = vld [vmem:[#allocation2 + $0x58] sm:$0xff]  ;;  %v457_v41 = vld [vmem:[#allocation2 + $0x40] sm:$0xff] }
  0x5b   : > { %1567 = vmatpush3.bf16.msra.mxu0 %v1752_v42  ;;  %1682 = vmatpush3.bf16.msra.mxu1 %v1752_v42  ;;  %v441_v39 = vld [vmem:[#allocation2 + $0xd8] sm:$0xff] }
  0x5c   : > { %1568 = vmatprep.subr.bf16.mxu0 %v1753_v43  ;;  %1675 = vmatprep.subr.bf16.mxu1 %v1753_v43 }
  0x5f   : > { %1569 = vmatpush3.bf16.msra.mxu0 %v1754_v46  ;;  %1683 = vmatpush3.bf16.msra.mxu1 %v1754_v46 }
  0x60   : > { %1570 = vmatprep.subr.bf16.mxu0 %v1755_v47  ;;  %1676 = vmatprep.subr.bf16.mxu1 %v1755_v47 }
  0x63   : > { %1571 = vmatpush3.bf16.msra.mxu0 %v1756_v48  ;;  %1684 = vmatpush3.bf16.msra.mxu1 %v1756_v48 }
  0x64   : > { %1572 = vmatprep.subr.bf16.mxu0 %v1757_v49  ;;  %1677 = vmatprep.subr.bf16.mxu1 %v1757_v49  ;;  %v442_v49 = vld [vmem:[#allocation2 + $0x18] sm:$0xff] }
  0x67   : > { %1573 = vmatpush3.bf16.msra.mxu0 %v1758_v50  ;;  %1685 = vmatpush3.bf16.msra.mxu1 %v1758_v50 }
  0x6a   : > { %824 = vmatmul.mubr.bf16.vlgmr.msra.gmra.mxu0 %v1759_v51  ;;  %888 = vmatmul.mubr.bf16.vlgmr.msra.gmra.mxu1 %v1762_v52  ;;  %v458_v51 = vld [vmem:[#allocation2 + $0xc8] sm:$0xff] }
  0x6b   : > { %831 = vmatprep.mubr.bf16.mxu0 %v1765_v53  ;;  %895 = vmatprep.mubr.bf16.mxu1 %v1767_v54 }
  0x72   : > { %832 = vmatmul.mubr.bf16.gmra.mxu0 %v1769_v55  ;;  %896 = vmatmul.mubr.bf16.gmra.mxu1 %v1770_v56 }
  0x73   : > { %839 = vmatprep.mubr.bf16.mxu0 %v1771_v57  ;;  %903 = vmatprep.mubr.bf16.mxu1 %v1773_v58 }
  0x7a   : > { %840 = vmatmul.mubr.bf16.gmra.mxu0 %v1775_v59  ;;  %904 = vmatmul.mubr.bf16.gmra.mxu1 %v1776_v60  ;;  %v443_v59 = vld [vmem:[#allocation2 + $0x50] sm:$0xff] }
  0x7b   : > { %847 = vmatprep.mubr.bf16.mxu0 %v1777_v61  ;;  %911 = vmatprep.mubr.bf16.mxu1 %v1779_v62  ;;  %v459_v61 = vld [vmem:[#allocation2 + $0xe0] sm:$0xff] }
  0x82   : > { %848 = vmatmul.mubr.bf16.gmra.mxu0 %v1781_v63  ;;  %912 = vmatmul.mubr.bf16.gmra.mxu1 %v1782_v0 }
  0x83   : > { %855 = vmatprep.mubr.bf16.mxu0 %v1783_v1  ;;  %919 = vmatprep.mubr.bf16.mxu1 %v1785_v2 }
  0x8a   : > { %856 = vmatmul.mubr.bf16.gmra.mxu0 %v1787_v3  ;;  %920 = vmatmul.mubr.bf16.gmra.mxu1 %v1788_v4 }
  0x8b   : > { %863 = vmatprep.mubr.bf16.mxu0 %v1789_v5  ;;  %927 = vmatprep.mubr.bf16.mxu1 %v1791_v6  ;;  %v444_v5 = vld [vmem:[#allocation2 + $0x68] sm:$0xff] }
  0x92   : > { %864 = vmatmul.mubr.bf16.gmra.mxu0 %v1793_v7  ;;  %928 = vmatmul.mubr.bf16.gmra.mxu1 %v1794_v8  ;;  %v460_v7 = vld [vmem:[#allocation2 + $0x90] sm:$0xff] }
  0x93   : > { %871 = vmatprep.mubr.bf16.mxu0 %v1795_v9  ;;  %935 = vmatprep.mubr.bf16.mxu1 %v1797_v10 }
  0x9a   : > { %872 = vmatmul.mubr.bf16.gmra.mxu0 %v1799_v11  ;;  %936 = vmatmul.mubr.bf16.gmra.mxu1 %v1800_v12 }
  0x9b   : > { %879 = vmatprep.mubr.bf16.mxu0 %v1801_v13  ;;  %943 = vmatprep.mubr.bf16.mxu1 %v1803_v14 }
  0xa2   : > { %880 = vmatmul.mubr.bf16.gmra.mxu0 %v1805_v15  ;;  %944 = vmatmul.mubr.bf16.gmra.mxu1 %v1806_v16  ;;  %v445_v15 = vld [vmem:[#allocation2 + $0x30] sm:$0xff] }
 0x12a   : > { %v1574_v17 = vpop.f32.mrf.mxu0  ;;  %v1622_v18 = vpop.f32.mrf.mxu1 }
 0x12c   : > { %v1575_v20 = vpop.f32.mrf.mxu0  ;;  %v1623_v22 = vpop.f32.mrf.mxu1 }
 0x12d   : > { %v1576_v23 = vadd.f32 %v1575_v20, %v1574_v17  ;;  %v1624_v24 = vadd.f32 %v1623_v22, %v1622_v18  ;;  %v461_v17 = vld [vmem:[#allocation2 + $0x70] sm:$0xff] }
 0x12e   : > { %v1577_v25 = vpop.f32.mrf.mxu0  ;;  %v1625_v26 = vpop.f32.mrf.mxu1 }
 0x12f   : > { %v952_v27 = vadd.f32 %v1576_v23, %v439_v19  ;;  %v968_v28 = vadd.f32 %v1624_v24, %v455_v21 }
 0x130   : > { %v1578_v30 = vpop.f32.mrf.mxu0  ;;  %v1626_v32 = vpop.f32.mrf.mxu1 }
 0x131   : > { %984 = vst [vmem:[#allocation2 + $0xb0] sm:$0xff] %v952_v27  ;;  %1000 = vst [vmem:[#allocation2 + $0x38] sm:$0xff] %v968_v28  ;;  %v1579_v33 = vadd.f32 %v1578_v30, %v1577_v25  ;;  %v1627_v34 = vadd.f32 %v1626_v32, %v1625_v26  ;;  %v446_v25 = vld [vmem:[#allocation2 + $0x48] sm:$0xff]  ;;  %v462_v27 = vld [vmem:[#allocation2 + $0xc0] sm:$0xff] }
 0x132   : > { %v1580_v35 = vpop.f32.mrf.mxu0  ;;  %v1628_v36 = vpop.f32.mrf.mxu1 }
 0x133   : > { %v953_v37 = vadd.f32 %v1579_v33, %v440_v29  ;;  %v969_v38 = vadd.f32 %v1627_v34, %v456_v31 }
 0x134   : > { %v1581_v40 = vpop.f32.mrf.mxu0  ;;  %v1629_v42 = vpop.f32.mrf.mxu1 }
 0x135   : > { %985 = vst [vmem:[#allocation2] sm:$0xff] %v953_v37  ;;  %1001 = vst [vmem:[#allocation2 + $0x58] sm:$0xff] %v969_v38  ;;  %v1582_v43 = vadd.f32 %v1581_v40, %v1580_v35  ;;  %v1630_v44 = vadd.f32 %v1629_v42, %v1628_v36  ;;  %v447_v35 = vld [vmem:[#allocation2 + $0x80] sm:$0xff]  ;;  %v463_v37 = vld [vmem:[#allocation2 + $0xa8] sm:$0xff] }
 0x136   : > { %v1583_v45 = vpop.f32.mrf.mxu0  ;;  %v1631_v46 = vpop.f32.mrf.mxu1 }
 0x137   : > { %v954_v47 = vadd.f32 %v1582_v43, %v441_v39  ;;  %v970_v48 = vadd.f32 %v1630_v44, %v457_v41 }
 0x138   : > { %v1584_v50 = vpop.f32.mrf.mxu0  ;;  %v1632_v52 = vpop.f32.mrf.mxu1 }
 0x139   : > { %986 = vst [vmem:[#allocation2 + $0xd8] sm:$0xff] %v954_v47  ;;  %1002 = vst [vmem:[#allocation2 + $0x40] sm:$0xff] %v970_v48  ;;  %v1585_v53 = vadd.f32 %v1584_v50, %v1583_v45  ;;  %v1633_v54 = vadd.f32 %v1632_v52, %v1631_v46  ;;  %v448_v45 = vld [vmem:[#allocation2 + $0x88] sm:$0xff]  ;;  %v464_v47 = vld [vmem:[#allocation2 + $0xd0] sm:$0xff] }
 0x13a   : > { %v1586_v55 = vpop.f32.mrf.mxu0  ;;  %v1634_v56 = vpop.f32.mrf.mxu1 }
 0x13b   : > { %v955_v57 = vadd.f32 %v1585_v53, %v442_v49  ;;  %v971_v58 = vadd.f32 %v1633_v54, %v458_v51 }
 0x13c   : > { %v1587_v60 = vpop.f32.mrf.mxu0  ;;  %v1635_v62 = vpop.f32.mrf.mxu1 }
 0x13d   : > { %987 = vst [vmem:[#allocation2 + $0x18] sm:$0xff] %v955_v57  ;;  %1003 = vst [vmem:[#allocation2 + $0xc8] sm:$0xff] %v971_v58  ;;  %v1588_v63 = vadd.f32 %v1587_v60, %v1586_v55  ;;  %v1636_v0 = vadd.f32 %v1635_v62, %v1634_v56  ;;  %v449_v55 = vld [vmem:[#allocation2 + $0xe8] sm:$0xff]  ;;  %v465_v57 = vld [vmem:[#allocation2 + $0x10] sm:$0xff] }
 0x13e   : > { %v1589_v1 = vpop.f32.mrf.mxu0  ;;  %v1637_v2 = vpop.f32.mrf.mxu1 }
 0x13f   : > { %v956_v3 = vadd.f32 %v1588_v63, %v443_v59  ;;  %v972_v4 = vadd.f32 %v1636_v0, %v459_v61 }
 0x140   : > { %v1590_v6 = vpop.f32.mrf.mxu0  ;;  %v1638_v8 = vpop.f32.mrf.mxu1 }
 0x141   : > { %988 = vst [vmem:[#allocation2 + $0x50] sm:$0xff] %v956_v3  ;;  %1004 = vst [vmem:[#allocation2 + $0xe0] sm:$0xff] %v972_v4  ;;  %v1591_v9 = vadd.f32 %v1590_v6, %v1589_v1  ;;  %v1639_v10 = vadd.f32 %v1638_v8, %v1637_v2  ;;  %v450_v1 = vld [vmem:[#allocation2 + $0xb8] sm:$0xff]  ;;  %v466_v3 = vld [vmem:[#allocation2 + $0x28] sm:$0xff] }
 0x142   : > { %v1592_v11 = vpop.f32.mrf.mxu0  ;;  %v1640_v12 = vpop.f32.mrf.mxu1 }
 0x143   : > { %v957_v13 = vadd.f32 %v1591_v9, %v444_v5  ;;  %v973_v14 = vadd.f32 %v1639_v10, %v460_v7 }
 0x144   : > { %v1593_v16 = vpop.f32.mrf.mxu0  ;;  %v1641_v18 = vpop.f32.mrf.mxu1 }
 0x145   : > { %989 = vst [vmem:[#allocation2 + $0x68] sm:$0xff] %v957_v13  ;;  %1005 = vst [vmem:[#allocation2 + $0x90] sm:$0xff] %v973_v14  ;;  %v1594_v19 = vadd.f32 %v1593_v16, %v1592_v11  ;;  %v1642_v20 = vadd.f32 %v1641_v18, %v1640_v12  ;;  %v451_v11 = vld [vmem:[#allocation2 + $0x60] sm:$0xff] }
 0x146   : > { %v1595_v21 = vpop.f32.mrf.mxu0  ;;  %v1643_v22 = vpop.f32.mrf.mxu1  ;;  %v467_v13 = vld [vmem:[#allocation2 + $0xa0] sm:$0xff] }
 0x147   : > { %v958_v23 = vadd.f32 %v1594_v19, %v445_v15  ;;  %v974_v24 = vadd.f32 %v1642_v20, %v461_v17 }
 0x148   : > { %v1596_v26 = vpop.f32.mrf.mxu0  ;;  %v1644_v28 = vpop.f32.mrf.mxu1 }
 0x149   : > { %990 = vst [vmem:[#allocation2 + $0x30] sm:$0xff] %v958_v23  ;;  %1006 = vst [vmem:[#allocation2 + $0x70] sm:$0xff] %v974_v24  ;;  %v1597_v29 = vadd.f32 %v1596_v26, %v1595_v21  ;;  %v1645_v30 = vadd.f32 %v1644_v28, %v1643_v22  ;;  %v452_v21 = vld [vmem:[#allocation2 + $0xf0] sm:$0xff]  ;;  %v468_v23 = vld [vmem:[#allocation2 + $0xf8] sm:$0xff] }
 0x14a   : > { %v1598_v31 = vpop.f32.mrf.mxu0  ;;  %v1646_v32 = vpop.f32.mrf.mxu1 }
 0x14b   : > { %v959_v33 = vadd.f32 %v1597_v29, %v446_v25  ;;  %v975_v34 = vadd.f32 %v1645_v30, %v462_v27 }
 0x14c   : > { %v1599_v36 = vpop.f32.mrf.mxu0  ;;  %v1647_v38 = vpop.f32.mrf.mxu1 }
 0x14d   : > { %991 = vst [vmem:[#allocation2 + $0x48] sm:$0xff] %v959_v33  ;;  %1007 = vst [vmem:[#allocation2 + $0xc0] sm:$0xff] %v975_v34  ;;  %v1600_v39 = vadd.f32 %v1599_v36, %v1598_v31  ;;  %v1648_v40 = vadd.f32 %v1647_v38, %v1646_v32  ;;  %v453_v31 = vld [vmem:[#allocation2 + $0x8] sm:$0xff]  ;;  %v469_v33 = vld [vmem:[#allocation2 + $0x20] sm:$0xff] }
 0x14e   : > { %v1601_v41 = vpop.f32.mrf.mxu0  ;;  %v1649_v42 = vpop.f32.mrf.mxu1 }
 0x14f   : > { %v960_v43 = vadd.f32 %v1600_v39, %v447_v35  ;;  %v976_v44 = vadd.f32 %v1648_v40, %v463_v37 }
 0x150   : > { %v1602_v46 = vpop.f32.mrf.mxu0  ;;  %v1650_v48 = vpop.f32.mrf.mxu1 }
 0x151   : > { %992 = vst [vmem:[#allocation2 + $0x80] sm:$0xff] %v960_v43  ;;  %1008 = vst [vmem:[#allocation2 + $0xa8] sm:$0xff] %v976_v44  ;;  %v1603_v49 = vadd.f32 %v1602_v46, %v1601_v41  ;;  %v1651_v50 = vadd.f32 %v1650_v48, %v1649_v42  ;;  %v454_v41 = vld [vmem:[#allocation2 + $0x78] sm:$0xff] }
 0x152   : > { %v1604_v51 = vpop.f32.mrf.mxu0  ;;  %v1652_v52 = vpop.f32.mrf.mxu1  ;;  %v470_v43 = vld [vmem:[#allocation2 + $0x98] sm:$0xff] }
 0x153   : > { %v961_v53 = vadd.f32 %v1603_v49, %v448_v45  ;;  %v977_v54 = vadd.f32 %v1651_v50, %v464_v47 }
 0x154   : > { %v1605_v56 = vpop.f32.mrf.mxu0  ;;  %v1653_v58 = vpop.f32.mrf.mxu1 }
 0x155   : > { %993 = vst [vmem:[#allocation2 + $0x88] sm:$0xff] %v961_v53  ;;  %1009 = vst [vmem:[#allocation2 + $0xd0] sm:$0xff] %v977_v54  ;;  %v1606_v59 = vadd.f32 %v1605_v56, %v1604_v51  ;;  %v1654_v60 = vadd.f32 %v1653_v58, %v1652_v52 }
 0x156   : > { %v1607_v61 = vpop.f32.mrf.mxu0  ;;  %v1655_v62 = vpop.f32.mrf.mxu1 }
 0x157   : > { %v962_v63 = vadd.f32 %v1606_v59, %v449_v55  ;;  %v978_v0 = vadd.f32 %v1654_v60, %v465_v57 }
 0x158   : > { %v1608_v2 = vpop.f32.mrf.mxu0  ;;  %v1656_v4 = vpop.f32.mrf.mxu1 }
 0x159   : > { %994 = vst [vmem:[#allocation2 + $0xe8] sm:$0xff] %v962_v63  ;;  %1010 = vst [vmem:[#allocation2 + $0x10] sm:$0xff] %v978_v0  ;;  %v1609_v5 = vadd.f32 %v1608_v2, %v1607_v61  ;;  %v1657_v6 = vadd.f32 %v1656_v4, %v1655_v62 }
 0x15a   : > { %v1610_v7 = vpop.f32.mrf.mxu0  ;;  %v1658_v8 = vpop.f32.mrf.mxu1 }
 0x15b   : > { %v963_v9 = vadd.f32 %v1609_v5, %v450_v1  ;;  %v979_v10 = vadd.f32 %v1657_v6, %v466_v3 }
 0x15c   : > { %v1611_v12 = vpop.f32.mrf.mxu0  ;;  %v1659_v14 = vpop.f32.mrf.mxu1 }
 0x15d   : > { %995 = vst [vmem:[#allocation2 + $0xb8] sm:$0xff] %v963_v9  ;;  %1011 = vst [vmem:[#allocation2 + $0x28] sm:$0xff] %v979_v10  ;;  %v1612_v15 = vadd.f32 %v1611_v12, %v1610_v7  ;;  %v1660_v16 = vadd.f32 %v1659_v14, %v1658_v8 }
 0x15e   : > { %v1613_v17 = vpop.f32.mrf.mxu0  ;;  %v1661_v18 = vpop.f32.mrf.mxu1 }
 0x15f   : > { %v964_v19 = vadd.f32 %v1612_v15, %v451_v11  ;;  %v980_v20 = vadd.f32 %v1660_v16, %v467_v13 }
 0x160   : > { %v1614_v22 = vpop.f32.mrf.mxu0  ;;  %v1662_v24 = vpop.f32.mrf.mxu1 }
 0x161   : > { %996 = vst [vmem:[#allocation2 + $0x60] sm:$0xff] %v964_v19  ;;  %1012 = vst [vmem:[#allocation2 + $0xa0] sm:$0xff] %v980_v20  ;;  %v1615_v25 = vadd.f32 %v1614_v22, %v1613_v17  ;;  %v1663_v26 = vadd.f32 %v1662_v24, %v1661_v18 }
 0x162   : > { %v1616_v27 = vpop.f32.mrf.mxu0  ;;  %v1664_v28 = vpop.f32.mrf.mxu1 }
 0x163   : > { %v965_v29 = vadd.f32 %v1615_v25, %v452_v21  ;;  %v981_v30 = vadd.f32 %v1663_v26, %v468_v23 }
 0x164   : > { %v1617_v32 = vpop.f32.mrf.mxu0  ;;  %v1665_v34 = vpop.f32.mrf.mxu1 }
 0x165   : > { %997 = vst [vmem:[#allocation2 + $0xf0] sm:$0xff] %v965_v29  ;;  %1013 = vst [vmem:[#allocation2 + $0xf8] sm:$0xff] %v981_v30  ;;  %v1618_v35 = vadd.f32 %v1617_v32, %v1616_v27  ;;  %v1666_v36 = vadd.f32 %v1665_v34, %v1664_v28 }
 0x166   : > { %v1619_v37 = vpop.f32.mrf.mxu0  ;;  %v1667_v38 = vpop.f32.mrf.mxu1 }
 0x167   : > { %v966_v39 = vadd.f32 %v1618_v35, %v453_v31  ;;  %v982_v40 = vadd.f32 %v1666_v36, %v469_v33 }
 0x168   : > { %v1620_v42 = vpop.f32.mrf.mxu0  ;;  %v1668_v44 = vpop.f32.mrf.mxu1 }
 0x169   : > { %998 = vst [vmem:[#allocation2 + $0x8] sm:$0xff] %v966_v39  ;;  %1014 = vst [vmem:[#allocation2 + $0x20] sm:$0xff] %v982_v40  ;;  %v1621_v45 = vadd.f32 %v1620_v42, %v1619_v37  ;;  %v1669_v46 = vadd.f32 %v1668_v44, %v1667_v38  ;;  %1019 = sbr.rel (%p1395_p13) target bundleno = 381 (0x17d), region = 74 }
 0x16b   : > { %v967_v47 = vadd.f32 %v1621_v45, %v454_v41  ;;  %v983_v48 = vadd.f32 %v1669_v46, %v470_v43 }
 0x16d   : > { %999 = vst [vmem:[#allocation2 + $0x78] sm:$0xff] %v967_v47  ;;  %1015 = vst [vmem:[#allocation2 + $0x98] sm:$0xff] %v983_v48 }
 0x16e   : > { %v1020_v49 = vld [vmem:[#allocation2 + $0xb0] sm:$0xff]  ;;  %v1021_v50 = vld [vmem:[#allocation2] sm:$0xff]  ;;  %v1022_v51 = vld [vmem:[#allocation2 + $0xd8] sm:$0xff] }
 0x16f   : > { %v1466_v52 = vpack.c.bf16 %v1021_v50, %v1020_v49  ;;  %v1023_v53 = vld [vmem:[#allocation2 + $0x18] sm:$0xff]  ;;  %v1024_v54 = vld [vmem:[#allocation2 + $0x50] sm:$0xff]  ;;  %v1025_v55 = vld [vmem:[#allocation2 + $0x68] sm:$0xff] }
 0x170   : > { %v1471_v56 = vpack.c.bf16 %v1023_v53, %v1022_v51  ;;  %v1476_v57 = vpack.c.bf16 %v1025_v55, %v1024_v54  ;;  %v1026_v58 = vld [vmem:[#allocation2 + $0x30] sm:$0xff]  ;;  %v1027_v59 = vld [vmem:[#allocation2 + $0x48] sm:$0xff]  ;;  %v1028_v60 = vld [vmem:[#allocation2 + $0x80] sm:$0xff] }
 0x171   : > { %1467 = vst [vmem:[%s2020_s26] sm:$0xff] %v1466_v52   ;;  %v1481_v61 = vpack.c.bf16 %v1027_v59, %v1026_v58  ;;  %v1029_v62 = vld [vmem:[#allocation2 + $0x88] sm:$0xff]  ;;  %v1031_v0 = vld [vmem:[#allocation2 + $0xb8] sm:$0xff]  ;;  %v1032_v3 = vld [vmem:[#allocation2 + $0x60] sm:$0xff] }
 0x172   : > { %v1030_v63 = vld [vmem:[#allocation2 + $0xe8] sm:$0xff]  ;;  %1543 = vst [vmem:[%s2020_s26 + $0x8] sm:$0xff] %v1471_v56   ;;  %1544 = vst [vmem:[%s2020_s26 + $0x10] sm:$0xff] %v1476_v57   ;;  %v1486_v1 = vpack.c.bf16 %v1029_v62, %v1028_v60  ;;  %v1033_v4 = vld [vmem:[#allocation2 + $0xf0] sm:$0xff] }
 0x173   : > { %v1491_v2 = vpack.c.bf16 %v1031_v0, %v1030_v63  ;;  %v1034_v5 = vld [vmem:[#allocation2 + $0x8] sm:$0xff]  ;;  %1545 = vst [vmem:[%s2020_s26 + $0x18] sm:$0xff] %v1481_v61   ;;  %v1496_v6 = vpack.c.bf16 %v1033_v4, %v1032_v3  ;;  %v1036_v8 = vld [vmem:[#allocation2 + $0x38] sm:$0xff]  ;;  %v1038_v12 = vld [vmem:[#allocation2 + $0x40] sm:$0xff] }
 0x174   : > { %v1035_v7 = vld [vmem:[#allocation2 + $0x78] sm:$0xff]  ;;  %1546 = vst [vmem:[%s2020_s26 + $0x20] sm:$0xff] %v1486_v1   ;;  %v1039_v13 = vld [vmem:[#allocation2 + $0xc8] sm:$0xff]  ;;  %v1040_v14 = vld [vmem:[#allocation2 + $0xe0] sm:$0xff] }
 0x175   : > { %v1037_v9 = vld [vmem:[#allocation2 + $0x58] sm:$0xff]  ;;  %1547 = vst [vmem:[%s2020_s26 + $0x28] sm:$0xff] %v1491_v2   ;;  %v1501_v10 = vpack.c.bf16 %v1035_v7, %v1034_v5  ;;  %1548 = vst [vmem:[%s2020_s26 + $0x30] sm:$0xff] %v1496_v6   ;;  %v1511_v15 = vpack.c.bf16 %v1039_v13, %v1038_v12  ;;  %v1041_v16 = vld [vmem:[#allocation2 + $0x90] sm:$0xff] }
 0x176   : > { %v1506_v11 = vpack.c.bf16 %v1037_v9, %v1036_v8  ;;  %v1042_v17 = vld [vmem:[#allocation2 + $0x70] sm:$0xff]  ;;  %v1043_v18 = vld [vmem:[#allocation2 + $0xc0] sm:$0xff]  ;;  %v1516_v19 = vpack.c.bf16 %v1041_v16, %v1040_v14  ;;  %v1044_v21 = vld [vmem:[#allocation2 + $0xa8] sm:$0xff] }
 0x177   : > { %1549 = vst [vmem:[%s2020_s26 + $0x38] sm:$0xff] %v1501_v10   ;;  %v1521_v20 = vpack.c.bf16 %v1043_v18, %v1042_v17  ;;  %v1045_v22 = vld [vmem:[#allocation2 + $0xd0] sm:$0xff]  ;;  %1551 = vst [vmem:[%s2020_s26 + $0x48] sm:$0xff] %v1511_v15   ;;  %v1047_v25 = vld [vmem:[#allocation2 + $0x28] sm:$0xff] }
 0x178   : > { %1550 = vst [vmem:[%s2020_s26 + $0x40] sm:$0xff] %v1506_v11   ;;  %v1046_v23 = vld [vmem:[#allocation2 + $0x10] sm:$0xff]  ;;  %v1526_v24 = vpack.c.bf16 %v1045_v22, %v1044_v21  ;;  %v1048_v26 = vld [vmem:[#allocation2 + $0xa0] sm:$0xff]  ;;  %v1049_v27 = vld [vmem:[#allocation2 + $0xf8] sm:$0xff] }
 0x179   : > { %1552 = vst [vmem:[%s2020_s26 + $0x50] sm:$0xff] %v1516_v19   ;;  %1553 = vst [vmem:[%s2020_s26 + $0x58] sm:$0xff] %v1521_v20   ;;  %v1531_v28 = vpack.c.bf16 %v1047_v25, %v1046_v23  ;;  %v1536_v29 = vpack.c.bf16 %v1049_v27, %v1048_v26  ;;  %v1050_v30 = vld [vmem:[#allocation2 + $0x20] sm:$0xff]  ;;  %v1051_v31 = vld [vmem:[#allocation2 + $0x98] sm:$0xff] }
 0x17a   : > { %1554 = vst [vmem:[%s2020_s26 + $0x60] sm:$0xff] %v1526_v24   ;;  %v1541_v32 = vpack.c.bf16 %v1051_v31, %v1050_v30 }
 0x17b   : > { %1555 = vst [vmem:[%s2020_s26 + $0x68] sm:$0xff] %v1531_v28   ;;  %1556 = vst [vmem:[%s2020_s26 + $0x70] sm:$0xff] %v1536_v29  }
 0x17c   : > { %1557 = vst [vmem:[%s2020_s26 + $0x78] sm:$0xff] %v1541_v32  }
 0x17d PF: > { %s12_s15 = sadd.s32 1, %s1861_s15   ;;  %s2114_s9 = smov %s1841_s10 }
 0x17e   : > { %p9_p0 = scmp.ge.s32.totalorder %s12_s15, 6   ;;  %s2115_s10 = smov %s1930_s22 }
 0x17f   : > { %s2116_s11 = smov %s1853_s13  ;;  %s2117_s12 = smov %s1857_s14 }
 0x180   : > { %s2118_s13 = smov %s2121_s16  ;;  %s2119_s14 = smov %s2125_s17 }
 0x181   :  { %11 = sbr.rel (!%p9_p0) target bundleno = 4 (0x4), region = 112 }

// kernel: resnest_forward.61
= control target key start
LH: loop header
LB: loop body
LE: loop exit
PB: predicated region body
PF: predicated region fallthrough
CT: control target
= control target key end

     0   :  { %s1109_s9 = smov 0   ;;  %s1111_s10 = smov 0   ;;  %s1263_s0 = inlined_call_operand.vmem [shape: bf16[1,128,128], index: 0, kind: input, shape index: {}]   ;;  %s1264_s1 = inlined_call_operand.vmem [shape: bf16[1,128,256], index: 1, kind: input, shape index: {}]   ;;  %s1265_s2 = inlined_call_operand.vmem [shape: bf16[128,256], index: 2, kind: output, shape index: {}]  }
   0x1   :  { %s1113_s11 = smov 0   ;;  %s1115_s12 = smov 0  }
   0x2   :  { %s1117_s13 = smov 0  }
   0x3 LB: > { %s24_s14 = sadd.s32 1, %s1088_s12  ;;  %s825_s15 = sadd.s32 4294967295, %s1092_s13   ;;  %s1092_s13 = sphi %s1117_s13, %s12_s13   ;;  %s1088_s12 = sphi %s1115_s12, %s1270_s12   ;;  %s1084_s11 = sphi %s1113_s11, %s1269_s11   ;;  %s1080_s10 = sphi %s1111_s10, %s1268_s10   ;;  %s1076_s9 = sphi %s1109_s9, %s1267_s9  }
   0x4   : > { %p25_p0 = scmp.ge.s32.totalorder %s24_s14, 2  ;;  %p75_p1 = scmp.ne.s32.totalorder %s1080_s10, %s1076_s9 }
   0x5   : > { %p76_p2 = scmp.eq.s32.totalorder %s1092_s13, 0  ;;  %p111_p4 = scmp.eq.s32.totalorder %s825_s15, 1 }
   0x6   : > { %s1272_s14 = smov (%p25_p0, %s24_s14), 0  ;;  %s68_s17 = sadd.s32 1, %s1080_s10 }
   0x7   : > { %p77_p3 = por %p76_p2, %p75_p1  ;;  %s64_s16 = ssub.s32 %s1088_s12, %s1272_s14 }
   0x8   : > { %p66_p5 = scmp.eq.s32.totalorder %s64_s16, 0  ;;  %p1144_p6 = por %p111_p4, %p75_p1 }
   0x9   : > { %p829_p7 = scmp.ge.s32.totalorder %s1092_s13, 2 }
   0xa   : > { %s1149_s19 = scalar_select %p66_p5, %s1080_s10, %s68_s17  }
   0xb   : > { %146 = sbr.rel (%p829_p7) target bundleno = 30 (0x1e), region = 20 }
  0x10   : > { %149 = sbr.rel (!%p77_p3) target bundleno = 30 (0x1e), region = 24  ;;  %s151_s20 = sand.u32 (%p77_p3), 1, %s1080_s10  }
  0x11   : > { %s831_s21 = sshll.u32 (%p77_p3), %s1088_s12, 2  ;;  %s830_s22 = sshll.u32 (%p77_p3), %s151_s20, 6 }
  0x12   : > { %s1157_s25 = scalar_lea.vmem (%p77_p3), %s1264_s1, %s831_s21  ;;  %s153_s26 = scalar_lea.vmem (%p77_p3), [#allocation2], %s830_s22 }
  0x13   : > { %v174_v0 = vld [vmem:[%s1157_s25] sm:$0xf] (%p77_p3)  ;;  %v176_v1 = vld [vmem:[%s1157_s25 + $0x8] sm:$0xf] (%p77_p3)  ;;  %v178_v2 = vld [vmem:[%s1157_s25 + $0x10] sm:$0xf] (%p77_p3) }
  0x14   : > { %175 = vst [vmem:[%s153_s26] sm:$0xf] (%p77_p3), %v174_v0  ;;  %177 = vst [vmem:[%s153_s26 + $0x4] sm:$0xf] (%p77_p3), %v176_v1  ;;  %v180_v3 = vld [vmem:[%s1157_s25 + $0x18] sm:$0xf] (%p77_p3) }
  0x15   : > { %v182_v4 = vld [vmem:[%s1157_s25 + $0x20] sm:$0xf]  ;;  %179 = vst [vmem:[%s153_s26 + $0x8] sm:$0xf] %v178_v2  ;;  %181 = vst [vmem:[%s153_s26 + $0xc] sm:$0xf] %v180_v3 }
  0x16   : > { %183 = vst [vmem:[%s153_s26 + $0x10] sm:$0xf] %v182_v4  ;;  %v184_v5 = vld [vmem:[%s1157_s25 + $0x28] sm:$0xf]  ;;  %v186_v6 = vld [vmem:[%s1157_s25 + $0x30] sm:$0xf] }
  0x17   : > { %v188_v7 = vld [vmem:[%s1157_s25 + $0x38] sm:$0xf]  ;;  %185 = vst [vmem:[%s153_s26 + $0x14] sm:$0xf] %v184_v5  ;;  %187 = vst [vmem:[%s153_s26 + $0x18] sm:$0xf] %v186_v6 }
  0x18   : > { %189 = vst [vmem:[%s153_s26 + $0x1c] sm:$0xf] %v188_v7  ;;  %v190_v8 = vld [vmem:[%s1157_s25 + $0x40] sm:$0xf]  ;;  %v192_v9 = vld [vmem:[%s1157_s25 + $0x48] sm:$0xf] }
  0x19   : > { %v194_v10 = vld [vmem:[%s1157_s25 + $0x50] sm:$0xf]  ;;  %191 = vst [vmem:[%s153_s26 + $0x20] sm:$0xf] %v190_v8  ;;  %193 = vst [vmem:[%s153_s26 + $0x24] sm:$0xf] %v192_v9 }
  0x1a   : > { %195 = vst [vmem:[%s153_s26 + $0x28] sm:$0xf] %v194_v10  ;;  %v196_v11 = vld [vmem:[%s1157_s25 + $0x58] sm:$0xf]  ;;  %v198_v12 = vld [vmem:[%s1157_s25 + $0x60] sm:$0xf] }
  0x1b   : > { %v200_v13 = vld [vmem:[%s1157_s25 + $0x68] sm:$0xf]  ;;  %197 = vst [vmem:[%s153_s26 + $0x2c] sm:$0xf] %v196_v11  ;;  %199 = vst [vmem:[%s153_s26 + $0x30] sm:$0xf] %v198_v12 }
  0x1c   : > { %201 = vst [vmem:[%s153_s26 + $0x34] sm:$0xf] %v200_v13  ;;  %v202_v14 = vld [vmem:[%s1157_s25 + $0x70] sm:$0xf]  ;;  %v204_v15 = vld [vmem:[%s1157_s25 + $0x78] sm:$0xf] }
  0x1d   : > { %203 = vst [vmem:[%s153_s26 + $0x38] sm:$0xf] %v202_v14  ;;  %205 = vst [vmem:[%s153_s26 + $0x3c] sm:$0xf] %v204_v15 }
  0x1e PF: > { %p832_p8 = scmp.ge.s32.totalorder %s1092_s13, 1  ;;  %p260_p9 = scmp.lt.s32.totalorder %s1092_s13, 3 }
  0x20   : > { %p261_p10 = pnand %p832_p8, %p260_p9 }
  0x21   : > { %s267_s27 = sand.u32 (!%p261_p10), 1, %s1076_s9  }
  0x22   : > { %264 = sbr.rel (%p261_p10) target bundleno = 293 (0x125), region = 65  ;;  %s1181_s30 = sshll.u32 (!%p261_p10), %s267_s27, 6 }
  0x23   : > { %s1187_s5 = scalar_lea.vmem (!%p261_p10), [#allocation2], %s1181_s30  ;;  %s1216_s25 = scalar_lea.vmem (!%p261_p10), [#allocation3], %s1181_s30 }
  0x27   : > { %v1046_v16 = vld [vmem:[%s1263_s0] sm:$0xff]   ;;  %v1038_v18 = vld [vmem:[%s1187_s5 + $0x38] sm:$0xff]   ;;  %v1039_v19 = vld [vmem:[%s1187_s5 + $0x30] sm:$0xff]   ;;  %s868_s26 = sshll.u32 (%p1144_p6), %s1084_s11, 2 }
  0x28   : > { %v1047_v17 = vld [vmem:[%s1263_s0 + $0x20] sm:$0xff]   ;;  %966 = vmatprep.mubr.bf16.mxu0 %v1046_v16  ;;  %950 = vmatprep.subr.bf16.mxu0 %v1038_v18  ;;  %v1040_v20 = vld [vmem:[%s1187_s5 + $0x28] sm:$0xff]   ;;  %v1042_v22 = vld [vmem:[%s1187_s5 + $0x18] sm:$0xff]   ;;  %s628_s29 = scalar_lea.vmem (%p1144_p6), %s1265_s2, %s868_s26 }
  0x29   : > { %974 = vmatprep.mubr.bf16.mxu1 %v1047_v17  ;;  %982 = vmatprep.subr.bf16.mxu1 %v1038_v18  ;;  %v1041_v21 = vld [vmem:[%s1187_s5 + $0x20] sm:$0xff]   ;;  %v1043_v23 = vld [vmem:[%s1187_s5 + $0x10] sm:$0xff]   ;;  %v1044_v24 = vld [vmem:[%s1187_s5 + $0x8] sm:$0xff]  }
  0x2a   : > { %951 = vmatpush3.bf16.msra.mxu0 %v1038_v18  ;;  %990 = vmatpush3.bf16.msra.mxu1 %v1038_v18  ;;  %v1045_v25 = vld [vmem:[%s1187_s5] sm:$0xff]   ;;  %v1048_v26 = vld [vmem:[%s1263_s0 + $0x8] sm:$0xff]   ;;  %v1050_v28 = vld [vmem:[%s1263_s0 + $0x10] sm:$0xff]  }
  0x2b   : > { %952 = vmatprep.subr.bf16.mxu0 %v1039_v19  ;;  %983 = vmatprep.subr.bf16.mxu1 %v1039_v19  ;;  %v1049_v27 = vld [vmem:[%s1263_s0 + $0x28] sm:$0xff]   ;;  %v1051_v29 = vld [vmem:[%s1263_s0 + $0x30] sm:$0xff]   ;;  %v1052_v30 = vld [vmem:[%s1263_s0 + $0x18] sm:$0xff]  }
  0x2c   : > { %v1053_v31 = vld [vmem:[%s1263_s0 + $0x38] sm:$0xff]  }
  0x2e   : > { %953 = vmatpush3.bf16.msra.mxu0 %v1039_v19  ;;  %991 = vmatpush3.bf16.msra.mxu1 %v1039_v19 }
  0x2f   : > { %954 = vmatprep.subr.bf16.mxu0 %v1040_v20  ;;  %984 = vmatprep.subr.bf16.mxu1 %v1040_v20 }
  0x32   : > { %955 = vmatpush3.bf16.msra.mxu0 %v1040_v20  ;;  %992 = vmatpush3.bf16.msra.mxu1 %v1040_v20 }
  0x33   : > { %956 = vmatprep.subr.bf16.mxu0 %v1041_v21  ;;  %985 = vmatprep.subr.bf16.mxu1 %v1041_v21 }
  0x36   : > { %957 = vmatpush3.bf16.msra.mxu0 %v1041_v21  ;;  %993 = vmatpush3.bf16.msra.mxu1 %v1041_v21 }
  0x37   : > { %958 = vmatprep.subr.bf16.mxu0 %v1042_v22  ;;  %986 = vmatprep.subr.bf16.mxu1 %v1042_v22 }
  0x3a   : > { %959 = vmatpush3.bf16.msra.mxu0 %v1042_v22  ;;  %994 = vmatpush3.bf16.msra.mxu1 %v1042_v22 }
  0x3b   : > { %960 = vmatprep.subr.bf16.mxu0 %v1043_v23  ;;  %987 = vmatprep.subr.bf16.mxu1 %v1043_v23 }
  0x3e   : > { %961 = vmatpush3.bf16.msra.mxu0 %v1043_v23  ;;  %995 = vmatpush3.bf16.msra.mxu1 %v1043_v23 }
  0x3f   : > { %962 = vmatprep.subr.bf16.mxu0 %v1044_v24  ;;  %988 = vmatprep.subr.bf16.mxu1 %v1044_v24 }
  0x42   : > { %963 = vmatpush3.bf16.msra.mxu0 %v1044_v24  ;;  %996 = vmatpush3.bf16.msra.mxu1 %v1044_v24 }
  0x43   : > { %964 = vmatprep.subr.bf16.mxu0 %v1045_v25  ;;  %989 = vmatprep.subr.bf16.mxu1 %v1045_v25 }
  0x46   : > { %965 = vmatpush3.bf16.msra.mxu0 %v1045_v25  ;;  %997 = vmatpush3.bf16.msra.mxu1 %v1045_v25 }
  0x49   : > { %967 = vmatmul.mubr.bf16.vlgmr.msra.gmra.mxu0 %v1048_v26  ;;  %975 = vmatmul.mubr.bf16.vlgmr.msra.gmra.mxu1 %v1049_v27 }
  0x4a   : > { %970 = vmatprep.mubr.bf16.mxu0 %v1050_v28  ;;  %978 = vmatprep.mubr.bf16.mxu1 %v1051_v29 }
  0x51   : > { %971 = vmatmul.mubr.bf16.gmra.mxu0 %v1052_v30  ;;  %979 = vmatmul.mubr.bf16.gmra.mxu1 %v1053_v31 }
 0x109   : > { %v968_v32 = vpop.f32.mrf.mxu0  ;;  %v976_v33 = vpop.f32.mrf.mxu1 }
 0x10b   : > { %v472_v34 = vpop.f32.mrf.mxu0  ;;  %v504_v35 = vpop.f32.mrf.mxu1 }
 0x10d   : > { %v969_v36 = vpop.f32.mrf.mxu0  ;;  %v977_v37 = vpop.f32.mrf.mxu1 }
 0x10e   : > { %v895_v38 = vpack.c.bf16 %v969_v36, %v968_v32  ;;  %v915_v39 = vpack.c.bf16 %v977_v37, %v976_v33 }
 0x10f   : > { %v475_v40 = vpop.f32.mrf.mxu0  ;;  %v507_v41 = vpop.f32.mrf.mxu1 }
 0x110   : > { %927 = vst [vmem:[%s1216_s25 + $0x8] sm:$0xff] %v895_v38   ;;  %931 = vst [vmem:[%s1216_s25 + $0x28] sm:$0xff] %v915_v39   ;;  %v890_v42 = vpack.c.bf16 %v475_v40, %v472_v34  ;;  %v910_v43 = vpack.c.bf16 %v507_v41, %v504_v35 }
 0x111   : > { %v972_v44 = vpop.f32.mrf.mxu0  ;;  %v980_v45 = vpop.f32.mrf.mxu1 }
 0x112   : > { %891 = vst [vmem:[%s1216_s25] sm:$0xff] %v890_v42   ;;  %930 = vst [vmem:[%s1216_s25 + $0x20] sm:$0xff] %v910_v43  }
 0x113   : > { %v488_v46 = vpop.f32.mrf.mxu0  ;;  %v520_v47 = vpop.f32.mrf.mxu1 }
 0x115   : > { %v973_v48 = vpop.f32.mrf.mxu0  ;;  %v981_v49 = vpop.f32.mrf.mxu1 }
 0x116   : > { %v905_v50 = vpack.c.bf16 %v973_v48, %v972_v44  ;;  %v925_v51 = vpack.c.bf16 %v981_v49, %v980_v45  ;;  %621 = sbr.rel (!%p1144_p6) target bundleno = 293 (0x125), region = 73 }
 0x117   : > { %v491_v52 = vpop.f32.mrf.mxu0  ;;  %v523_v53 = vpop.f32.mrf.mxu1  ;;  %v649_v58 = vld [vmem:[%s1216_s25 + $0x8] sm:$0xf] (%p1144_p6)  ;;  %v651_v59 = vld [vmem:[%s1216_s25 + $0xc] sm:$0xf] (%p1144_p6) }
 0x118   : > { %929 = vst [vmem:[%s1216_s25 + $0x18] sm:$0xff] %v905_v50   ;;  %933 = vst [vmem:[%s1216_s25 + $0x38] sm:$0xff] %v925_v51   ;;  %v900_v54 = vpack.c.bf16 %v491_v52, %v488_v46  ;;  %v920_v55 = vpack.c.bf16 %v523_v53, %v520_v47  ;;  %v665_v2 = vld [vmem:[%s1216_s25 + $0x28] sm:$0xf] (%p1144_p6)  ;;  %v667_v3 = vld [vmem:[%s1216_s25 + $0x2c] sm:$0xf] (%p1144_p6) }
 0x119   : > { %v645_v56 = vld [vmem:[%s1216_s25] sm:$0xf] (%p1144_p6)  ;;  %v647_v57 = vld [vmem:[%s1216_s25 + $0x4] sm:$0xf] (%p1144_p6)  ;;  %650 = vst [vmem:[%s628_s29 + $0x10] sm:$0xf] (%p1144_p6), %v649_v58 }
 0x11a   : > { %928 = vst [vmem:[%s1216_s25 + $0x10] sm:$0xff] %v900_v54   ;;  %932 = vst [vmem:[%s1216_s25 + $0x30] sm:$0xff] %v920_v55   ;;  %v661_v0 = vld [vmem:[%s1216_s25 + $0x20] sm:$0xf] (%p1144_p6)  ;;  %v663_v1 = vld [vmem:[%s1216_s25 + $0x24] sm:$0xf] (%p1144_p6) }
 0x11b   : > { %646 = vst [vmem:[%s628_s29] sm:$0xf] %v645_v56  ;;  %648 = vst [vmem:[%s628_s29 + $0x8] sm:$0xf] %v647_v57 }
 0x11c   : > { %652 = vst [vmem:[%s628_s29 + $0x18] sm:$0xf] %v651_v59  ;;  %662 = vst [vmem:[%s628_s29 + $0x40] sm:$0xf] %v661_v0 }
 0x11d   : > { %664 = vst [vmem:[%s628_s29 + $0x48] sm:$0xf] %v663_v1  ;;  %666 = vst [vmem:[%s628_s29 + $0x50] sm:$0xf] %v665_v2 }
 0x11e   : > { %668 = vst [vmem:[%s628_s29 + $0x58] sm:$0xf] %v667_v3 }
 0x11f   : > { %v657_v62 = vld [vmem:[%s1216_s25 + $0x18] sm:$0xf]  ;;  %v659_v63 = vld [vmem:[%s1216_s25 + $0x1c] sm:$0xf] }
 0x120   : > { %658 = vst [vmem:[%s628_s29 + $0x30] sm:$0xf] %v657_v62  ;;  %660 = vst [vmem:[%s628_s29 + $0x38] sm:$0xf] %v659_v63  ;;  %v673_v6 = vld [vmem:[%s1216_s25 + $0x38] sm:$0xf] }
 0x121   : > { %v653_v60 = vld [vmem:[%s1216_s25 + $0x10] sm:$0xf]  ;;  %v655_v61 = vld [vmem:[%s1216_s25 + $0x14] sm:$0xf]  ;;  %v675_v7 = vld [vmem:[%s1216_s25 + $0x3c] sm:$0xf] }
 0x122   : > { %654 = vst [vmem:[%s628_s29 + $0x20] sm:$0xf] %v653_v60  ;;  %656 = vst [vmem:[%s628_s29 + $0x28] sm:$0xf] %v655_v61  ;;  %v669_v4 = vld [vmem:[%s1216_s25 + $0x30] sm:$0xf] }
 0x123   : > { %v671_v5 = vld [vmem:[%s1216_s25 + $0x34] sm:$0xf]  ;;  %670 = vst [vmem:[%s628_s29 + $0x60] sm:$0xf] %v669_v4  ;;  %674 = vst [vmem:[%s628_s29 + $0x70] sm:$0xf] %v673_v6 }
 0x124   : > { %672 = vst [vmem:[%s628_s29 + $0x68] sm:$0xf] %v671_v5  ;;  %676 = vst [vmem:[%s628_s29 + $0x78] sm:$0xf] %v675_v7 }
 0x125 PF: > { %s12_s13 = sadd.s32 1, %s1092_s13   ;;  %s1267_s9 = smov %s1080_s10 }
 0x126   : > { %p9_p11 = scmp.ge.s32.totalorder %s12_s13, 4   ;;  %s1268_s10 = smov %s1149_s19 }
 0x127   : > { %s1269_s11 = smov %s1088_s12  ;;  %s1270_s12 = smov %s1272_s14 }
 0x128   :  { %11 = sbr.rel (!%p9_p11) target bundleno = 3 (0x3), region = 148 }

// kernel: resnest_forward.62
= control target key start
LH: loop header
LB: loop body
LE: loop exit
PB: predicated region body
PF: predicated region fallthrough
CT: control target
= control target key end

     0   :  { %s981_s9 = smov 0   ;;  %s983_s10 = smov 0   ;;  %s1145_s0 = inlined_call_operand.vmem [shape: bf16[4,32,768], index: 0, kind: input, shape index: {}]   ;;  %s1146_s1 = inlined_call_operand.vmem [shape: bf16[4,768,128], index: 1, kind: input, shape index: {}]   ;;  %s1147_s2 = inlined_call_operand.vmem [shape: bf16[32,512], index: 2, kind: output, shape index: {}]  }
   0x1   :  { %s985_s11 = smov 0   ;;  %s987_s12 = smov 0  }
   0x2   :  { %s989_s13 = smov 0   ;;  %s991_s14 = smov 0  }
   0x3   :  { %s993_s15 = smov 0   ;;  %s995_s16 = smov 0  }
   0x4   :  { %s997_s17 = smov 0  }
   0x5 LB: > { %s27_s18 = sadd.s32 1, %s955_s15  ;;  %s38_s19 = sadd.s32 1, %s959_s16  ;;  %s963_s17 = sphi %s997_s17, %s12_s17   ;;  %s959_s16 = sphi %s995_s16, %s1157_s16   ;;  %s955_s15 = sphi %s993_s15, %s1156_s15   ;;  %s951_s14 = sphi %s991_s14, %s1155_s14   ;;  %s947_s13 = sphi %s989_s13, %s1154_s13   ;;  %s943_s12 = sphi %s987_s12, %s1153_s12   ;;  %s939_s11 = sphi %s985_s11, %s1152_s11   ;;  %s935_s10 = sphi %s983_s10, %s1151_s10   ;;  %s931_s9 = sphi %s981_s9, %s1150_s9  }
   0x6   : > { %p28_p0 = scmp.ge.s32.totalorder %s27_s18, 3  ;;  %p56_p1 = scmp.ne.s32.totalorder %s943_s12, %s939_s11 }
   0x7   : > { %s695_s20 = sadd.s32 4294967295, %s963_s17   ;;  %p57_p2 = scmp.eq.s32.totalorder %s963_s17, 0 }
   0x8   : > { %s1159_s18 = smov (%p28_p0, %s27_s18), 0  ;;  %s1161_s19 = smov (!%p28_p0, %s38_s19), %s959_s16 }
   0x9   : > { %p40_p3 = scmp.ge.s32.totalorder %s1161_s19, 4  ;;  %s45_s21 = ssub.s32 %s955_s15, %s1159_s18 }
   0xa   : > { %p1037_p4 = por %p57_p2, %p56_p1  ;;  %p119_p5 = scmp.ne.s32.totalorder %s935_s10, %s931_s9 }
   0xb   : > { %s1163_s19 = smov (%p40_p3, %s1161_s19), 0  ;;  %s49_s23 = sadd.s32 1, %s943_s12 }
   0xc   : > { %p120_p6 = scmp.eq.s32.totalorder %s695_s20, 11  ;;  %s42_s24 = ssub.s32 %s959_s16, %s1163_s19 }
   0xd   : > { %s109_s25 = sadd.s32 1, %s935_s10  ;;  %s46_s26 = sor.u32 %s45_s21, %s42_s24 }
   0xe   : > { %p107_p7 = scmp.eq.s32.totalorder %s42_s24, 0  ;;  %p47_p8 = scmp.eq.s32.totalorder %s46_s26, 0 }
   0xf   : > { %p1049_p9 = por %p120_p6, %p119_p5  ;;  %p698_p10 = scmp.ge.s32.totalorder %s963_s17, 12 }
  0x10   : > { %s1054_s28 = scalar_select %p107_p7, %s935_s10, %s109_s25  }
  0x11   : > { %s1057_s29 = scalar_select %p47_p8, %s943_s12, %s49_s23  }
  0x12   : > { %142 = sbr.rel (%p698_p10) target bundleno = 33 (0x21), region = 16 }
  0x17   : > { %145 = sbr.rel (!%p1037_p4) target bundleno = 33 (0x21), region = 20  ;;  %s147_s30 = sand.u32 (%p1037_p4), 1, %s943_s12  }
  0x18   : > { %s700_s3 = sshll.u32 (%p1037_p4), %s955_s15, 1  ;;  %s699_s4 = sshll.u32 (%p1037_p4), %s147_s30, 5 }
  0x19   : > { %s796_s5 = smul.u32 (%p1037_p4), 24, %s959_s16  ;;  %s149_s23 = scalar_lea.vmem (%p1037_p4), [#allocation3], %s699_s4 }
  0x1b   : > { %s155_s6 = sadd.s32 (%p1037_p4), %s796_s5, %s700_s3 }
  0x1c   : > { %s701_s7 = sshll.u32 %s155_s6, 2 }
  0x1d   : > { %s157_s21 = scalar_lea.vmem %s1145_s0, %s701_s7 }
  0x1e   : > { %v192_v0 = vld [vmem:[%s157_s21] sm:$0xff]  ;;  %v194_v1 = vld [vmem:[%s157_s21 + $0x18] sm:$0xff]  ;;  %v196_v2 = vld [vmem:[%s157_s21 + $0x30] sm:$0xff] }
  0x1f   : > { %193 = vst [vmem:[%s149_s23] sm:$0xff] %v192_v0  ;;  %195 = vst [vmem:[%s149_s23 + $0x8] sm:$0xff] %v194_v1  ;;  %v198_v3 = vld [vmem:[%s157_s21 + $0x48] sm:$0xff] }
  0x20   : > { %197 = vst [vmem:[%s149_s23 + $0x10] sm:$0xff] %v196_v2  ;;  %199 = vst [vmem:[%s149_s23 + $0x18] sm:$0xff] %v198_v3 }
  0x21 PF: > { %p702_p11 = scmp.ge.s32.totalorder %s963_s17, 1  ;;  %p220_p12 = scmp.lt.s32.totalorder %s963_s17, 13 }
  0x23   : > { %p221_p13 = pnand %p702_p11, %p220_p12 }
  0x24   : > { %s227_s22 = sand.u32 (!%p221_p13), 1, %s939_s11   ;;  %s256_s24 = sand.u32 (!%p221_p13), 1, %s931_s9  }
  0x25   : > { %224 = sbr.rel (%p221_p13) target bundleno = 309 (0x135), region = 62  ;;  %s703_s25 = sshll.u32 (!%p221_p13), %s227_s22, 5 }
  0x26   : > { %s704_s26 = sshll.u32 (!%p221_p13), %s256_s24, 4  ;;  %s705_s30 = sshll.u32 (!%p221_p13), %s947_s13, 5 }
  0x27   : > { %p262_p0 = scmp.lt.s32.totalorder (!%p221_p13), %s951_s14, 3  ;;  %p264_p1 = scmp.lt.s32.totalorder (!%p221_p13), %s705_s30, 95 }
  0x28   : > { %s1080_s21 = scalar_lea.vmem (!%p221_p13), [#allocation3], %s703_s25  ;;  %s1082_s23 = scalar_lea.vmem (!%p221_p13), [#allocation4], %s704_s26 }
  0x29   : > { %p707_p2 = scmp.ne.s32.totalorder (!%p221_p13), %s947_s13, 0 }
  0x2a   : > { %s263_s3 = scalar_select %p262_p0, %s951_s14, 3 }
  0x2b   : > { %s1165_s30 = smov (!%p264_p1, %s705_s30), 95 }
  0x2c   : > { %s797_s4 = smul.u32 96, %s263_s3 }
  0x2d   : > { %280 = sbr.rel (%p707_p2) target bundleno = 53 (0x35), region = 70 }
  0x2e   : > { %s270_s5 = sadd.s32 %s797_s4, %s1165_s30 }
  0x2f   : > { %s706_s6 = sshll.u32 %s270_s5, 2 }
  0x30   : > { %s1078_s20 = scalar_lea.vmem %s1146_s1, %s706_s6 }
  0x32   : > { %v965_v4 = vmov 0.0  }
  0x33   : > { %281 = vst [vmem:[#allocation2 + $0x10] sm:$0xff] %v965_v4  ;;  %282 = vst [vmem:[#allocation2] sm:$0xff] %v965_v4 }
  0x34   : > { %283 = vst [vmem:[#allocation2 + $0x18] sm:$0xff] %v965_v4  ;;  %284 = vst [vmem:[#allocation2 + $0x8] sm:$0xff] %v965_v4 }
  0x35 PF: > { %v871_v5 = vld [vmem:[%s1078_s20 + $0x78] sm:$0xff]   ;;  %v873_v7 = vld [vmem:[%s1078_s20 + $0x70] sm:$0xff]   ;;  %v875_v9 = vld [vmem:[%s1078_s20 + $0x68] sm:$0xff]   ;;  %p728_p3 = scmp.ne.s32.totalorder %s947_s13, 2 }
  0x36   : > { %v872_v6 = vld [vmem:[%s1078_s20 + $0x38] sm:$0xff]   ;;  %752 = vmatprep.subr.bf16.mxu0 %v871_v5  ;;  %780 = vmatprep.subr.bf16.mxu1 %v871_v5  ;;  %v874_v8 = vld [vmem:[%s1078_s20 + $0x30] sm:$0xff]   ;;  %v876_v10 = vld [vmem:[%s1078_s20 + $0x28] sm:$0xff]  }
  0x37   : > { %753 = vmatpush3.bf16.msra.mxu0 %v872_v6  ;;  %788 = vmatpush3.bf16.msra.mxu1 %v872_v6  ;;  %v877_v11 = vld [vmem:[%s1078_s20 + $0x60] sm:$0xff]   ;;  %v879_v13 = vld [vmem:[%s1078_s20 + $0x58] sm:$0xff]   ;;  %v881_v15 = vld [vmem:[%s1078_s20 + $0x50] sm:$0xff]  }
  0x38   : > { %754 = vmatprep.subr.bf16.mxu0 %v873_v7  ;;  %781 = vmatprep.subr.bf16.mxu1 %v873_v7  ;;  %v878_v12 = vld [vmem:[%s1078_s20 + $0x20] sm:$0xff]   ;;  %v880_v14 = vld [vmem:[%s1078_s20 + $0x18] sm:$0xff]   ;;  %v882_v18 = vld [vmem:[%s1078_s20 + $0x10] sm:$0xff]  }
  0x39   : > { %v889_v16 = vld [vmem:[%s1080_s21 + $0x4] ss:$8 sps:$4 sm:$0xff]   ;;  %v892_v17 = vld [vmem:[%s1080_s21 + $0x14] ss:$8 sps:$4 sm:$0xff]   ;;  %v887_v23 = vld [vmem:[%s1080_s21] ss:$8 sps:$4 sm:$0xff]  }
  0x3a   : > { %v883_v19 = vld [vmem:[%s1078_s20 + $0x48] sm:$0xff]   ;;  %473 = vmatprep.mubr.bf16.mxu0 %v889_v16  ;;  %481 = vmatprep.mubr.bf16.mxu1 %v892_v17  ;;  %v885_v21 = vld [vmem:[%s1078_s20 + $0x40] sm:$0xff]   ;;  %v890_v24 = vld [vmem:[%s1080_s21 + $0x10] ss:$8 sps:$4 sm:$0xff]  }
  0x3b   : > { %755 = vmatpush3.bf16.msra.mxu0 %v874_v8  ;;  %789 = vmatpush3.bf16.msra.mxu1 %v874_v8  ;;  %v884_v20 = vld [vmem:[%s1078_s20 + $0x8] sm:$0xff]   ;;  %v886_v22 = vld [vmem:[%s1078_s20] sm:$0xff]   ;;  %v285_v27 = vld [vmem:[#allocation2 + $0x10] sm:$0xff] }
  0x3c   : > { %756 = vmatprep.subr.bf16.mxu0 %v875_v9  ;;  %782 = vmatprep.subr.bf16.mxu1 %v875_v9  ;;  %v287_v29 = vld [vmem:[#allocation2 + $0x18] sm:$0xff]  ;;  %v286_v37 = vld [vmem:[#allocation2] sm:$0xff]  ;;  %v288_v39 = vld [vmem:[#allocation2 + $0x8] sm:$0xff] }
  0x3f   : > { %757 = vmatpush3.bf16.msra.mxu0 %v876_v10  ;;  %790 = vmatpush3.bf16.msra.mxu1 %v876_v10 }
  0x40   : > { %758 = vmatprep.subr.bf16.mxu0 %v877_v11  ;;  %783 = vmatprep.subr.bf16.mxu1 %v877_v11 }
  0x43   : > { %759 = vmatpush3.bf16.msra.mxu0 %v878_v12  ;;  %791 = vmatpush3.bf16.msra.mxu1 %v878_v12 }
  0x44   : > { %760 = vmatprep.subr.bf16.mxu0 %v879_v13  ;;  %784 = vmatprep.subr.bf16.mxu1 %v879_v13 }
  0x47   : > { %761 = vmatpush3.bf16.msra.mxu0 %v880_v14  ;;  %792 = vmatpush3.bf16.msra.mxu1 %v880_v14 }
  0x48   : > { %762 = vmatprep.subr.bf16.mxu0 %v881_v15  ;;  %785 = vmatprep.subr.bf16.mxu1 %v881_v15 }
  0x4b   : > { %763 = vmatpush3.bf16.msra.mxu0 %v882_v18  ;;  %793 = vmatpush3.bf16.msra.mxu1 %v882_v18 }
  0x4c   : > { %764 = vmatprep.subr.bf16.mxu0 %v883_v19  ;;  %786 = vmatprep.subr.bf16.mxu1 %v883_v19 }
  0x4f   : > { %765 = vmatpush3.bf16.msra.mxu0 %v884_v20  ;;  %794 = vmatpush3.bf16.msra.mxu1 %v884_v20 }
  0x50   : > { %766 = vmatprep.subr.bf16.mxu0 %v885_v21  ;;  %787 = vmatprep.subr.bf16.mxu1 %v885_v21 }
  0x53   : > { %767 = vmatpush3.bf16.msra.mxu0 %v886_v22  ;;  %795 = vmatpush3.bf16.msra.mxu1 %v886_v22 }
  0x56   : > { %474 = vmatmul.mubr.bf16.vlgmr.msra.gmra.mxu0 %v887_v23  ;;  %482 = vmatmul.mubr.bf16.vlgmr.msra.gmra.mxu1 %v890_v24 }
 0x116   : > { %v768_v25 = vpop.f32.mrf.mxu0  ;;  %v774_v26 = vpop.f32.mrf.mxu1 }
 0x118   : > { %v769_v28 = vpop.f32.mrf.mxu0  ;;  %v775_v30 = vpop.f32.mrf.mxu1 }
 0x119   : > { %v770_v31 = vadd.f32 %v769_v28, %v768_v25  ;;  %v776_v32 = vadd.f32 %v775_v30, %v774_v26 }
 0x11a   : > { %v771_v33 = vpop.f32.mrf.mxu0  ;;  %v777_v34 = vpop.f32.mrf.mxu1 }
 0x11b   : > { %v490_v35 = vadd.f32 %v770_v31, %v285_v27  ;;  %v492_v36 = vadd.f32 %v776_v32, %v287_v29 }
 0x11c   : > { %v772_v38 = vpop.f32.mrf.mxu0  ;;  %v778_v40 = vpop.f32.mrf.mxu1 }
 0x11d   : > { %494 = vst [vmem:[#allocation2 + $0x10] sm:$0xff] %v490_v35  ;;  %496 = vst [vmem:[#allocation2 + $0x18] sm:$0xff] %v492_v36  ;;  %v773_v41 = vadd.f32 %v772_v38, %v771_v33  ;;  %v779_v42 = vadd.f32 %v778_v40, %v777_v34  ;;  %501 = sbr.rel (%p728_p3) target bundleno = 300 (0x12c), region = 74 }
 0x11f   : > { %v491_v43 = vadd.f32 %v773_v41, %v286_v37  ;;  %v493_v44 = vadd.f32 %v779_v42, %v288_v39 }
 0x121   : > { %495 = vst [vmem:[#allocation2] sm:$0xff] %v491_v43  ;;  %497 = vst [vmem:[#allocation2 + $0x8] sm:$0xff] %v493_v44 }
 0x124   : > { %v502_v45 = vld [vmem:[#allocation2 + $0x10] sm:$0xff]  ;;  %v504_v47 = vld [vmem:[#allocation2 + $0x18] sm:$0xff] }
 0x128   : > { %v503_v46 = vld [vmem:[#allocation2] sm:$0xff]  ;;  %v505_v49 = vld [vmem:[#allocation2 + $0x8] sm:$0xff] }
 0x129   : > { %v744_v48 = vpack.c.bf16 %v503_v46, %v502_v45  ;;  %v749_v50 = vpack.c.bf16 %v505_v49, %v504_v47 }
 0x12b   : > { %745 = vst [vmem:[%s1082_s23] sm:$0xff] %v744_v48   ;;  %751 = vst [vmem:[%s1082_s23 + $0x8] sm:$0xff] %v749_v50  }
 0x12c PF: > { %532 = sbr.rel (!%p1049_p9) target bundleno = 309 (0x135), region = 78  ;;  %s734_s9 = sshll.u32 (%p1049_p9), %s951_s14, 2 }
 0x12d   : > { %s538_s22 = scalar_lea.vmem (%p1049_p9), %s1147_s2, %s734_s9 }
 0x132   : > { %v555_v51 = vld [vmem:[%s1082_s23] sm:$0xf]  ;;  %v557_v52 = vld [vmem:[%s1082_s23 + $0x4] sm:$0xf]  ;;  %v559_v53 = vld [vmem:[%s1082_s23 + $0x8] sm:$0xf] }
 0x133   : > { %v561_v54 = vld [vmem:[%s1082_s23 + $0xc] sm:$0xf]  ;;  %556 = vst [vmem:[%s538_s22] sm:$0xf] %v555_v51  ;;  %558 = vst [vmem:[%s538_s22 + $0x10] sm:$0xf] %v557_v52 }
 0x134   : > { %560 = vst [vmem:[%s538_s22 + $0x20] sm:$0xf] %v559_v53  ;;  %562 = vst [vmem:[%s538_s22 + $0x30] sm:$0xf] %v561_v54 }
 0x135 PF: > { %s12_s17 = sadd.s32 1, %s963_s17   ;;  %s1150_s9 = smov %s935_s10 }
 0x136   : > { %p9_p4 = scmp.ge.s32.totalorder %s12_s17, 14   ;;  %s1151_s10 = smov %s1054_s28 }
 0x137   : > { %s1152_s11 = smov %s943_s12  ;;  %s1153_s12 = smov %s1057_s29 }
 0x138   : > { %s1154_s13 = smov %s955_s15  ;;  %s1155_s14 = smov %s959_s16 }
 0x139   : > { %s1156_s15 = smov %s1159_s18  ;;  %s1157_s16 = smov %s1163_s19 }
 0x13a   :  { %11 = sbr.rel (!%p9_p4) target bundleno = 5 (0x5), region = 153 }

// kernel: mul.369
= control target key start
LH: loop header
LB: loop body
LE: loop exit
PB: predicated region body
PF: predicated region fallthrough
CT: control target
= control target key end

     0   :  { %s34_s0 = inlined_call_operand.vmem [shape: f32[128], index: 0, kind: input, shape index: {}]   ;;  %s35_s1 = inlined_call_operand.vmem [shape: f32[128], index: 1, kind: input, shape index: {}]   ;;  %s36_s2 = inlined_call_operand.vmem [shape: f32[128], index: 2, kind: output, shape index: {}]  }
   0x1   :  { %v3_v0 = vld [vmem:[%s34_s0] sm:$0x1] }
   0x2   :  { %v4_v1 = vld [vmem:[%s35_s1] sm:$0x1] }
   0x3   :  { %v7_v2 = vmul.f32 %v4_v1, %v3_v0 }
   0x5   :  { %9 = vst [vmem:[%s36_s2] sm:$0x1] %v7_v2 }

// kernel: resnest_forward.63
= control target key start
LH: loop header
LB: loop body
LE: loop exit
PB: predicated region body
PF: predicated region fallthrough
CT: control target
= control target key end

     0   :  { %s453_s1 = inlined_call_operand.vmem [shape: bf16[1,256,128], index: 1, kind: input, shape index: {}]   ;;  %s454_s0 = inlined_call_operand.vmem [shape: bf16[1,32,256], index: 0, kind: input, shape index: {}]   ;;  %s455_s2 = inlined_call_operand.vmem [shape: bf16[32,128], index: 2, kind: output, shape index: {}]  }
   0x1   :  { %v350_v0 = vld [vmem:[%s453_s1 + $0x78] sm:$0xff]   ;;  %v352_v2 = vld [vmem:[%s453_s1 + $0x70] sm:$0xff]   ;;  %v354_v4 = vld [vmem:[%s453_s1 + $0x68] sm:$0xff]  }
   0x2   :  { %v351_v1 = vld [vmem:[%s453_s1 + $0x38] sm:$0xff]   ;;  %306 = vmatprep.subr.bf16.mxu0 %v350_v0  ;;  %334 = vmatprep.subr.bf16.mxu1 %v350_v0  ;;  %v353_v3 = vld [vmem:[%s453_s1 + $0x30] sm:$0xff]   ;;  %v355_v5 = vld [vmem:[%s453_s1 + $0x28] sm:$0xff]  }
   0x3   :  { %307 = vmatpush3.bf16.msra.mxu0 %v351_v1  ;;  %342 = vmatpush3.bf16.msra.mxu1 %v351_v1  ;;  %v356_v6 = vld [vmem:[%s453_s1 + $0x60] sm:$0xff]   ;;  %v358_v8 = vld [vmem:[%s453_s1 + $0x58] sm:$0xff]   ;;  %v360_v10 = vld [vmem:[%s453_s1 + $0x50] sm:$0xff]  }
   0x4   :  { %308 = vmatprep.subr.bf16.mxu0 %v352_v2  ;;  %335 = vmatprep.subr.bf16.mxu1 %v352_v2  ;;  %v357_v7 = vld [vmem:[%s453_s1 + $0x20] sm:$0xff]   ;;  %v359_v9 = vld [vmem:[%s453_s1 + $0x18] sm:$0xff]   ;;  %v361_v13 = vld [vmem:[%s453_s1 + $0x10] sm:$0xff]  }
   0x5   :  { %v368_v11 = vld [vmem:[%s454_s0 + $0x4] ss:$8 sps:$4 sm:$0xff]   ;;  %v371_v12 = vld [vmem:[%s454_s0 + $0x14] ss:$8 sps:$4 sm:$0xff]   ;;  %v366_v18 = vld [vmem:[%s454_s0] ss:$8 sps:$4 sm:$0xff]  }
   0x6   :  { %v362_v14 = vld [vmem:[%s453_s1 + $0x48] sm:$0xff]   ;;  %207 = vmatprep.mubr.bf16.mxu0 %v368_v11  ;;  %215 = vmatprep.mubr.bf16.mxu1 %v371_v12  ;;  %v364_v16 = vld [vmem:[%s453_s1 + $0x40] sm:$0xff]   ;;  %v369_v19 = vld [vmem:[%s454_s0 + $0x10] ss:$8 sps:$4 sm:$0xff]  }
   0x7   :  { %309 = vmatpush3.bf16.msra.mxu0 %v353_v3  ;;  %343 = vmatpush3.bf16.msra.mxu1 %v353_v3  ;;  %v363_v15 = vld [vmem:[%s453_s1 + $0x8] sm:$0xff]   ;;  %v365_v17 = vld [vmem:[%s453_s1] sm:$0xff]  }
   0x8   :  { %310 = vmatprep.subr.bf16.mxu0 %v354_v4  ;;  %336 = vmatprep.subr.bf16.mxu1 %v354_v4 }
   0xb   :  { %311 = vmatpush3.bf16.msra.mxu0 %v355_v5  ;;  %344 = vmatpush3.bf16.msra.mxu1 %v355_v5 }
   0xc   :  { %312 = vmatprep.subr.bf16.mxu0 %v356_v6  ;;  %337 = vmatprep.subr.bf16.mxu1 %v356_v6 }
   0xf   :  { %313 = vmatpush3.bf16.msra.mxu0 %v357_v7  ;;  %345 = vmatpush3.bf16.msra.mxu1 %v357_v7 }
  0x10   :  { %314 = vmatprep.subr.bf16.mxu0 %v358_v8  ;;  %338 = vmatprep.subr.bf16.mxu1 %v358_v8 }
  0x13   :  { %315 = vmatpush3.bf16.msra.mxu0 %v359_v9  ;;  %346 = vmatpush3.bf16.msra.mxu1 %v359_v9 }
  0x14   :  { %316 = vmatprep.subr.bf16.mxu0 %v360_v10  ;;  %339 = vmatprep.subr.bf16.mxu1 %v360_v10 }
  0x17   :  { %317 = vmatpush3.bf16.msra.mxu0 %v361_v13  ;;  %347 = vmatpush3.bf16.msra.mxu1 %v361_v13 }
  0x18   :  { %318 = vmatprep.subr.bf16.mxu0 %v362_v14  ;;  %340 = vmatprep.subr.bf16.mxu1 %v362_v14 }
  0x1b   :  { %319 = vmatpush3.bf16.msra.mxu0 %v363_v15  ;;  %348 = vmatpush3.bf16.msra.mxu1 %v363_v15 }
  0x1c   :  { %320 = vmatprep.subr.bf16.mxu0 %v364_v16  ;;  %341 = vmatprep.subr.bf16.mxu1 %v364_v16 }
  0x1f   :  { %321 = vmatpush3.bf16.msra.mxu0 %v365_v17  ;;  %349 = vmatpush3.bf16.msra.mxu1 %v365_v17 }
  0x22   :  { %208 = vmatmul.mubr.bf16.vlgmr.msra.gmra.mxu0 %v366_v18  ;;  %216 = vmatmul.mubr.bf16.vlgmr.msra.gmra.mxu1 %v369_v19 }
  0xe2   :  { %v322_v20 = vpop.f32.mrf.mxu0  ;;  %v328_v21 = vpop.f32.mrf.mxu1 }
  0xe4   :  { %v323_v22 = vpop.f32.mrf.mxu0  ;;  %v329_v23 = vpop.f32.mrf.mxu1 }
  0xe5   :  { %v324_v28 = vadd.f32 %v323_v22, %v322_v20  ;;  %v330_v29 = vadd.f32 %v329_v23, %v328_v21 }
  0xe6   :  { %v325_v24 = vpop.f32.mrf.mxu0  ;;  %v331_v25 = vpop.f32.mrf.mxu1 }
  0xe8   :  { %v326_v26 = vpop.f32.mrf.mxu0  ;;  %v332_v27 = vpop.f32.mrf.mxu1 }
  0xe9   :  { %v327_v30 = vadd.f32 %v326_v26, %v325_v24  ;;  %v333_v31 = vadd.f32 %v332_v27, %v331_v25 }
  0xeb   :  { %v298_v32 = vpack.c.bf16 %v327_v30, %v324_v28  ;;  %v303_v33 = vpack.c.bf16 %v333_v31, %v330_v29 }
  0xed   :  { %299 = vst [vmem:[%s455_s2] sm:$0xff] %v298_v32   ;;  %305 = vst [vmem:[%s455_s2 + $0x8] sm:$0xff] %v303_v33  }

// kernel: resnest_forward.64
= control target key start
LH: loop header
LB: loop body
LE: loop exit
PB: predicated region body
PF: predicated region fallthrough
CT: control target
= control target key end

     0   :  { %s315_s1 = inlined_call_operand.vmem [shape: bf16[1,128,128], index: 1, kind: input, shape index: {}]   ;;  %s316_s0 = inlined_call_operand.vmem [shape: bf16[1,32,128], index: 0, kind: input, shape index: {}]   ;;  %s317_s2 = inlined_call_operand.vmem [shape: bf16[32,128], index: 2, kind: output, shape index: {}]  }
   0x1   :  { %v254_v0 = vld [vmem:[%s315_s1 + $0x38] sm:$0xff]   ;;  %v255_v1 = vld [vmem:[%s315_s1 + $0x30] sm:$0xff]   ;;  %v256_v2 = vld [vmem:[%s315_s1 + $0x28] sm:$0xff]  }
   0x2   :  { %234 = vmatprep.subr.bf16.mxu0 %v254_v0  ;;  %v257_v3 = vld [vmem:[%s315_s1 + $0x20] sm:$0xff]   ;;  %v258_v5 = vld [vmem:[%s315_s1 + $0x18] sm:$0xff]   ;;  %v259_v6 = vld [vmem:[%s315_s1 + $0x10] sm:$0xff]  }
   0x3   :  { %235 = vmatpush3.bf16.msra.mxu0 %v254_v0  ;;  %v262_v4 = vld [vmem:[%s316_s0] sm:$0xff]   ;;  %v260_v7 = vld [vmem:[%s315_s1 + $0x8] sm:$0xff]  }
   0x4   :  { %236 = vmatprep.subr.bf16.mxu0 %v255_v1  ;;  %250 = vmatprep.mubr.bf16.mxu0 %v262_v4  ;;  %v261_v8 = vld [vmem:[%s315_s1] sm:$0xff]   ;;  %v263_v9 = vld [vmem:[%s316_s0 + $0x8] sm:$0xff]  }
   0x7   :  { %237 = vmatpush3.bf16.msra.mxu0 %v255_v1 }
   0x8   :  { %238 = vmatprep.subr.bf16.mxu0 %v256_v2 }
   0xb   :  { %239 = vmatpush3.bf16.msra.mxu0 %v256_v2 }
   0xc   :  { %240 = vmatprep.subr.bf16.mxu0 %v257_v3 }
   0xf   :  { %241 = vmatpush3.bf16.msra.mxu0 %v257_v3 }
  0x10   :  { %242 = vmatprep.subr.bf16.mxu0 %v258_v5 }
  0x13   :  { %243 = vmatpush3.bf16.msra.mxu0 %v258_v5 }
  0x14   :  { %244 = vmatprep.subr.bf16.mxu0 %v259_v6 }
  0x17   :  { %245 = vmatpush3.bf16.msra.mxu0 %v259_v6 }
  0x18   :  { %246 = vmatprep.subr.bf16.mxu0 %v260_v7 }
  0x1b   :  { %247 = vmatpush3.bf16.msra.mxu0 %v260_v7 }
  0x1c   :  { %248 = vmatprep.subr.bf16.mxu0 %v261_v8 }
  0x1f   :  { %249 = vmatpush3.bf16.msra.mxu0 %v261_v8 }
  0x22   :  { %251 = vmatmul.mubr.bf16.vlgmr.msra.gmra.mxu0 %v263_v9 }
  0xe2   :  { %v252_v10 = vpop.f32.mrf.mxu0 }
  0xe4   :  { %v137_v11 = vpop.f32.mrf.mxu0 }
  0xe6   :  { %v253_v12 = vpop.f32.mrf.mxu0 }
  0xe7   :  { %v221_v13 = vpack.c.bf16 %v253_v12, %v252_v10 }
  0xe8   :  { %v140_v14 = vpop.f32.mrf.mxu0 }
  0xe9   :  { %223 = vst [vmem:[%s317_s2 + $0x8] sm:$0xff] %v221_v13   ;;  %v216_v15 = vpack.c.bf16 %v140_v14, %v137_v11 }
  0xeb   :  { %217 = vst [vmem:[%s317_s2] sm:$0xff] %v216_v15  }

// kernel: resnest_forward.65
= control target key start
LH: loop header
LB: loop body
LE: loop exit
PB: predicated region body
PF: predicated region fallthrough
CT: control target
= control target key end

     0   :  { %s221_s0 = inlined_call_operand.vmem [shape: bf16[32,128], index: 0, kind: input, shape index: {}]   ;;  %s222_s1 = inlined_call_operand.vmem [shape: bf16[32,128], index: 1, kind: input, shape index: {}]   ;;  %s223_s2 = inlined_call_operand.vmem [shape: f32[1,128], index: 2, kind: input, shape index: {}]   ;;  %s224_s3 = inlined_call_operand.vmem [shape: f32[1,128], index: 3, kind: input, shape index: {}]   ;;  %s225_s4 = inlined_call_operand.vmem [shape: f32[1,128], index: 4, kind: input, shape index: {}]   ;;  %s226_s5 = inlined_call_operand.vmem [shape: f32[1,128], index: 5, kind: input, shape index: {}]   ;;  %s227_s6 = inlined_call_operand.vmem [shape: bf16[32,128], index: 6, kind: output, shape index: {}]  }
   0x1   :  { %v128_v0 = vld [vmem:[%s221_s0] sm:$0xff]   ;;  %v153_v9 = vld [vmem:[%s221_s0 + $0x8] sm:$0xff]  }
   0x2   :  { %v115_v1 = vld [vmem:[%s223_s2] ss:$0 sm:$0xff]  ;;  %v129_v2 = vunpack.c.l.bf16 %v128_v0  ;;  %v130_v3 = vunpack.c.h.bf16 %v128_v0  ;;  %v154_v10 = vld [vmem:[%s222_s1 + $0x8] sm:$0xff]   ;;  %v133_v13 = vunpack.c.l.bf16 %v153_v9  ;;  %v134_v14 = vunpack.c.h.bf16 %v153_v9 }
   0x3   :  { %v136_v4 = vld [vmem:[%s222_s1] sm:$0xff]   ;;  %v141_v17 = vunpack.c.l.bf16 %v154_v10  ;;  %v142_v18 = vunpack.c.h.bf16 %v154_v10 }
   0x4   :  { %v117_v5 = vld [vmem:[%s225_s4] ss:$0 sm:$0xff]  ;;  %v137_v7 = vunpack.c.l.bf16 %v136_v4  ;;  %v138_v8 = vunpack.c.h.bf16 %v136_v4  ;;  %v38_v11 = vmul.f32 %v129_v2, %v115_v1  ;;  %v39_v12 = vmul.f32 %v130_v3, %v115_v1 }
   0x5   :  { %v116_v6 = vld [vmem:[%s224_s3] ss:$0 sm:$0xff]  ;;  %v40_v21 = vmul.f32 %v133_v13, %v115_v1  ;;  %v41_v22 = vmul.f32 %v134_v14, %v115_v1  ;;  %v70_v24 = vmul.f32 %v141_v17, %v117_v5  ;;  %v71_v25 = vmul.f32 %v142_v18, %v117_v5 }
   0x6   :  { %v68_v15 = vmul.f32 %v137_v7, %v117_v5  ;;  %v69_v16 = vmul.f32 %v138_v8, %v117_v5  ;;  %v49_v19 = vadd.f32 %v116_v6, %v38_v11  ;;  %v50_v20 = vadd.f32 %v116_v6, %v39_v12  ;;  %v118_v23 = vld [vmem:[%s226_s5] ss:$0 sm:$0xff] }
   0x7   :  { %v51_v28 = vadd.f32 %v116_v6, %v40_v21  ;;  %v52_v29 = vadd.f32 %v116_v6, %v41_v22 }
   0x8   :  { %v72_v26 = vadd.f32 %v68_v15, %v49_v19  ;;  %v73_v27 = vadd.f32 %v69_v16, %v50_v20 }
   0x9   :  { %v74_v32 = vadd.f32 %v70_v24, %v51_v28  ;;  %v75_v33 = vadd.f32 %v71_v25, %v52_v29 }
   0xa   :  { %v83_v30 = vadd.f32 %v118_v23, %v72_v26  ;;  %v84_v31 = vadd.f32 %v118_v23, %v73_v27 }
   0xb   :  { %v85_v36 = vadd.f32 %v118_v23, %v74_v32  ;;  %v86_v37 = vadd.f32 %v118_v23, %v75_v33 }
   0xc   :  { %v87_v34 = vmax.f32 %v83_v30, 0.0  ;;  %v88_v35 = vmax.f32 %v84_v31, 0.0 }
   0xd   :  { %v89_v39 = vmax.f32 %v85_v36, 0.0  ;;  %v90_v40 = vmax.f32 %v86_v37, 0.0 }
   0xe   :  { %v146_v38 = vpack.c.bf16 %v88_v35, %v87_v34 }
   0xf   :  { %v151_v41 = vpack.c.bf16 %v90_v40, %v89_v39 }
  0x10   :  { %147 = vst [vmem:[%s227_s6] sm:$0xff] %v146_v38  }
  0x11   :  { %155 = vst [vmem:[%s227_s6 + $0x8] sm:$0xff] %v151_v41  }

// kernel: resnest_forward.66
= control target key start
LH: loop header
LB: loop body
LE: loop exit
PB: predicated region body
PF: predicated region fallthrough
CT: control target
= control target key end

     0   :  { %s799_s9 = smov 0   ;;  %s801_s10 = smov 0   ;;  %s899_s0 = inlined_call_operand.vmem [shape: bf16[1,32,128], index: 0, kind: input, shape index: {}]   ;;  %s900_s1 = inlined_call_operand.vmem [shape: bf16[1,128,256], index: 1, kind: input, shape index: {}]   ;;  %s901_s2 = inlined_call_operand.vmem [shape: bf16[32,256], index: 2, kind: output, shape index: {}]  }
   0x1   :  { %s803_s11 = smov 0   ;;  %s805_s12 = smov 0  }
   0x2   :  { %s807_s13 = smov 0  }
   0x3 LB: > { %s24_s14 = sadd.s32 1, %s778_s12  ;;  %s621_s15 = sadd.s32 4294967295, %s782_s13   ;;  %s782_s13 = sphi %s807_s13, %s12_s13   ;;  %s778_s12 = sphi %s805_s12, %s906_s12   ;;  %s774_s11 = sphi %s803_s11, %s905_s11   ;;  %s770_s10 = sphi %s801_s10, %s904_s10   ;;  %s766_s9 = sphi %s799_s9, %s903_s9  }
   0x4   : > { %p25_p0 = scmp.ge.s32.totalorder %s24_s14, 2  ;;  %p75_p1 = scmp.ne.s32.totalorder %s770_s10, %s766_s9 }
   0x5   : > { %p76_p2 = scmp.eq.s32.totalorder %s782_s13, 0  ;;  %p111_p4 = scmp.eq.s32.totalorder %s621_s15, 1 }
   0x6   : > { %s908_s14 = smov (%p25_p0, %s24_s14), 0  ;;  %s68_s17 = sadd.s32 1, %s770_s10 }
   0x7   : > { %p77_p3 = por %p76_p2, %p75_p1  ;;  %s64_s16 = ssub.s32 %s778_s12, %s908_s14 }
   0x8   : > { %p66_p5 = scmp.eq.s32.totalorder %s64_s16, 0  ;;  %p834_p6 = por %p111_p4, %p75_p1 }
   0x9   : > { %p625_p7 = scmp.ge.s32.totalorder %s782_s13, 2 }
   0xa   : > { %s839_s19 = scalar_select %p66_p5, %s770_s10, %s68_s17  }
   0xb   : > { %146 = sbr.rel (%p625_p7) target bundleno = 30 (0x1e), region = 20 }
  0x10   : > { %149 = sbr.rel (!%p77_p3) target bundleno = 30 (0x1e), region = 24  ;;  %s151_s20 = sand.u32 (%p77_p3), 1, %s770_s10  }
  0x11   : > { %s627_s21 = sshll.u32 (%p77_p3), %s778_s12, 2  ;;  %s626_s22 = sshll.u32 (%p77_p3), %s151_s20, 6 }
  0x12   : > { %s847_s25 = scalar_lea.vmem (%p77_p3), %s900_s1, %s627_s21  ;;  %s153_s26 = scalar_lea.vmem (%p77_p3), [#allocation2], %s626_s22 }
  0x13   : > { %v174_v0 = vld [vmem:[%s847_s25] sm:$0xf] (%p77_p3)  ;;  %v176_v1 = vld [vmem:[%s847_s25 + $0x8] sm:$0xf] (%p77_p3)  ;;  %v178_v2 = vld [vmem:[%s847_s25 + $0x10] sm:$0xf] (%p77_p3) }
  0x14   : > { %175 = vst [vmem:[%s153_s26] sm:$0xf] (%p77_p3), %v174_v0  ;;  %177 = vst [vmem:[%s153_s26 + $0x4] sm:$0xf] (%p77_p3), %v176_v1  ;;  %v180_v3 = vld [vmem:[%s847_s25 + $0x18] sm:$0xf] (%p77_p3) }
  0x15   : > { %v182_v4 = vld [vmem:[%s847_s25 + $0x20] sm:$0xf]  ;;  %179 = vst [vmem:[%s153_s26 + $0x8] sm:$0xf] %v178_v2  ;;  %181 = vst [vmem:[%s153_s26 + $0xc] sm:$0xf] %v180_v3 }
  0x16   : > { %183 = vst [vmem:[%s153_s26 + $0x10] sm:$0xf] %v182_v4  ;;  %v184_v5 = vld [vmem:[%s847_s25 + $0x28] sm:$0xf]  ;;  %v186_v6 = vld [vmem:[%s847_s25 + $0x30] sm:$0xf] }
  0x17   : > { %v188_v7 = vld [vmem:[%s847_s25 + $0x38] sm:$0xf]  ;;  %185 = vst [vmem:[%s153_s26 + $0x14] sm:$0xf] %v184_v5  ;;  %187 = vst [vmem:[%s153_s26 + $0x18] sm:$0xf] %v186_v6 }
  0x18   : > { %189 = vst [vmem:[%s153_s26 + $0x1c] sm:$0xf] %v188_v7  ;;  %v190_v8 = vld [vmem:[%s847_s25 + $0x40] sm:$0xf]  ;;  %v192_v9 = vld [vmem:[%s847_s25 + $0x48] sm:$0xf] }
  0x19   : > { %v194_v10 = vld [vmem:[%s847_s25 + $0x50] sm:$0xf]  ;;  %191 = vst [vmem:[%s153_s26 + $0x20] sm:$0xf] %v190_v8  ;;  %193 = vst [vmem:[%s153_s26 + $0x24] sm:$0xf] %v192_v9 }
  0x1a   : > { %195 = vst [vmem:[%s153_s26 + $0x28] sm:$0xf] %v194_v10  ;;  %v196_v11 = vld [vmem:[%s847_s25 + $0x58] sm:$0xf]  ;;  %v198_v12 = vld [vmem:[%s847_s25 + $0x60] sm:$0xf] }
  0x1b   : > { %v200_v13 = vld [vmem:[%s847_s25 + $0x68] sm:$0xf]  ;;  %197 = vst [vmem:[%s153_s26 + $0x2c] sm:$0xf] %v196_v11  ;;  %199 = vst [vmem:[%s153_s26 + $0x30] sm:$0xf] %v198_v12 }
  0x1c   : > { %201 = vst [vmem:[%s153_s26 + $0x34] sm:$0xf] %v200_v13  ;;  %v202_v14 = vld [vmem:[%s847_s25 + $0x70] sm:$0xf]  ;;  %v204_v15 = vld [vmem:[%s847_s25 + $0x78] sm:$0xf] }
  0x1d   : > { %203 = vst [vmem:[%s153_s26 + $0x38] sm:$0xf] %v202_v14  ;;  %205 = vst [vmem:[%s153_s26 + $0x3c] sm:$0xf] %v204_v15 }
  0x1e PF: > { %p628_p8 = scmp.ge.s32.totalorder %s782_s13, 1  ;;  %p260_p9 = scmp.lt.s32.totalorder %s782_s13, 3 }
  0x20   : > { %p261_p10 = pnand %p628_p8, %p260_p9 }
  0x21   : > { %s267_s27 = sand.u32 (!%p261_p10), 1, %s766_s9  }
  0x22   : > { %264 = sbr.rel (%p261_p10) target bundleno = 282 (0x11a), region = 65  ;;  %s629_s30 = sshll.u32 (!%p261_p10), %s267_s27, 6 }
  0x23   : > { %s269_s3 = scalar_lea.vmem (!%p261_p10), [#allocation2], %s629_s30  ;;  %s630_s6 = sshll.u32 (!%p261_p10), %s267_s27, 4 }
  0x24   : > { %s295_s7 = scalar_lea.vmem (!%p261_p10), [#allocation3], %s630_s6 }
  0x27   : > { %v742_v16 = vld [vmem:[%s899_s0] sm:$0xff]   ;;  %v734_v17 = vld [vmem:[%s269_s3 + $0x38] sm:$0xff]   ;;  %v735_v18 = vld [vmem:[%s269_s3 + $0x30] sm:$0xff]   ;;  %s646_s8 = sshll.u32 (%p834_p6), %s774_s11, 2 }
  0x28   : > { %690 = vmatprep.mubr.bf16.mxu0 %v742_v16  ;;  %674 = vmatprep.subr.bf16.mxu0 %v734_v17  ;;  %v736_v19 = vld [vmem:[%s269_s3 + $0x28] sm:$0xff]   ;;  %v737_v20 = vld [vmem:[%s269_s3 + $0x20] sm:$0xff]   ;;  %v738_v21 = vld [vmem:[%s269_s3 + $0x18] sm:$0xff]   ;;  %s472_s9 = scalar_lea.vmem (%p834_p6), %s901_s2, %s646_s8 }
  0x29   : > { %675 = vmatpush3.bf16.msra.mxu0 %v734_v17  ;;  %v739_v22 = vld [vmem:[%s269_s3 + $0x10] sm:$0xff]   ;;  %v740_v23 = vld [vmem:[%s269_s3 + $0x8] sm:$0xff]   ;;  %v741_v24 = vld [vmem:[%s269_s3] sm:$0xff]  }
  0x2a   : > { %676 = vmatprep.subr.bf16.mxu0 %v735_v18  ;;  %v743_v25 = vld [vmem:[%s899_s0 + $0x8] sm:$0xff]  }
  0x2d   : > { %677 = vmatpush3.bf16.msra.mxu0 %v735_v18 }
  0x2e   : > { %678 = vmatprep.subr.bf16.mxu0 %v736_v19 }
  0x31   : > { %679 = vmatpush3.bf16.msra.mxu0 %v736_v19 }
  0x32   : > { %680 = vmatprep.subr.bf16.mxu0 %v737_v20 }
  0x35   : > { %681 = vmatpush3.bf16.msra.mxu0 %v737_v20 }
  0x36   : > { %682 = vmatprep.subr.bf16.mxu0 %v738_v21 }
  0x39   : > { %683 = vmatpush3.bf16.msra.mxu0 %v738_v21 }
  0x3a   : > { %684 = vmatprep.subr.bf16.mxu0 %v739_v22 }
  0x3d   : > { %685 = vmatpush3.bf16.msra.mxu0 %v739_v22 }
  0x3e   : > { %686 = vmatprep.subr.bf16.mxu0 %v740_v23 }
  0x41   : > { %687 = vmatpush3.bf16.msra.mxu0 %v740_v23 }
  0x42   : > { %688 = vmatprep.subr.bf16.mxu0 %v741_v24 }
  0x45   : > { %689 = vmatpush3.bf16.msra.mxu0 %v741_v24 }
  0x48   : > { %691 = vmatmul.mubr.bf16.vlgmr.msra.gmra.mxu0 %v743_v25 }
 0x108   : > { %v692_v26 = vpop.f32.mrf.mxu0 }
 0x10a   : > { %v424_v27 = vpop.f32.mrf.mxu0 }
 0x10c   : > { %v693_v28 = vpop.f32.mrf.mxu0 }
 0x10d   : > { %v661_v29 = vpack.c.bf16 %v693_v28, %v692_v26  ;;  %465 = sbr.rel (!%p834_p6) target bundleno = 282 (0x11a), region = 73 }
 0x10e   : > { %v427_v30 = vpop.f32.mrf.mxu0 }
 0x10f   : > { %663 = vst [vmem:[%s295_s7 + $0x8] sm:$0xff] %v661_v29   ;;  %v656_v31 = vpack.c.bf16 %v427_v30, %v424_v27 }
 0x111   : > { %657 = vst [vmem:[%s295_s7] sm:$0xff] %v656_v31  }
 0x116   : > { %v493_v34 = vld [vmem:[%s295_s7 + $0x8] sm:$0xf]  ;;  %v495_v35 = vld [vmem:[%s295_s7 + $0xc] sm:$0xf] }
 0x117   : > { %494 = vst [vmem:[%s472_s9 + $0x10] sm:$0xf] %v493_v34  ;;  %496 = vst [vmem:[%s472_s9 + $0x18] sm:$0xf] %v495_v35 }
 0x118   : > { %v489_v32 = vld [vmem:[%s295_s7] sm:$0xf]  ;;  %v491_v33 = vld [vmem:[%s295_s7 + $0x4] sm:$0xf] }
 0x119   : > { %490 = vst [vmem:[%s472_s9] sm:$0xf] %v489_v32  ;;  %492 = vst [vmem:[%s472_s9 + $0x8] sm:$0xf] %v491_v33 }
 0x11a PF: > { %s12_s13 = sadd.s32 1, %s782_s13   ;;  %s903_s9 = smov %s770_s10 }
 0x11b   : > { %p9_p11 = scmp.ge.s32.totalorder %s12_s13, 4   ;;  %s904_s10 = smov %s839_s19 }
 0x11c   : > { %s905_s11 = smov %s778_s12  ;;  %s906_s12 = smov %s908_s14 }
 0x11d   :  { %11 = sbr.rel (!%p9_p11) target bundleno = 3 (0x3), region = 148 }

// kernel: resnest_forward.77
= control target key start
LH: loop header
LB: loop body
LE: loop exit
PB: predicated region body
PF: predicated region fallthrough
CT: control target
= control target key end

     0   :  { %s756_s9 = smov 0   ;;  %s758_s10 = smov 0   ;;  %s853_s0 = inlined_call_operand.vmem [shape: bf16[1,16,128], index: 0, kind: input, shape index: {}]   ;;  %s854_s1 = inlined_call_operand.vmem [shape: bf16[1,128,256], index: 1, kind: input, shape index: {}]   ;;  %s855_s2 = inlined_call_operand.vmem [shape: bf16[16,256], index: 2, kind: output, shape index: {}]  }
   0x1   :  { %s760_s11 = smov 0   ;;  %s762_s12 = smov 0  }
   0x2   :  { %s764_s13 = smov 0  }
   0x3 LB: > { %s24_s14 = sadd.s32 1, %s733_s12  ;;  %s587_s15 = sadd.s32 4294967295, %s737_s13   ;;  %s737_s13 = sphi %s764_s13, %s12_s13   ;;  %s733_s12 = sphi %s762_s12, %s860_s12   ;;  %s729_s11 = sphi %s760_s11, %s859_s11   ;;  %s725_s10 = sphi %s758_s10, %s858_s10   ;;  %s721_s9 = sphi %s756_s9, %s857_s9  }
   0x4   : > { %p25_p0 = scmp.ge.s32.totalorder %s24_s14, 2  ;;  %p75_p1 = scmp.ne.s32.totalorder %s725_s10, %s721_s9 }
   0x5   : > { %p76_p2 = scmp.eq.s32.totalorder %s737_s13, 0  ;;  %p111_p4 = scmp.eq.s32.totalorder %s587_s15, 1 }
   0x6   : > { %s862_s14 = smov (%p25_p0, %s24_s14), 0  ;;  %s68_s17 = sadd.s32 1, %s725_s10 }
   0x7   : > { %p77_p3 = por %p76_p2, %p75_p1  ;;  %s64_s16 = ssub.s32 %s733_s12, %s862_s14 }
   0x8   : > { %p66_p5 = scmp.eq.s32.totalorder %s64_s16, 0  ;;  %p791_p6 = por %p111_p4, %p75_p1 }
   0x9   : > { %p591_p7 = scmp.ge.s32.totalorder %s737_s13, 2 }
   0xa   : > { %s796_s19 = scalar_select %p66_p5, %s725_s10, %s68_s17  }
   0xb   : > { %146 = sbr.rel (%p591_p7) target bundleno = 30 (0x1e), region = 20 }
  0x10   : > { %149 = sbr.rel (!%p77_p3) target bundleno = 30 (0x1e), region = 24  ;;  %s151_s20 = sand.u32 (%p77_p3), 1, %s725_s10  }
  0x11   : > { %s593_s21 = sshll.u32 (%p77_p3), %s733_s12, 2  ;;  %s592_s22 = sshll.u32 (%p77_p3), %s151_s20, 6 }
  0x12   : > { %s804_s25 = scalar_lea.vmem (%p77_p3), %s854_s1, %s593_s21  ;;  %s153_s26 = scalar_lea.vmem (%p77_p3), [#allocation2], %s592_s22 }
  0x13   : > { %v174_v0 = vld [vmem:[%s804_s25] sm:$0xf] (%p77_p3)  ;;  %v176_v1 = vld [vmem:[%s804_s25 + $0x8] sm:$0xf] (%p77_p3)  ;;  %v178_v2 = vld [vmem:[%s804_s25 + $0x10] sm:$0xf] (%p77_p3) }
  0x14   : > { %175 = vst [vmem:[%s153_s26] sm:$0xf] (%p77_p3), %v174_v0  ;;  %177 = vst [vmem:[%s153_s26 + $0x4] sm:$0xf] (%p77_p3), %v176_v1  ;;  %v180_v3 = vld [vmem:[%s804_s25 + $0x18] sm:$0xf] (%p77_p3) }
  0x15   : > { %v182_v4 = vld [vmem:[%s804_s25 + $0x20] sm:$0xf]  ;;  %179 = vst [vmem:[%s153_s26 + $0x8] sm:$0xf] %v178_v2  ;;  %181 = vst [vmem:[%s153_s26 + $0xc] sm:$0xf] %v180_v3 }
  0x16   : > { %183 = vst [vmem:[%s153_s26 + $0x10] sm:$0xf] %v182_v4  ;;  %v184_v5 = vld [vmem:[%s804_s25 + $0x28] sm:$0xf]  ;;  %v186_v6 = vld [vmem:[%s804_s25 + $0x30] sm:$0xf] }
  0x17   : > { %v188_v7 = vld [vmem:[%s804_s25 + $0x38] sm:$0xf]  ;;  %185 = vst [vmem:[%s153_s26 + $0x14] sm:$0xf] %v184_v5  ;;  %187 = vst [vmem:[%s153_s26 + $0x18] sm:$0xf] %v186_v6 }
  0x18   : > { %189 = vst [vmem:[%s153_s26 + $0x1c] sm:$0xf] %v188_v7  ;;  %v190_v8 = vld [vmem:[%s804_s25 + $0x40] sm:$0xf]  ;;  %v192_v9 = vld [vmem:[%s804_s25 + $0x48] sm:$0xf] }
  0x19   : > { %v194_v10 = vld [vmem:[%s804_s25 + $0x50] sm:$0xf]  ;;  %191 = vst [vmem:[%s153_s26 + $0x20] sm:$0xf] %v190_v8  ;;  %193 = vst [vmem:[%s153_s26 + $0x24] sm:$0xf] %v192_v9 }
  0x1a   : > { %195 = vst [vmem:[%s153_s26 + $0x28] sm:$0xf] %v194_v10  ;;  %v196_v11 = vld [vmem:[%s804_s25 + $0x58] sm:$0xf]  ;;  %v198_v12 = vld [vmem:[%s804_s25 + $0x60] sm:$0xf] }
  0x1b   : > { %v200_v13 = vld [vmem:[%s804_s25 + $0x68] sm:$0xf]  ;;  %197 = vst [vmem:[%s153_s26 + $0x2c] sm:$0xf] %v196_v11  ;;  %199 = vst [vmem:[%s153_s26 + $0x30] sm:$0xf] %v198_v12 }
  0x1c   : > { %201 = vst [vmem:[%s153_s26 + $0x34] sm:$0xf] %v200_v13  ;;  %v202_v14 = vld [vmem:[%s804_s25 + $0x70] sm:$0xf]  ;;  %v204_v15 = vld [vmem:[%s804_s25 + $0x78] sm:$0xf] }
  0x1d   : > { %203 = vst [vmem:[%s153_s26 + $0x38] sm:$0xf] %v202_v14  ;;  %205 = vst [vmem:[%s153_s26 + $0x3c] sm:$0xf] %v204_v15 }
  0x1e PF: > { %p594_p8 = scmp.ge.s32.totalorder %s737_s13, 1  ;;  %p260_p9 = scmp.lt.s32.totalorder %s737_s13, 3 }
  0x20   : > { %p261_p10 = pnand %p594_p8, %p260_p9 }
  0x21   : > { %s267_s27 = sand.u32 (!%p261_p10), 1, %s721_s9  }
  0x22   : > { %264 = sbr.rel (%p261_p10) target bundleno = 280 (0x118), region = 65  ;;  %s595_s28 = sshll.u32 (!%p261_p10), %s267_s27, 6 }
  0x23   : > { %s269_s29 = scalar_lea.vmem (!%p261_p10), [#allocation2], %s595_s28  ;;  %s596_s4 = sshll.u32 (!%p261_p10), %s267_s27, 3 }
  0x24   : > { %s295_s5 = scalar_lea.vmem (!%p261_p10), [#allocation3], %s596_s4 }
  0x27   : > { %v739_v16 = vmov 0.0   ;;  %vm740_vm0 = vmmov 0   ;;  %v690_v17 = vld [vmem:[%s269_s29 + $0x38] sm:$0xff]   ;;  %v691_v18 = vld [vmem:[%s269_s29 + $0x30] sm:$0xff]   ;;  %v692_v19 = vld [vmem:[%s269_s29 + $0x28] sm:$0xff]   ;;  %s609_s6 = sshll.u32 (%p791_p6), %s729_s11, 2 }
  0x28   : > { %628 = vmatprep.subr.bf16.mxu0 %v739_v16  ;;  %644 = vmatprep.mubr.msk.bf16.mxu0 %vm740_vm0, %v739_v16  ;;  %v693_v20 = vld [vmem:[%s269_s29 + $0x20] sm:$0xff]   ;;  %v694_v21 = vld [vmem:[%s269_s29 + $0x18] sm:$0xff]   ;;  %v695_v22 = vld [vmem:[%s269_s29 + $0x10] sm:$0xff]   ;;  %s446_s15 = scalar_lea.vmem (%p791_p6), %s855_s2, %s609_s6 }
  0x29   : > { %629 = vmatpush3.bf16.msra.mxu0 %v690_v17  ;;  %v696_v23 = vld [vmem:[%s269_s29 + $0x8] sm:$0xff]   ;;  %v697_v24 = vld [vmem:[%s269_s29] sm:$0xff]  }
  0x2a   : > { %630 = vmatprep.subr.bf16.mxu0 %v739_v16  ;;  %v698_v25 = vld [vmem:[%s853_s0] sm:$0xff]  }
  0x2d   : > { %631 = vmatpush3.bf16.msra.mxu0 %v691_v18 }
  0x2e   : > { %632 = vmatprep.subr.bf16.mxu0 %v739_v16 }
  0x31   : > { %633 = vmatpush3.bf16.msra.mxu0 %v692_v19 }
  0x32   : > { %634 = vmatprep.subr.bf16.mxu0 %v739_v16 }
  0x35   : > { %635 = vmatpush3.bf16.msra.mxu0 %v693_v20 }
  0x36   : > { %636 = vmatprep.subr.bf16.mxu0 %v739_v16 }
  0x39   : > { %637 = vmatpush3.bf16.msra.mxu0 %v694_v21 }
  0x3a   : > { %638 = vmatprep.subr.bf16.mxu0 %v739_v16 }
  0x3d   : > { %639 = vmatpush3.bf16.msra.mxu0 %v695_v22 }
  0x3e   : > { %640 = vmatprep.subr.bf16.mxu0 %v739_v16 }
  0x41   : > { %641 = vmatpush3.bf16.msra.mxu0 %v696_v23 }
  0x42   : > { %642 = vmatprep.subr.bf16.mxu0 %v739_v16 }
  0x45   : > { %643 = vmatpush3.bf16.msra.mxu0 %v697_v24 }
  0x48   : > { %645 = vmatmul.mubr.bf16.vlgmr.msra.gmra.mxu0 %v698_v25 }
 0x108   : > { %v416_v26 = vpop.f32.mrf.mxu0 }
 0x10a   : > { %v646_v27 = vpop.f32.mrf.mxu0 }
 0x10b   : > { %439 = sbr.rel (!%p791_p6) target bundleno = 280 (0x118), region = 73 }
 0x10c   : > { %v419_v28 = vpop.f32.mrf.mxu0 }
 0x10d   : > { %v617_v29 = vpack.c.bf16 %v419_v28, %v416_v26 }
 0x10e   : > { %v647_v30 = vpop.f32.mrf.mxu0 }
 0x10f   : > { %618 = vst [vmem:[%s295_s5] sm:$0xff] %v617_v29  }
 0x116   : > { %v463_v31 = vld [vmem:[%s295_s5] sm:$0xf]  ;;  %v465_v32 = vld [vmem:[%s295_s5 + $0x4] sm:$0xf] }
 0x117   : > { %464 = vst [vmem:[%s446_s15] sm:$0xf] %v463_v31  ;;  %466 = vst [vmem:[%s446_s15 + $0x8] sm:$0xf] %v465_v32 }
 0x118 PF: > { %s12_s13 = sadd.s32 1, %s737_s13   ;;  %s857_s9 = smov %s725_s10 }
 0x119   : > { %p9_p11 = scmp.ge.s32.totalorder %s12_s13, 4   ;;  %s858_s10 = smov %s796_s19 }
 0x11a   : > { %s859_s11 = smov %s733_s12  ;;  %s860_s12 = smov %s862_s14 }
 0x11b   :  { %11 = sbr.rel (!%p9_p11) target bundleno = 3 (0x3), region = 148 }

// kernel: resnest_forward.74
= control target key start
LH: loop header
LB: loop body
LE: loop exit
PB: predicated region body
PF: predicated region fallthrough
CT: control target
= control target key end

     0   :  { %s838_s9 = smov 0   ;;  %s840_s10 = smov 0   ;;  %s956_s0 = inlined_call_operand.vmem [shape: bf16[1,32,128], index: 0, kind: input, shape index: {}]   ;;  %s957_s1 = inlined_call_operand.vmem [shape: bf16[1,128,512], index: 1, kind: input, shape index: {}]   ;;  %s958_s2 = inlined_call_operand.vmem [shape: bf16[32,512], index: 2, kind: output, shape index: {}]  }
   0x1   :  { %s842_s11 = smov 0   ;;  %s844_s12 = smov 0  }
   0x2   :  { %s846_s13 = smov 0  }
   0x3 LB: > { %s24_s14 = sadd.s32 1, %s816_s12  ;;  %s655_s15 = sadd.s32 4294967295, %s820_s13   ;;  %s820_s13 = sphi %s846_s13, %s12_s13   ;;  %s816_s12 = sphi %s844_s12, %s963_s12   ;;  %s812_s11 = sphi %s842_s11, %s962_s11   ;;  %s808_s10 = sphi %s840_s10, %s961_s10   ;;  %s804_s9 = sphi %s838_s9, %s960_s9  }
   0x4   : > { %p25_p0 = scmp.ge.s32.totalorder %s24_s14, 2  ;;  %p75_p1 = scmp.ne.s32.totalorder %s808_s10, %s804_s9 }
   0x5   : > { %p76_p2 = scmp.eq.s32.totalorder %s820_s13, 0  ;;  %p111_p4 = scmp.eq.s32.totalorder %s655_s15, 1 }
   0x6   : > { %s965_s14 = smov (%p25_p0, %s24_s14), 0  ;;  %s68_s17 = sadd.s32 1, %s808_s10 }
   0x7   : > { %p77_p3 = por %p76_p2, %p75_p1  ;;  %s64_s16 = ssub.s32 %s816_s12, %s965_s14 }
   0x8   : > { %p66_p5 = scmp.eq.s32.totalorder %s64_s16, 0  ;;  %p873_p6 = por %p111_p4, %p75_p1 }
   0x9   : > { %p659_p7 = scmp.ge.s32.totalorder %s820_s13, 2 }
   0xa   : > { %s878_s19 = scalar_select %p66_p5, %s808_s10, %s68_s17  }
   0xb   : > { %146 = sbr.rel (%p659_p7) target bundleno = 28 (0x1c), region = 20 }
  0x10   : > { %149 = sbr.rel (!%p77_p3) target bundleno = 28 (0x1c), region = 24  ;;  %s151_s20 = sand.u32 (%p77_p3), 1, %s808_s10  }
  0x11   : > { %s693_s21 = sshll.u32 (%p77_p3), %s816_s12, 3  ;;  %s660_s22 = sshll.u32 (%p77_p3), %s151_s20, 7 }
  0x12   : > { %s886_s25 = scalar_lea.vmem (%p77_p3), %s957_s1, %s693_s21  ;;  %s153_s26 = scalar_lea.vmem (%p77_p3), [#allocation2], %s660_s22 }
  0x13   : > { %v217_v0 = vld [vmem:[%s886_s25] sm:$0xff] (%p77_p3)  ;;  %v219_v1 = vld [vmem:[%s886_s25 + $0x10] sm:$0xff] (%p77_p3) }
  0x14   : > { %v221_v2 = vld [vmem:[%s886_s25 + $0x20] sm:$0xff] (%p77_p3)  ;;  %218 = vst [vmem:[%s153_s26] sm:$0xff] (%p77_p3), %v217_v0  ;;  %220 = vst [vmem:[%s153_s26 + $0x8] sm:$0xff] (%p77_p3), %v219_v1  ;;  %v223_v3 = vld [vmem:[%s886_s25 + $0x30] sm:$0xff] (%p77_p3) }
  0x15   : > { %222 = vst [vmem:[%s153_s26 + $0x10] sm:$0xff] %v221_v2  ;;  %v225_v4 = vld [vmem:[%s886_s25 + $0x40] sm:$0xff]  ;;  %v227_v5 = vld [vmem:[%s886_s25 + $0x50] sm:$0xff]  ;;  %224 = vst [vmem:[%s153_s26 + $0x18] sm:$0xff] %v223_v3 }
  0x16   : > { %226 = vst [vmem:[%s153_s26 + $0x20] sm:$0xff] %v225_v4  ;;  %228 = vst [vmem:[%s153_s26 + $0x28] sm:$0xff] %v227_v5  ;;  %v229_v6 = vld [vmem:[%s886_s25 + $0x60] sm:$0xff]  ;;  %v231_v7 = vld [vmem:[%s886_s25 + $0x70] sm:$0xff] }
  0x17   : > { %v233_v8 = vld [vmem:[%s886_s25 + $0x80] sm:$0xff]  ;;  %230 = vst [vmem:[%s153_s26 + $0x30] sm:$0xff] %v229_v6  ;;  %232 = vst [vmem:[%s153_s26 + $0x38] sm:$0xff] %v231_v7  ;;  %v235_v9 = vld [vmem:[%s886_s25 + $0x90] sm:$0xff] }
  0x18   : > { %234 = vst [vmem:[%s153_s26 + $0x40] sm:$0xff] %v233_v8  ;;  %v237_v10 = vld [vmem:[%s886_s25 + $0xa0] sm:$0xff]  ;;  %v239_v11 = vld [vmem:[%s886_s25 + $0xb0] sm:$0xff]  ;;  %236 = vst [vmem:[%s153_s26 + $0x48] sm:$0xff] %v235_v9 }
  0x19   : > { %238 = vst [vmem:[%s153_s26 + $0x50] sm:$0xff] %v237_v10  ;;  %240 = vst [vmem:[%s153_s26 + $0x58] sm:$0xff] %v239_v11  ;;  %v241_v12 = vld [vmem:[%s886_s25 + $0xc0] sm:$0xff]  ;;  %v243_v13 = vld [vmem:[%s886_s25 + $0xd0] sm:$0xff] }
  0x1a   : > { %v245_v14 = vld [vmem:[%s886_s25 + $0xe0] sm:$0xff]  ;;  %242 = vst [vmem:[%s153_s26 + $0x60] sm:$0xff] %v241_v12  ;;  %244 = vst [vmem:[%s153_s26 + $0x68] sm:$0xff] %v243_v13  ;;  %v247_v15 = vld [vmem:[%s886_s25 + $0xf0] sm:$0xff] }
  0x1b   : > { %246 = vst [vmem:[%s153_s26 + $0x70] sm:$0xff] %v245_v14  ;;  %248 = vst [vmem:[%s153_s26 + $0x78] sm:$0xff] %v247_v15 }
  0x1c PF: > { %p663_p8 = scmp.ge.s32.totalorder %s820_s13, 1  ;;  %p253_p9 = scmp.lt.s32.totalorder %s820_s13, 3 }
  0x1e   : > { %p254_p10 = pnand %p663_p8, %p253_p9 }
  0x1f   : > { %s260_s27 = sand.u32 (!%p254_p10), 1, %s804_s9  }
  0x20   : > { %257 = sbr.rel (%p254_p10) target bundleno = 281 (0x119), region = 62  ;;  %s664_s28 = sshll.u32 (!%p254_p10), %s260_s27, 7 }
  0x21   : > { %s909_s29 = scalar_lea.vmem (!%p254_p10), [#allocation2], %s664_s28  ;;  %s665_s6 = sshll.u32 (!%p254_p10), %s260_s27, 5 }
  0x22   : > { %s288_s7 = scalar_lea.vmem (!%p254_p10), [#allocation3], %s665_s6 }
  0x25   : > { %v822_v16 = vmov 0   ;;  %v756_v17 = vld [vmem:[%s909_s29 + $0x74] ss:$8 sps:$4 sm:$0xff]   ;;  %v758_v18 = vld [vmem:[%s909_s29 + $0x70] ss:$8 sps:$4 sm:$0xff]   ;;  %v780_v33 = vld [vmem:[%s956_s0] sm:$0xff]  }
  0x26   : > { %449 = vmatprep.mubr.bf16.mxu0 %v822_v16  ;;  %459 = vmatprep.mubr.bf16.mxu1 %v822_v16  ;;  %v759_v19 = vld [vmem:[%s909_s29 + $0x64] ss:$8 sps:$4 sm:$0xff]   ;;  %v761_v20 = vld [vmem:[%s909_s29 + $0x60] ss:$8 sps:$4 sm:$0xff]   ;;  %v762_v21 = vld [vmem:[%s909_s29 + $0x54] ss:$8 sps:$4 sm:$0xff]  }
  0x27   : > { %417 = vmatprep.subr.bf16.mxu0 %v756_v17  ;;  %699 = vmatprep.subr.bf16.mxu1 %v756_v17  ;;  %v764_v22 = vld [vmem:[%s909_s29 + $0x50] ss:$8 sps:$4 sm:$0xff]   ;;  %v765_v23 = vld [vmem:[%s909_s29 + $0x44] ss:$8 sps:$4 sm:$0xff]   ;;  %v767_v24 = vld [vmem:[%s909_s29 + $0x40] ss:$8 sps:$4 sm:$0xff]  }
  0x28   : > { %418 = vmatpush1.bf16.msra.mxu0 %v758_v18  ;;  %707 = vmatpush1.bf16.msra.mxu1 %v758_v18  ;;  %v768_v25 = vld [vmem:[%s909_s29 + $0x34] ss:$8 sps:$4 sm:$0xff]   ;;  %v770_v26 = vld [vmem:[%s909_s29 + $0x30] ss:$8 sps:$4 sm:$0xff]   ;;  %v771_v27 = vld [vmem:[%s909_s29 + $0x24] ss:$8 sps:$4 sm:$0xff]  }
  0x29   : > { %419 = vmatprep.subr.bf16.mxu0 %v759_v19  ;;  %700 = vmatprep.subr.bf16.mxu1 %v759_v19  ;;  %v773_v28 = vld [vmem:[%s909_s29 + $0x20] ss:$8 sps:$4 sm:$0xff]   ;;  %v774_v29 = vld [vmem:[%s909_s29 + $0x14] ss:$8 sps:$4 sm:$0xff]   ;;  %v776_v30 = vld [vmem:[%s909_s29 + $0x10] ss:$8 sps:$4 sm:$0xff]  }
  0x2a   : > { %v777_v31 = vld [vmem:[%s909_s29 + $0x4] ss:$8 sps:$4 sm:$0xff]   ;;  %v779_v32 = vld [vmem:[%s909_s29] ss:$8 sps:$4 sm:$0xff]   ;;  %s698_s8 = sshll.u32 (%p873_p6), %s812_s11, 3 }
  0x2b   : > { %v781_v34 = vld [vmem:[%s956_s0 + $0x8] sm:$0xff]   ;;  %s512_s16 = scalar_lea.vmem (%p873_p6), %s958_s2, %s698_s8 }
  0x2c   : > { %420 = vmatpush1.bf16.msra.mxu0 %v761_v20  ;;  %708 = vmatpush1.bf16.msra.mxu1 %v761_v20 }
  0x2d   : > { %421 = vmatprep.subr.bf16.mxu0 %v762_v21  ;;  %701 = vmatprep.subr.bf16.mxu1 %v762_v21 }
  0x30   : > { %422 = vmatpush1.bf16.msra.mxu0 %v764_v22  ;;  %709 = vmatpush1.bf16.msra.mxu1 %v764_v22 }
  0x31   : > { %423 = vmatprep.subr.bf16.mxu0 %v765_v23  ;;  %702 = vmatprep.subr.bf16.mxu1 %v765_v23 }
  0x34   : > { %424 = vmatpush1.bf16.msra.mxu0 %v767_v24  ;;  %710 = vmatpush1.bf16.msra.mxu1 %v767_v24 }
  0x35   : > { %425 = vmatprep.subr.bf16.mxu0 %v768_v25  ;;  %703 = vmatprep.subr.bf16.mxu1 %v768_v25 }
  0x38   : > { %426 = vmatpush1.bf16.msra.mxu0 %v770_v26  ;;  %711 = vmatpush1.bf16.msra.mxu1 %v770_v26 }
  0x39   : > { %427 = vmatprep.subr.bf16.mxu0 %v771_v27  ;;  %704 = vmatprep.subr.bf16.mxu1 %v771_v27 }
  0x3c   : > { %428 = vmatpush1.bf16.msra.mxu0 %v773_v28  ;;  %712 = vmatpush1.bf16.msra.mxu1 %v773_v28 }
  0x3d   : > { %429 = vmatprep.subr.bf16.mxu0 %v774_v29  ;;  %705 = vmatprep.subr.bf16.mxu1 %v774_v29 }
  0x40   : > { %430 = vmatpush1.bf16.msra.mxu0 %v776_v30  ;;  %713 = vmatpush1.bf16.msra.mxu1 %v776_v30 }
  0x41   : > { %431 = vmatprep.subr.bf16.mxu0 %v777_v31  ;;  %706 = vmatprep.subr.bf16.mxu1 %v777_v31 }
  0x44   : > { %432 = vmatpush1.bf16.msra.mxu0 %v779_v32  ;;  %714 = vmatpush1.bf16.msra.mxu1 %v779_v32 }
  0x47   : > { %450 = vmatmul.mubr.bf16.vlgmr.msra.gmra.mxu0 %v780_v33  ;;  %460 = vmatmul.mubr.bf16.vlgmr.msra.gmra.mxu1 %v781_v34 }
 0x107   : > { %v451_v35 = vpop.f32.mrf.mxu0  ;;  %v461_v36 = vpop.f32.mrf.mxu1 }
 0x109   : > { %v453_v37 = vpop.f32.mrf.mxu0  ;;  %v463_v38 = vpop.f32.mrf.mxu1 }
 0x10a   : > { %v694_v39 = vpack.c.bf16 %v453_v37, %v451_v35  ;;  %v696_v40 = vpack.c.bf16 %v463_v38, %v461_v36 }
 0x10b   : > { %v455_v41 = vpop.f32.mrf.mxu0  ;;  %v465_v42 = vpop.f32.mrf.mxu1 }
 0x10c   : > { %494 = vst [vmem:[%s288_s7] sm:$0xff] %v694_v39  ;;  %496 = vst [vmem:[%s288_s7 + $0x10] sm:$0xff] %v696_v40  ;;  %504 = sbr.rel (!%p873_p6) target bundleno = 281 (0x119), region = 70 }
 0x10d   : > { %v457_v43 = vpop.f32.mrf.mxu0  ;;  %v467_v44 = vpop.f32.mrf.mxu1 }
 0x10e   : > { %v695_v45 = vpack.c.bf16 %v457_v43, %v455_v41  ;;  %v697_v46 = vpack.c.bf16 %v467_v44, %v465_v42 }
 0x110   : > { %495 = vst [vmem:[%s288_s7 + $0x8] sm:$0xff] %v695_v45  ;;  %497 = vst [vmem:[%s288_s7 + $0x18] sm:$0xff] %v697_v46 }
 0x113   : > { %v547_v47 = vld [vmem:[%s288_s7] sm:$0xff]  ;;  %v551_v49 = vld [vmem:[%s288_s7 + $0x10] sm:$0xff] }
 0x114   : > { %548 = vst [vmem:[%s512_s16] sm:$0xff] %v547_v47  ;;  %552 = vst [vmem:[%s512_s16 + $0x20] sm:$0xff] %v551_v49 }
 0x117   : > { %v549_v48 = vld [vmem:[%s288_s7 + $0x8] sm:$0xff]  ;;  %v553_v50 = vld [vmem:[%s288_s7 + $0x18] sm:$0xff] }
 0x118   : > { %550 = vst [vmem:[%s512_s16 + $0x10] sm:$0xff] %v549_v48  ;;  %554 = vst [vmem:[%s512_s16 + $0x30] sm:$0xff] %v553_v50 }
 0x119 PF: > { %s12_s13 = sadd.s32 1, %s820_s13   ;;  %s960_s9 = smov %s808_s10 }
 0x11a   : > { %p9_p11 = scmp.ge.s32.totalorder %s12_s13, 4   ;;  %s961_s10 = smov %s878_s19 }
 0x11b   : > { %s962_s11 = smov %s816_s12  ;;  %s963_s12 = smov %s965_s14 }
 0x11c   :  { %11 = sbr.rel (!%p9_p11) target bundleno = 3 (0x3), region = 142 }

// kernel: resnest_forward.75
= control target key start
LH: loop header
LB: loop body
LE: loop exit
PB: predicated region body
PF: predicated region fallthrough
CT: control target
= control target key end

     0   :  { %s997_s9 = smov 0   ;;  %s999_s10 = smov 0   ;;  %s1176_s0 = inlined_call_operand.vmem [shape: bf16[4,16,1280], index: 0, kind: input, shape index: {}]   ;;  %s1177_s1 = inlined_call_operand.vmem [shape: bf16[4,1280,256], index: 1, kind: input, shape index: {}]   ;;  %s1178_s2 = inlined_call_operand.vmem [shape: bf16[16,1024], index: 2, kind: output, shape index: {}]  }
   0x1   :  { %s1001_s11 = smov 0   ;;  %s1003_s12 = smov 0  }
   0x2   :  { %s1005_s13 = smov 0   ;;  %s1007_s14 = smov 0  }
   0x3   :  { %s1009_s15 = smov 0   ;;  %s1011_s16 = smov 0  }
   0x4   :  { %s1013_s17 = smov 0  }
   0x5 LB: > { %s27_s18 = sadd.s32 1, %s971_s15  ;;  %s38_s19 = sadd.s32 1, %s975_s16  ;;  %s979_s17 = sphi %s1013_s17, %s12_s17   ;;  %s975_s16 = sphi %s1011_s16, %s1188_s16   ;;  %s971_s15 = sphi %s1009_s15, %s1187_s15   ;;  %s967_s14 = sphi %s1007_s14, %s1186_s14   ;;  %s963_s13 = sphi %s1005_s13, %s1185_s13   ;;  %s959_s12 = sphi %s1003_s12, %s1184_s12   ;;  %s955_s11 = sphi %s1001_s11, %s1183_s11   ;;  %s951_s10 = sphi %s999_s10, %s1182_s10   ;;  %s947_s9 = sphi %s997_s9, %s1181_s9  }
   0x6   : > { %p28_p0 = scmp.ge.s32.totalorder %s27_s18, 5  ;;  %p56_p1 = scmp.ne.s32.totalorder %s959_s12, %s955_s11 }
   0x7   : > { %s724_s20 = sadd.s32 4294967295, %s979_s17   ;;  %p57_p2 = scmp.eq.s32.totalorder %s979_s17, 0 }
   0x8   : > { %s1190_s18 = smov (%p28_p0, %s27_s18), 0  ;;  %s1192_s19 = smov (!%p28_p0, %s38_s19), %s975_s16 }
   0x9   : > { %p40_p3 = scmp.ge.s32.totalorder %s1192_s19, 4  ;;  %s45_s21 = ssub.s32 %s971_s15, %s1190_s18 }
   0xa   : > { %p1053_p4 = por %p57_p2, %p56_p1  ;;  %p119_p5 = scmp.ne.s32.totalorder %s951_s10, %s947_s9 }
   0xb   : > { %s1194_s19 = smov (%p40_p3, %s1192_s19), 0  ;;  %s49_s23 = sadd.s32 1, %s959_s12 }
   0xc   : > { %p120_p6 = scmp.eq.s32.totalorder %s724_s20, 19  ;;  %s42_s24 = ssub.s32 %s975_s16, %s1194_s19 }
   0xd   : > { %s109_s25 = sadd.s32 1, %s951_s10  ;;  %s46_s26 = sor.u32 %s45_s21, %s42_s24 }
   0xe   : > { %p107_p7 = scmp.eq.s32.totalorder %s42_s24, 0  ;;  %p47_p8 = scmp.eq.s32.totalorder %s46_s26, 0 }
   0xf   : > { %p1065_p9 = por %p120_p6, %p119_p5  ;;  %p727_p10 = scmp.ge.s32.totalorder %s979_s17, 20 }
  0x10   : > { %s1070_s28 = scalar_select %p107_p7, %s951_s10, %s109_s25  }
  0x11   : > { %s1073_s29 = scalar_select %p47_p8, %s959_s12, %s49_s23  }
  0x12   : > { %142 = sbr.rel (%p727_p10) target bundleno = 32 (0x20), region = 16 }
  0x17   : > { %145 = sbr.rel (!%p1053_p4) target bundleno = 32 (0x20), region = 20  ;;  %s147_s30 = sand.u32 (%p1053_p4), 1, %s959_s12  }
  0x18   : > { %s729_s3 = sshll.u32 (%p1053_p4), %s971_s15, 1  ;;  %s728_s4 = sshll.u32 (%p1053_p4), %s147_s30, 4 }
  0x19   : > { %s783_s5 = smul.u32 (%p1053_p4), 20, %s975_s16  ;;  %s149_s23 = scalar_lea.vmem (%p1053_p4), [#allocation3], %s728_s4 }
  0x1b   : > { %s155_s6 = sadd.s32 (%p1053_p4), %s783_s5, %s729_s3 }
  0x1c   : > { %s730_s7 = sshll.u32 %s155_s6, 2 }
  0x1d   : > { %s157_s21 = scalar_lea.vmem %s1176_s0, %s730_s7 }
  0x1e   : > { %v188_v0 = vld [vmem:[%s157_s21] sm:$0xff]  ;;  %v190_v1 = vld [vmem:[%s157_s21 + $0x28] sm:$0xff] }
  0x1f   : > { %189 = vst [vmem:[%s149_s23] sm:$0xff] %v188_v0  ;;  %191 = vst [vmem:[%s149_s23 + $0x8] sm:$0xff] %v190_v1 }
  0x20 PF: > { %p731_p11 = scmp.ge.s32.totalorder %s979_s17, 1  ;;  %p215_p12 = scmp.lt.s32.totalorder %s979_s17, 21 }
  0x22   : > { %p216_p13 = pnand %p731_p11, %p215_p12 }
  0x23   : > { %s222_s22 = sand.u32 (!%p216_p13), 1, %s955_s11   ;;  %s253_s24 = sand.u32 (!%p216_p13), 1, %s947_s9  }
  0x24   : > { %219 = sbr.rel (%p216_p13) target bundleno = 337 (0x151), region = 62  ;;  %s1088_s25 = sshll.u32 (!%p216_p13), %s222_s22, 4 }
  0x25   : > { %s733_s26 = sshll.u32 (!%p216_p13), %s253_s24, 4  ;;  %s734_s30 = sshll.u32 (!%p216_p13), %s963_s13, 5 }
  0x26   : > { %p260_p0 = scmp.lt.s32.totalorder (!%p216_p13), %s967_s14, 3  ;;  %p262_p1 = scmp.lt.s32.totalorder (!%p216_p13), %s734_s30, 159 }
  0x27   : > { %s224_s11 = scalar_lea.vmem (!%p216_p13), [#allocation3], %s1088_s25  ;;  %s1099_s9 = scalar_lea.vmem (!%p216_p13), [#allocation4], %s733_s26 }
  0x28   : > { %p737_p2 = scmp.ne.s32.totalorder (!%p216_p13), %s963_s13, 0 }
  0x29   : > { %s261_s3 = scalar_select %p260_p0, %s967_s14, 3 }
  0x2a   : > { %s1196_s30 = smov (!%p262_p1, %s734_s30), 159 }
  0x2b   : > { %s784_s4 = smul.u32 320, %s261_s3  ;;  %s735_s5 = sshll.u32 %s1196_s30, 1 }
  0x2c   : > { %280 = sbr.rel (%p737_p2) target bundleno = 52 (0x34), region = 70 }
  0x2d   : > { %s269_s6 = sadd.s32 %s784_s4, %s735_s5 }
  0x2e   : > { %s736_s7 = sshll.u32 %s269_s6, 2 }
  0x2f   : > { %s1096_s21 = scalar_lea.vmem %s1177_s1, %s736_s7 }
  0x31   : > { %v981_v2 = vmov 0.0  }
  0x32   : > { %281 = vst [vmem:[#allocation2 + $0x10] sm:$0xff] %v981_v2  ;;  %282 = vst [vmem:[#allocation2] sm:$0xff] %v981_v2 }
  0x33   : > { %283 = vst [vmem:[#allocation2 + $0x18] sm:$0xff] %v981_v2  ;;  %284 = vst [vmem:[#allocation2 + $0x8] sm:$0xff] %v981_v2 }
  0x34 PF: > { %v858_v3 = vld [vmem:[%s1096_s21 + $0x74] ss:$8 sps:$4 sm:$0xff]   ;;  %v860_v4 = vld [vmem:[%s1096_s21 + $0x70] ss:$8 sps:$4 sm:$0xff]   ;;  %v861_v5 = vld [vmem:[%s1096_s21 + $0x64] ss:$8 sps:$4 sm:$0xff]  }
  0x35   : > { %493 = vmatprep.subr.bf16.mxu0 %v858_v3  ;;  %v863_v6 = vld [vmem:[%s1096_s21 + $0x60] ss:$8 sps:$4 sm:$0xff]   ;;  %v864_v7 = vld [vmem:[%s1096_s21 + $0x54] ss:$8 sps:$4 sm:$0xff]   ;;  %v866_v8 = vld [vmem:[%s1096_s21 + $0x50] ss:$8 sps:$4 sm:$0xff]  }
  0x36   : > { %494 = vmatpush1.bf16.msra.mxu0 %v860_v4  ;;  %v867_v9 = vld [vmem:[%s1096_s21 + $0x44] ss:$8 sps:$4 sm:$0xff]   ;;  %v869_v10 = vld [vmem:[%s1096_s21 + $0x40] ss:$8 sps:$4 sm:$0xff]   ;;  %v870_v11 = vld [vmem:[%s1096_s21 + $0x34] ss:$8 sps:$4 sm:$0xff]  }
  0x37   : > { %495 = vmatprep.subr.bf16.mxu0 %v861_v5  ;;  %v872_v12 = vld [vmem:[%s1096_s21 + $0x30] ss:$8 sps:$4 sm:$0xff]   ;;  %v873_v13 = vld [vmem:[%s1096_s21 + $0x24] ss:$8 sps:$4 sm:$0xff]   ;;  %v875_v14 = vld [vmem:[%s1096_s21 + $0x20] ss:$8 sps:$4 sm:$0xff]  }
  0x38   : > { %v876_v15 = vld [vmem:[%s1096_s21 + $0x14] ss:$8 sps:$4 sm:$0xff]   ;;  %v878_v17 = vld [vmem:[%s1096_s21 + $0x10] ss:$8 sps:$4 sm:$0xff]   ;;  %v879_v18 = vld [vmem:[%s1096_s21 + $0x4] ss:$8 sps:$4 sm:$0xff]  }
  0x39   : > { %v908_v16 = vld [vmem:[%s224_s11 + $0x4] ss:$8 sps:$4 sm:$0xff]   ;;  %v881_v19 = vld [vmem:[%s1096_s21] ss:$8 sps:$4 sm:$0xff]   ;;  %v884_v21 = vld [vmem:[%s1096_s21 + $0xf0] ss:$8 sps:$4 sm:$0xff]  }
  0x3a   : > { %496 = vmatpush1.bf16.msra.mxu0 %v863_v6  ;;  %525 = vmatprep.mubr.bf16.mxu0 %v908_v16  ;;  %v882_v20 = vld [vmem:[%s1096_s21 + $0xf4] ss:$8 sps:$4 sm:$0xff]   ;;  %v885_v22 = vld [vmem:[%s1096_s21 + $0xe4] ss:$8 sps:$4 sm:$0xff]   ;;  %v887_v23 = vld [vmem:[%s1096_s21 + $0xe0] ss:$8 sps:$4 sm:$0xff]  }
  0x3b   : > { %497 = vmatprep.subr.bf16.mxu0 %v864_v7  ;;  %v888_v24 = vld [vmem:[%s1096_s21 + $0xd4] ss:$8 sps:$4 sm:$0xff]   ;;  %v890_v25 = vld [vmem:[%s1096_s21 + $0xd0] ss:$8 sps:$4 sm:$0xff]   ;;  %v891_v26 = vld [vmem:[%s1096_s21 + $0xc4] ss:$8 sps:$4 sm:$0xff]  }
  0x3c   : > { %v893_v27 = vld [vmem:[%s1096_s21 + $0xc0] ss:$8 sps:$4 sm:$0xff]   ;;  %v894_v28 = vld [vmem:[%s1096_s21 + $0xb4] ss:$8 sps:$4 sm:$0xff]   ;;  %v896_v29 = vld [vmem:[%s1096_s21 + $0xb0] ss:$8 sps:$4 sm:$0xff]  }
  0x3d   : > { %v897_v30 = vld [vmem:[%s1096_s21 + $0xa4] ss:$8 sps:$4 sm:$0xff]   ;;  %v899_v31 = vld [vmem:[%s1096_s21 + $0xa0] ss:$8 sps:$4 sm:$0xff]   ;;  %v900_v32 = vld [vmem:[%s1096_s21 + $0x94] ss:$8 sps:$4 sm:$0xff]  }
  0x3e   : > { %498 = vmatpush1.bf16.msra.mxu0 %v866_v8  ;;  %v902_v33 = vld [vmem:[%s1096_s21 + $0x90] ss:$8 sps:$4 sm:$0xff]   ;;  %v903_v34 = vld [vmem:[%s1096_s21 + $0x84] ss:$8 sps:$4 sm:$0xff]   ;;  %v905_v35 = vld [vmem:[%s1096_s21 + $0x80] ss:$8 sps:$4 sm:$0xff]  }
  0x3f   : > { %499 = vmatprep.subr.bf16.mxu0 %v867_v9  ;;  %v906_v36 = vld [vmem:[%s224_s11] ss:$8 sps:$4 sm:$0xff]   ;;  %p772_p3 = scmp.ne.s32.totalorder %s963_s13, 4 }
  0x40   : > { %v285_v37 = vld [vmem:[#allocation2 + $0x10] sm:$0xff]  ;;  %v286_v39 = vld [vmem:[#allocation2] sm:$0xff]  ;;  %v287_v42 = vld [vmem:[#allocation2 + $0x18] sm:$0xff] }
  0x41   : > { %v288_v45 = vld [vmem:[#allocation2 + $0x8] sm:$0xff] }
  0x42   : > { %500 = vmatpush1.bf16.msra.mxu0 %v869_v10 }
  0x43   : > { %501 = vmatprep.subr.bf16.mxu0 %v870_v11 }
  0x46   : > { %502 = vmatpush1.bf16.msra.mxu0 %v872_v12 }
  0x47   : > { %503 = vmatprep.subr.bf16.mxu0 %v873_v13 }
  0x4a   : > { %504 = vmatpush1.bf16.msra.mxu0 %v875_v14 }
  0x4b   : > { %505 = vmatprep.subr.bf16.mxu0 %v876_v15 }
  0x4e   : > { %506 = vmatpush1.bf16.msra.mxu0 %v878_v17 }
  0x4f   : > { %507 = vmatprep.subr.bf16.mxu0 %v879_v18 }
  0x52   : > { %508 = vmatpush1.bf16.msra.mxu0 %v881_v19 }
  0x53   : > { %509 = vmatprep.subr.bf16.mxu0 %v882_v20 }
  0x56   : > { %510 = vmatpush2.bf16.msra.mxu0 %v884_v21 }
  0x57   : > { %511 = vmatprep.subr.bf16.mxu0 %v885_v22 }
  0x5a   : > { %512 = vmatpush2.bf16.msra.mxu0 %v887_v23 }
  0x5b   : > { %513 = vmatprep.subr.bf16.mxu0 %v888_v24 }
  0x5e   : > { %514 = vmatpush2.bf16.msra.mxu0 %v890_v25 }
  0x5f   : > { %515 = vmatprep.subr.bf16.mxu0 %v891_v26 }
  0x62   : > { %516 = vmatpush2.bf16.msra.mxu0 %v893_v27 }
  0x63   : > { %517 = vmatprep.subr.bf16.mxu0 %v894_v28 }
  0x66   : > { %518 = vmatpush2.bf16.msra.mxu0 %v896_v29 }
  0x67   : > { %519 = vmatprep.subr.bf16.mxu0 %v897_v30 }
  0x6a   : > { %520 = vmatpush2.bf16.msra.mxu0 %v899_v31 }
  0x6b   : > { %521 = vmatprep.subr.bf16.mxu0 %v900_v32 }
  0x6e   : > { %522 = vmatpush2.bf16.msra.mxu0 %v902_v33 }
  0x6f   : > { %523 = vmatprep.subr.bf16.mxu0 %v903_v34 }
  0x72   : > { %524 = vmatpush2.bf16.msra.mxu0 %v905_v35 }
  0x75   : > { %526 = vmatmul.mubr.bf16.vlgmr.msra.gmra.mxu0 %v906_v36 }
 0x135   : > { %v527_v38 = vpop.f32.mrf.mxu0 }
 0x136   : > { %v536_v40 = vadd.f32 %v527_v38, %v285_v37 }
 0x137   : > { %v529_v41 = vpop.f32.mrf.mxu0 }
 0x138   : > { %540 = vst [vmem:[#allocation2 + $0x10] sm:$0xff] %v536_v40  ;;  %v537_v43 = vadd.f32 %v529_v41, %v286_v39 }
 0x139   : > { %v531_v44 = vpop.f32.mrf.mxu0 }
 0x13a   : > { %541 = vst [vmem:[#allocation2] sm:$0xff] %v537_v43  ;;  %v538_v46 = vadd.f32 %v531_v44, %v287_v42  ;;  %547 = sbr.rel (%p772_p3) target bundleno = 329 (0x149), region = 74 }
 0x13b   : > { %v533_v47 = vpop.f32.mrf.mxu0 }
 0x13c   : > { %542 = vst [vmem:[#allocation2 + $0x18] sm:$0xff] %v538_v46  ;;  %v539_v48 = vadd.f32 %v533_v47, %v288_v45 }
 0x13e   : > { %543 = vst [vmem:[#allocation2 + $0x8] sm:$0xff] %v539_v48 }
 0x13f   : > { %v548_v49 = vld [vmem:[#allocation2 + $0x10] sm:$0xff] }
 0x141   : > { %v549_v50 = vld [vmem:[#allocation2] sm:$0xff] }
 0x142   : > { %v780_v52 = vpack.c.bf16 %v549_v50, %v548_v49 }
 0x143   : > { %v550_v51 = vld [vmem:[#allocation2 + $0x18] sm:$0xff] }
 0x144   : > { %564 = vst [vmem:[%s1099_s9] sm:$0xff] %v780_v52 }
 0x145   : > { %v551_v53 = vld [vmem:[#allocation2 + $0x8] sm:$0xff] }
 0x146   : > { %v781_v54 = vpack.c.bf16 %v551_v53, %v550_v51 }
 0x148   : > { %565 = vst [vmem:[%s1099_s9 + $0x8] sm:$0xff] %v781_v54 }
 0x149 PF: > { %572 = sbr.rel (!%p1065_p9) target bundleno = 337 (0x151), region = 78  ;;  %s782_s23 = sshll.u32 (%p1065_p9), %s967_s14, 3 }
 0x14a   : > { %s579_s24 = scalar_lea.vmem (%p1065_p9), %s1178_s2, %s782_s23 }
 0x14b   : > { %v610_v55 = vld [vmem:[%s1099_s9] sm:$0xff] (%p1065_p9) }
 0x14c   : > { %611 = vst [vmem:[%s579_s24] sm:$0xff] (%p1065_p9), %v610_v55 }
 0x14f   : > { %v612_v56 = vld [vmem:[%s1099_s9 + $0x8] sm:$0xff] }
 0x150   : > { %613 = vst [vmem:[%s579_s24 + $0x20] sm:$0xff] %v612_v56 }
 0x151 PF: > { %s12_s17 = sadd.s32 1, %s979_s17   ;;  %s1181_s9 = smov %s951_s10 }
 0x152   : > { %p9_p4 = scmp.ge.s32.totalorder %s12_s17, 22   ;;  %s1182_s10 = smov %s1070_s28 }
 0x153   : > { %s1183_s11 = smov %s959_s12  ;;  %s1184_s12 = smov %s1073_s29 }
 0x154   : > { %s1185_s13 = smov %s971_s15  ;;  %s1186_s14 = smov %s975_s16 }
 0x155   : > { %s1187_s15 = smov %s1190_s18  ;;  %s1188_s16 = smov %s1194_s19 }
 0x156   :  { %11 = sbr.rel (!%p9_p4) target bundleno = 5 (0x5), region = 150 }

// kernel: resnest_forward.76
= control target key start
LH: loop header
LB: loop body
LE: loop exit
PB: predicated region body
PF: predicated region fallthrough
CT: control target
= control target key end

     0   :  { %s1079_s9 = smov 0   ;;  %s1081_s10 = smov 0   ;;  %s1337_s0 = inlined_call_operand.vmem [shape: bf16[1,16,512], index: 0, kind: input, shape index: {}]   ;;  %s1338_s1 = inlined_call_operand.vmem [shape: bf16[1,512,256], index: 1, kind: input, shape index: {}]   ;;  %s1339_s2 = inlined_call_operand.vmem [shape: bf16[16,256], index: 2, kind: output, shape index: {}]  }
   0x1   :  { %s1083_s11 = smov 0   ;;  %s1085_s12 = smov 0  }
   0x2   :  { %s1087_s13 = smov 0   ;;  %s1089_s14 = smov 0  }
   0x3   :  { %s1091_s15 = smov 0   ;;  %s1093_s16 = smov 0  }
   0x4   :  { %s1095_s17 = smov 0   ;;  %s1097_s18 = smov 0  }
   0x5   :  { %s1099_s19 = smov 0  }
   0x6 LB: > { %s795_s20 = sadd.s32 4294967295, %s1061_s19   ;;  %s27_s21 = sadd.s32 1, %s1053_s17  ;;  %s1061_s19 = sphi %s1099_s19, %s12_s19   ;;  %s1057_s18 = sphi %s1097_s18, %s1358_s18   ;;  %s1053_s17 = sphi %s1095_s17, %s1357_s17   ;;  %s1049_s16 = sphi %s1093_s16, %s1356_s16   ;;  %s1045_s15 = sphi %s1091_s15, %s1355_s15   ;;  %s1041_s14 = sphi %s1089_s14, %s1354_s14   ;;  %s1037_s13 = sphi %s1087_s13, %s1353_s13   ;;  %s1033_s12 = sphi %s1085_s12, %s1352_s12   ;;  %s1029_s11 = sphi %s1083_s11, %s1351_s11   ;;  %s1025_s10 = sphi %s1081_s10, %s1350_s10   ;;  %s1021_s9 = sphi %s1079_s9, %s1349_s9  }
   0x7   : > { %p28_p0 = scmp.ge.s32.totalorder %s27_s21, 2  ;;  %s30_s22 = sadd.s32 1, %s1057_s18 }
   0x8   : > { %s49_s23 = sadd.s32 1, %s1041_s14  ;;  %p56_p1 = scmp.ne.s32.totalorder %s1041_s14, %s1037_s13 }
   0x9   : > { %s1360_s21 = smov (%p28_p0, %s27_s21), 0  ;;  %s1362_s22 = smov (!%p28_p0, %s30_s22), %s1057_s18 }
   0xa   : > { %1342 = sst [smem:[#allocation6_spill]] %s1360_s21  ;;  %s45_s24 = ssub.s32 %s1053_s17, %s1360_s21 }
   0xb   : > { %p57_p2 = scmp.eq.s32.totalorder %s1061_s19, 0  ;;  %p32_p3 = scmp.ge.s32.totalorder %s1362_s22, 2 }
   0xc   : > { %p47_p4 = scmp.eq.s32.totalorder %s45_s24, 0  ;;  %s79_s26 = sadd.s32 1, %s1033_s12 }
   0xd   : > { %p1146_p5 = por %p57_p2, %p56_p1  ;;  %s1364_s22 = smov (%p32_p3, %s1362_s22), 0 }
   0xe   : > { %1344 = sst [smem:[#allocation7_spill]] %s1364_s22  ;;  %s75_s28 = ssub.s32 %s1057_s18, %s1364_s22 }
   0xf   : > { %s1154_s27 = scalar_select %p47_p4, %s1041_s14, %s49_s23  }
  0x10   : > { %p86_p6 = scmp.ne.s32.totalorder %s1033_s12, %s1029_s11  ;;  %s76_s29 = sor.u32 %s75_s28, %s45_s24 }
  0x11   : > { %p109_p7 = scmp.eq.s32.totalorder %s75_s28, 0  ;;  %p77_p8 = scmp.eq.s32.totalorder %s76_s29, 0 }
  0x12   : > { %p1160_p9 = por %p86_p6, %p57_p2  ;;  %s111_s3 = sadd.s32 1, %s1025_s10 }
  0x13   : > { %p121_p10 = scmp.ne.s32.totalorder %s1025_s10, %s1021_s9  ;;  %p122_p11 = scmp.eq.s32.totalorder %s795_s20, 3 }
  0x14   : > { %s1168_s4 = scalar_select %p77_p8, %s1033_s12, %s79_s26  }
  0x15   : > { %s1171_s5 = scalar_select %p109_p7, %s1025_s10, %s111_s3  }
  0x16   : > { %p1173_p12 = por %p122_p11, %p121_p10  ;;  %p798_p13 = scmp.ge.s32.totalorder %s1061_s19, 4 }
  0x18   : > { %144 = sbr.rel (%p798_p13) target bundleno = 61 (0x3d), region = 16 }
  0x1d   : > { %147 = sbr.rel (!%p1146_p5) target bundleno = 34 (0x22), region = 20  ;;  %s149_s7 = sand.u32 (%p1146_p5), 1, %s1041_s14  }
  0x1e   : > { %s836_s8 = sshll.u32 (%p1146_p5), %s1053_s17, 3  ;;  %s799_s23 = sshll.u32 (%p1146_p5), %s149_s7, 4 }
  0x1f   : > { %s159_s28 = scalar_lea.vmem (%p1146_p5), %s1337_s0, %s836_s8  ;;  %s151_s20 = scalar_lea.vmem (%p1146_p5), [#allocation3], %s799_s23 }
  0x20   : > { %v190_v0 = vld [vmem:[%s159_s28] sm:$0xff] (%p1146_p5)  ;;  %v192_v1 = vld [vmem:[%s159_s28 + $0x10] sm:$0xff] (%p1146_p5) }
  0x21   : > { %191 = vst [vmem:[%s151_s20] sm:$0xff] (%p1146_p5), %v190_v0  ;;  %193 = vst [vmem:[%s151_s20 + $0x8] sm:$0xff] (%p1146_p5), %v192_v1 }
  0x22 PF: > { %199 = sbr.rel (!%p1160_p9) target bundleno = 61 (0x3d), region = 58  ;;  %s201_s25 = sand.u32 (%p1160_p9), 1, %s1033_s12  }
  0x23   : > { %s837_s29 = sshll.u32 (%p1160_p9), %s1053_s17, 6  ;;  %s802_s3 = sshll.u32 (%p1160_p9), %s201_s25, 7 }
  0x24   : > { %s206_s7 = sadd.s32 (%p1160_p9), %s1057_s18, %s837_s29  ;;  %s1198_s30 = scalar_lea.vmem (%p1160_p9), [#allocation4], %s802_s3 }
  0x25   : > { %s805_s22 = sshll.u32 (%p1160_p9), %s206_s7, 2 }
  0x26   : > { %s1193_s8 = scalar_lea.vmem (%p1160_p9), %s1338_s1, %s805_s22 }
  0x27   : > { %v227_v2 = vld [vmem:[%s1193_s8] sm:$0xf]  ;;  %v229_v3 = vld [vmem:[%s1193_s8 + $0x8] sm:$0xf]  ;;  %v231_v4 = vld [vmem:[%s1193_s8 + $0x10] sm:$0xf] }
  0x28   : > { %228 = vst [vmem:[%s1198_s30] sm:$0xf] %v227_v2  ;;  %230 = vst [vmem:[%s1198_s30 + $0x4] sm:$0xf] %v229_v3  ;;  %v233_v5 = vld [vmem:[%s1193_s8 + $0x18] sm:$0xf] }
  0x29   : > { %232 = vst [vmem:[%s1198_s30 + $0x8] sm:$0xf] %v231_v4  ;;  %v235_v6 = vld [vmem:[%s1193_s8 + $0x20] sm:$0xf]  ;;  %v237_v7 = vld [vmem:[%s1193_s8 + $0x28] sm:$0xf] }
  0x2a   : > { %234 = vst [vmem:[%s1198_s30 + $0xc] sm:$0xf] %v233_v5  ;;  %236 = vst [vmem:[%s1198_s30 + $0x10] sm:$0xf] %v235_v6  ;;  %v239_v8 = vld [vmem:[%s1193_s8 + $0x30] sm:$0xf] }
  0x2b   : > { %238 = vst [vmem:[%s1198_s30 + $0x14] sm:$0xf] %v237_v7  ;;  %v241_v9 = vld [vmem:[%s1193_s8 + $0x38] sm:$0xf]  ;;  %v243_v10 = vld [vmem:[%s1193_s8 + $0x40] sm:$0xf] }
  0x2c   : > { %240 = vst [vmem:[%s1198_s30 + $0x18] sm:$0xf] %v239_v8  ;;  %242 = vst [vmem:[%s1198_s30 + $0x1c] sm:$0xf] %v241_v9  ;;  %v245_v11 = vld [vmem:[%s1193_s8 + $0x48] sm:$0xf] }
  0x2d   : > { %244 = vst [vmem:[%s1198_s30 + $0x20] sm:$0xf] %v243_v10  ;;  %v247_v12 = vld [vmem:[%s1193_s8 + $0x50] sm:$0xf]  ;;  %v249_v13 = vld [vmem:[%s1193_s8 + $0x58] sm:$0xf] }
  0x2e   : > { %246 = vst [vmem:[%s1198_s30 + $0x24] sm:$0xf] %v245_v11  ;;  %248 = vst [vmem:[%s1198_s30 + $0x28] sm:$0xf] %v247_v12  ;;  %v251_v14 = vld [vmem:[%s1193_s8 + $0x60] sm:$0xf] }
  0x2f   : > { %250 = vst [vmem:[%s1198_s30 + $0x2c] sm:$0xf] %v249_v13  ;;  %v253_v15 = vld [vmem:[%s1193_s8 + $0x68] sm:$0xf]  ;;  %v255_v16 = vld [vmem:[%s1193_s8 + $0x70] sm:$0xf] }
  0x30   : > { %252 = vst [vmem:[%s1198_s30 + $0x30] sm:$0xf] %v251_v14  ;;  %254 = vst [vmem:[%s1198_s30 + $0x34] sm:$0xf] %v253_v15  ;;  %v257_v17 = vld [vmem:[%s1193_s8 + $0x78] sm:$0xf] }
  0x31   : > { %256 = vst [vmem:[%s1198_s30 + $0x38] sm:$0xf] %v255_v16  ;;  %v259_v18 = vld [vmem:[%s1193_s8 + $0x80] sm:$0xf]  ;;  %v261_v19 = vld [vmem:[%s1193_s8 + $0x88] sm:$0xf] }
  0x32   : > { %258 = vst [vmem:[%s1198_s30 + $0x3c] sm:$0xf] %v257_v17  ;;  %260 = vst [vmem:[%s1198_s30 + $0x40] sm:$0xf] %v259_v18  ;;  %v263_v20 = vld [vmem:[%s1193_s8 + $0x90] sm:$0xf] }
  0x33   : > { %262 = vst [vmem:[%s1198_s30 + $0x44] sm:$0xf] %v261_v19  ;;  %v265_v21 = vld [vmem:[%s1193_s8 + $0x98] sm:$0xf]  ;;  %v267_v22 = vld [vmem:[%s1193_s8 + $0xa0] sm:$0xf] }
  0x34   : > { %264 = vst [vmem:[%s1198_s30 + $0x48] sm:$0xf] %v263_v20  ;;  %266 = vst [vmem:[%s1198_s30 + $0x4c] sm:$0xf] %v265_v21  ;;  %v269_v23 = vld [vmem:[%s1193_s8 + $0xa8] sm:$0xf] }
  0x35   : > { %268 = vst [vmem:[%s1198_s30 + $0x50] sm:$0xf] %v267_v22  ;;  %v271_v24 = vld [vmem:[%s1193_s8 + $0xb0] sm:$0xf]  ;;  %v273_v25 = vld [vmem:[%s1193_s8 + $0xb8] sm:$0xf] }
  0x36   : > { %270 = vst [vmem:[%s1198_s30 + $0x54] sm:$0xf] %v269_v23  ;;  %272 = vst [vmem:[%s1198_s30 + $0x58] sm:$0xf] %v271_v24  ;;  %v275_v26 = vld [vmem:[%s1193_s8 + $0xc0] sm:$0xf] }
  0x37   : > { %274 = vst [vmem:[%s1198_s30 + $0x5c] sm:$0xf] %v273_v25  ;;  %v277_v27 = vld [vmem:[%s1193_s8 + $0xc8] sm:$0xf]  ;;  %v279_v28 = vld [vmem:[%s1193_s8 + $0xd0] sm:$0xf] }
  0x38   : > { %276 = vst [vmem:[%s1198_s30 + $0x60] sm:$0xf] %v275_v26  ;;  %278 = vst [vmem:[%s1198_s30 + $0x64] sm:$0xf] %v277_v27  ;;  %v281_v29 = vld [vmem:[%s1193_s8 + $0xd8] sm:$0xf] }
  0x39   : > { %280 = vst [vmem:[%s1198_s30 + $0x68] sm:$0xf] %v279_v28  ;;  %v283_v30 = vld [vmem:[%s1193_s8 + $0xe0] sm:$0xf]  ;;  %v285_v31 = vld [vmem:[%s1193_s8 + $0xe8] sm:$0xf] }
  0x3a   : > { %282 = vst [vmem:[%s1198_s30 + $0x6c] sm:$0xf] %v281_v29  ;;  %284 = vst [vmem:[%s1198_s30 + $0x70] sm:$0xf] %v283_v30  ;;  %v287_v32 = vld [vmem:[%s1193_s8 + $0xf0] sm:$0xf] }
  0x3b   : > { %286 = vst [vmem:[%s1198_s30 + $0x74] sm:$0xf] %v285_v31  ;;  %v289_v33 = vld [vmem:[%s1193_s8 + $0xf8] sm:$0xf]  ;;  %288 = vst [vmem:[%s1198_s30 + $0x78] sm:$0xf] %v287_v32 }
  0x3c   : > { %290 = vst [vmem:[%s1198_s30 + $0x7c] sm:$0xf] %v289_v33 }
  0x3d PF: > { %p806_p0 = scmp.ge.s32.totalorder %s1061_s19, 1  ;;  %p377_p1 = scmp.lt.s32.totalorder %s1061_s19, 5 }
  0x3f   : > { %p378_p2 = pnand %p806_p0, %p377_p1 }
  0x40   : > { %s384_s21 = sand.u32 (!%p378_p2), 1, %s1037_s13   ;;  %s391_s22 = sand.u32 (!%p378_p2), 1, %s1029_s11  }
  0x41   : > { %381 = sbr.rel (%p378_p2) target bundleno = 333 (0x14d), region = 99  ;;  %s1265_s23 = sshll.u32 (!%p378_p2), %s384_s21, 4 }
  0x42   : > { %s808_s26 = sshll.u32 (!%p378_p2), %s391_s22, 7  ;;  %s412_s28 = sand.u32 (!%p378_p2), 1, %s1021_s9  }
  0x43   : > { %s809_s20 = sshll.u32 (!%p378_p2), %s412_s28, 3  ;;  %s386_s25 = scalar_lea.vmem (!%p378_p2), [#allocation3], %s1265_s23 }
  0x44   : > { %s1269_s29 = scalar_lea.vmem (!%p378_p2), [#allocation4], %s808_s26  ;;  %s1271_s3 = scalar_lea.vmem (!%p378_p2), [#allocation5], %s809_s20 }
  0x45   : > { %p810_p3 = scmp.ne.s32.totalorder (!%p378_p2), %s1045_s15, 0 }
  0x47   : > { %425 = sbr.rel (%p810_p3) target bundleno = 78 (0x4e), region = 111 }
  0x4c   : > { %v1063_v34 = vmov 0.0  }
  0x4d   : > { %426 = vst [vmem:[#allocation2] sm:$0xff] %v1063_v34  ;;  %427 = vst [vmem:[#allocation2 + $0x8] sm:$0xff] %v1063_v34 }
  0x4e PF: > { %v956_v35 = vld [vmem:[%s1269_s29 + $0x78] sm:$0xff]   ;;  %v958_v37 = vld [vmem:[%s1269_s29 + $0x70] sm:$0xff]   ;;  %v960_v39 = vld [vmem:[%s1269_s29 + $0x68] sm:$0xff]   ;;  %p829_p4 = scmp.ne.s32.totalorder %s1045_s15, 1 }
  0x4f   : > { %v957_v36 = vld [vmem:[%s1269_s29 + $0x38] sm:$0xff]   ;;  %845 = vmatprep.subr.bf16.mxu0 %v956_v35  ;;  %v959_v38 = vld [vmem:[%s1269_s29 + $0x30] sm:$0xff]   ;;  %v961_v40 = vld [vmem:[%s1269_s29 + $0x28] sm:$0xff]  }
  0x50   : > { %846 = vmatpush3.bf16.msra.mxu0 %v957_v36  ;;  %v962_v41 = vld [vmem:[%s1269_s29 + $0x60] sm:$0xff]   ;;  %v964_v43 = vld [vmem:[%s1269_s29 + $0x58] sm:$0xff]   ;;  %v966_v45 = vld [vmem:[%s1269_s29 + $0x50] sm:$0xff]  }
  0x51   : > { %847 = vmatprep.subr.bf16.mxu0 %v958_v37  ;;  %v963_v42 = vld [vmem:[%s1269_s29 + $0x20] sm:$0xff]   ;;  %v965_v44 = vld [vmem:[%s1269_s29 + $0x18] sm:$0xff]   ;;  %v967_v47 = vld [vmem:[%s1269_s29 + $0x10] sm:$0xff]  }
  0x52   : > { %v974_v46 = vld [vmem:[%s386_s25 + $0x4] ss:$8 sps:$4 sm:$0xff]   ;;  %v972_v52 = vld [vmem:[%s386_s25] ss:$8 sps:$4 sm:$0xff]  }
  0x53   : > { %602 = vmatprep.mubr.bf16.mxu0 %v974_v46  ;;  %v968_v48 = vld [vmem:[%s1269_s29 + $0x48] sm:$0xff]   ;;  %v970_v50 = vld [vmem:[%s1269_s29 + $0x40] sm:$0xff]  }
  0x54   : > { %848 = vmatpush3.bf16.msra.mxu0 %v959_v38  ;;  %v969_v49 = vld [vmem:[%s1269_s29 + $0x8] sm:$0xff]   ;;  %v971_v51 = vld [vmem:[%s1269_s29] sm:$0xff]   ;;  %v428_v54 = vld [vmem:[#allocation2] sm:$0xff] }
  0x55   : > { %849 = vmatprep.subr.bf16.mxu0 %v960_v39  ;;  %v429_v59 = vld [vmem:[#allocation2 + $0x8] sm:$0xff] }
  0x58   : > { %850 = vmatpush3.bf16.msra.mxu0 %v961_v40 }
  0x59   : > { %851 = vmatprep.subr.bf16.mxu0 %v962_v41 }
  0x5c   : > { %852 = vmatpush3.bf16.msra.mxu0 %v963_v42 }
  0x5d   : > { %853 = vmatprep.subr.bf16.mxu0 %v964_v43 }
  0x60   : > { %854 = vmatpush3.bf16.msra.mxu0 %v965_v44 }
  0x61   : > { %855 = vmatprep.subr.bf16.mxu0 %v966_v45 }
  0x64   : > { %856 = vmatpush3.bf16.msra.mxu0 %v967_v47 }
  0x65   : > { %857 = vmatprep.subr.bf16.mxu0 %v968_v48 }
  0x68   : > { %858 = vmatpush3.bf16.msra.mxu0 %v969_v49 }
  0x69   : > { %859 = vmatprep.subr.bf16.mxu0 %v970_v50 }
  0x6c   : > { %860 = vmatpush3.bf16.msra.mxu0 %v971_v51 }
  0x6f   : > { %603 = vmatmul.mubr.bf16.vlgmr.msra.gmra.mxu0 %v972_v52 }
 0x12f   : > { %v861_v53 = vpop.f32.mrf.mxu0 }
 0x131   : > { %v862_v55 = vpop.f32.mrf.mxu0 }
 0x132   : > { %v863_v56 = vadd.f32 %v862_v55, %v861_v53 }
 0x133   : > { %v864_v57 = vpop.f32.mrf.mxu0 }
 0x134   : > { %v611_v58 = vadd.f32 %v863_v56, %v428_v54 }
 0x135   : > { %v865_v60 = vpop.f32.mrf.mxu0 }
 0x136   : > { %613 = vst [vmem:[#allocation2] sm:$0xff] %v611_v58  ;;  %v866_v61 = vadd.f32 %v865_v60, %v864_v57  ;;  %618 = sbr.rel (%p829_p4) target bundleno = 325 (0x145), region = 115 }
 0x138   : > { %v612_v62 = vadd.f32 %v866_v61, %v429_v59 }
 0x13a   : > { %614 = vst [vmem:[#allocation2 + $0x8] sm:$0xff] %v612_v62 }
 0x13d   : > { %v619_v63 = vld [vmem:[#allocation2] sm:$0xff] }
 0x141   : > { %v620_v0 = vld [vmem:[#allocation2 + $0x8] sm:$0xff] }
 0x142   : > { %v843_v1 = vpack.c.bf16 %v620_v0, %v619_v63 }
 0x144   : > { %844 = vst [vmem:[%s1271_s3] sm:$0xff] %v843_v1  }
 0x145 PF: > { %637 = sbr.rel (!%p1173_p12) target bundleno = 333 (0x14d), region = 119  ;;  %s833_s9 = sshll.u32 (%p1173_p12), %s1049_s16, 2 }
 0x146   : > { %s644_s15 = scalar_lea.vmem (%p1173_p12), %s1339_s2, %s833_s9 }
 0x14b   : > { %v661_v2 = vld [vmem:[%s1271_s3] sm:$0xf]  ;;  %v663_v3 = vld [vmem:[%s1271_s3 + $0x4] sm:$0xf] }
 0x14c   : > { %662 = vst [vmem:[%s644_s15] sm:$0xf] %v661_v2  ;;  %664 = vst [vmem:[%s644_s15 + $0x8] sm:$0xf] %v663_v3 }
 0x14d PF: > { %s12_s19 = sadd.s32 1, %s1061_s19   ;;  %s1347_s6 = sld [smem:[#allocation6_spill]] }
 0x14e   : > { %p9_p5 = scmp.ge.s32.totalorder %s12_s19, 6   ;;  %s1348_s7 = sld [smem:[#allocation7_spill]] }
 0x14f   : > { %s1349_s9 = smov %s1025_s10  ;;  %s1350_s10 = smov %s1171_s5 }
 0x150   : > { %s1351_s11 = smov %s1033_s12  ;;  %s1352_s12 = smov %s1168_s4 }
 0x151   : > { %s1353_s13 = smov %s1041_s14  ;;  %s1354_s14 = smov %s1154_s27 }
 0x152   : > { %s1355_s15 = smov %s1053_s17  ;;  %s1356_s16 = smov %s1057_s18 }
 0x153   : > { %s1357_s17 = smov %s1347_s6  ;;  %11 = sbr.rel (!%p9_p5) target bundleno = 6 (0x6), region = 199 }
 0x154   : > { %s1358_s18 = smov %s1348_s7 }

// kernel: resnest_forward.78
= control target key start
LH: loop header
LB: loop body
LE: loop exit
PB: predicated region body
PF: predicated region fallthrough
CT: control target
= control target key end

     0   :  { %v31_v0 = vlaneseq  ;;  %s194_s0 = inlined_call_operand.vmem [shape: bf16[16,256], index: 0, kind: input, shape index: {}]   ;;  %s195_s1 = inlined_call_operand.vmem [shape: bf16[16,256], index: 1, kind: input, shape index: {}]   ;;  %s196_s2 = inlined_call_operand.vmem [shape: f32[1,256], index: 2, kind: input, shape index: {}]   ;;  %s197_s3 = inlined_call_operand.vmem [shape: f32[1,256], index: 3, kind: input, shape index: {}]   ;;  %s198_s4 = inlined_call_operand.vmem [shape: f32[1,256], index: 4, kind: input, shape index: {}]   ;;  %s199_s5 = inlined_call_operand.vmem [shape: f32[1,256], index: 5, kind: input, shape index: {}]   ;;  %s200_s6 = inlined_call_operand.vmem [shape: bf16[16,256], index: 6, kind: output, shape index: {}]  }
   0x1   :  { %v23_v1 = vld [vmem:[%s194_s0] sm:$0xff]  ;;  %v24_v8 = vld [vmem:[%s194_s0 + $0x8] sm:$0xff] }
   0x2   :  { %v29_v2 = vld [vmem:[%s196_s2] sm:$0x3]  ;;  %v32_v3 = vshrl.u32 %v31_v0, 7  ;;  %v25_v5 = vunpack.c.l.bf16 %v23_v1  ;;  %v26_v6 = vunpack.c.h.bf16 %v23_v1  ;;  %v62_v9 = vld [vmem:[%s195_s1 + $0x8] sm:$0xff]  ;;  %v27_v14 = vunpack.c.l.bf16 %v24_v8 }
   0x3   :  { %v61_v4 = vld [vmem:[%s195_s1] sm:$0xff]  ;;  %v28_v15 = vunpack.c.h.bf16 %v24_v8  ;;  %v65_v18 = vunpack.c.l.bf16 %v62_v9  ;;  %v66_v19 = vunpack.c.h.bf16 %v62_v9 }
   0x4   :  { %v45_v7 = vld [vmem:[%s197_s3] sm:$0x3]  ;;  %v33_v10 = vsub.s32 0, %v32_v3  ;;  %v37_v11 = vsub.s32 1, %v32_v3  ;;  %v63_v16 = vunpack.c.l.bf16 %v61_v4  ;;  %v64_v17 = vunpack.c.h.bf16 %v61_v4 }
   0x5   :  { %v67_v12 = vld [vmem:[%s198_s4] sm:$0x3] }
   0x6   :  { %v87_v13 = vld [vmem:[%s199_s5] sm:$0x3]  ;;  %v34_v20 = vrot.slane %v29_v2, %v33_v10  ;;  %v38_v21 = vrot.slane %v29_v2, %v37_v11  ;;  %v50_v22 = vrot.slane %v45_v7, %v33_v10  ;;  %v54_v23 = vrot.slane %v45_v7, %v37_v11 }
   0x7   :  { %v72_v24 = vrot.slane %v67_v12, %v33_v10  ;;  %v76_v25 = vrot.slane %v67_v12, %v37_v11  ;;  %v92_v26 = vrot.slane %v87_v13, %v33_v10  ;;  %v96_v27 = vrot.slane %v87_v13, %v37_v11 }
   0x8   :  { %v41_v28 = vmul.f32 %v34_v20, %v25_v5  ;;  %v42_v29 = vmul.f32 %v38_v21, %v26_v6  ;;  %v43_v30 = vmul.f32 %v34_v20, %v27_v14  ;;  %v44_v31 = vmul.f32 %v38_v21, %v28_v15 }
   0x9   :  { %v79_v32 = vmul.f32 %v72_v24, %v63_v16  ;;  %v80_v33 = vmul.f32 %v76_v25, %v64_v17  ;;  %v81_v34 = vmul.f32 %v72_v24, %v65_v18  ;;  %v82_v35 = vmul.f32 %v76_v25, %v66_v19 }
   0xa   :  { %v57_v36 = vadd.f32 %v50_v22, %v41_v28  ;;  %v58_v37 = vadd.f32 %v54_v23, %v42_v29  ;;  %v59_v38 = vadd.f32 %v50_v22, %v43_v30  ;;  %v60_v39 = vadd.f32 %v54_v23, %v44_v31 }
   0xc   :  { %v83_v40 = vadd.f32 %v79_v32, %v57_v36  ;;  %v84_v41 = vadd.f32 %v80_v33, %v58_v37  ;;  %v85_v42 = vadd.f32 %v81_v34, %v59_v38  ;;  %v86_v43 = vadd.f32 %v82_v35, %v60_v39 }
   0xe   :  { %v99_v44 = vadd.f32 %v92_v26, %v83_v40  ;;  %v100_v45 = vadd.f32 %v96_v27, %v84_v41  ;;  %v101_v46 = vadd.f32 %v92_v26, %v85_v42  ;;  %v102_v47 = vadd.f32 %v96_v27, %v86_v43 }
  0x10   :  { %v103_v48 = vmax.f32 %v99_v44, 0.0  ;;  %v104_v49 = vmax.f32 %v100_v45, 0.0  ;;  %v105_v50 = vmax.f32 %v101_v46, 0.0  ;;  %v106_v51 = vmax.f32 %v102_v47, 0.0 }
  0x12   :  { %v127_v52 = vpack.c.bf16 %v104_v49, %v103_v48  ;;  %v128_v53 = vpack.c.bf16 %v106_v51, %v105_v50 }
  0x14   :  { %119 = vst [vmem:[%s200_s6] sm:$0xff] %v127_v52  ;;  %120 = vst [vmem:[%s200_s6 + $0x8] sm:$0xff] %v128_v53 }

// kernel: resnest_forward.79
= control target key start
LH: loop header
LB: loop body
LE: loop exit
PB: predicated region body
PF: predicated region fallthrough
CT: control target
= control target key end

     0   :  { %s986_s9 = smov 0   ;;  %s988_s10 = smov 0   ;;  %s1170_s0 = inlined_call_operand.vmem [shape: bf16[1,16,256], index: 0, kind: input, shape index: {}]   ;;  %s1171_s1 = inlined_call_operand.vmem [shape: bf16[1,256,512], index: 1, kind: input, shape index: {}]   ;;  %s1172_s2 = inlined_call_operand.vmem [shape: bf16[16,512], index: 2, kind: output, shape index: {}]  }
   0x1   :  { %s990_s11 = smov 0   ;;  %s992_s12 = smov 0  }
   0x2   :  { %s994_s13 = smov 0  }
   0x3 LB: > { %s24_s14 = sadd.s32 1, %s965_s12  ;;  %s784_s15 = sadd.s32 4294967295, %s969_s13   ;;  %s969_s13 = sphi %s994_s13, %s12_s13   ;;  %s965_s12 = sphi %s992_s12, %s1177_s12   ;;  %s961_s11 = sphi %s990_s11, %s1176_s11   ;;  %s957_s10 = sphi %s988_s10, %s1175_s10   ;;  %s953_s9 = sphi %s986_s9, %s1174_s9  }
   0x4   : > { %p25_p0 = scmp.ge.s32.totalorder %s24_s14, 2  ;;  %p75_p1 = scmp.ne.s32.totalorder %s957_s10, %s953_s9 }
   0x5   : > { %p76_p2 = scmp.eq.s32.totalorder %s969_s13, 0  ;;  %p111_p4 = scmp.eq.s32.totalorder %s784_s15, 1 }
   0x6   : > { %s1179_s14 = smov (%p25_p0, %s24_s14), 0  ;;  %s68_s17 = sadd.s32 1, %s957_s10 }
   0x7   : > { %p77_p3 = por %p76_p2, %p75_p1  ;;  %s64_s16 = ssub.s32 %s965_s12, %s1179_s14 }
   0x8   : > { %p66_p5 = scmp.eq.s32.totalorder %s64_s16, 0  ;;  %p1021_p6 = por %p111_p4, %p75_p1 }
   0x9   : > { %p788_p7 = scmp.ge.s32.totalorder %s969_s13, 2 }
   0xa   : > { %s1026_s19 = scalar_select %p66_p5, %s957_s10, %s68_s17  }
   0xb   : > { %147 = sbr.rel (%p788_p7) target bundleno = 36 (0x24), region = 20 }
  0x10   : > { %150 = sbr.rel (!%p77_p3) target bundleno = 36 (0x24), region = 24  ;;  %s152_s20 = sand.u32 (%p77_p3), 1, %s957_s10  }
  0x11   : > { %s836_s21 = sshll.u32 (%p77_p3), %s965_s12, 3  ;;  %s789_s22 = sshll.u32 (%p77_p3), %s152_s20, 8 }
  0x12   : > { %s1034_s25 = scalar_lea.vmem (%p77_p3), %s1171_s1, %s836_s21  ;;  %s1039_s26 = scalar_lea.vmem (%p77_p3), [#allocation2], %s789_s22 }
  0x13   : > { %v250_v0 = vld [vmem:[%s1034_s25] sm:$0xff] (%p77_p3)  ;;  %v252_v1 = vld [vmem:[%s1034_s25 + $0x10] sm:$0xff] (%p77_p3) }
  0x14   : > { %v254_v2 = vld [vmem:[%s1034_s25 + $0x20] sm:$0xff] (%p77_p3)  ;;  %251 = vst [vmem:[%s1039_s26] sm:$0xff] (%p77_p3), %v250_v0  ;;  %253 = vst [vmem:[%s1039_s26 + $0x8] sm:$0xff] (%p77_p3), %v252_v1  ;;  %v256_v3 = vld [vmem:[%s1034_s25 + $0x30] sm:$0xff] (%p77_p3) }
  0x15   : > { %255 = vst [vmem:[%s1039_s26 + $0x10] sm:$0xff] %v254_v2  ;;  %v258_v4 = vld [vmem:[%s1034_s25 + $0x40] sm:$0xff]  ;;  %v260_v5 = vld [vmem:[%s1034_s25 + $0x50] sm:$0xff]  ;;  %257 = vst [vmem:[%s1039_s26 + $0x18] sm:$0xff] %v256_v3 }
  0x16   : > { %259 = vst [vmem:[%s1039_s26 + $0x20] sm:$0xff] %v258_v4  ;;  %261 = vst [vmem:[%s1039_s26 + $0x28] sm:$0xff] %v260_v5  ;;  %v262_v6 = vld [vmem:[%s1034_s25 + $0x60] sm:$0xff]  ;;  %v264_v7 = vld [vmem:[%s1034_s25 + $0x70] sm:$0xff] }
  0x17   : > { %v266_v8 = vld [vmem:[%s1034_s25 + $0x80] sm:$0xff]  ;;  %263 = vst [vmem:[%s1039_s26 + $0x30] sm:$0xff] %v262_v6  ;;  %265 = vst [vmem:[%s1039_s26 + $0x38] sm:$0xff] %v264_v7  ;;  %v268_v9 = vld [vmem:[%s1034_s25 + $0x90] sm:$0xff] }
  0x18   : > { %267 = vst [vmem:[%s1039_s26 + $0x40] sm:$0xff] %v266_v8  ;;  %v270_v10 = vld [vmem:[%s1034_s25 + $0xa0] sm:$0xff]  ;;  %v272_v11 = vld [vmem:[%s1034_s25 + $0xb0] sm:$0xff]  ;;  %269 = vst [vmem:[%s1039_s26 + $0x48] sm:$0xff] %v268_v9 }
  0x19   : > { %271 = vst [vmem:[%s1039_s26 + $0x50] sm:$0xff] %v270_v10  ;;  %273 = vst [vmem:[%s1039_s26 + $0x58] sm:$0xff] %v272_v11  ;;  %v274_v12 = vld [vmem:[%s1034_s25 + $0xc0] sm:$0xff]  ;;  %v276_v13 = vld [vmem:[%s1034_s25 + $0xd0] sm:$0xff] }
  0x1a   : > { %v278_v14 = vld [vmem:[%s1034_s25 + $0xe0] sm:$0xff]  ;;  %275 = vst [vmem:[%s1039_s26 + $0x60] sm:$0xff] %v274_v12  ;;  %277 = vst [vmem:[%s1039_s26 + $0x68] sm:$0xff] %v276_v13  ;;  %v280_v15 = vld [vmem:[%s1034_s25 + $0xf0] sm:$0xff] }
  0x1b   : > { %279 = vst [vmem:[%s1039_s26 + $0x70] sm:$0xff] %v278_v14  ;;  %v282_v16 = vld [vmem:[%s1034_s25 + $0x100] sm:$0xff]  ;;  %v284_v17 = vld [vmem:[%s1034_s25 + $0x110] sm:$0xff]  ;;  %281 = vst [vmem:[%s1039_s26 + $0x78] sm:$0xff] %v280_v15 }
  0x1c   : > { %283 = vst [vmem:[%s1039_s26 + $0x80] sm:$0xff] %v282_v16  ;;  %285 = vst [vmem:[%s1039_s26 + $0x88] sm:$0xff] %v284_v17  ;;  %v286_v18 = vld [vmem:[%s1034_s25 + $0x120] sm:$0xff]  ;;  %v288_v19 = vld [vmem:[%s1034_s25 + $0x130] sm:$0xff] }
  0x1d   : > { %v290_v20 = vld [vmem:[%s1034_s25 + $0x140] sm:$0xff]  ;;  %287 = vst [vmem:[%s1039_s26 + $0x90] sm:$0xff] %v286_v18  ;;  %289 = vst [vmem:[%s1039_s26 + $0x98] sm:$0xff] %v288_v19  ;;  %v292_v21 = vld [vmem:[%s1034_s25 + $0x150] sm:$0xff] }
  0x1e   : > { %291 = vst [vmem:[%s1039_s26 + $0xa0] sm:$0xff] %v290_v20  ;;  %v294_v22 = vld [vmem:[%s1034_s25 + $0x160] sm:$0xff]  ;;  %v296_v23 = vld [vmem:[%s1034_s25 + $0x170] sm:$0xff]  ;;  %293 = vst [vmem:[%s1039_s26 + $0xa8] sm:$0xff] %v292_v21 }
  0x1f   : > { %295 = vst [vmem:[%s1039_s26 + $0xb0] sm:$0xff] %v294_v22  ;;  %297 = vst [vmem:[%s1039_s26 + $0xb8] sm:$0xff] %v296_v23  ;;  %v298_v24 = vld [vmem:[%s1034_s25 + $0x180] sm:$0xff]  ;;  %v300_v25 = vld [vmem:[%s1034_s25 + $0x190] sm:$0xff] }
  0x20   : > { %v302_v26 = vld [vmem:[%s1034_s25 + $0x1a0] sm:$0xff]  ;;  %299 = vst [vmem:[%s1039_s26 + $0xc0] sm:$0xff] %v298_v24  ;;  %301 = vst [vmem:[%s1039_s26 + $0xc8] sm:$0xff] %v300_v25  ;;  %v304_v27 = vld [vmem:[%s1034_s25 + $0x1b0] sm:$0xff] }
  0x21   : > { %303 = vst [vmem:[%s1039_s26 + $0xd0] sm:$0xff] %v302_v26  ;;  %v306_v28 = vld [vmem:[%s1034_s25 + $0x1c0] sm:$0xff]  ;;  %v308_v29 = vld [vmem:[%s1034_s25 + $0x1d0] sm:$0xff]  ;;  %305 = vst [vmem:[%s1039_s26 + $0xd8] sm:$0xff] %v304_v27 }
  0x22   : > { %307 = vst [vmem:[%s1039_s26 + $0xe0] sm:$0xff] %v306_v28  ;;  %309 = vst [vmem:[%s1039_s26 + $0xe8] sm:$0xff] %v308_v29  ;;  %v310_v30 = vld [vmem:[%s1034_s25 + $0x1e0] sm:$0xff]  ;;  %v312_v31 = vld [vmem:[%s1034_s25 + $0x1f0] sm:$0xff] }
  0x23   : > { %311 = vst [vmem:[%s1039_s26 + $0xf0] sm:$0xff] %v310_v30  ;;  %313 = vst [vmem:[%s1039_s26 + $0xf8] sm:$0xff] %v312_v31 }
  0x24 PF: > { %p792_p8 = scmp.ge.s32.totalorder %s969_s13, 1  ;;  %p318_p9 = scmp.lt.s32.totalorder %s969_s13, 3 }
  0x26   : > { %p319_p10 = pnand %p792_p8, %p318_p9 }
  0x27   : > { %s325_s27 = sand.u32 (!%p319_p10), 1, %s953_s9  }
  0x28   : > { %322 = sbr.rel (%p319_p10) target bundleno = 320 (0x140), region = 62  ;;  %s793_s28 = sshll.u32 (!%p319_p10), %s325_s27, 8 }
  0x29   : > { %s1110_s3 = scalar_lea.vmem (!%p319_p10), [#allocation2], %s793_s28  ;;  %s794_s6 = sshll.u32 (!%p319_p10), %s325_s27, 4 }
  0x2a   : > { %s354_s7 = scalar_lea.vmem (!%p319_p10), [#allocation3], %s794_s6 }
  0x2d   : > { %v930_v32 = vld [vmem:[%s1170_s0 + $0x4] ss:$8 sps:$4 sm:$0xff]   ;;  %v880_v33 = vld [vmem:[%s1110_s3 + $0x74] ss:$8 sps:$4 sm:$0xff]   ;;  %v882_v34 = vld [vmem:[%s1110_s3 + $0x70] ss:$8 sps:$4 sm:$0xff]  }
  0x2e   : > { %607 = vmatprep.mubr.bf16.mxu0 %v930_v32  ;;  %575 = vmatprep.subr.bf16.mxu0 %v880_v33  ;;  %v883_v35 = vld [vmem:[%s1110_s3 + $0x64] ss:$8 sps:$4 sm:$0xff]   ;;  %v885_v36 = vld [vmem:[%s1110_s3 + $0x60] ss:$8 sps:$4 sm:$0xff]   ;;  %v886_v37 = vld [vmem:[%s1110_s3 + $0x54] ss:$8 sps:$4 sm:$0xff]  }
  0x2f   : > { %576 = vmatpush1.bf16.msra.mxu0 %v882_v34  ;;  %v888_v38 = vld [vmem:[%s1110_s3 + $0x50] ss:$8 sps:$4 sm:$0xff]   ;;  %v889_v39 = vld [vmem:[%s1110_s3 + $0x44] ss:$8 sps:$4 sm:$0xff]   ;;  %v891_v40 = vld [vmem:[%s1110_s3 + $0x40] ss:$8 sps:$4 sm:$0xff]  }
  0x30   : > { %577 = vmatprep.subr.bf16.mxu0 %v883_v35  ;;  %v892_v41 = vld [vmem:[%s1110_s3 + $0x34] ss:$8 sps:$4 sm:$0xff]   ;;  %v894_v42 = vld [vmem:[%s1110_s3 + $0x30] ss:$8 sps:$4 sm:$0xff]   ;;  %v895_v43 = vld [vmem:[%s1110_s3 + $0x24] ss:$8 sps:$4 sm:$0xff]  }
  0x31   : > { %v897_v44 = vld [vmem:[%s1110_s3 + $0x20] ss:$8 sps:$4 sm:$0xff]   ;;  %v898_v45 = vld [vmem:[%s1110_s3 + $0x14] ss:$8 sps:$4 sm:$0xff]   ;;  %v900_v46 = vld [vmem:[%s1110_s3 + $0x10] ss:$8 sps:$4 sm:$0xff]  }
  0x32   : > { %v901_v47 = vld [vmem:[%s1110_s3 + $0x4] ss:$8 sps:$4 sm:$0xff]   ;;  %v903_v48 = vld [vmem:[%s1110_s3] ss:$8 sps:$4 sm:$0xff]   ;;  %v904_v49 = vld [vmem:[%s1110_s3 + $0xf4] ss:$8 sps:$4 sm:$0xff]  }
  0x33   : > { %578 = vmatpush1.bf16.msra.mxu0 %v885_v36  ;;  %v906_v50 = vld [vmem:[%s1110_s3 + $0xf0] ss:$8 sps:$4 sm:$0xff]   ;;  %v907_v51 = vld [vmem:[%s1110_s3 + $0xe4] ss:$8 sps:$4 sm:$0xff]   ;;  %v909_v52 = vld [vmem:[%s1110_s3 + $0xe0] ss:$8 sps:$4 sm:$0xff]  }
  0x34   : > { %579 = vmatprep.subr.bf16.mxu0 %v886_v37  ;;  %v910_v53 = vld [vmem:[%s1110_s3 + $0xd4] ss:$8 sps:$4 sm:$0xff]   ;;  %v912_v54 = vld [vmem:[%s1110_s3 + $0xd0] ss:$8 sps:$4 sm:$0xff]   ;;  %v913_v55 = vld [vmem:[%s1110_s3 + $0xc4] ss:$8 sps:$4 sm:$0xff]  }
  0x35   : > { %v915_v56 = vld [vmem:[%s1110_s3 + $0xc0] ss:$8 sps:$4 sm:$0xff]   ;;  %v916_v57 = vld [vmem:[%s1110_s3 + $0xb4] ss:$8 sps:$4 sm:$0xff]   ;;  %v918_v58 = vld [vmem:[%s1110_s3 + $0xb0] ss:$8 sps:$4 sm:$0xff]  }
  0x36   : > { %v919_v59 = vld [vmem:[%s1110_s3 + $0xa4] ss:$8 sps:$4 sm:$0xff]   ;;  %v921_v60 = vld [vmem:[%s1110_s3 + $0xa0] ss:$8 sps:$4 sm:$0xff]   ;;  %v922_v61 = vld [vmem:[%s1110_s3 + $0x94] ss:$8 sps:$4 sm:$0xff]  }
  0x37   : > { %580 = vmatpush1.bf16.msra.mxu0 %v888_v38  ;;  %v924_v62 = vld [vmem:[%s1110_s3 + $0x90] ss:$8 sps:$4 sm:$0xff]   ;;  %v925_v63 = vld [vmem:[%s1110_s3 + $0x84] ss:$8 sps:$4 sm:$0xff]   ;;  %v927_v0 = vld [vmem:[%s1110_s3 + $0x80] ss:$8 sps:$4 sm:$0xff]  }
  0x38   : > { %581 = vmatprep.subr.bf16.mxu0 %v889_v39  ;;  %v928_v1 = vld [vmem:[%s1170_s0] ss:$8 sps:$4 sm:$0xff]   ;;  %s839_s8 = sshll.u32 (%p1021_p6), %s961_s11, 3 }
  0x39   : > { %s646_s9 = scalar_lea.vmem (%p1021_p6), %s1172_s2, %s839_s8 }
  0x3b   : > { %582 = vmatpush1.bf16.msra.mxu0 %v891_v40 }
  0x3c   : > { %583 = vmatprep.subr.bf16.mxu0 %v892_v41 }
  0x3f   : > { %584 = vmatpush1.bf16.msra.mxu0 %v894_v42 }
  0x40   : > { %585 = vmatprep.subr.bf16.mxu0 %v895_v43 }
  0x43   : > { %586 = vmatpush1.bf16.msra.mxu0 %v897_v44 }
  0x44   : > { %587 = vmatprep.subr.bf16.mxu0 %v898_v45 }
  0x47   : > { %588 = vmatpush1.bf16.msra.mxu0 %v900_v46 }
  0x48   : > { %589 = vmatprep.subr.bf16.mxu0 %v901_v47 }
  0x4b   : > { %590 = vmatpush1.bf16.msra.mxu0 %v903_v48 }
  0x4c   : > { %591 = vmatprep.subr.bf16.mxu0 %v904_v49 }
  0x4f   : > { %592 = vmatpush2.bf16.msra.mxu0 %v906_v50 }
  0x50   : > { %593 = vmatprep.subr.bf16.mxu0 %v907_v51 }
  0x53   : > { %594 = vmatpush2.bf16.msra.mxu0 %v909_v52 }
  0x54   : > { %595 = vmatprep.subr.bf16.mxu0 %v910_v53 }
  0x57   : > { %596 = vmatpush2.bf16.msra.mxu0 %v912_v54 }
  0x58   : > { %597 = vmatprep.subr.bf16.mxu0 %v913_v55 }
  0x5b   : > { %598 = vmatpush2.bf16.msra.mxu0 %v915_v56 }
  0x5c   : > { %599 = vmatprep.subr.bf16.mxu0 %v916_v57 }
  0x5f   : > { %600 = vmatpush2.bf16.msra.mxu0 %v918_v58 }
  0x60   : > { %601 = vmatprep.subr.bf16.mxu0 %v919_v59 }
  0x63   : > { %602 = vmatpush2.bf16.msra.mxu0 %v921_v60 }
  0x64   : > { %603 = vmatprep.subr.bf16.mxu0 %v922_v61 }
  0x67   : > { %604 = vmatpush2.bf16.msra.mxu0 %v924_v62 }
  0x68   : > { %605 = vmatprep.subr.bf16.mxu0 %v925_v63 }
  0x6b   : > { %606 = vmatpush2.bf16.msra.mxu0 %v927_v0 }
  0x6e   : > { %608 = vmatmul.mubr.bf16.vlgmr.msra.gmra.mxu0 %v928_v1 }
 0x12e   : > { %v609_v2 = vpop.f32.mrf.mxu0 }
 0x130   : > { %v611_v3 = vpop.f32.mrf.mxu0 }
 0x131   : > { %v837_v4 = vpack.c.bf16 %v611_v3, %v609_v2 }
 0x132   : > { %v613_v5 = vpop.f32.mrf.mxu0 }
 0x133   : > { %630 = vst [vmem:[%s354_s7] sm:$0xff] %v837_v4  ;;  %638 = sbr.rel (!%p1021_p6) target bundleno = 320 (0x140), region = 70 }
 0x134   : > { %v615_v6 = vpop.f32.mrf.mxu0 }
 0x135   : > { %v838_v7 = vpack.c.bf16 %v615_v6, %v613_v5 }
 0x137   : > { %631 = vst [vmem:[%s354_s7 + $0x8] sm:$0xff] %v838_v7 }
 0x13a   : > { %v677_v8 = vld [vmem:[%s354_s7] sm:$0xff] }
 0x13b   : > { %678 = vst [vmem:[%s646_s9] sm:$0xff] %v677_v8 }
 0x13e   : > { %v679_v9 = vld [vmem:[%s354_s7 + $0x8] sm:$0xff] }
 0x13f   : > { %680 = vst [vmem:[%s646_s9 + $0x10] sm:$0xff] %v679_v9 }
 0x140 PF: > { %s12_s13 = sadd.s32 1, %s969_s13   ;;  %s1174_s9 = smov %s957_s10 }
 0x141   : > { %p9_p11 = scmp.ge.s32.totalorder %s12_s13, 4   ;;  %s1175_s10 = smov %s1026_s19 }
 0x142   : > { %s1176_s11 = smov %s965_s12  ;;  %s1177_s12 = smov %s1179_s14 }
 0x143   :  { %11 = sbr.rel (!%p9_p11) target bundleno = 3 (0x3), region = 142 }

// kernel: resnest_forward.91
= control target key start
LH: loop header
LB: loop body
LE: loop exit
PB: predicated region body
PF: predicated region fallthrough
CT: control target
= control target key end

     0   :  { %s986_s9 = smov 0   ;;  %s988_s10 = smov 0   ;;  %s1170_s0 = inlined_call_operand.vmem [shape: bf16[1,16,256], index: 0, kind: input, shape index: {}]   ;;  %s1171_s1 = inlined_call_operand.vmem [shape: bf16[1,256,1024], index: 1, kind: input, shape index: {}]   ;;  %s1172_s2 = inlined_call_operand.vmem [shape: bf16[16,1024], index: 2, kind: output, shape index: {}]  }
   0x1   :  { %s990_s11 = smov 0   ;;  %s992_s12 = smov 0  }
   0x2   :  { %s994_s13 = smov 0  }
   0x3 LB: > { %s24_s14 = sadd.s32 1, %s965_s12  ;;  %s784_s15 = sadd.s32 4294967295, %s969_s13   ;;  %s969_s13 = sphi %s994_s13, %s12_s13   ;;  %s965_s12 = sphi %s992_s12, %s1177_s12   ;;  %s961_s11 = sphi %s990_s11, %s1176_s11   ;;  %s957_s10 = sphi %s988_s10, %s1175_s10   ;;  %s953_s9 = sphi %s986_s9, %s1174_s9  }
   0x4   : > { %p25_p0 = scmp.ge.s32.totalorder %s24_s14, 4  ;;  %p75_p1 = scmp.ne.s32.totalorder %s957_s10, %s953_s9 }
   0x5   : > { %p76_p2 = scmp.eq.s32.totalorder %s969_s13, 0  ;;  %p111_p4 = scmp.eq.s32.totalorder %s784_s15, 3 }
   0x6   : > { %s1179_s14 = smov (%p25_p0, %s24_s14), 0  ;;  %s68_s17 = sadd.s32 1, %s957_s10 }
   0x7   : > { %p77_p3 = por %p76_p2, %p75_p1  ;;  %s64_s16 = ssub.s32 %s965_s12, %s1179_s14 }
   0x8   : > { %p66_p5 = scmp.eq.s32.totalorder %s64_s16, 0  ;;  %p1021_p6 = por %p111_p4, %p75_p1 }
   0x9   : > { %p788_p7 = scmp.ge.s32.totalorder %s969_s13, 4 }
   0xa   : > { %s1026_s19 = scalar_select %p66_p5, %s957_s10, %s68_s17  }
   0xb   : > { %147 = sbr.rel (%p788_p7) target bundleno = 52 (0x34), region = 20 }
  0x10   : > { %150 = sbr.rel (!%p77_p3) target bundleno = 52 (0x34), region = 24  ;;  %s152_s20 = sand.u32 (%p77_p3), 1, %s957_s10  }
  0x11   : > { %s836_s21 = sshll.u32 (%p77_p3), %s965_s12, 3  ;;  %s789_s22 = sshll.u32 (%p77_p3), %s152_s20, 8 }
  0x12   : > { %s1034_s25 = scalar_lea.vmem (%p77_p3), %s1171_s1, %s836_s21  ;;  %s1039_s26 = scalar_lea.vmem (%p77_p3), [#allocation2], %s789_s22 }
  0x13   : > { %v250_v0 = vld [vmem:[%s1034_s25] sm:$0xff] (%p77_p3) }
  0x14   : > { %v252_v1 = vld [vmem:[%s1034_s25 + $0x20] sm:$0xff] (%p77_p3)  ;;  %251 = vst [vmem:[%s1039_s26] sm:$0xff] (%p77_p3), %v250_v0 }
  0x15   : > { %v254_v2 = vld [vmem:[%s1034_s25 + $0x40] sm:$0xff]  ;;  %253 = vst [vmem:[%s1039_s26 + $0x8] sm:$0xff] %v252_v1 }
  0x16   : > { %255 = vst [vmem:[%s1039_s26 + $0x10] sm:$0xff] %v254_v2  ;;  %v256_v3 = vld [vmem:[%s1034_s25 + $0x60] sm:$0xff] }
  0x17   : > { %v258_v4 = vld [vmem:[%s1034_s25 + $0x80] sm:$0xff]  ;;  %257 = vst [vmem:[%s1039_s26 + $0x18] sm:$0xff] %v256_v3 }
  0x18   : > { %v260_v5 = vld [vmem:[%s1034_s25 + $0xa0] sm:$0xff]  ;;  %259 = vst [vmem:[%s1039_s26 + $0x20] sm:$0xff] %v258_v4 }
  0x19   : > { %261 = vst [vmem:[%s1039_s26 + $0x28] sm:$0xff] %v260_v5  ;;  %v262_v6 = vld [vmem:[%s1034_s25 + $0xc0] sm:$0xff] }
  0x1a   : > { %v264_v7 = vld [vmem:[%s1034_s25 + $0xe0] sm:$0xff]  ;;  %263 = vst [vmem:[%s1039_s26 + $0x30] sm:$0xff] %v262_v6 }
  0x1b   : > { %v266_v8 = vld [vmem:[%s1034_s25 + $0x100] sm:$0xff]  ;;  %265 = vst [vmem:[%s1039_s26 + $0x38] sm:$0xff] %v264_v7 }
  0x1c   : > { %267 = vst [vmem:[%s1039_s26 + $0x40] sm:$0xff] %v266_v8  ;;  %v268_v9 = vld [vmem:[%s1034_s25 + $0x120] sm:$0xff] }
  0x1d   : > { %v270_v10 = vld [vmem:[%s1034_s25 + $0x140] sm:$0xff]  ;;  %269 = vst [vmem:[%s1039_s26 + $0x48] sm:$0xff] %v268_v9 }
  0x1e   : > { %v272_v11 = vld [vmem:[%s1034_s25 + $0x160] sm:$0xff]  ;;  %271 = vst [vmem:[%s1039_s26 + $0x50] sm:$0xff] %v270_v10 }
  0x1f   : > { %273 = vst [vmem:[%s1039_s26 + $0x58] sm:$0xff] %v272_v11  ;;  %v274_v12 = vld [vmem:[%s1034_s25 + $0x180] sm:$0xff] }
  0x20   : > { %v276_v13 = vld [vmem:[%s1034_s25 + $0x1a0] sm:$0xff]  ;;  %275 = vst [vmem:[%s1039_s26 + $0x60] sm:$0xff] %v274_v12 }
  0x21   : > { %v278_v14 = vld [vmem:[%s1034_s25 + $0x1c0] sm:$0xff]  ;;  %277 = vst [vmem:[%s1039_s26 + $0x68] sm:$0xff] %v276_v13 }
  0x22   : > { %279 = vst [vmem:[%s1039_s26 + $0x70] sm:$0xff] %v278_v14  ;;  %v280_v15 = vld [vmem:[%s1034_s25 + $0x1e0] sm:$0xff] }
  0x23   : > { %v282_v16 = vld [vmem:[%s1034_s25 + $0x200] sm:$0xff]  ;;  %281 = vst [vmem:[%s1039_s26 + $0x78] sm:$0xff] %v280_v15 }
  0x24   : > { %v284_v17 = vld [vmem:[%s1034_s25 + $0x220] sm:$0xff]  ;;  %283 = vst [vmem:[%s1039_s26 + $0x80] sm:$0xff] %v282_v16 }
  0x25   : > { %285 = vst [vmem:[%s1039_s26 + $0x88] sm:$0xff] %v284_v17  ;;  %v286_v18 = vld [vmem:[%s1034_s25 + $0x240] sm:$0xff] }
  0x26   : > { %v288_v19 = vld [vmem:[%s1034_s25 + $0x260] sm:$0xff]  ;;  %287 = vst [vmem:[%s1039_s26 + $0x90] sm:$0xff] %v286_v18 }
  0x27   : > { %v290_v20 = vld [vmem:[%s1034_s25 + $0x280] sm:$0xff]  ;;  %289 = vst [vmem:[%s1039_s26 + $0x98] sm:$0xff] %v288_v19 }
  0x28   : > { %291 = vst [vmem:[%s1039_s26 + $0xa0] sm:$0xff] %v290_v20  ;;  %v292_v21 = vld [vmem:[%s1034_s25 + $0x2a0] sm:$0xff] }
  0x29   : > { %v294_v22 = vld [vmem:[%s1034_s25 + $0x2c0] sm:$0xff]  ;;  %293 = vst [vmem:[%s1039_s26 + $0xa8] sm:$0xff] %v292_v21 }
  0x2a   : > { %v296_v23 = vld [vmem:[%s1034_s25 + $0x2e0] sm:$0xff]  ;;  %295 = vst [vmem:[%s1039_s26 + $0xb0] sm:$0xff] %v294_v22 }
  0x2b   : > { %297 = vst [vmem:[%s1039_s26 + $0xb8] sm:$0xff] %v296_v23  ;;  %v298_v24 = vld [vmem:[%s1034_s25 + $0x300] sm:$0xff] }
  0x2c   : > { %v300_v25 = vld [vmem:[%s1034_s25 + $0x320] sm:$0xff]  ;;  %299 = vst [vmem:[%s1039_s26 + $0xc0] sm:$0xff] %v298_v24 }
  0x2d   : > { %v302_v26 = vld [vmem:[%s1034_s25 + $0x340] sm:$0xff]  ;;  %301 = vst [vmem:[%s1039_s26 + $0xc8] sm:$0xff] %v300_v25 }
  0x2e   : > { %303 = vst [vmem:[%s1039_s26 + $0xd0] sm:$0xff] %v302_v26  ;;  %v304_v27 = vld [vmem:[%s1034_s25 + $0x360] sm:$0xff] }
  0x2f   : > { %v306_v28 = vld [vmem:[%s1034_s25 + $0x380] sm:$0xff]  ;;  %305 = vst [vmem:[%s1039_s26 + $0xd8] sm:$0xff] %v304_v27 }
  0x30   : > { %v308_v29 = vld [vmem:[%s1034_s25 + $0x3a0] sm:$0xff]  ;;  %307 = vst [vmem:[%s1039_s26 + $0xe0] sm:$0xff] %v306_v28 }
  0x31   : > { %309 = vst [vmem:[%s1039_s26 + $0xe8] sm:$0xff] %v308_v29  ;;  %v310_v30 = vld [vmem:[%s1034_s25 + $0x3c0] sm:$0xff] }
  0x32   : > { %v312_v31 = vld [vmem:[%s1034_s25 + $0x3e0] sm:$0xff]  ;;  %311 = vst [vmem:[%s1039_s26 + $0xf0] sm:$0xff] %v310_v30 }
  0x33   : > { %313 = vst [vmem:[%s1039_s26 + $0xf8] sm:$0xff] %v312_v31 }
  0x34 PF: > { %p792_p8 = scmp.ge.s32.totalorder %s969_s13, 1  ;;  %p318_p9 = scmp.lt.s32.totalorder %s969_s13, 5 }
  0x36   : > { %p319_p10 = pnand %p792_p8, %p318_p9 }
  0x37   : > { %s325_s27 = sand.u32 (!%p319_p10), 1, %s953_s9  }
  0x38   : > { %322 = sbr.rel (%p319_p10) target bundleno = 336 (0x150), region = 62  ;;  %s793_s28 = sshll.u32 (!%p319_p10), %s325_s27, 8 }
  0x39   : > { %s1110_s3 = scalar_lea.vmem (!%p319_p10), [#allocation2], %s793_s28  ;;  %s794_s6 = sshll.u32 (!%p319_p10), %s325_s27, 4 }
  0x3a   : > { %s354_s7 = scalar_lea.vmem (!%p319_p10), [#allocation3], %s794_s6 }
  0x3d   : > { %v930_v32 = vld [vmem:[%s1170_s0 + $0x4] ss:$8 sps:$4 sm:$0xff]   ;;  %v880_v33 = vld [vmem:[%s1110_s3 + $0x74] ss:$8 sps:$4 sm:$0xff]   ;;  %v882_v34 = vld [vmem:[%s1110_s3 + $0x70] ss:$8 sps:$4 sm:$0xff]  }
  0x3e   : > { %607 = vmatprep.mubr.bf16.mxu0 %v930_v32  ;;  %575 = vmatprep.subr.bf16.mxu0 %v880_v33  ;;  %v883_v35 = vld [vmem:[%s1110_s3 + $0x64] ss:$8 sps:$4 sm:$0xff]   ;;  %v885_v36 = vld [vmem:[%s1110_s3 + $0x60] ss:$8 sps:$4 sm:$0xff]   ;;  %v886_v37 = vld [vmem:[%s1110_s3 + $0x54] ss:$8 sps:$4 sm:$0xff]  }
  0x3f   : > { %576 = vmatpush1.bf16.msra.mxu0 %v882_v34  ;;  %v888_v38 = vld [vmem:[%s1110_s3 + $0x50] ss:$8 sps:$4 sm:$0xff]   ;;  %v889_v39 = vld [vmem:[%s1110_s3 + $0x44] ss:$8 sps:$4 sm:$0xff]   ;;  %v891_v40 = vld [vmem:[%s1110_s3 + $0x40] ss:$8 sps:$4 sm:$0xff]  }
  0x40   : > { %577 = vmatprep.subr.bf16.mxu0 %v883_v35  ;;  %v892_v41 = vld [vmem:[%s1110_s3 + $0x34] ss:$8 sps:$4 sm:$0xff]   ;;  %v894_v42 = vld [vmem:[%s1110_s3 + $0x30] ss:$8 sps:$4 sm:$0xff]   ;;  %v895_v43 = vld [vmem:[%s1110_s3 + $0x24] ss:$8 sps:$4 sm:$0xff]  }
  0x41   : > { %v897_v44 = vld [vmem:[%s1110_s3 + $0x20] ss:$8 sps:$4 sm:$0xff]   ;;  %v898_v45 = vld [vmem:[%s1110_s3 + $0x14] ss:$8 sps:$4 sm:$0xff]   ;;  %v900_v46 = vld [vmem:[%s1110_s3 + $0x10] ss:$8 sps:$4 sm:$0xff]  }
  0x42   : > { %v901_v47 = vld [vmem:[%s1110_s3 + $0x4] ss:$8 sps:$4 sm:$0xff]   ;;  %v903_v48 = vld [vmem:[%s1110_s3] ss:$8 sps:$4 sm:$0xff]   ;;  %v904_v49 = vld [vmem:[%s1110_s3 + $0xf4] ss:$8 sps:$4 sm:$0xff]  }
  0x43   : > { %578 = vmatpush1.bf16.msra.mxu0 %v885_v36  ;;  %v906_v50 = vld [vmem:[%s1110_s3 + $0xf0] ss:$8 sps:$4 sm:$0xff]   ;;  %v907_v51 = vld [vmem:[%s1110_s3 + $0xe4] ss:$8 sps:$4 sm:$0xff]   ;;  %v909_v52 = vld [vmem:[%s1110_s3 + $0xe0] ss:$8 sps:$4 sm:$0xff]  }
  0x44   : > { %579 = vmatprep.subr.bf16.mxu0 %v886_v37  ;;  %v910_v53 = vld [vmem:[%s1110_s3 + $0xd4] ss:$8 sps:$4 sm:$0xff]   ;;  %v912_v54 = vld [vmem:[%s1110_s3 + $0xd0] ss:$8 sps:$4 sm:$0xff]   ;;  %v913_v55 = vld [vmem:[%s1110_s3 + $0xc4] ss:$8 sps:$4 sm:$0xff]  }
  0x45   : > { %v915_v56 = vld [vmem:[%s1110_s3 + $0xc0] ss:$8 sps:$4 sm:$0xff]   ;;  %v916_v57 = vld [vmem:[%s1110_s3 + $0xb4] ss:$8 sps:$4 sm:$0xff]   ;;  %v918_v58 = vld [vmem:[%s1110_s3 + $0xb0] ss:$8 sps:$4 sm:$0xff]  }
  0x46   : > { %v919_v59 = vld [vmem:[%s1110_s3 + $0xa4] ss:$8 sps:$4 sm:$0xff]   ;;  %v921_v60 = vld [vmem:[%s1110_s3 + $0xa0] ss:$8 sps:$4 sm:$0xff]   ;;  %v922_v61 = vld [vmem:[%s1110_s3 + $0x94] ss:$8 sps:$4 sm:$0xff]  }
  0x47   : > { %580 = vmatpush1.bf16.msra.mxu0 %v888_v38  ;;  %v924_v62 = vld [vmem:[%s1110_s3 + $0x90] ss:$8 sps:$4 sm:$0xff]   ;;  %v925_v63 = vld [vmem:[%s1110_s3 + $0x84] ss:$8 sps:$4 sm:$0xff]   ;;  %v927_v0 = vld [vmem:[%s1110_s3 + $0x80] ss:$8 sps:$4 sm:$0xff]  }
  0x48   : > { %581 = vmatprep.subr.bf16.mxu0 %v889_v39  ;;  %v928_v1 = vld [vmem:[%s1170_s0] ss:$8 sps:$4 sm:$0xff]   ;;  %s839_s8 = sshll.u32 (%p1021_p6), %s961_s11, 3 }
  0x49   : > { %s646_s9 = scalar_lea.vmem (%p1021_p6), %s1172_s2, %s839_s8 }
  0x4b   : > { %582 = vmatpush1.bf16.msra.mxu0 %v891_v40 }
  0x4c   : > { %583 = vmatprep.subr.bf16.mxu0 %v892_v41 }
  0x4f   : > { %584 = vmatpush1.bf16.msra.mxu0 %v894_v42 }
  0x50   : > { %585 = vmatprep.subr.bf16.mxu0 %v895_v43 }
  0x53   : > { %586 = vmatpush1.bf16.msra.mxu0 %v897_v44 }
  0x54   : > { %587 = vmatprep.subr.bf16.mxu0 %v898_v45 }
  0x57   : > { %588 = vmatpush1.bf16.msra.mxu0 %v900_v46 }
  0x58   : > { %589 = vmatprep.subr.bf16.mxu0 %v901_v47 }
  0x5b   : > { %590 = vmatpush1.bf16.msra.mxu0 %v903_v48 }
  0x5c   : > { %591 = vmatprep.subr.bf16.mxu0 %v904_v49 }
  0x5f   : > { %592 = vmatpush2.bf16.msra.mxu0 %v906_v50 }
  0x60   : > { %593 = vmatprep.subr.bf16.mxu0 %v907_v51 }
  0x63   : > { %594 = vmatpush2.bf16.msra.mxu0 %v909_v52 }
  0x64   : > { %595 = vmatprep.subr.bf16.mxu0 %v910_v53 }
  0x67   : > { %596 = vmatpush2.bf16.msra.mxu0 %v912_v54 }
  0x68   : > { %597 = vmatprep.subr.bf16.mxu0 %v913_v55 }
  0x6b   : > { %598 = vmatpush2.bf16.msra.mxu0 %v915_v56 }
  0x6c   : > { %599 = vmatprep.subr.bf16.mxu0 %v916_v57 }
  0x6f   : > { %600 = vmatpush2.bf16.msra.mxu0 %v918_v58 }
  0x70   : > { %601 = vmatprep.subr.bf16.mxu0 %v919_v59 }
  0x73   : > { %602 = vmatpush2.bf16.msra.mxu0 %v921_v60 }
  0x74   : > { %603 = vmatprep.subr.bf16.mxu0 %v922_v61 }
  0x77   : > { %604 = vmatpush2.bf16.msra.mxu0 %v924_v62 }
  0x78   : > { %605 = vmatprep.subr.bf16.mxu0 %v925_v63 }
  0x7b   : > { %606 = vmatpush2.bf16.msra.mxu0 %v927_v0 }
  0x7e   : > { %608 = vmatmul.mubr.bf16.vlgmr.msra.gmra.mxu0 %v928_v1 }
 0x13e   : > { %v609_v2 = vpop.f32.mrf.mxu0 }
 0x140   : > { %v611_v3 = vpop.f32.mrf.mxu0 }
 0x141   : > { %v837_v4 = vpack.c.bf16 %v611_v3, %v609_v2 }
 0x142   : > { %v613_v5 = vpop.f32.mrf.mxu0 }
 0x143   : > { %630 = vst [vmem:[%s354_s7] sm:$0xff] %v837_v4  ;;  %638 = sbr.rel (!%p1021_p6) target bundleno = 336 (0x150), region = 70 }
 0x144   : > { %v615_v6 = vpop.f32.mrf.mxu0 }
 0x145   : > { %v838_v7 = vpack.c.bf16 %v615_v6, %v613_v5 }
 0x147   : > { %631 = vst [vmem:[%s354_s7 + $0x8] sm:$0xff] %v838_v7 }
 0x14a   : > { %v677_v8 = vld [vmem:[%s354_s7] sm:$0xff] }
 0x14b   : > { %678 = vst [vmem:[%s646_s9] sm:$0xff] %v677_v8 }
 0x14e   : > { %v679_v9 = vld [vmem:[%s354_s7 + $0x8] sm:$0xff] }
 0x14f   : > { %680 = vst [vmem:[%s646_s9 + $0x20] sm:$0xff] %v679_v9 }
 0x150 PF: > { %s12_s13 = sadd.s32 1, %s969_s13   ;;  %s1174_s9 = smov %s957_s10 }
 0x151   : > { %p9_p11 = scmp.ge.s32.totalorder %s12_s13, 6   ;;  %s1175_s10 = smov %s1026_s19 }
 0x152   : > { %s1176_s11 = smov %s965_s12  ;;  %s1177_s12 = smov %s1179_s14 }
 0x153   :  { %11 = sbr.rel (!%p9_p11) target bundleno = 3 (0x3), region = 142 }

// kernel: resnest_forward.92
= control target key start
LH: loop header
LB: loop body
LE: loop exit
PB: predicated region body
PF: predicated region fallthrough
CT: control target
= control target key end

     0   :  { %s1526_s0 = inlined_call_operand.vmem [shape: bf16[4,16,2304], index: 0, kind: input, shape index: {}]   ;;  %s1527_s1 = inlined_call_operand.vmem [shape: bf16[4,2304,512], index: 1, kind: input, shape index: {}]   ;;  %s1528_s2 = inlined_call_operand.vmem [shape: bf16[16,2048], index: 2, kind: output, shape index: {}]  }
   0x1   :  { %1532 = sst [smem:[#allocation12_spill]] %s1528_s2 }
   0x2   :  { %s1211_s9 = smov 0   ;;  %s1213_s10 = smov 0  }
   0x3   :  { %s1215_s11 = smov 0   ;;  %s1217_s12 = smov 0  }
   0x4   :  { %s1219_s13 = smov 0   ;;  %s1221_s14 = smov 0  }
   0x5   :  { %s1223_s15 = smov 0   ;;  %s1225_s16 = smov 0  }
   0x6   :  { %s1227_s17 = smov 0   ;;  %s1229_s18 = smov 0  }
   0x7   :  { %s1231_s19 = smov 0   ;;  %s1233_s20 = smov 0  }
   0x8   :  { %s1235_s21 = smov 0  }
   0x9 LB: > { %1533 = sst [smem:[#allocation6_spill]] %s1153_s11  ;;  %s27_s23 = sadd.s32 1, %s1181_s18  ;;  %s1193_s21 = sphi %s1235_s21, %s12_s21   ;;  %s1189_s20 = sphi %s1233_s20, %s1563_s20   ;;  %s1185_s19 = sphi %s1231_s19, %s1562_s19   ;;  %s1181_s18 = sphi %s1229_s18, %s1561_s18   ;;  %s1177_s17 = sphi %s1227_s17, %s1560_s17   ;;  %s1173_s16 = sphi %s1225_s16, %s1559_s16   ;;  %s1169_s15 = sphi %s1223_s15, %s1558_s15   ;;  %s1165_s14 = sphi %s1221_s14, %s1557_s14   ;;  %s1161_s13 = sphi %s1219_s13, %s1556_s13   ;;  %s1157_s12 = sphi %s1217_s12, %s1555_s12   ;;  %s1153_s11 = sphi %s1215_s11, %s1554_s11   ;;  %s1149_s10 = sphi %s1213_s10, %s1553_s10   ;;  %s1145_s9 = sphi %s1211_s9, %s1552_s9  }
   0xa   : > { %1534 = sst [smem:[#allocation7_spill]] %s1161_s13  ;;  %p28_p0 = scmp.ge.s32.totalorder %s27_s23, 9 }
   0xb   : > { %1535 = sst [smem:[#allocation8_spill]] %s1169_s15  ;;  %s30_s24 = sadd.s32 1, %s1185_s19 }
   0xc   : > { %1536 = sst [smem:[#allocation9_spill]] %s1173_s16  ;;  %s38_s25 = sadd.s32 1, %s1189_s20 }
   0xd   : > { %1537 = sst [smem:[#allocation10_spill]] %s1177_s17  ;;  %s49_s26 = sadd.s32 1, %s1165_s14 }
   0xe   : > { %s1565_s23 = smov (%p28_p0, %s27_s23), 0  ;;  %s1567_s24 = smov (!%p28_p0, %s30_s24), %s1185_s19 }
   0xf   : > { %1538 = sst [smem:[#allocation11_spill]] %s1565_s23  ;;  %s45_s27 = ssub.s32 %s1181_s18, %s1565_s23 }
  0x10   : > { %p56_p1 = scmp.ne.s32.totalorder %s1165_s14, %s1161_s13  ;;  %p32_p2 = scmp.ge.s32.totalorder %s1567_s24, 2 }
  0x11   : > { %p57_p3 = scmp.eq.s32.totalorder %s1193_s21, 0  ;;  %s79_s28 = sadd.s32 1, %s1157_s12 }
  0x12   : > { %p86_p4 = scmp.ne.s32.totalorder %s1157_s12, %s1153_s11  ;;  %s1569_s24 = smov (%p32_p2, %s1567_s24), 0 }
  0x13   : > { %s1571_s25 = smov (!%p32_p2, %s38_s25), %s1189_s20  ;;  %p1295_p5 = por %p57_p3, %p56_p1 }
  0x14   : > { %s75_s30 = ssub.s32 %s1185_s19, %s1569_s24  ;;  %p40_p6 = scmp.ge.s32.totalorder %s1571_s25, 4 }
  0x15   : > { %p1301_p7 = por %p86_p4, %p57_p3  ;;  %s869_s4 = sshll.u32 %s1189_s20, 1 }
  0x16   : > { %s111_s5 = sadd.s32 1, %s1149_s10  ;;  %s1573_s25 = smov (%p40_p6, %s1571_s25), 0 }
  0x17   : > { %s103_s6 = sadd.s32 %s1185_s19, %s869_s4  ;;  %p121_p8 = scmp.ne.s32.totalorder %s1149_s10, %s1145_s9 }
  0x18   : > { %s42_s7 = ssub.s32 %s1189_s20, %s1573_s25  ;;  %s870_s8 = sshll.u32 %s1573_s25, 1 }
  0x19   : > { %s46_s22 = sor.u32 %s45_s27, %s42_s7  ;;  %s105_s23 = sadd.s32 %s870_s8, %s1569_s24 }
  0x1a   : > { %p47_p9 = scmp.eq.s32.totalorder %s46_s22, 0  ;;  %s76_s2 = sor.u32 %s75_s30, %s46_s22 }
  0x1b   : > { %p77_p10 = scmp.eq.s32.totalorder %s76_s2, 0  ;;  %s107_s16 = ssub.s32 %s103_s6, %s105_s23 }
  0x1c   : > { %s1317_s17 = scalar_select %p47_p9, %s1165_s14, %s49_s26  }
  0x1d   : > { %s1320_s15 = scalar_select %p77_p10, %s1157_s12, %s79_s28  }
  0x1e   : > { %p109_p11 = scmp.eq.s32.totalorder %s107_s16, 0  ;;  %s1541_s11 = sadd.s32 4294967295, %s1193_s21  }
  0x1f   : > { %p122_p12 = scmp.eq.s32.totalorder %s1541_s11, 71  ;;  %p872_p0 = scmp.ge.s32.totalorder %s1193_s21, 72 }
  0x20   : > { %s1325_s13 = scalar_select %p109_p11, %s1149_s10, %s111_s5  }
  0x21   : > { %p1330_p13 = por %p122_p12, %p121_p8  ;;  %144 = sbr.rel (%p872_p0) target bundleno = 72 (0x48), region = 16 }
  0x26   : > { %147 = sbr.rel (!%p1295_p5) target bundleno = 47 (0x2f), region = 20  ;;  %s149_s2 = sand.u32 (%p1295_p5), 1, %s1165_s14  }
  0x27   : > { %s874_s16 = sshll.u32 (%p1295_p5), %s1181_s18, 1  ;;  %s873_s22 = sshll.u32 (%p1295_p5), %s149_s2, 4 }
  0x28   : > { %s933_s11 = smul.u32 (%p1295_p5), 36, %s1189_s20  ;;  %s151_s5 = scalar_lea.vmem (%p1295_p5), [#allocation3], %s873_s22 }
  0x2a   : > { %s157_s23 = sadd.s32 (%p1295_p5), %s933_s11, %s874_s16 }
  0x2b   : > { %s875_s26 = sshll.u32 %s157_s23, 2 }
  0x2c   : > { %s159_s30 = scalar_lea.vmem %s1526_s0, %s875_s26 }
  0x2d   : > { %v190_v0 = vld [vmem:[%s159_s30] sm:$0xff]  ;;  %v192_v1 = vld [vmem:[%s159_s30 + $0x48] sm:$0xff] }
  0x2e   : > { %191 = vst [vmem:[%s151_s5] sm:$0xff] %v190_v0  ;;  %193 = vst [vmem:[%s151_s5 + $0x8] sm:$0xff] %v192_v1 }
  0x2f PF: > { %199 = sbr.rel (!%p1301_p7) target bundleno = 72 (0x48), region = 58  ;;  %s201_s29 = sand.u32 (%p1301_p7), 1, %s1157_s12  }
  0x30   : > { %s878_s6 = sshll.u32 (%p1301_p7), %s1185_s19, 1  ;;  %s929_s7 = sshll.u32 (%p1301_p7), %s1181_s18, 7 }
  0x31   : > { %s207_s8 = sadd.s32 (%p1301_p7), %s929_s7, %s878_s6  ;;  %s876_s2 = sshll.u32 (%p1301_p7), %s201_s29, 8 }
  0x32   : > { %s934_s16 = smul.u32 (%p1301_p7), 1152, %s1189_s20  ;;  %s1357_s3 = scalar_lea.vmem (%p1301_p7), [#allocation4], %s876_s2 }
  0x34   : > { %s209_s11 = sadd.s32 %s934_s16, %s207_s8 }
  0x35   : > { %s880_s23 = sshll.u32 %s209_s11, 2 }
  0x36   : > { %s1352_s27 = scalar_lea.vmem %s1527_s1, %s880_s23 }
  0x37   : > { %v302_v2 = vld [vmem:[%s1352_s27] sm:$0xff]  ;;  %v304_v3 = vld [vmem:[%s1352_s27 + $0x10] sm:$0xff] }
  0x38   : > { %v306_v4 = vld [vmem:[%s1352_s27 + $0x20] sm:$0xff]  ;;  %303 = vst [vmem:[%s1357_s3] sm:$0xff] %v302_v2  ;;  %305 = vst [vmem:[%s1357_s3 + $0x8] sm:$0xff] %v304_v3  ;;  %v308_v5 = vld [vmem:[%s1352_s27 + $0x30] sm:$0xff] }
  0x39   : > { %307 = vst [vmem:[%s1357_s3 + $0x10] sm:$0xff] %v306_v4  ;;  %v310_v6 = vld [vmem:[%s1352_s27 + $0x40] sm:$0xff]  ;;  %v312_v7 = vld [vmem:[%s1352_s27 + $0x50] sm:$0xff]  ;;  %309 = vst [vmem:[%s1357_s3 + $0x18] sm:$0xff] %v308_v5 }
  0x3a   : > { %311 = vst [vmem:[%s1357_s3 + $0x20] sm:$0xff] %v310_v6  ;;  %313 = vst [vmem:[%s1357_s3 + $0x28] sm:$0xff] %v312_v7  ;;  %v314_v8 = vld [vmem:[%s1352_s27 + $0x60] sm:$0xff]  ;;  %v316_v9 = vld [vmem:[%s1352_s27 + $0x70] sm:$0xff] }
  0x3b   : > { %v318_v10 = vld [vmem:[%s1352_s27 + $0x80] sm:$0xff]  ;;  %315 = vst [vmem:[%s1357_s3 + $0x30] sm:$0xff] %v314_v8  ;;  %317 = vst [vmem:[%s1357_s3 + $0x38] sm:$0xff] %v316_v9  ;;  %v320_v11 = vld [vmem:[%s1352_s27 + $0x90] sm:$0xff] }
  0x3c   : > { %319 = vst [vmem:[%s1357_s3 + $0x40] sm:$0xff] %v318_v10  ;;  %v322_v12 = vld [vmem:[%s1352_s27 + $0xa0] sm:$0xff]  ;;  %v324_v13 = vld [vmem:[%s1352_s27 + $0xb0] sm:$0xff]  ;;  %321 = vst [vmem:[%s1357_s3 + $0x48] sm:$0xff] %v320_v11 }
  0x3d   : > { %323 = vst [vmem:[%s1357_s3 + $0x50] sm:$0xff] %v322_v12  ;;  %325 = vst [vmem:[%s1357_s3 + $0x58] sm:$0xff] %v324_v13  ;;  %v326_v14 = vld [vmem:[%s1352_s27 + $0xc0] sm:$0xff]  ;;  %v328_v15 = vld [vmem:[%s1352_s27 + $0xd0] sm:$0xff] }
  0x3e   : > { %v330_v16 = vld [vmem:[%s1352_s27 + $0xe0] sm:$0xff]  ;;  %327 = vst [vmem:[%s1357_s3 + $0x60] sm:$0xff] %v326_v14  ;;  %329 = vst [vmem:[%s1357_s3 + $0x68] sm:$0xff] %v328_v15  ;;  %v332_v17 = vld [vmem:[%s1352_s27 + $0xf0] sm:$0xff] }
  0x3f   : > { %331 = vst [vmem:[%s1357_s3 + $0x70] sm:$0xff] %v330_v16  ;;  %v334_v18 = vld [vmem:[%s1352_s27 + $0x100] sm:$0xff]  ;;  %v336_v19 = vld [vmem:[%s1352_s27 + $0x110] sm:$0xff]  ;;  %333 = vst [vmem:[%s1357_s3 + $0x78] sm:$0xff] %v332_v17 }
  0x40   : > { %335 = vst [vmem:[%s1357_s3 + $0x80] sm:$0xff] %v334_v18  ;;  %337 = vst [vmem:[%s1357_s3 + $0x88] sm:$0xff] %v336_v19  ;;  %v338_v20 = vld [vmem:[%s1352_s27 + $0x120] sm:$0xff]  ;;  %v340_v21 = vld [vmem:[%s1352_s27 + $0x130] sm:$0xff] }
  0x41   : > { %v342_v22 = vld [vmem:[%s1352_s27 + $0x140] sm:$0xff]  ;;  %339 = vst [vmem:[%s1357_s3 + $0x90] sm:$0xff] %v338_v20  ;;  %341 = vst [vmem:[%s1357_s3 + $0x98] sm:$0xff] %v340_v21  ;;  %v344_v23 = vld [vmem:[%s1352_s27 + $0x150] sm:$0xff] }
  0x42   : > { %343 = vst [vmem:[%s1357_s3 + $0xa0] sm:$0xff] %v342_v22  ;;  %v346_v24 = vld [vmem:[%s1352_s27 + $0x160] sm:$0xff]  ;;  %v348_v25 = vld [vmem:[%s1352_s27 + $0x170] sm:$0xff]  ;;  %345 = vst [vmem:[%s1357_s3 + $0xa8] sm:$0xff] %v344_v23 }
  0x43   : > { %347 = vst [vmem:[%s1357_s3 + $0xb0] sm:$0xff] %v346_v24  ;;  %349 = vst [vmem:[%s1357_s3 + $0xb8] sm:$0xff] %v348_v25  ;;  %v350_v26 = vld [vmem:[%s1352_s27 + $0x180] sm:$0xff]  ;;  %v352_v27 = vld [vmem:[%s1352_s27 + $0x190] sm:$0xff] }
  0x44   : > { %v354_v28 = vld [vmem:[%s1352_s27 + $0x1a0] sm:$0xff]  ;;  %351 = vst [vmem:[%s1357_s3 + $0xc0] sm:$0xff] %v350_v26  ;;  %353 = vst [vmem:[%s1357_s3 + $0xc8] sm:$0xff] %v352_v27  ;;  %v356_v29 = vld [vmem:[%s1352_s27 + $0x1b0] sm:$0xff] }
  0x45   : > { %355 = vst [vmem:[%s1357_s3 + $0xd0] sm:$0xff] %v354_v28  ;;  %v358_v30 = vld [vmem:[%s1352_s27 + $0x1c0] sm:$0xff]  ;;  %v360_v31 = vld [vmem:[%s1352_s27 + $0x1d0] sm:$0xff]  ;;  %357 = vst [vmem:[%s1357_s3 + $0xd8] sm:$0xff] %v356_v29 }
  0x46   : > { %359 = vst [vmem:[%s1357_s3 + $0xe0] sm:$0xff] %v358_v30  ;;  %361 = vst [vmem:[%s1357_s3 + $0xe8] sm:$0xff] %v360_v31  ;;  %v362_v32 = vld [vmem:[%s1352_s27 + $0x1e0] sm:$0xff]  ;;  %v364_v33 = vld [vmem:[%s1352_s27 + $0x1f0] sm:$0xff] }
  0x47   : > { %363 = vst [vmem:[%s1357_s3 + $0xf0] sm:$0xff] %v362_v32  ;;  %365 = vst [vmem:[%s1357_s3 + $0xf8] sm:$0xff] %v364_v33 }
  0x48 PF: > { %p881_p1 = scmp.ge.s32.totalorder %s1193_s21, 1  ;;  %p370_p2 = scmp.lt.s32.totalorder %s1193_s21, 73 }
  0x4a   : > { %p371_p3 = pnand %p881_p1, %p370_p2 }
  0x4b   : > { %s1543_s28 = sld [smem:[#allocation7_spill]] (!%p371_p3)  ;;  %s405_s8 = sand.u32 (!%p371_p3), 1, %s1145_s9  }
  0x4c   : > { %374 = sbr.rel (%p371_p3) target bundleno = 382 (0x17e), region = 96  ;;  %s1544_s30 = sld [smem:[#allocation6_spill]] (!%p371_p3) }
  0x4d   : > { %s884_s2 = sshll.u32 (!%p371_p3), %s405_s8, 4  ;;  %s1545_s26 = sld [smem:[#allocation8_spill]] (!%p371_p3) }
  0x4e   : > { %s1430_s23 = scalar_lea.vmem (!%p371_p3), [#allocation5], %s884_s2 }
  0x51   : > { %s377_s5 = sand.u32 1, %s1543_s28  }
  0x52   : > { %s384_s29 = sand.u32 1, %s1544_s30   ;;  %s1424_s6 = sshll.u32 %s377_s5, 4 }
  0x53   : > { %s883_s7 = sshll.u32 %s384_s29, 8  ;;  %s379_s16 = scalar_lea.vmem [#allocation3], %s1424_s6 }
  0x54   : > { %s1428_s11 = scalar_lea.vmem [#allocation4], %s883_s7  ;;  %p885_p4 = scmp.ne.s32.totalorder %s1545_s26, 0 }
  0x56   : > { %419 = sbr.rel (%p885_p4) target bundleno = 94 (0x5e), region = 108 }
  0x5b   : > { %v1195_v34 = vmov 0.0  }
  0x5c   : > { %420 = vst [vmem:[#allocation2 + $0x10] sm:$0xff] %v1195_v34  ;;  %421 = vst [vmem:[#allocation2] sm:$0xff] %v1195_v34 }
  0x5d   : > { %422 = vst [vmem:[#allocation2 + $0x18] sm:$0xff] %v1195_v34  ;;  %423 = vst [vmem:[#allocation2 + $0x8] sm:$0xff] %v1195_v34 }
  0x5e PF: > { %v1040_v35 = vld [vmem:[%s1428_s11 + $0x74] ss:$8 sps:$4 sm:$0xff]   ;;  %v1042_v36 = vld [vmem:[%s1428_s11 + $0x70] ss:$8 sps:$4 sm:$0xff]   ;;  %v1043_v37 = vld [vmem:[%s1428_s11 + $0x64] ss:$8 sps:$4 sm:$0xff]  }
  0x5f   : > { %632 = vmatprep.subr.bf16.mxu0 %v1040_v35  ;;  %v1045_v38 = vld [vmem:[%s1428_s11 + $0x60] ss:$8 sps:$4 sm:$0xff]   ;;  %v1046_v39 = vld [vmem:[%s1428_s11 + $0x54] ss:$8 sps:$4 sm:$0xff]   ;;  %v1048_v40 = vld [vmem:[%s1428_s11 + $0x50] ss:$8 sps:$4 sm:$0xff]  }
  0x60   : > { %633 = vmatpush1.bf16.msra.mxu0 %v1042_v36  ;;  %v1049_v41 = vld [vmem:[%s1428_s11 + $0x44] ss:$8 sps:$4 sm:$0xff]   ;;  %v1051_v42 = vld [vmem:[%s1428_s11 + $0x40] ss:$8 sps:$4 sm:$0xff]   ;;  %v1052_v43 = vld [vmem:[%s1428_s11 + $0x34] ss:$8 sps:$4 sm:$0xff]  }
  0x61   : > { %634 = vmatprep.subr.bf16.mxu0 %v1043_v37  ;;  %v1054_v44 = vld [vmem:[%s1428_s11 + $0x30] ss:$8 sps:$4 sm:$0xff]   ;;  %v1055_v45 = vld [vmem:[%s1428_s11 + $0x24] ss:$8 sps:$4 sm:$0xff]   ;;  %v1057_v46 = vld [vmem:[%s1428_s11 + $0x20] ss:$8 sps:$4 sm:$0xff]  }
  0x62   : > { %v1058_v47 = vld [vmem:[%s1428_s11 + $0x14] ss:$8 sps:$4 sm:$0xff]   ;;  %v1060_v49 = vld [vmem:[%s1428_s11 + $0x10] ss:$8 sps:$4 sm:$0xff]   ;;  %v1061_v50 = vld [vmem:[%s1428_s11 + $0x4] ss:$8 sps:$4 sm:$0xff]  }
  0x63   : > { %v1090_v48 = vld [vmem:[%s379_s16 + $0x4] ss:$8 sps:$4 sm:$0xff]   ;;  %v1063_v51 = vld [vmem:[%s1428_s11] ss:$8 sps:$4 sm:$0xff]   ;;  %v1066_v53 = vld [vmem:[%s1428_s11 + $0xf0] ss:$8 sps:$4 sm:$0xff]  }
  0x64   : > { %635 = vmatpush1.bf16.msra.mxu0 %v1045_v38  ;;  %664 = vmatprep.mubr.bf16.mxu0 %v1090_v48  ;;  %v1064_v52 = vld [vmem:[%s1428_s11 + $0xf4] ss:$8 sps:$4 sm:$0xff]   ;;  %v1067_v54 = vld [vmem:[%s1428_s11 + $0xe4] ss:$8 sps:$4 sm:$0xff]   ;;  %v1069_v55 = vld [vmem:[%s1428_s11 + $0xe0] ss:$8 sps:$4 sm:$0xff]  }
  0x65   : > { %636 = vmatprep.subr.bf16.mxu0 %v1046_v39  ;;  %v1070_v56 = vld [vmem:[%s1428_s11 + $0xd4] ss:$8 sps:$4 sm:$0xff]   ;;  %v1072_v57 = vld [vmem:[%s1428_s11 + $0xd0] ss:$8 sps:$4 sm:$0xff]   ;;  %v1073_v58 = vld [vmem:[%s1428_s11 + $0xc4] ss:$8 sps:$4 sm:$0xff]  }
  0x66   : > { %v1075_v59 = vld [vmem:[%s1428_s11 + $0xc0] ss:$8 sps:$4 sm:$0xff]   ;;  %v1076_v60 = vld [vmem:[%s1428_s11 + $0xb4] ss:$8 sps:$4 sm:$0xff]   ;;  %v1078_v61 = vld [vmem:[%s1428_s11 + $0xb0] ss:$8 sps:$4 sm:$0xff]  }
  0x67   : > { %v1079_v62 = vld [vmem:[%s1428_s11 + $0xa4] ss:$8 sps:$4 sm:$0xff]   ;;  %v1081_v63 = vld [vmem:[%s1428_s11 + $0xa0] ss:$8 sps:$4 sm:$0xff]   ;;  %v1082_v0 = vld [vmem:[%s1428_s11 + $0x94] ss:$8 sps:$4 sm:$0xff]  }
  0x68   : > { %637 = vmatpush1.bf16.msra.mxu0 %v1048_v40  ;;  %v1084_v1 = vld [vmem:[%s1428_s11 + $0x90] ss:$8 sps:$4 sm:$0xff]   ;;  %v1085_v2 = vld [vmem:[%s1428_s11 + $0x84] ss:$8 sps:$4 sm:$0xff]   ;;  %v1087_v3 = vld [vmem:[%s1428_s11 + $0x80] ss:$8 sps:$4 sm:$0xff]  }
  0x69   : > { %638 = vmatprep.subr.bf16.mxu0 %v1049_v41  ;;  %v1088_v4 = vld [vmem:[%s379_s16] ss:$8 sps:$4 sm:$0xff]   ;;  %s1546_s9 = sld [smem:[#allocation8_spill]] }
  0x6a   : > { %v424_v5 = vld [vmem:[#allocation2 + $0x10] sm:$0xff]  ;;  %v425_v7 = vld [vmem:[#allocation2] sm:$0xff]  ;;  %v426_v10 = vld [vmem:[#allocation2 + $0x18] sm:$0xff] }
  0x6b   : > { %v427_v13 = vld [vmem:[#allocation2 + $0x8] sm:$0xff] }
  0x6c   : > { %639 = vmatpush1.bf16.msra.mxu0 %v1051_v42 }
  0x6d   : > { %640 = vmatprep.subr.bf16.mxu0 %v1052_v43 }
  0x6f   : > { %p920_p5 = scmp.ne.s32.totalorder %s1546_s9, 8 }
  0x70   : > { %641 = vmatpush1.bf16.msra.mxu0 %v1054_v44 }
  0x71   : > { %642 = vmatprep.subr.bf16.mxu0 %v1055_v45 }
  0x74   : > { %643 = vmatpush1.bf16.msra.mxu0 %v1057_v46 }
  0x75   : > { %644 = vmatprep.subr.bf16.mxu0 %v1058_v47 }
  0x78   : > { %645 = vmatpush1.bf16.msra.mxu0 %v1060_v49 }
  0x79   : > { %646 = vmatprep.subr.bf16.mxu0 %v1061_v50 }
  0x7c   : > { %647 = vmatpush1.bf16.msra.mxu0 %v1063_v51 }
  0x7d   : > { %648 = vmatprep.subr.bf16.mxu0 %v1064_v52 }
  0x80   : > { %649 = vmatpush2.bf16.msra.mxu0 %v1066_v53 }
  0x81   : > { %650 = vmatprep.subr.bf16.mxu0 %v1067_v54 }
  0x84   : > { %651 = vmatpush2.bf16.msra.mxu0 %v1069_v55 }
  0x85   : > { %652 = vmatprep.subr.bf16.mxu0 %v1070_v56 }
  0x88   : > { %653 = vmatpush2.bf16.msra.mxu0 %v1072_v57 }
  0x89   : > { %654 = vmatprep.subr.bf16.mxu0 %v1073_v58 }
  0x8c   : > { %655 = vmatpush2.bf16.msra.mxu0 %v1075_v59 }
  0x8d   : > { %656 = vmatprep.subr.bf16.mxu0 %v1076_v60 }
  0x90   : > { %657 = vmatpush2.bf16.msra.mxu0 %v1078_v61 }
  0x91   : > { %658 = vmatprep.subr.bf16.mxu0 %v1079_v62 }
  0x94   : > { %659 = vmatpush2.bf16.msra.mxu0 %v1081_v63 }
  0x95   : > { %660 = vmatprep.subr.bf16.mxu0 %v1082_v0 }
  0x98   : > { %661 = vmatpush2.bf16.msra.mxu0 %v1084_v1 }
  0x99   : > { %662 = vmatprep.subr.bf16.mxu0 %v1085_v2 }
  0x9c   : > { %663 = vmatpush2.bf16.msra.mxu0 %v1087_v3 }
  0x9f   : > { %665 = vmatmul.mubr.bf16.vlgmr.msra.gmra.mxu0 %v1088_v4 }
 0x15f   : > { %v666_v6 = vpop.f32.mrf.mxu0 }
 0x160   : > { %v675_v8 = vadd.f32 %v666_v6, %v424_v5 }
 0x161   : > { %v668_v9 = vpop.f32.mrf.mxu0 }
 0x162   : > { %679 = vst [vmem:[#allocation2 + $0x10] sm:$0xff] %v675_v8  ;;  %v676_v11 = vadd.f32 %v668_v9, %v425_v7 }
 0x163   : > { %v670_v12 = vpop.f32.mrf.mxu0 }
 0x164   : > { %680 = vst [vmem:[#allocation2] sm:$0xff] %v676_v11  ;;  %v677_v14 = vadd.f32 %v670_v12, %v426_v10  ;;  %686 = sbr.rel (%p920_p5) target bundleno = 371 (0x173), region = 112 }
 0x165   : > { %v672_v15 = vpop.f32.mrf.mxu0 }
 0x166   : > { %681 = vst [vmem:[#allocation2 + $0x18] sm:$0xff] %v677_v14  ;;  %v678_v16 = vadd.f32 %v672_v15, %v427_v13 }
 0x168   : > { %682 = vst [vmem:[#allocation2 + $0x8] sm:$0xff] %v678_v16 }
 0x169   : > { %v687_v17 = vld [vmem:[#allocation2 + $0x10] sm:$0xff] }
 0x16b   : > { %v688_v18 = vld [vmem:[#allocation2] sm:$0xff] }
 0x16c   : > { %v930_v20 = vpack.c.bf16 %v688_v18, %v687_v17 }
 0x16d   : > { %v689_v19 = vld [vmem:[#allocation2 + $0x18] sm:$0xff] }
 0x16e   : > { %703 = vst [vmem:[%s1430_s23] sm:$0xff] %v930_v20 }
 0x16f   : > { %v690_v21 = vld [vmem:[#allocation2 + $0x8] sm:$0xff] }
 0x170   : > { %v931_v22 = vpack.c.bf16 %v690_v21, %v689_v19 }
 0x172   : > { %704 = vst [vmem:[%s1430_s23 + $0x8] sm:$0xff] %v931_v22 }
 0x173 PF: > { %711 = sbr.rel (!%p1330_p13) target bundleno = 382 (0x17e), region = 116  ;;  %s1547_s22 = sld [smem:[#allocation10_spill]] (%p1330_p13) }
 0x174   : > { %s1548_s27 = sld [smem:[#allocation9_spill]] (%p1330_p13) }
 0x175   : > { %v750_v23 = vld [vmem:[%s1430_s23] sm:$0xff] (%p1330_p13)  ;;  %s1549_s6 = sld [smem:[#allocation12_spill]] (%p1330_p13) }
 0x179   : > { %s924_s3 = sshll.u32 %s1547_s22, 1  ;;  %v752_v24 = vld [vmem:[%s1430_s23 + $0x8] sm:$0xff] }
 0x17a   : > { %s713_s28 = sadd.s32 %s1548_s27, %s924_s3 }
 0x17b   : > { %s932_s30 = sshll.u32 %s713_s28, 3 }
 0x17c   : > { %s719_s7 = scalar_lea.vmem %s1549_s6, %s932_s30 }
 0x17d   : > { %751 = vst [vmem:[%s719_s7] sm:$0xff] %v750_v23  ;;  %753 = vst [vmem:[%s719_s7 + $0x40] sm:$0xff] %v752_v24 }
 0x17e PF: > { %s12_s21 = sadd.s32 1, %s1193_s21   ;;  %s1551_s8 = sld [smem:[#allocation11_spill]] }
 0x17f   : > { %p1482_p6 = scmp.ge.s32.totalorder %s12_s21, 74   ;;  %s1552_s9 = smov %s1149_s10 }
 0x180   : > { %s1553_s10 = smov %s1325_s13  ;;  %s1554_s11 = smov %s1157_s12 }
 0x181   : > { %s1555_s12 = smov %s1320_s15  ;;  %s1556_s13 = smov %s1165_s14 }
 0x182   : > { %s1557_s14 = smov %s1317_s17  ;;  %s1558_s15 = smov %s1181_s18 }
 0x183   : > { %s1559_s16 = smov %s1185_s19  ;;  %s1560_s17 = smov %s1189_s20 }
 0x184   : > { %s1561_s18 = smov %s1551_s8  ;;  %s1562_s19 = smov %s1569_s24 }
 0x185   : > { %s1563_s20 = smov %s1573_s25  ;;  %11 = sbr.rel (!%p1482_p6) target bundleno = 9 (0x9), region = 193 }

// kernel: mul.562
= control target key start
LH: loop header
LB: loop body
LE: loop exit
PB: predicated region body
PF: predicated region fallthrough
CT: control target
= control target key end

     0   :  { %s34_s0 = inlined_call_operand.vmem [shape: f32[512], index: 0, kind: input, shape index: {}]   ;;  %s35_s1 = inlined_call_operand.vmem [shape: f32[512], index: 1, kind: input, shape index: {}]   ;;  %s36_s2 = inlined_call_operand.vmem [shape: f32[512], index: 2, kind: output, shape index: {}]  }
   0x1   :  { %v3_v0 = vld [vmem:[%s34_s0] sm:$0xf] }
   0x2   :  { %v4_v1 = vld [vmem:[%s35_s1] sm:$0xf] }
   0x3   :  { %v7_v2 = vmul.f32 %v4_v1, %v3_v0 }
   0x5   :  { %9 = vst [vmem:[%s36_s2] sm:$0xf] %v7_v2 }

// kernel: resnest_forward.95
= control target key start
LH: loop header
LB: loop body
LE: loop exit
PB: predicated region body
PF: predicated region fallthrough
CT: control target
= control target key end

     0   :  { %v37_v0 = vlaneseq  ;;  %s306_s0 = inlined_call_operand.vmem [shape: bf16[16,512], index: 0, kind: input, shape index: {}]   ;;  %s307_s1 = inlined_call_operand.vmem [shape: bf16[16,512], index: 1, kind: input, shape index: {}]   ;;  %s308_s2 = inlined_call_operand.vmem [shape: f32[1,512], index: 2, kind: input, shape index: {}]   ;;  %s309_s3 = inlined_call_operand.vmem [shape: f32[1,512], index: 3, kind: input, shape index: {}]   ;;  %s310_s4 = inlined_call_operand.vmem [shape: f32[1,512], index: 4, kind: input, shape index: {}]   ;;  %s311_s5 = inlined_call_operand.vmem [shape: f32[1,512], index: 5, kind: input, shape index: {}]   ;;  %s312_s6 = inlined_call_operand.vmem [shape: bf16[16,512], index: 6, kind: output, shape index: {}]  }
   0x1   :  { %v23_v1 = vld [vmem:[%s306_s0] sm:$0xff]  ;;  %v24_v10 = vld [vmem:[%s306_s0 + $0x8] sm:$0xff]  ;;  %v25_v42 = vld [vmem:[%s306_s0 + $0x10] sm:$0xff] }
   0x2   :  { %v35_v2 = vld [vmem:[%s308_s2] sm:$0xf]  ;;  %v38_v3 = vshrl.u32 %v37_v0, 7  ;;  %v27_v5 = vunpack.c.l.bf16 %v23_v1  ;;  %v28_v6 = vunpack.c.h.bf16 %v23_v1  ;;  %v96_v11 = vld [vmem:[%s307_s1 + $0x8] sm:$0xff]  ;;  %v29_v16 = vunpack.c.l.bf16 %v24_v10  ;;  %v97_v47 = vld [vmem:[%s307_s1 + $0x10] sm:$0xff] }
   0x3   :  { %v95_v4 = vld [vmem:[%s307_s1] sm:$0xff]  ;;  %v30_v17 = vunpack.c.h.bf16 %v24_v10  ;;  %v101_v20 = vunpack.c.l.bf16 %v96_v11  ;;  %v102_v21 = vunpack.c.h.bf16 %v96_v11  ;;  %v31_v54 = vunpack.c.l.bf16 %v25_v42  ;;  %v26_v0 = vld [vmem:[%s306_s0 + $0x18] sm:$0xff] }
   0x4   :  { %v65_v7 = vld [vmem:[%s309_s3] sm:$0xf]  ;;  %v99_v8 = vunpack.c.l.bf16 %v95_v4  ;;  %v100_v9 = vunpack.c.h.bf16 %v95_v4  ;;  %v39_v12 = vsub.s32 0, %v38_v3  ;;  %v43_v13 = vsub.s32 1, %v38_v3  ;;  %v98_v1 = vld [vmem:[%s307_s1 + $0x18] sm:$0xff] }
   0x5   :  { %v107_v14 = vld [vmem:[%s310_s4] sm:$0xf]  ;;  %v47_v18 = vsub.s32 2, %v38_v3  ;;  %v51_v19 = vsub.s32 3, %v38_v3  ;;  %v32_v55 = vunpack.c.h.bf16 %v25_v42  ;;  %v103_v58 = vunpack.c.l.bf16 %v97_v47 }
   0x6   :  { %v145_v15 = vld [vmem:[%s311_s5] sm:$0xf]  ;;  %v40_v22 = vrot.slane %v35_v2, %v39_v12  ;;  %v44_v23 = vrot.slane %v35_v2, %v43_v13  ;;  %v70_v24 = vrot.slane %v65_v7, %v39_v12  ;;  %v74_v25 = vrot.slane %v65_v7, %v43_v13 }
   0x7   :  { %v112_v26 = vrot.slane %v107_v14, %v39_v12  ;;  %v116_v27 = vrot.slane %v107_v14, %v43_v13  ;;  %v150_v28 = vrot.slane %v145_v15, %v39_v12  ;;  %v154_v29 = vrot.slane %v145_v15, %v43_v13 }
   0x8   :  { %v57_v30 = vmul.f32 %v40_v22, %v27_v5  ;;  %v58_v31 = vmul.f32 %v44_v23, %v28_v6  ;;  %v48_v32 = vrot.slane %v35_v2, %v47_v18  ;;  %v52_v33 = vrot.slane %v35_v2, %v51_v19 }
   0x9   :  { %v129_v34 = vmul.f32 %v112_v26, %v99_v8  ;;  %v130_v35 = vmul.f32 %v116_v27, %v100_v9  ;;  %v78_v36 = vrot.slane %v65_v7, %v47_v18  ;;  %v82_v37 = vrot.slane %v65_v7, %v51_v19 }
   0xa   :  { %v87_v38 = vadd.f32 %v70_v24, %v57_v30  ;;  %v88_v39 = vadd.f32 %v74_v25, %v58_v31  ;;  %v59_v40 = vmul.f32 %v48_v32, %v29_v16  ;;  %v60_v41 = vmul.f32 %v52_v33, %v30_v17 }
   0xb   :  { %v120_v43 = vrot.slane %v107_v14, %v47_v18  ;;  %v124_v44 = vrot.slane %v107_v14, %v51_v19  ;;  %v158_v45 = vrot.slane %v145_v15, %v47_v18  ;;  %v162_v46 = vrot.slane %v145_v15, %v51_v19 }
   0xc   :  { %v137_v48 = vadd.f32 %v129_v34, %v87_v38  ;;  %v138_v49 = vadd.f32 %v130_v35, %v88_v39  ;;  %v89_v50 = vadd.f32 %v78_v36, %v59_v40  ;;  %v90_v51 = vadd.f32 %v82_v37, %v60_v41 }
   0xd   :  { %v131_v52 = vmul.f32 %v120_v43, %v101_v20  ;;  %v132_v53 = vmul.f32 %v124_v44, %v102_v21  ;;  %v104_v59 = vunpack.c.h.bf16 %v97_v47  ;;  %v61_v62 = vmul.f32 %v40_v22, %v31_v54 }
   0xe   :  { %v167_v56 = vadd.f32 %v150_v28, %v137_v48  ;;  %v168_v57 = vadd.f32 %v154_v29, %v138_v49  ;;  %v62_v63 = vmul.f32 %v44_v23, %v32_v55  ;;  %v133_v4 = vmul.f32 %v112_v26, %v103_v58 }
   0xf   :  { %v139_v60 = vadd.f32 %v131_v52, %v89_v50  ;;  %v140_v61 = vadd.f32 %v132_v53, %v90_v51  ;;  %v134_v5 = vmul.f32 %v116_v27, %v104_v59  ;;  %v91_v8 = vadd.f32 %v70_v24, %v61_v62 }
  0x10   :  { %v175_v2 = vmax.f32 %v167_v56, 0.0  ;;  %v176_v3 = vmax.f32 %v168_v57, 0.0  ;;  %v92_v9 = vadd.f32 %v74_v25, %v62_v63  ;;  %v33_v11 = vunpack.c.l.bf16 %v26_v0 }
  0x11   :  { %v169_v6 = vadd.f32 %v158_v45, %v139_v60  ;;  %v170_v7 = vadd.f32 %v162_v46, %v140_v61  ;;  %v34_v12 = vunpack.c.h.bf16 %v26_v0  ;;  %v105_v13 = vunpack.c.l.bf16 %v98_v1 }
  0x12   :  { %v219_v10 = vpack.c.bf16 %v176_v3, %v175_v2  ;;  %v141_v16 = vadd.f32 %v133_v4, %v91_v8  ;;  %v142_v17 = vadd.f32 %v134_v5, %v92_v9  ;;  %v63_v18 = vmul.f32 %v48_v32, %v33_v11 }
  0x13   :  { %v177_v14 = vmax.f32 %v169_v6, 0.0  ;;  %v178_v15 = vmax.f32 %v170_v7, 0.0  ;;  %v64_v19 = vmul.f32 %v52_v33, %v34_v12  ;;  %v106_v20 = vunpack.c.h.bf16 %v98_v1 }
  0x14   :  { %207 = vst [vmem:[%s312_s6] sm:$0xff] %v219_v10  ;;  %v135_v21 = vmul.f32 %v120_v43, %v105_v13  ;;  %v171_v23 = vadd.f32 %v150_v28, %v141_v16  ;;  %v172_v24 = vadd.f32 %v154_v29, %v142_v17  ;;  %v93_v25 = vadd.f32 %v78_v36, %v63_v18 }
  0x15   :  { %v220_v22 = vpack.c.bf16 %v178_v15, %v177_v14  ;;  %v94_v26 = vadd.f32 %v82_v37, %v64_v19  ;;  %v136_v27 = vmul.f32 %v124_v44, %v106_v20 }
  0x16   :  { %v179_v30 = vmax.f32 %v171_v23, 0.0  ;;  %v180_v31 = vmax.f32 %v172_v24, 0.0  ;;  %v143_v34 = vadd.f32 %v135_v21, %v93_v25 }
  0x17   :  { %208 = vst [vmem:[%s312_s6 + $0x8] sm:$0xff] %v220_v22  ;;  %v144_v35 = vadd.f32 %v136_v27, %v94_v26 }
  0x18   :  { %v221_v38 = vpack.c.bf16 %v180_v31, %v179_v30  ;;  %v173_v39 = vadd.f32 %v158_v45, %v143_v34 }
  0x19   :  { %v174_v32 = vadd.f32 %v162_v46, %v144_v35 }
  0x1a   :  { %209 = vst [vmem:[%s312_s6 + $0x10] sm:$0xff] %v221_v38  ;;  %v181_v28 = vmax.f32 %v173_v39, 0.0 }
  0x1b   :  { %v182_v29 = vmax.f32 %v174_v32, 0.0 }
  0x1d   :  { %v222_v33 = vpack.c.bf16 %v182_v29, %v181_v28 }
  0x1f   :  { %210 = vst [vmem:[%s312_s6 + $0x18] sm:$0xff] %v222_v33 }

// kernel: resnest_forward.93
= control target key start
LH: loop header
LB: loop body
LE: loop exit
PB: predicated region body
PF: predicated region fallthrough
CT: control target
= control target key end

     0   :  { %s1172_s9 = smov 0   ;;  %s1174_s10 = smov 0   ;;  %s1447_s0 = inlined_call_operand.vmem [shape: bf16[1,16,1024], index: 0, kind: input, shape index: {}]   ;;  %s1448_s1 = inlined_call_operand.vmem [shape: bf16[1,1024,512], index: 1, kind: input, shape index: {}]   ;;  %s1449_s2 = inlined_call_operand.vmem [shape: bf16[16,512], index: 2, kind: output, shape index: {}]  }
   0x1   :  { %s1176_s11 = smov 0   ;;  %s1178_s12 = smov 0  }
   0x2   :  { %s1180_s13 = smov 0   ;;  %s1182_s14 = smov 0  }
   0x3   :  { %s1184_s15 = smov 0   ;;  %s1186_s16 = smov 0  }
   0x4   :  { %s1188_s17 = smov 0   ;;  %s1190_s18 = smov 0  }
   0x5   :  { %s1192_s19 = smov 0  }
   0x6 LB: > { %s864_s20 = sadd.s32 4294967295, %s1154_s19   ;;  %s27_s21 = sadd.s32 1, %s1146_s17  ;;  %s1154_s19 = sphi %s1192_s19, %s12_s19   ;;  %s1150_s18 = sphi %s1190_s18, %s1468_s18   ;;  %s1146_s17 = sphi %s1188_s17, %s1467_s17   ;;  %s1142_s16 = sphi %s1186_s16, %s1466_s16   ;;  %s1138_s15 = sphi %s1184_s15, %s1465_s15   ;;  %s1134_s14 = sphi %s1182_s14, %s1464_s14   ;;  %s1130_s13 = sphi %s1180_s13, %s1463_s13   ;;  %s1126_s12 = sphi %s1178_s12, %s1462_s12   ;;  %s1122_s11 = sphi %s1176_s11, %s1461_s11   ;;  %s1118_s10 = sphi %s1174_s10, %s1460_s10   ;;  %s1114_s9 = sphi %s1172_s9, %s1459_s9  }
   0x7   : > { %p28_p0 = scmp.ge.s32.totalorder %s27_s21, 4  ;;  %s30_s22 = sadd.s32 1, %s1150_s18 }
   0x8   : > { %s49_s23 = sadd.s32 1, %s1134_s14  ;;  %p56_p1 = scmp.ne.s32.totalorder %s1134_s14, %s1130_s13 }
   0x9   : > { %s1470_s21 = smov (%p28_p0, %s27_s21), 0  ;;  %s1472_s22 = smov (!%p28_p0, %s30_s22), %s1150_s18 }
   0xa   : > { %1452 = sst [smem:[#allocation6_spill]] %s1470_s21  ;;  %s45_s24 = ssub.s32 %s1146_s17, %s1470_s21 }
   0xb   : > { %p57_p2 = scmp.eq.s32.totalorder %s1154_s19, 0  ;;  %p32_p3 = scmp.ge.s32.totalorder %s1472_s22, 2 }
   0xc   : > { %p47_p4 = scmp.eq.s32.totalorder %s45_s24, 0  ;;  %s79_s26 = sadd.s32 1, %s1126_s12 }
   0xd   : > { %p1239_p5 = por %p57_p2, %p56_p1  ;;  %s1474_s22 = smov (%p32_p3, %s1472_s22), 0 }
   0xe   : > { %1454 = sst [smem:[#allocation7_spill]] %s1474_s22  ;;  %s75_s28 = ssub.s32 %s1150_s18, %s1474_s22 }
   0xf   : > { %s1247_s27 = scalar_select %p47_p4, %s1134_s14, %s49_s23  }
  0x10   : > { %p86_p6 = scmp.ne.s32.totalorder %s1126_s12, %s1122_s11  ;;  %s76_s29 = sor.u32 %s75_s28, %s45_s24 }
  0x11   : > { %p109_p7 = scmp.eq.s32.totalorder %s75_s28, 0  ;;  %p77_p8 = scmp.eq.s32.totalorder %s76_s29, 0 }
  0x12   : > { %p1253_p9 = por %p86_p6, %p57_p2  ;;  %s111_s3 = sadd.s32 1, %s1118_s10 }
  0x13   : > { %p121_p10 = scmp.ne.s32.totalorder %s1118_s10, %s1114_s9  ;;  %p122_p11 = scmp.eq.s32.totalorder %s864_s20, 7 }
  0x14   : > { %s1261_s4 = scalar_select %p77_p8, %s1126_s12, %s79_s26  }
  0x15   : > { %s1264_s5 = scalar_select %p109_p7, %s1118_s10, %s111_s3  }
  0x16   : > { %p1266_p12 = por %p122_p11, %p121_p10  ;;  %p867_p13 = scmp.ge.s32.totalorder %s1154_s19, 8 }
  0x18   : > { %144 = sbr.rel (%p867_p13) target bundleno = 58 (0x3a), region = 16 }
  0x1d   : > { %147 = sbr.rel (!%p1239_p5) target bundleno = 35 (0x23), region = 20  ;;  %s149_s7 = sand.u32 (%p1239_p5), 1, %s1134_s14  }
  0x1e   : > { %s923_s8 = sshll.u32 (%p1239_p5), %s1146_s17, 3  ;;  %s868_s23 = sshll.u32 (%p1239_p5), %s149_s7, 4 }
  0x1f   : > { %s159_s28 = scalar_lea.vmem (%p1239_p5), %s1447_s0, %s923_s8  ;;  %s151_s20 = scalar_lea.vmem (%p1239_p5), [#allocation3], %s868_s23 }
  0x20   : > { %v190_v0 = vld [vmem:[%s159_s28] sm:$0xff] (%p1239_p5) }
  0x21   : > { %v192_v1 = vld [vmem:[%s159_s28 + $0x20] sm:$0xff] (%p1239_p5)  ;;  %191 = vst [vmem:[%s151_s20] sm:$0xff] (%p1239_p5), %v190_v0 }
  0x22   : > { %193 = vst [vmem:[%s151_s20 + $0x8] sm:$0xff] %v192_v1 }
  0x23 PF: > { %199 = sbr.rel (!%p1253_p9) target bundleno = 58 (0x3a), region = 58  ;;  %s201_s25 = sand.u32 (%p1253_p9), 1, %s1126_s12  }
  0x24   : > { %s873_s29 = sshll.u32 (%p1253_p9), %s1150_s18, 1  ;;  %s871_s3 = sshll.u32 (%p1253_p9), %s201_s25, 8 }
  0x25   : > { %s924_s7 = sshll.u32 (%p1253_p9), %s1146_s17, 7  ;;  %s1291_s30 = scalar_lea.vmem (%p1253_p9), [#allocation4], %s871_s3 }
  0x26   : > { %s207_s22 = sadd.s32 (%p1253_p9), %s924_s7, %s873_s29 }
  0x27   : > { %s875_s21 = sshll.u32 (%p1253_p9), %s207_s22, 2 }
  0x28   : > { %s1286_s26 = scalar_lea.vmem %s1448_s1, %s875_s21 }
  0x29   : > { %v302_v2 = vld [vmem:[%s1286_s26] sm:$0xff]  ;;  %v304_v3 = vld [vmem:[%s1286_s26 + $0x10] sm:$0xff] }
  0x2a   : > { %v306_v4 = vld [vmem:[%s1286_s26 + $0x20] sm:$0xff]  ;;  %303 = vst [vmem:[%s1291_s30] sm:$0xff] %v302_v2  ;;  %305 = vst [vmem:[%s1291_s30 + $0x8] sm:$0xff] %v304_v3  ;;  %v308_v5 = vld [vmem:[%s1286_s26 + $0x30] sm:$0xff] }
  0x2b   : > { %307 = vst [vmem:[%s1291_s30 + $0x10] sm:$0xff] %v306_v4  ;;  %v310_v6 = vld [vmem:[%s1286_s26 + $0x40] sm:$0xff]  ;;  %v312_v7 = vld [vmem:[%s1286_s26 + $0x50] sm:$0xff]  ;;  %309 = vst [vmem:[%s1291_s30 + $0x18] sm:$0xff] %v308_v5 }
  0x2c   : > { %311 = vst [vmem:[%s1291_s30 + $0x20] sm:$0xff] %v310_v6  ;;  %313 = vst [vmem:[%s1291_s30 + $0x28] sm:$0xff] %v312_v7  ;;  %v314_v8 = vld [vmem:[%s1286_s26 + $0x60] sm:$0xff]  ;;  %v316_v9 = vld [vmem:[%s1286_s26 + $0x70] sm:$0xff] }
  0x2d   : > { %v318_v10 = vld [vmem:[%s1286_s26 + $0x80] sm:$0xff]  ;;  %315 = vst [vmem:[%s1291_s30 + $0x30] sm:$0xff] %v314_v8  ;;  %317 = vst [vmem:[%s1291_s30 + $0x38] sm:$0xff] %v316_v9  ;;  %v320_v11 = vld [vmem:[%s1286_s26 + $0x90] sm:$0xff] }
  0x2e   : > { %319 = vst [vmem:[%s1291_s30 + $0x40] sm:$0xff] %v318_v10  ;;  %v322_v12 = vld [vmem:[%s1286_s26 + $0xa0] sm:$0xff]  ;;  %v324_v13 = vld [vmem:[%s1286_s26 + $0xb0] sm:$0xff]  ;;  %321 = vst [vmem:[%s1291_s30 + $0x48] sm:$0xff] %v320_v11 }
  0x2f   : > { %323 = vst [vmem:[%s1291_s30 + $0x50] sm:$0xff] %v322_v12  ;;  %325 = vst [vmem:[%s1291_s30 + $0x58] sm:$0xff] %v324_v13  ;;  %v326_v14 = vld [vmem:[%s1286_s26 + $0xc0] sm:$0xff]  ;;  %v328_v15 = vld [vmem:[%s1286_s26 + $0xd0] sm:$0xff] }
  0x30   : > { %v330_v16 = vld [vmem:[%s1286_s26 + $0xe0] sm:$0xff]  ;;  %327 = vst [vmem:[%s1291_s30 + $0x60] sm:$0xff] %v326_v14  ;;  %329 = vst [vmem:[%s1291_s30 + $0x68] sm:$0xff] %v328_v15  ;;  %v332_v17 = vld [vmem:[%s1286_s26 + $0xf0] sm:$0xff] }
  0x31   : > { %331 = vst [vmem:[%s1291_s30 + $0x70] sm:$0xff] %v330_v16  ;;  %v334_v18 = vld [vmem:[%s1286_s26 + $0x100] sm:$0xff]  ;;  %v336_v19 = vld [vmem:[%s1286_s26 + $0x110] sm:$0xff]  ;;  %333 = vst [vmem:[%s1291_s30 + $0x78] sm:$0xff] %v332_v17 }
  0x32   : > { %335 = vst [vmem:[%s1291_s30 + $0x80] sm:$0xff] %v334_v18  ;;  %337 = vst [vmem:[%s1291_s30 + $0x88] sm:$0xff] %v336_v19  ;;  %v338_v20 = vld [vmem:[%s1286_s26 + $0x120] sm:$0xff]  ;;  %v340_v21 = vld [vmem:[%s1286_s26 + $0x130] sm:$0xff] }
  0x33   : > { %v342_v22 = vld [vmem:[%s1286_s26 + $0x140] sm:$0xff]  ;;  %339 = vst [vmem:[%s1291_s30 + $0x90] sm:$0xff] %v338_v20  ;;  %341 = vst [vmem:[%s1291_s30 + $0x98] sm:$0xff] %v340_v21  ;;  %v344_v23 = vld [vmem:[%s1286_s26 + $0x150] sm:$0xff] }
  0x34   : > { %343 = vst [vmem:[%s1291_s30 + $0xa0] sm:$0xff] %v342_v22  ;;  %v346_v24 = vld [vmem:[%s1286_s26 + $0x160] sm:$0xff]  ;;  %v348_v25 = vld [vmem:[%s1286_s26 + $0x170] sm:$0xff]  ;;  %345 = vst [vmem:[%s1291_s30 + $0xa8] sm:$0xff] %v344_v23 }
  0x35   : > { %347 = vst [vmem:[%s1291_s30 + $0xb0] sm:$0xff] %v346_v24  ;;  %349 = vst [vmem:[%s1291_s30 + $0xb8] sm:$0xff] %v348_v25  ;;  %v350_v26 = vld [vmem:[%s1286_s26 + $0x180] sm:$0xff]  ;;  %v352_v27 = vld [vmem:[%s1286_s26 + $0x190] sm:$0xff] }
  0x36   : > { %v354_v28 = vld [vmem:[%s1286_s26 + $0x1a0] sm:$0xff]  ;;  %351 = vst [vmem:[%s1291_s30 + $0xc0] sm:$0xff] %v350_v26  ;;  %353 = vst [vmem:[%s1291_s30 + $0xc8] sm:$0xff] %v352_v27  ;;  %v356_v29 = vld [vmem:[%s1286_s26 + $0x1b0] sm:$0xff] }
  0x37   : > { %355 = vst [vmem:[%s1291_s30 + $0xd0] sm:$0xff] %v354_v28  ;;  %v358_v30 = vld [vmem:[%s1286_s26 + $0x1c0] sm:$0xff]  ;;  %v360_v31 = vld [vmem:[%s1286_s26 + $0x1d0] sm:$0xff]  ;;  %357 = vst [vmem:[%s1291_s30 + $0xd8] sm:$0xff] %v356_v29 }
  0x38   : > { %359 = vst [vmem:[%s1291_s30 + $0xe0] sm:$0xff] %v358_v30  ;;  %361 = vst [vmem:[%s1291_s30 + $0xe8] sm:$0xff] %v360_v31  ;;  %v362_v32 = vld [vmem:[%s1286_s26 + $0x1e0] sm:$0xff]  ;;  %v364_v33 = vld [vmem:[%s1286_s26 + $0x1f0] sm:$0xff] }
  0x39   : > { %363 = vst [vmem:[%s1291_s30 + $0xf0] sm:$0xff] %v362_v32  ;;  %365 = vst [vmem:[%s1291_s30 + $0xf8] sm:$0xff] %v364_v33 }
  0x3a PF: > { %p876_p0 = scmp.ge.s32.totalorder %s1154_s19, 1  ;;  %p370_p1 = scmp.lt.s32.totalorder %s1154_s19, 9 }
  0x3c   : > { %p371_p2 = pnand %p876_p0, %p370_p1 }
  0x3d   : > { %s377_s21 = sand.u32 (!%p371_p2), 1, %s1130_s13   ;;  %s384_s22 = sand.u32 (!%p371_p2), 1, %s1122_s11  }
  0x3e   : > { %374 = sbr.rel (%p371_p2) target bundleno = 361 (0x169), region = 96  ;;  %s1358_s23 = sshll.u32 (!%p371_p2), %s377_s21, 4 }
  0x3f   : > { %s878_s28 = sshll.u32 (!%p371_p2), %s384_s22, 8  ;;  %s405_s20 = sand.u32 (!%p371_p2), 1, %s1114_s9  }
  0x40   : > { %s879_s25 = sshll.u32 (!%p371_p2), %s405_s20, 4  ;;  %s379_s29 = scalar_lea.vmem (!%p371_p2), [#allocation3], %s1358_s23 }
  0x41   : > { %s1362_s3 = scalar_lea.vmem (!%p371_p2), [#allocation4], %s878_s28  ;;  %s1364_s7 = scalar_lea.vmem (!%p371_p2), [#allocation5], %s879_s25 }
  0x42   : > { %p880_p3 = scmp.ne.s32.totalorder (!%p371_p2), %s1138_s15, 0 }
  0x44   : > { %419 = sbr.rel (%p880_p3) target bundleno = 76 (0x4c), region = 108 }
  0x49   : > { %v1156_v34 = vmov 0.0  }
  0x4a   : > { %420 = vst [vmem:[#allocation2 + $0x10] sm:$0xff] %v1156_v34  ;;  %421 = vst [vmem:[#allocation2] sm:$0xff] %v1156_v34 }
  0x4b   : > { %422 = vst [vmem:[#allocation2 + $0x18] sm:$0xff] %v1156_v34  ;;  %423 = vst [vmem:[#allocation2 + $0x8] sm:$0xff] %v1156_v34 }
  0x4c PF: > { %v1017_v35 = vld [vmem:[%s1362_s3 + $0x74] ss:$8 sps:$4 sm:$0xff]   ;;  %v1019_v36 = vld [vmem:[%s1362_s3 + $0x70] ss:$8 sps:$4 sm:$0xff]   ;;  %v1020_v37 = vld [vmem:[%s1362_s3 + $0x64] ss:$8 sps:$4 sm:$0xff]  }
  0x4d   : > { %632 = vmatprep.subr.bf16.mxu0 %v1017_v35  ;;  %v1022_v38 = vld [vmem:[%s1362_s3 + $0x60] ss:$8 sps:$4 sm:$0xff]   ;;  %v1023_v39 = vld [vmem:[%s1362_s3 + $0x54] ss:$8 sps:$4 sm:$0xff]   ;;  %v1025_v40 = vld [vmem:[%s1362_s3 + $0x50] ss:$8 sps:$4 sm:$0xff]  }
  0x4e   : > { %633 = vmatpush1.bf16.msra.mxu0 %v1019_v36  ;;  %v1026_v41 = vld [vmem:[%s1362_s3 + $0x44] ss:$8 sps:$4 sm:$0xff]   ;;  %v1028_v42 = vld [vmem:[%s1362_s3 + $0x40] ss:$8 sps:$4 sm:$0xff]   ;;  %v1029_v43 = vld [vmem:[%s1362_s3 + $0x34] ss:$8 sps:$4 sm:$0xff]  }
  0x4f   : > { %634 = vmatprep.subr.bf16.mxu0 %v1020_v37  ;;  %v1031_v44 = vld [vmem:[%s1362_s3 + $0x30] ss:$8 sps:$4 sm:$0xff]   ;;  %v1032_v45 = vld [vmem:[%s1362_s3 + $0x24] ss:$8 sps:$4 sm:$0xff]   ;;  %v1034_v46 = vld [vmem:[%s1362_s3 + $0x20] ss:$8 sps:$4 sm:$0xff]  }
  0x50   : > { %v1035_v47 = vld [vmem:[%s1362_s3 + $0x14] ss:$8 sps:$4 sm:$0xff]   ;;  %v1037_v49 = vld [vmem:[%s1362_s3 + $0x10] ss:$8 sps:$4 sm:$0xff]   ;;  %v1038_v50 = vld [vmem:[%s1362_s3 + $0x4] ss:$8 sps:$4 sm:$0xff]  }
  0x51   : > { %v1067_v48 = vld [vmem:[%s379_s29 + $0x4] ss:$8 sps:$4 sm:$0xff]   ;;  %v1040_v51 = vld [vmem:[%s1362_s3] ss:$8 sps:$4 sm:$0xff]   ;;  %v1043_v53 = vld [vmem:[%s1362_s3 + $0xf0] ss:$8 sps:$4 sm:$0xff]  }
  0x52   : > { %635 = vmatpush1.bf16.msra.mxu0 %v1022_v38  ;;  %664 = vmatprep.mubr.bf16.mxu0 %v1067_v48  ;;  %v1041_v52 = vld [vmem:[%s1362_s3 + $0xf4] ss:$8 sps:$4 sm:$0xff]   ;;  %v1044_v54 = vld [vmem:[%s1362_s3 + $0xe4] ss:$8 sps:$4 sm:$0xff]   ;;  %v1046_v55 = vld [vmem:[%s1362_s3 + $0xe0] ss:$8 sps:$4 sm:$0xff]  }
  0x53   : > { %636 = vmatprep.subr.bf16.mxu0 %v1023_v39  ;;  %v1047_v56 = vld [vmem:[%s1362_s3 + $0xd4] ss:$8 sps:$4 sm:$0xff]   ;;  %v1049_v57 = vld [vmem:[%s1362_s3 + $0xd0] ss:$8 sps:$4 sm:$0xff]   ;;  %v1050_v58 = vld [vmem:[%s1362_s3 + $0xc4] ss:$8 sps:$4 sm:$0xff]  }
  0x54   : > { %v1052_v59 = vld [vmem:[%s1362_s3 + $0xc0] ss:$8 sps:$4 sm:$0xff]   ;;  %v1053_v60 = vld [vmem:[%s1362_s3 + $0xb4] ss:$8 sps:$4 sm:$0xff]   ;;  %v1055_v61 = vld [vmem:[%s1362_s3 + $0xb0] ss:$8 sps:$4 sm:$0xff]  }
  0x55   : > { %v1056_v62 = vld [vmem:[%s1362_s3 + $0xa4] ss:$8 sps:$4 sm:$0xff]   ;;  %v1058_v63 = vld [vmem:[%s1362_s3 + $0xa0] ss:$8 sps:$4 sm:$0xff]   ;;  %v1059_v0 = vld [vmem:[%s1362_s3 + $0x94] ss:$8 sps:$4 sm:$0xff]  }
  0x56   : > { %637 = vmatpush1.bf16.msra.mxu0 %v1025_v40  ;;  %v1061_v1 = vld [vmem:[%s1362_s3 + $0x90] ss:$8 sps:$4 sm:$0xff]   ;;  %v1062_v2 = vld [vmem:[%s1362_s3 + $0x84] ss:$8 sps:$4 sm:$0xff]   ;;  %v1064_v3 = vld [vmem:[%s1362_s3 + $0x80] ss:$8 sps:$4 sm:$0xff]  }
  0x57   : > { %638 = vmatprep.subr.bf16.mxu0 %v1026_v41  ;;  %v1065_v4 = vld [vmem:[%s379_s29] ss:$8 sps:$4 sm:$0xff]   ;;  %p915_p4 = scmp.ne.s32.totalorder %s1138_s15, 3 }
  0x58   : > { %v424_v5 = vld [vmem:[#allocation2 + $0x10] sm:$0xff]  ;;  %v425_v7 = vld [vmem:[#allocation2] sm:$0xff]  ;;  %v426_v10 = vld [vmem:[#allocation2 + $0x18] sm:$0xff] }
  0x59   : > { %v427_v13 = vld [vmem:[#allocation2 + $0x8] sm:$0xff] }
  0x5a   : > { %639 = vmatpush1.bf16.msra.mxu0 %v1028_v42 }
  0x5b   : > { %640 = vmatprep.subr.bf16.mxu0 %v1029_v43 }
  0x5e   : > { %641 = vmatpush1.bf16.msra.mxu0 %v1031_v44 }
  0x5f   : > { %642 = vmatprep.subr.bf16.mxu0 %v1032_v45 }
  0x62   : > { %643 = vmatpush1.bf16.msra.mxu0 %v1034_v46 }
  0x63   : > { %644 = vmatprep.subr.bf16.mxu0 %v1035_v47 }
  0x66   : > { %645 = vmatpush1.bf16.msra.mxu0 %v1037_v49 }
  0x67   : > { %646 = vmatprep.subr.bf16.mxu0 %v1038_v50 }
  0x6a   : > { %647 = vmatpush1.bf16.msra.mxu0 %v1040_v51 }
  0x6b   : > { %648 = vmatprep.subr.bf16.mxu0 %v1041_v52 }
  0x6e   : > { %649 = vmatpush2.bf16.msra.mxu0 %v1043_v53 }
  0x6f   : > { %650 = vmatprep.subr.bf16.mxu0 %v1044_v54 }
  0x72   : > { %651 = vmatpush2.bf16.msra.mxu0 %v1046_v55 }
  0x73   : > { %652 = vmatprep.subr.bf16.mxu0 %v1047_v56 }
  0x76   : > { %653 = vmatpush2.bf16.msra.mxu0 %v1049_v57 }
  0x77   : > { %654 = vmatprep.subr.bf16.mxu0 %v1050_v58 }
  0x7a   : > { %655 = vmatpush2.bf16.msra.mxu0 %v1052_v59 }
  0x7b   : > { %656 = vmatprep.subr.bf16.mxu0 %v1053_v60 }
  0x7e   : > { %657 = vmatpush2.bf16.msra.mxu0 %v1055_v61 }
  0x7f   : > { %658 = vmatprep.subr.bf16.mxu0 %v1056_v62 }
  0x82   : > { %659 = vmatpush2.bf16.msra.mxu0 %v1058_v63 }
  0x83   : > { %660 = vmatprep.subr.bf16.mxu0 %v1059_v0 }
  0x86   : > { %661 = vmatpush2.bf16.msra.mxu0 %v1061_v1 }
  0x87   : > { %662 = vmatprep.subr.bf16.mxu0 %v1062_v2 }
  0x8a   : > { %663 = vmatpush2.bf16.msra.mxu0 %v1064_v3 }
  0x8d   : > { %665 = vmatmul.mubr.bf16.vlgmr.msra.gmra.mxu0 %v1065_v4 }
 0x14d   : > { %v666_v6 = vpop.f32.mrf.mxu0 }
 0x14e   : > { %v675_v8 = vadd.f32 %v666_v6, %v424_v5 }
 0x14f   : > { %v668_v9 = vpop.f32.mrf.mxu0 }
 0x150   : > { %679 = vst [vmem:[#allocation2 + $0x10] sm:$0xff] %v675_v8  ;;  %v676_v11 = vadd.f32 %v668_v9, %v425_v7 }
 0x151   : > { %v670_v12 = vpop.f32.mrf.mxu0 }
 0x152   : > { %680 = vst [vmem:[#allocation2] sm:$0xff] %v676_v11  ;;  %v677_v14 = vadd.f32 %v670_v12, %v426_v10  ;;  %686 = sbr.rel (%p915_p4) target bundleno = 353 (0x161), region = 112 }
 0x153   : > { %v672_v15 = vpop.f32.mrf.mxu0 }
 0x154   : > { %681 = vst [vmem:[#allocation2 + $0x18] sm:$0xff] %v677_v14  ;;  %v678_v16 = vadd.f32 %v672_v15, %v427_v13 }
 0x156   : > { %682 = vst [vmem:[#allocation2 + $0x8] sm:$0xff] %v678_v16 }
 0x157   : > { %v687_v17 = vld [vmem:[#allocation2 + $0x10] sm:$0xff] }
 0x159   : > { %v688_v18 = vld [vmem:[#allocation2] sm:$0xff] }
 0x15a   : > { %v925_v20 = vpack.c.bf16 %v688_v18, %v687_v17 }
 0x15b   : > { %v689_v19 = vld [vmem:[#allocation2 + $0x18] sm:$0xff] }
 0x15c   : > { %703 = vst [vmem:[%s1364_s7] sm:$0xff] %v925_v20 }
 0x15d   : > { %v690_v21 = vld [vmem:[#allocation2 + $0x8] sm:$0xff] }
 0x15e   : > { %v926_v22 = vpack.c.bf16 %v690_v21, %v689_v19 }
 0x160   : > { %704 = vst [vmem:[%s1364_s7 + $0x8] sm:$0xff] %v926_v22 }
 0x161 PF: > { %711 = sbr.rel (!%p1266_p12) target bundleno = 361 (0x169), region = 116  ;;  %s927_s9 = sshll.u32 (%p1266_p12), %s1142_s16, 3 }
 0x162   : > { %s719_s15 = scalar_lea.vmem (%p1266_p12), %s1449_s2, %s927_s9 }
 0x163   : > { %v750_v23 = vld [vmem:[%s1364_s7] sm:$0xff] (%p1266_p12) }
 0x164   : > { %751 = vst [vmem:[%s719_s15] sm:$0xff] (%p1266_p12), %v750_v23 }
 0x167   : > { %v752_v24 = vld [vmem:[%s1364_s7 + $0x8] sm:$0xff] }
 0x168   : > { %753 = vst [vmem:[%s719_s15 + $0x10] sm:$0xff] %v752_v24 }
 0x169 PF: > { %s12_s19 = sadd.s32 1, %s1154_s19   ;;  %s1457_s6 = sld [smem:[#allocation6_spill]] }
 0x16a   : > { %p9_p5 = scmp.ge.s32.totalorder %s12_s19, 10   ;;  %s1458_s24 = sld [smem:[#allocation7_spill]] }
 0x16b   : > { %s1459_s9 = smov %s1118_s10  ;;  %s1460_s10 = smov %s1264_s5 }
 0x16c   : > { %s1461_s11 = smov %s1126_s12  ;;  %s1462_s12 = smov %s1261_s4 }
 0x16d   : > { %s1463_s13 = smov %s1134_s14  ;;  %s1464_s14 = smov %s1247_s27 }
 0x16e   : > { %s1465_s15 = smov %s1146_s17  ;;  %s1466_s16 = smov %s1150_s18 }
 0x16f   : > { %s1467_s17 = smov %s1457_s6  ;;  %11 = sbr.rel (!%p9_p5) target bundleno = 6 (0x6), region = 193 }
 0x170   : > { %s1468_s18 = smov %s1458_s24 }

// kernel: resnest_forward.96
= control target key start
LH: loop header
LB: loop body
LE: loop exit
PB: predicated region body
PF: predicated region fallthrough
CT: control target
= control target key end

     0   :  { %s1172_s9 = smov 0   ;;  %s1174_s10 = smov 0   ;;  %s1447_s0 = inlined_call_operand.vmem [shape: bf16[1,16,512], index: 0, kind: input, shape index: {}]   ;;  %s1448_s1 = inlined_call_operand.vmem [shape: bf16[1,512,1024], index: 1, kind: input, shape index: {}]   ;;  %s1449_s2 = inlined_call_operand.vmem [shape: bf16[16,1024], index: 2, kind: output, shape index: {}]  }
   0x1   :  { %s1176_s11 = smov 0   ;;  %s1178_s12 = smov 0  }
   0x2   :  { %s1180_s13 = smov 0   ;;  %s1182_s14 = smov 0  }
   0x3   :  { %s1184_s15 = smov 0   ;;  %s1186_s16 = smov 0  }
   0x4   :  { %s1188_s17 = smov 0   ;;  %s1190_s18 = smov 0  }
   0x5   :  { %s1192_s19 = smov 0  }
   0x6 LB: > { %s864_s20 = sadd.s32 4294967295, %s1154_s19   ;;  %s27_s21 = sadd.s32 1, %s1146_s17  ;;  %s1154_s19 = sphi %s1192_s19, %s12_s19   ;;  %s1150_s18 = sphi %s1190_s18, %s1468_s18   ;;  %s1146_s17 = sphi %s1188_s17, %s1467_s17   ;;  %s1142_s16 = sphi %s1186_s16, %s1466_s16   ;;  %s1138_s15 = sphi %s1184_s15, %s1465_s15   ;;  %s1134_s14 = sphi %s1182_s14, %s1464_s14   ;;  %s1130_s13 = sphi %s1180_s13, %s1463_s13   ;;  %s1126_s12 = sphi %s1178_s12, %s1462_s12   ;;  %s1122_s11 = sphi %s1176_s11, %s1461_s11   ;;  %s1118_s10 = sphi %s1174_s10, %s1460_s10   ;;  %s1114_s9 = sphi %s1172_s9, %s1459_s9  }
   0x7   : > { %p28_p0 = scmp.ge.s32.totalorder %s27_s21, 2  ;;  %s30_s22 = sadd.s32 1, %s1150_s18 }
   0x8   : > { %s49_s23 = sadd.s32 1, %s1134_s14  ;;  %p56_p1 = scmp.ne.s32.totalorder %s1134_s14, %s1130_s13 }
   0x9   : > { %s1470_s21 = smov (%p28_p0, %s27_s21), 0  ;;  %s1472_s22 = smov (!%p28_p0, %s30_s22), %s1150_s18 }
   0xa   : > { %1452 = sst [smem:[#allocation6_spill]] %s1470_s21  ;;  %s45_s24 = ssub.s32 %s1146_s17, %s1470_s21 }
   0xb   : > { %p57_p2 = scmp.eq.s32.totalorder %s1154_s19, 0  ;;  %p32_p3 = scmp.ge.s32.totalorder %s1472_s22, 4 }
   0xc   : > { %p47_p4 = scmp.eq.s32.totalorder %s45_s24, 0  ;;  %s79_s26 = sadd.s32 1, %s1126_s12 }
   0xd   : > { %p1239_p5 = por %p57_p2, %p56_p1  ;;  %s1474_s22 = smov (%p32_p3, %s1472_s22), 0 }
   0xe   : > { %1454 = sst [smem:[#allocation7_spill]] %s1474_s22  ;;  %s75_s28 = ssub.s32 %s1150_s18, %s1474_s22 }
   0xf   : > { %s1247_s27 = scalar_select %p47_p4, %s1134_s14, %s49_s23  }
  0x10   : > { %p86_p6 = scmp.ne.s32.totalorder %s1126_s12, %s1122_s11  ;;  %s76_s29 = sor.u32 %s75_s28, %s45_s24 }
  0x11   : > { %p109_p7 = scmp.eq.s32.totalorder %s75_s28, 0  ;;  %p77_p8 = scmp.eq.s32.totalorder %s76_s29, 0 }
  0x12   : > { %p1253_p9 = por %p86_p6, %p57_p2  ;;  %s111_s3 = sadd.s32 1, %s1118_s10 }
  0x13   : > { %p121_p10 = scmp.ne.s32.totalorder %s1118_s10, %s1114_s9  ;;  %p122_p11 = scmp.eq.s32.totalorder %s864_s20, 7 }
  0x14   : > { %s1261_s4 = scalar_select %p77_p8, %s1126_s12, %s79_s26  }
  0x15   : > { %s1264_s5 = scalar_select %p109_p7, %s1118_s10, %s111_s3  }
  0x16   : > { %p1266_p12 = por %p122_p11, %p121_p10  ;;  %p867_p13 = scmp.ge.s32.totalorder %s1154_s19, 8 }
  0x18   : > { %144 = sbr.rel (%p867_p13) target bundleno = 73 (0x49), region = 16 }
  0x1d   : > { %147 = sbr.rel (!%p1239_p5) target bundleno = 34 (0x22), region = 20  ;;  %s149_s7 = sand.u32 (%p1239_p5), 1, %s1134_s14  }
  0x1e   : > { %s923_s8 = sshll.u32 (%p1239_p5), %s1146_s17, 3  ;;  %s868_s23 = sshll.u32 (%p1239_p5), %s149_s7, 4 }
  0x1f   : > { %s159_s28 = scalar_lea.vmem (%p1239_p5), %s1447_s0, %s923_s8  ;;  %s151_s20 = scalar_lea.vmem (%p1239_p5), [#allocation3], %s868_s23 }
  0x20   : > { %v190_v0 = vld [vmem:[%s159_s28] sm:$0xff] (%p1239_p5)  ;;  %v192_v1 = vld [vmem:[%s159_s28 + $0x10] sm:$0xff] (%p1239_p5) }
  0x21   : > { %191 = vst [vmem:[%s151_s20] sm:$0xff] (%p1239_p5), %v190_v0  ;;  %193 = vst [vmem:[%s151_s20 + $0x8] sm:$0xff] (%p1239_p5), %v192_v1 }
  0x22 PF: > { %199 = sbr.rel (!%p1253_p9) target bundleno = 73 (0x49), region = 58  ;;  %s201_s25 = sand.u32 (%p1253_p9), 1, %s1126_s12  }
  0x23   : > { %s873_s29 = sshll.u32 (%p1253_p9), %s1150_s18, 1  ;;  %s871_s3 = sshll.u32 (%p1253_p9), %s201_s25, 8 }
  0x24   : > { %s924_s7 = sshll.u32 (%p1253_p9), %s1146_s17, 8  ;;  %s1291_s30 = scalar_lea.vmem (%p1253_p9), [#allocation4], %s871_s3 }
  0x25   : > { %s207_s22 = sadd.s32 (%p1253_p9), %s924_s7, %s873_s29 }
  0x26   : > { %s875_s21 = sshll.u32 (%p1253_p9), %s207_s22, 2 }
  0x27   : > { %s1286_s26 = scalar_lea.vmem %s1448_s1, %s875_s21 }
  0x28   : > { %v302_v2 = vld [vmem:[%s1286_s26] sm:$0xff] }
  0x29   : > { %v304_v3 = vld [vmem:[%s1286_s26 + $0x20] sm:$0xff]  ;;  %303 = vst [vmem:[%s1291_s30] sm:$0xff] %v302_v2 }
  0x2a   : > { %v306_v4 = vld [vmem:[%s1286_s26 + $0x40] sm:$0xff]  ;;  %305 = vst [vmem:[%s1291_s30 + $0x8] sm:$0xff] %v304_v3 }
  0x2b   : > { %307 = vst [vmem:[%s1291_s30 + $0x10] sm:$0xff] %v306_v4  ;;  %v308_v5 = vld [vmem:[%s1286_s26 + $0x60] sm:$0xff] }
  0x2c   : > { %v310_v6 = vld [vmem:[%s1286_s26 + $0x80] sm:$0xff]  ;;  %309 = vst [vmem:[%s1291_s30 + $0x18] sm:$0xff] %v308_v5 }
  0x2d   : > { %v312_v7 = vld [vmem:[%s1286_s26 + $0xa0] sm:$0xff]  ;;  %311 = vst [vmem:[%s1291_s30 + $0x20] sm:$0xff] %v310_v6 }
  0x2e   : > { %313 = vst [vmem:[%s1291_s30 + $0x28] sm:$0xff] %v312_v7  ;;  %v314_v8 = vld [vmem:[%s1286_s26 + $0xc0] sm:$0xff] }
  0x2f   : > { %v316_v9 = vld [vmem:[%s1286_s26 + $0xe0] sm:$0xff]  ;;  %315 = vst [vmem:[%s1291_s30 + $0x30] sm:$0xff] %v314_v8 }
  0x30   : > { %v318_v10 = vld [vmem:[%s1286_s26 + $0x100] sm:$0xff]  ;;  %317 = vst [vmem:[%s1291_s30 + $0x38] sm:$0xff] %v316_v9 }
  0x31   : > { %319 = vst [vmem:[%s1291_s30 + $0x40] sm:$0xff] %v318_v10  ;;  %v320_v11 = vld [vmem:[%s1286_s26 + $0x120] sm:$0xff] }
  0x32   : > { %v322_v12 = vld [vmem:[%s1286_s26 + $0x140] sm:$0xff]  ;;  %321 = vst [vmem:[%s1291_s30 + $0x48] sm:$0xff] %v320_v11 }
  0x33   : > { %v324_v13 = vld [vmem:[%s1286_s26 + $0x160] sm:$0xff]  ;;  %323 = vst [vmem:[%s1291_s30 + $0x50] sm:$0xff] %v322_v12 }
  0x34   : > { %325 = vst [vmem:[%s1291_s30 + $0x58] sm:$0xff] %v324_v13  ;;  %v326_v14 = vld [vmem:[%s1286_s26 + $0x180] sm:$0xff] }
  0x35   : > { %v328_v15 = vld [vmem:[%s1286_s26 + $0x1a0] sm:$0xff]  ;;  %327 = vst [vmem:[%s1291_s30 + $0x60] sm:$0xff] %v326_v14 }
  0x36   : > { %v330_v16 = vld [vmem:[%s1286_s26 + $0x1c0] sm:$0xff]  ;;  %329 = vst [vmem:[%s1291_s30 + $0x68] sm:$0xff] %v328_v15 }
  0x37   : > { %331 = vst [vmem:[%s1291_s30 + $0x70] sm:$0xff] %v330_v16  ;;  %v332_v17 = vld [vmem:[%s1286_s26 + $0x1e0] sm:$0xff] }
  0x38   : > { %v334_v18 = vld [vmem:[%s1286_s26 + $0x200] sm:$0xff]  ;;  %333 = vst [vmem:[%s1291_s30 + $0x78] sm:$0xff] %v332_v17 }
  0x39   : > { %v336_v19 = vld [vmem:[%s1286_s26 + $0x220] sm:$0xff]  ;;  %335 = vst [vmem:[%s1291_s30 + $0x80] sm:$0xff] %v334_v18 }
  0x3a   : > { %337 = vst [vmem:[%s1291_s30 + $0x88] sm:$0xff] %v336_v19  ;;  %v338_v20 = vld [vmem:[%s1286_s26 + $0x240] sm:$0xff] }
  0x3b   : > { %v340_v21 = vld [vmem:[%s1286_s26 + $0x260] sm:$0xff]  ;;  %339 = vst [vmem:[%s1291_s30 + $0x90] sm:$0xff] %v338_v20 }
  0x3c   : > { %v342_v22 = vld [vmem:[%s1286_s26 + $0x280] sm:$0xff]  ;;  %341 = vst [vmem:[%s1291_s30 + $0x98] sm:$0xff] %v340_v21 }
  0x3d   : > { %343 = vst [vmem:[%s1291_s30 + $0xa0] sm:$0xff] %v342_v22  ;;  %v344_v23 = vld [vmem:[%s1286_s26 + $0x2a0] sm:$0xff] }
  0x3e   : > { %v346_v24 = vld [vmem:[%s1286_s26 + $0x2c0] sm:$0xff]  ;;  %345 = vst [vmem:[%s1291_s30 + $0xa8] sm:$0xff] %v344_v23 }
  0x3f   : > { %v348_v25 = vld [vmem:[%s1286_s26 + $0x2e0] sm:$0xff]  ;;  %347 = vst [vmem:[%s1291_s30 + $0xb0] sm:$0xff] %v346_v24 }
  0x40   : > { %349 = vst [vmem:[%s1291_s30 + $0xb8] sm:$0xff] %v348_v25  ;;  %v350_v26 = vld [vmem:[%s1286_s26 + $0x300] sm:$0xff] }
  0x41   : > { %v352_v27 = vld [vmem:[%s1286_s26 + $0x320] sm:$0xff]  ;;  %351 = vst [vmem:[%s1291_s30 + $0xc0] sm:$0xff] %v350_v26 }
  0x42   : > { %v354_v28 = vld [vmem:[%s1286_s26 + $0x340] sm:$0xff]  ;;  %353 = vst [vmem:[%s1291_s30 + $0xc8] sm:$0xff] %v352_v27 }
  0x43   : > { %355 = vst [vmem:[%s1291_s30 + $0xd0] sm:$0xff] %v354_v28  ;;  %v356_v29 = vld [vmem:[%s1286_s26 + $0x360] sm:$0xff] }
  0x44   : > { %v358_v30 = vld [vmem:[%s1286_s26 + $0x380] sm:$0xff]  ;;  %357 = vst [vmem:[%s1291_s30 + $0xd8] sm:$0xff] %v356_v29 }
  0x45   : > { %v360_v31 = vld [vmem:[%s1286_s26 + $0x3a0] sm:$0xff]  ;;  %359 = vst [vmem:[%s1291_s30 + $0xe0] sm:$0xff] %v358_v30 }
  0x46   : > { %361 = vst [vmem:[%s1291_s30 + $0xe8] sm:$0xff] %v360_v31  ;;  %v362_v32 = vld [vmem:[%s1286_s26 + $0x3c0] sm:$0xff] }
  0x47   : > { %v364_v33 = vld [vmem:[%s1286_s26 + $0x3e0] sm:$0xff]  ;;  %363 = vst [vmem:[%s1291_s30 + $0xf0] sm:$0xff] %v362_v32 }
  0x48   : > { %365 = vst [vmem:[%s1291_s30 + $0xf8] sm:$0xff] %v364_v33 }
  0x49 PF: > { %p876_p0 = scmp.ge.s32.totalorder %s1154_s19, 1  ;;  %p370_p1 = scmp.lt.s32.totalorder %s1154_s19, 9 }
  0x4b   : > { %p371_p2 = pnand %p876_p0, %p370_p1 }
  0x4c   : > { %s377_s21 = sand.u32 (!%p371_p2), 1, %s1130_s13   ;;  %s384_s22 = sand.u32 (!%p371_p2), 1, %s1122_s11  }
  0x4d   : > { %374 = sbr.rel (%p371_p2) target bundleno = 376 (0x178), region = 96  ;;  %s1358_s23 = sshll.u32 (!%p371_p2), %s377_s21, 4 }
  0x4e   : > { %s878_s28 = sshll.u32 (!%p371_p2), %s384_s22, 8  ;;  %s405_s20 = sand.u32 (!%p371_p2), 1, %s1114_s9  }
  0x4f   : > { %s879_s25 = sshll.u32 (!%p371_p2), %s405_s20, 4  ;;  %s379_s29 = scalar_lea.vmem (!%p371_p2), [#allocation3], %s1358_s23 }
  0x50   : > { %s1362_s3 = scalar_lea.vmem (!%p371_p2), [#allocation4], %s878_s28  ;;  %s1364_s7 = scalar_lea.vmem (!%p371_p2), [#allocation5], %s879_s25 }
  0x51   : > { %p880_p3 = scmp.ne.s32.totalorder (!%p371_p2), %s1138_s15, 0 }
  0x53   : > { %419 = sbr.rel (%p880_p3) target bundleno = 91 (0x5b), region = 108 }
  0x58   : > { %v1156_v34 = vmov 0.0  }
  0x59   : > { %420 = vst [vmem:[#allocation2 + $0x10] sm:$0xff] %v1156_v34  ;;  %421 = vst [vmem:[#allocation2] sm:$0xff] %v1156_v34 }
  0x5a   : > { %422 = vst [vmem:[#allocation2 + $0x18] sm:$0xff] %v1156_v34  ;;  %423 = vst [vmem:[#allocation2 + $0x8] sm:$0xff] %v1156_v34 }
  0x5b PF: > { %v1017_v35 = vld [vmem:[%s1362_s3 + $0x74] ss:$8 sps:$4 sm:$0xff]   ;;  %v1019_v36 = vld [vmem:[%s1362_s3 + $0x70] ss:$8 sps:$4 sm:$0xff]   ;;  %v1020_v37 = vld [vmem:[%s1362_s3 + $0x64] ss:$8 sps:$4 sm:$0xff]  }
  0x5c   : > { %632 = vmatprep.subr.bf16.mxu0 %v1017_v35  ;;  %v1022_v38 = vld [vmem:[%s1362_s3 + $0x60] ss:$8 sps:$4 sm:$0xff]   ;;  %v1023_v39 = vld [vmem:[%s1362_s3 + $0x54] ss:$8 sps:$4 sm:$0xff]   ;;  %v1025_v40 = vld [vmem:[%s1362_s3 + $0x50] ss:$8 sps:$4 sm:$0xff]  }
  0x5d   : > { %633 = vmatpush1.bf16.msra.mxu0 %v1019_v36  ;;  %v1026_v41 = vld [vmem:[%s1362_s3 + $0x44] ss:$8 sps:$4 sm:$0xff]   ;;  %v1028_v42 = vld [vmem:[%s1362_s3 + $0x40] ss:$8 sps:$4 sm:$0xff]   ;;  %v1029_v43 = vld [vmem:[%s1362_s3 + $0x34] ss:$8 sps:$4 sm:$0xff]  }
  0x5e   : > { %634 = vmatprep.subr.bf16.mxu0 %v1020_v37  ;;  %v1031_v44 = vld [vmem:[%s1362_s3 + $0x30] ss:$8 sps:$4 sm:$0xff]   ;;  %v1032_v45 = vld [vmem:[%s1362_s3 + $0x24] ss:$8 sps:$4 sm:$0xff]   ;;  %v1034_v46 = vld [vmem:[%s1362_s3 + $0x20] ss:$8 sps:$4 sm:$0xff]  }
  0x5f   : > { %v1035_v47 = vld [vmem:[%s1362_s3 + $0x14] ss:$8 sps:$4 sm:$0xff]   ;;  %v1037_v49 = vld [vmem:[%s1362_s3 + $0x10] ss:$8 sps:$4 sm:$0xff]   ;;  %v1038_v50 = vld [vmem:[%s1362_s3 + $0x4] ss:$8 sps:$4 sm:$0xff]  }
  0x60   : > { %v1067_v48 = vld [vmem:[%s379_s29 + $0x4] ss:$8 sps:$4 sm:$0xff]   ;;  %v1040_v51 = vld [vmem:[%s1362_s3] ss:$8 sps:$4 sm:$0xff]   ;;  %v1043_v53 = vld [vmem:[%s1362_s3 + $0xf0] ss:$8 sps:$4 sm:$0xff]  }
  0x61   : > { %635 = vmatpush1.bf16.msra.mxu0 %v1022_v38  ;;  %664 = vmatprep.mubr.bf16.mxu0 %v1067_v48  ;;  %v1041_v52 = vld [vmem:[%s1362_s3 + $0xf4] ss:$8 sps:$4 sm:$0xff]   ;;  %v1044_v54 = vld [vmem:[%s1362_s3 + $0xe4] ss:$8 sps:$4 sm:$0xff]   ;;  %v1046_v55 = vld [vmem:[%s1362_s3 + $0xe0] ss:$8 sps:$4 sm:$0xff]  }
  0x62   : > { %636 = vmatprep.subr.bf16.mxu0 %v1023_v39  ;;  %v1047_v56 = vld [vmem:[%s1362_s3 + $0xd4] ss:$8 sps:$4 sm:$0xff]   ;;  %v1049_v57 = vld [vmem:[%s1362_s3 + $0xd0] ss:$8 sps:$4 sm:$0xff]   ;;  %v1050_v58 = vld [vmem:[%s1362_s3 + $0xc4] ss:$8 sps:$4 sm:$0xff]  }
  0x63   : > { %v1052_v59 = vld [vmem:[%s1362_s3 + $0xc0] ss:$8 sps:$4 sm:$0xff]   ;;  %v1053_v60 = vld [vmem:[%s1362_s3 + $0xb4] ss:$8 sps:$4 sm:$0xff]   ;;  %v1055_v61 = vld [vmem:[%s1362_s3 + $0xb0] ss:$8 sps:$4 sm:$0xff]  }
  0x64   : > { %v1056_v62 = vld [vmem:[%s1362_s3 + $0xa4] ss:$8 sps:$4 sm:$0xff]   ;;  %v1058_v63 = vld [vmem:[%s1362_s3 + $0xa0] ss:$8 sps:$4 sm:$0xff]   ;;  %v1059_v0 = vld [vmem:[%s1362_s3 + $0x94] ss:$8 sps:$4 sm:$0xff]  }
  0x65   : > { %637 = vmatpush1.bf16.msra.mxu0 %v1025_v40  ;;  %v1061_v1 = vld [vmem:[%s1362_s3 + $0x90] ss:$8 sps:$4 sm:$0xff]   ;;  %v1062_v2 = vld [vmem:[%s1362_s3 + $0x84] ss:$8 sps:$4 sm:$0xff]   ;;  %v1064_v3 = vld [vmem:[%s1362_s3 + $0x80] ss:$8 sps:$4 sm:$0xff]  }
  0x66   : > { %638 = vmatprep.subr.bf16.mxu0 %v1026_v41  ;;  %v1065_v4 = vld [vmem:[%s379_s29] ss:$8 sps:$4 sm:$0xff]   ;;  %p915_p4 = scmp.ne.s32.totalorder %s1138_s15, 1 }
  0x67   : > { %v424_v5 = vld [vmem:[#allocation2 + $0x10] sm:$0xff]  ;;  %v425_v7 = vld [vmem:[#allocation2] sm:$0xff]  ;;  %v426_v10 = vld [vmem:[#allocation2 + $0x18] sm:$0xff] }
  0x68   : > { %v427_v13 = vld [vmem:[#allocation2 + $0x8] sm:$0xff] }
  0x69   : > { %639 = vmatpush1.bf16.msra.mxu0 %v1028_v42 }
  0x6a   : > { %640 = vmatprep.subr.bf16.mxu0 %v1029_v43 }
  0x6d   : > { %641 = vmatpush1.bf16.msra.mxu0 %v1031_v44 }
  0x6e   : > { %642 = vmatprep.subr.bf16.mxu0 %v1032_v45 }
  0x71   : > { %643 = vmatpush1.bf16.msra.mxu0 %v1034_v46 }
  0x72   : > { %644 = vmatprep.subr.bf16.mxu0 %v1035_v47 }
  0x75   : > { %645 = vmatpush1.bf16.msra.mxu0 %v1037_v49 }
  0x76   : > { %646 = vmatprep.subr.bf16.mxu0 %v1038_v50 }
  0x79   : > { %647 = vmatpush1.bf16.msra.mxu0 %v1040_v51 }
  0x7a   : > { %648 = vmatprep.subr.bf16.mxu0 %v1041_v52 }
  0x7d   : > { %649 = vmatpush2.bf16.msra.mxu0 %v1043_v53 }
  0x7e   : > { %650 = vmatprep.subr.bf16.mxu0 %v1044_v54 }
  0x81   : > { %651 = vmatpush2.bf16.msra.mxu0 %v1046_v55 }
  0x82   : > { %652 = vmatprep.subr.bf16.mxu0 %v1047_v56 }
  0x85   : > { %653 = vmatpush2.bf16.msra.mxu0 %v1049_v57 }
  0x86   : > { %654 = vmatprep.subr.bf16.mxu0 %v1050_v58 }
  0x89   : > { %655 = vmatpush2.bf16.msra.mxu0 %v1052_v59 }
  0x8a   : > { %656 = vmatprep.subr.bf16.mxu0 %v1053_v60 }
  0x8d   : > { %657 = vmatpush2.bf16.msra.mxu0 %v1055_v61 }
  0x8e   : > { %658 = vmatprep.subr.bf16.mxu0 %v1056_v62 }
  0x91   : > { %659 = vmatpush2.bf16.msra.mxu0 %v1058_v63 }
  0x92   : > { %660 = vmatprep.subr.bf16.mxu0 %v1059_v0 }
  0x95   : > { %661 = vmatpush2.bf16.msra.mxu0 %v1061_v1 }
  0x96   : > { %662 = vmatprep.subr.bf16.mxu0 %v1062_v2 }
  0x99   : > { %663 = vmatpush2.bf16.msra.mxu0 %v1064_v3 }
  0x9c   : > { %665 = vmatmul.mubr.bf16.vlgmr.msra.gmra.mxu0 %v1065_v4 }
 0x15c   : > { %v666_v6 = vpop.f32.mrf.mxu0 }
 0x15d   : > { %v675_v8 = vadd.f32 %v666_v6, %v424_v5 }
 0x15e   : > { %v668_v9 = vpop.f32.mrf.mxu0 }
 0x15f   : > { %679 = vst [vmem:[#allocation2 + $0x10] sm:$0xff] %v675_v8  ;;  %v676_v11 = vadd.f32 %v668_v9, %v425_v7 }
 0x160   : > { %v670_v12 = vpop.f32.mrf.mxu0 }
 0x161   : > { %680 = vst [vmem:[#allocation2] sm:$0xff] %v676_v11  ;;  %v677_v14 = vadd.f32 %v670_v12, %v426_v10  ;;  %686 = sbr.rel (%p915_p4) target bundleno = 368 (0x170), region = 112 }
 0x162   : > { %v672_v15 = vpop.f32.mrf.mxu0 }
 0x163   : > { %681 = vst [vmem:[#allocation2 + $0x18] sm:$0xff] %v677_v14  ;;  %v678_v16 = vadd.f32 %v672_v15, %v427_v13 }
 0x165   : > { %682 = vst [vmem:[#allocation2 + $0x8] sm:$0xff] %v678_v16 }
 0x166   : > { %v687_v17 = vld [vmem:[#allocation2 + $0x10] sm:$0xff] }
 0x168   : > { %v688_v18 = vld [vmem:[#allocation2] sm:$0xff] }
 0x169   : > { %v925_v20 = vpack.c.bf16 %v688_v18, %v687_v17 }
 0x16a   : > { %v689_v19 = vld [vmem:[#allocation2 + $0x18] sm:$0xff] }
 0x16b   : > { %703 = vst [vmem:[%s1364_s7] sm:$0xff] %v925_v20 }
 0x16c   : > { %v690_v21 = vld [vmem:[#allocation2 + $0x8] sm:$0xff] }
 0x16d   : > { %v926_v22 = vpack.c.bf16 %v690_v21, %v689_v19 }
 0x16f   : > { %704 = vst [vmem:[%s1364_s7 + $0x8] sm:$0xff] %v926_v22 }
 0x170 PF: > { %711 = sbr.rel (!%p1266_p12) target bundleno = 376 (0x178), region = 116  ;;  %s927_s9 = sshll.u32 (%p1266_p12), %s1142_s16, 3 }
 0x171   : > { %s719_s15 = scalar_lea.vmem (%p1266_p12), %s1449_s2, %s927_s9 }
 0x172   : > { %v750_v23 = vld [vmem:[%s1364_s7] sm:$0xff] (%p1266_p12) }
 0x173   : > { %751 = vst [vmem:[%s719_s15] sm:$0xff] (%p1266_p12), %v750_v23 }
 0x176   : > { %v752_v24 = vld [vmem:[%s1364_s7 + $0x8] sm:$0xff] }
 0x177   : > { %753 = vst [vmem:[%s719_s15 + $0x20] sm:$0xff] %v752_v24 }
 0x178 PF: > { %s12_s19 = sadd.s32 1, %s1154_s19   ;;  %s1457_s6 = sld [smem:[#allocation6_spill]] }
 0x179   : > { %p9_p5 = scmp.ge.s32.totalorder %s12_s19, 10   ;;  %s1458_s24 = sld [smem:[#allocation7_spill]] }
 0x17a   : > { %s1459_s9 = smov %s1118_s10  ;;  %s1460_s10 = smov %s1264_s5 }
 0x17b   : > { %s1461_s11 = smov %s1126_s12  ;;  %s1462_s12 = smov %s1261_s4 }
 0x17c   : > { %s1463_s13 = smov %s1134_s14  ;;  %s1464_s14 = smov %s1247_s27 }
 0x17d   : > { %s1465_s15 = smov %s1146_s17  ;;  %s1466_s16 = smov %s1150_s18 }
 0x17e   : > { %s1467_s17 = smov %s1457_s6  ;;  %11 = sbr.rel (!%p9_p5) target bundleno = 6 (0x6), region = 193 }
 0x17f   : > { %s1468_s18 = smov %s1458_s24 }

</bundles_post_ra>
